<compile_context>
chip_gen: v7x
topology: tpu7x:2x2x1
jax: 0.10.0
libtpu: 0.0.40
codegen_flags: <defaults>
</compile_context>

<pallas_src>
import math

import jax
import jax.numpy as jnp
from jax.experimental import pallas as pl
from jax.experimental.pallas import tpu as pltpu

EPS = 1e-5

_CPARAMS = pltpu.CompilerParams(
    dimension_semantics=("parallel",),
    vmem_limit_bytes=16 * 1024 * 1024,
)


def _leaky(x):
    # Reference module uses negative_slope=0.2 explicitly.
    return jnp.where(x >= 0, x, 0.2 * x)


# ----------------------------- Pallas kernels ------------------------------------

def _block_kernel(p_ref, w1_ref, s1_ref, b1_ref, w2_ref, s2_ref, b2_ref, o_ref):
    """conv(3x3 at stride-2 positions) -> BN -> relu -> 1x1 ds -> BN -> leaky."""
    h = jnp.dot(p_ref[...], w1_ref[...], preferred_element_type=jnp.float32)
    h = jnp.maximum(h * s1_ref[...] + b1_ref[...], 0.0)
    h2 = jnp.dot(h.astype(w2_ref.dtype), w2_ref[...],
                 preferred_element_type=jnp.float32)
    o_ref[...] = _leaky(h2 * s2_ref[...] + b2_ref[...]).astype(o_ref.dtype)


def _skip_block_kernel(p_ref, id_ref, w1_ref, s1_ref, b1_ref,
                       w2_ref, wid_ref, b2_ref, o_ref):
    """Block 1: conv -> BN -> relu -> 1x1 ds (+ 1x1 ds of identity) -> leaky."""
    h = jnp.dot(p_ref[...], w1_ref[...], preferred_element_type=jnp.float32)
    h = jnp.maximum(h * s1_ref[...] + b1_ref[...], 0.0)
    h2 = jnp.dot(h.astype(w2_ref.dtype), w2_ref[...],
                 preferred_element_type=jnp.float32)
    h2 = h2 + jnp.dot(id_ref[...], wid_ref[...], preferred_element_type=jnp.float32)
    o_ref[...] = _leaky(h2 + b2_ref[...]).astype(o_ref.dtype)


def _head_kernel(p_ref, w5_ref, s5_ref, b5_ref, wft_ref, bf_ref, o_ref):
    """blk5 conv (Cout=1, weight lane-padded to 128) -> BN -> relu
       -> Linear(16,1) -> mean over batch (1/B folded into wft)."""
    h = jnp.dot(p_ref[...], w5_ref[...], preferred_element_type=jnp.float32)[:, 0:1]
    h = jnp.maximum(h * s5_ref[...] + b5_ref[...], 0.0)          # (B*16, 1)
    contrib = h * wft_ref[...]                                   # (B*16, 1)
    o_ref[...] = jnp.sum(contrib, axis=0, keepdims=True) + bf_ref[...]


# ----------------------------- pallas_call wrappers -------------------------------

def _row_tile(m, target=256, floor=32):
    """Row-tile size: (8)-aligned, aims for >=4 grid steps, capped at `target`."""
    t = min(target, max(floor, m // 4))
    t = max(8, (t // 8) * 8)
    if m <= t:
        return m
    while t > 8 and m % t:
        t -= 8
    return t if m % t == 0 else m


def fused_block(patches, w1, s1, b1, w2, s2, b2):
    M, K = patches.shape
    Cmid = w1.shape[1]
    Cout = w2.shape[1]
    tm = _row_tile(M)
    return pl.pallas_call(
        _block_kernel,
        out_shape=jax.ShapeDtypeStruct((M, Cout), jnp.float32),
        grid=(M // tm,),
        in_specs=[
            pl.BlockSpec((tm, K), lambda i: (i, 0)),
            pl.BlockSpec((K, Cmid), lambda i: (0, 0)),
            pl.BlockSpec((1, Cmid), lambda i: (0, 0)),
            pl.BlockSpec((1, Cmid), lambda i: (0, 0)),
            pl.BlockSpec((Cmid, Cout), lambda i: (0, 0)),
            pl.BlockSpec((1, Cout), lambda i: (0, 0)),
            pl.BlockSpec((1, Cout), lambda i: (0, 0)),
        ],
        out_specs=pl.BlockSpec((tm, Cout), lambda i: (i, 0)),
        compiler_params=_CPARAMS,
    )(patches, w1, s1, b1, w2, s2, b2)


def fused_skip_block(patches, ident, w1, s1, b1, w2, wid, b2):
    M, K = patches.shape
    Kid = ident.shape[1]
    Cmid = w1.shape[1]
    Cout = w2.shape[1]
    tm = _row_tile(M)
    return pl.pallas_call(
        _skip_block_kernel,
        out_shape=jax.ShapeDtypeStruct((M, Cout), jnp.float32),
        grid=(M // tm,),
        in_specs=[
            pl.BlockSpec((tm, K), lambda i: (i, 0)),
            pl.BlockSpec((tm, Kid), lambda i: (i, 0)),
            pl.BlockSpec((K, Cmid), lambda i: (0, 0)),
            pl.BlockSpec((1, Cmid), lambda i: (0, 0)),
            pl.BlockSpec((1, Cmid), lambda i: (0, 0)),
            pl.BlockSpec((Cmid, Cout), lambda i: (0, 0)),
            pl.BlockSpec((Kid, Cout), lambda i: (0, 0)),
            pl.BlockSpec((1, Cout), lambda i: (0, 0)),
        ],
        out_specs=pl.BlockSpec((tm, Cout), lambda i: (i, 0)),
        compiler_params=_CPARAMS,
    )(patches, ident, w1, s1, b1, w2, wid, b2)


def head(patches5, w5pad, s5, b5, wft, bf):
    R, K5 = patches5.shape
    return pl.pallas_call(
        _head_kernel,
        out_shape=jax.ShapeDtypeStruct((1, 1), jnp.float32),
        in_specs=[
            pl.BlockSpec((R, K5), lambda: (0, 0)),
            pl.BlockSpec((K5, 128), lambda: (0, 0)),
            pl.BlockSpec((1, 1), lambda: (0, 0)),
            pl.BlockSpec((1, 1), lambda: (0, 0)),
            pl.BlockSpec((R, 1), lambda: (0, 0)),
            pl.BlockSpec((1, 1), lambda: (0, 0)),
        ],
        out_specs=pl.BlockSpec((1, 1), lambda: (0, 0)),
    )(patches5, w5pad, s5, b5, wft, bf)


# ----------------------------- JAX glue ------------------------------------------

def im2col_3x3_stride2(x):
    """3x3 pad-1 patches ONLY at stride-2 output positions.
    x: (B,H,W,C) -> (B*(H//2)*(W//2), 9*C); tap (dy,dx) row-major, channel minor."""
    B, H, W, C = x.shape
    Ho, Wo = H // 2, W // 2
    xp = jnp.pad(x, ((0, 0), (1, 1), (1, 1), (0, 0)))
    cols = [xp[:, dy:dy + H:2, dx:dx + W:2, :] for dy in range(3) for dx in range(3)]
    return jnp.concatenate(cols, axis=-1).reshape(B * Ho * Wo, 9 * C)


def im2col_3x3(x):
    """Stride-1 3x3 pad-1 patches: (B,H,W,C) -> (B*H*W, 9*C)."""
    B, H, W, C = x.shape
    xp = jnp.pad(x, ((0, 0), (1, 1), (1, 1), (0, 0)))
    cols = [xp[:, dy:dy + H, dx:dx + W, :] for dy in range(3) for dx in range(3)]
    return jnp.concatenate(cols, axis=-1).reshape(B * H * W, 9 * C)


def _uniform(key, shape, fan_in):
    bound = 1.0 / math.sqrt(fan_in)
    return jax.random.uniform(key, shape, jnp.float32, -bound, bound)


def _bn_params(ch):
    # fresh nn.BatchNorm2d: gamma=1, beta=0, running_mean=0, running_var=1
    return (jnp.ones((ch,), jnp.float32), jnp.zeros((ch,), jnp.float32),
            jnp.zeros((ch,), jnp.float32), jnp.ones((ch,), jnp.float32))


def _bn_affine(pre_bias, bn):
    """Fold (conv-bias -> BatchNorm) into a per-channel (scale, bias) affine."""
    gamma, beta, mean, var = bn
    scale = gamma / jnp.sqrt(var + EPS)
    bias = scale * (pre_bias - mean) + beta
    return scale[None, :].astype(jnp.float32), bias[None, :].astype(jnp.float32)


def init_params(seed=0):
    key = jax.random.PRNGKey(seed)
    keys = iter(jax.random.split(key, 64))
    p = {}

    def block(in_ch, out_ch):
        w1 = _uniform(next(keys), (3, 3, in_ch, out_ch), 9 * in_ch)   # HWIO
        return {
            "w1m": w1.reshape(9 * in_ch, out_ch).astype(jnp.bfloat16),
            "b1": _uniform(next(keys), (out_ch,), 9 * in_ch),
            "bn_blk": _bn_params(out_ch),
            "w_ds1": _uniform(next(keys), (in_ch, out_ch), in_ch).astype(jnp.bfloat16),
            "b_ds1": _uniform(next(keys), (out_ch,), in_ch),
            "w_ds2": _uniform(next(keys), (out_ch, out_ch), out_ch).astype(jnp.bfloat16),
            "b_ds2": _uniform(next(keys), (out_ch,), out_ch),
        }

    p["blk1"] = block(3, 64)      # conv_in   (downsample=True, skip=True)
    p["blk2"] = block(64, 128)    # conv_in2  (downsample=True, skip=False)
    p["blk3"] = block(128, 256)   # conv_in3
    p["blk4"] = block(256, 512)   # conv_in4
    p["blk5"] = block(512, 1)     # conv_in5  (downsample=False, skip=False)
    p["bn1"] = _bn_params(128)
    p["bn2"] = _bn_params(256)
    p["bn3"] = _bn_params(512)
    p["w_final"] = _uniform(next(keys), (16, 1), 16)
    p["b_final"] = _uniform(next(keys), (1, 1), 16)
    return p


def critic_cg1_forward(params, x_nchw):
    x = jnp.transpose(x_nchw, (0, 2, 3, 1)).astype(jnp.float32)   # NCHW -> NHWC
    B, H, W, _ = x.shape

    # ---- conv_in: SkipBlockDN(3, 64, downsample=True, skip=True) + leaky ----
    p = params["blk1"]
    s1, b1 = _bn_affine(p["b1"], p["bn_blk"])
    patches = im2col_3x3_stride2(x).astype(jnp.bfloat16)                  # (B*32*32, 27)
    ident = x[:, ::2, ::2, :].reshape(B * (H // 2) * (W // 2), 3).astype(jnp.bfloat16)
    bias_total = (p["b_ds2"] + p["b_ds1"])[None, :].astype(jnp.float32)
    h = fused_skip_block(patches, ident, p["w1m"], s1, b1,
                         p["w_ds2"], p["w_ds1"], bias_total)
    H, W = H // 2, W // 2
    x = h.reshape(B, H, W, 64)

    # ---- conv_in2..conv_in4 (no skip) + critic-level BN + leaky ----
    for name, bn_name, cout in (("blk2", "bn1", 128),
                                ("blk3", "bn2", 256),
                                ("blk4", "bn3", 512)):
        p = params[name]
        s1, b1 = _bn_affine(p["b1"], p["bn_blk"])
        s2, b2 = _bn_affine(p["b_ds2"], params[bn_name])
        patches = im2col_3x3_stride2(x).astype(jnp.bfloat16)
        h = fused_block(patches, p["w1m"], s1, b1, p["w_ds2"], s2, b2)
        H, W = H // 2, W // 2
        x = h.reshape(B, H, W, cout)

    # ---- conv_in5 (512->1, stride 1) + view(-1,16) + Linear(16,1) + batch mean ----
    p = params["blk5"]
    s5, b5 = _bn_affine(p["b1"], p["bn_blk"])           # scalars (out_ch == 1)
    patches5 = im2col_3x3(x).astype(jnp.bfloat16)       # (B*16, 4608)
    w5pad = jnp.pad(p["w1m"], ((0, 0), (0, 127)))       # (4608, 128), only col 0 real
    wft = jnp.tile(params["w_final"], (B, 1)) / B       # (B*16, 1); folds the 1/B mean
    out = head(patches5, w5pad, s5, b5, wft, params["b_final"])   # (1, 1)
    return out.reshape(1)


if __name__ == "__main__":
    # Spatial size must be 64x64 so the final 1-channel map flattens to 16 per sample
    # (as required by `x.view(-1, 16)` / nn.Linear(16, 1) in the reference module).
    key = jax.random.PRNGKey(0)
    x = jax.random.normal(key, (2, 3, 64, 64), jnp.float32)   # NCHW, like the torch module
    params = init_params(seed=0)
    fwd = jax.jit(critic_cg1_forward)
    y = jax.block_until_ready(fwd(params, x))
    assert y.shape == (1,) and y.dtype == jnp.float32
    print("KERNEL_OK")
</pallas_src>

<mosaic_0001>
module attributes {stable_mosaic.version = 11 : i64} {
  func.func @_skip_block_kernel(%arg0: i32, %arg1: memref<256x27xbf16, #tpu.memory_space<vmem>>, %arg2: memref<256x3xbf16, #tpu.memory_space<vmem>>, %arg3: memref<27x64xbf16, #tpu.memory_space<vmem>>, %arg4: memref<1x64xf32, #tpu.memory_space<vmem>>, %arg5: memref<1x64xf32, #tpu.memory_space<vmem>>, %arg6: memref<64x64xbf16, #tpu.memory_space<vmem>>, %arg7: memref<3x64xbf16, #tpu.memory_space<vmem>>, %arg8: memref<1x64xf32, #tpu.memory_space<vmem>>, %arg9: memref<256x64xf32, #tpu.memory_space<vmem>>) attributes {dimension_semantics = [#tpu.dimension_semantics<parallel>], iteration_bounds = array<i64: 8>, scalar_prefetch = 0 : i64, scratch_operands = 0 : i64, tpu.core_type = #tpu.core_type<tc>, window_params = [{transform_indices = @transform_0, window_bounds = array<i64: 256, 27>}, {transform_indices = @transform_1, window_bounds = array<i64: 256, 3>}, {pipeline_mode = #tpu.pipeline_mode<synchronous>, transform_indices = @transform_2, window_bounds = array<i64: 27, 64>}, {pipeline_mode = #tpu.pipeline_mode<synchronous>, transform_indices = @transform_3, window_bounds = array<i64: 1, 64>}, {pipeline_mode = #tpu.pipeline_mode<synchronous>, transform_indices = @transform_4, window_bounds = array<i64: 1, 64>}, {pipeline_mode = #tpu.pipeline_mode<synchronous>, transform_indices = @transform_5, window_bounds = array<i64: 64, 64>}, {pipeline_mode = #tpu.pipeline_mode<synchronous>, transform_indices = @transform_6, window_bounds = array<i64: 3, 64>}, {pipeline_mode = #tpu.pipeline_mode<synchronous>, transform_indices = @transform_7, window_bounds = array<i64: 1, 64>}, {transform_indices = @transform_8, window_bounds = array<i64: 256, 64>}]} {
    %c0 = arith.constant 0 : index
    %c0_0 = arith.constant 0 : index
    %0 = vector.load %arg1[%c0, %c0_0] : memref<256x27xbf16, #tpu.memory_space<vmem>>, vector<256x27xbf16>
    %c0_1 = arith.constant 0 : index
    %c0_2 = arith.constant 0 : index
    %1 = vector.load %arg3[%c0_1, %c0_2] : memref<27x64xbf16, #tpu.memory_space<vmem>>, vector<27x64xbf16>
    %cst = arith.constant dense<0.000000e+00> : vector<256x64xf32>
    %2 = tpu.matmul %0, %1, %cst {dimension_numbers = #tpu.dot_dimension_numbers<[1], [0], [0], [1], [0, 0, 1, 1], [], []>} : vector<256x27xbf16>, vector<27x64xbf16>, vector<256x64xf32> -> vector<256x64xf32>
    %c0_3 = arith.constant 0 : index
    %c0_4 = arith.constant 0 : index
    %3 = vector.load %arg4[%c0_3, %c0_4] : memref<1x64xf32, #tpu.memory_space<vmem>>, vector<1x64xf32>
    %4 = vector.broadcast %3 : vector<1x64xf32> to vector<256x64xf32>
    %5 = arith.mulf %2, %4 : vector<256x64xf32>
    %c0_5 = arith.constant 0 : index
    %c0_6 = arith.constant 0 : index
    %6 = vector.load %arg5[%c0_5, %c0_6] : memref<1x64xf32, #tpu.memory_space<vmem>>, vector<1x64xf32>
    %7 = vector.broadcast %6 : vector<1x64xf32> to vector<256x64xf32>
    %8 = arith.addf %5, %7 : vector<256x64xf32>
    %cst_7 = arith.constant 0.000000e+00 : f32
    %9 = vector.broadcast %cst_7 : f32 to vector<256x64xf32>
    %10 = arith.maximumf %8, %9 : vector<256x64xf32>
    %11 = arith.truncf %10 : vector<256x64xf32> to vector<256x64xbf16>
    %c0_8 = arith.constant 0 : index
    %c0_9 = arith.constant 0 : index
    %12 = vector.load %arg6[%c0_8, %c0_9] : memref<64x64xbf16, #tpu.memory_space<vmem>>, vector<64x64xbf16>
    %cst_10 = arith.constant dense<0.000000e+00> : vector<256x64xf32>
    %13 = tpu.matmul %11, %12, %cst_10 {dimension_numbers = #tpu.dot_dimension_numbers<[1], [0], [0], [1], [0, 0, 1, 1], [], []>} : vector<256x64xbf16>, vector<64x64xbf16>, vector<256x64xf32> -> vector<256x64xf32>
    %c0_11 = arith.constant 0 : index
    %c0_12 = arith.constant 0 : index
    %14 = vector.load %arg2[%c0_11, %c0_12] : memref<256x3xbf16, #tpu.memory_space<vmem>>, vector<256x3xbf16>
    %c0_13 = arith.constant 0 : index
    %c0_14 = arith.constant 0 : index
    %15 = vector.load %arg7[%c0_13, %c0_14] : memref<3x64xbf16, #tpu.memory_space<vmem>>, vector<3x64xbf16>
    %cst_15 = arith.constant dense<0.000000e+00> : vector<256x64xf32>
    %16 = tpu.matmul %14, %15, %cst_15 {dimension_numbers = #tpu.dot_dimension_numbers<[1], [0], [0], [1], [0, 0, 1, 1], [], []>} : vector<256x3xbf16>, vector<3x64xbf16>, vector<256x64xf32> -> vector<256x64xf32>
    %17 = arith.addf %13, %16 : vector<256x64xf32>
    %c0_16 = arith.constant 0 : index
    %c0_17 = arith.constant 0 : index
    %18 = vector.load %arg8[%c0_16, %c0_17] : memref<1x64xf32, #tpu.memory_space<vmem>>, vector<1x64xf32>
    %19 = vector.broadcast %18 : vector<1x64xf32> to vector<256x64xf32>
    %20 = arith.addf %17, %19 : vector<256x64xf32>
    %cst_18 = arith.constant 0.000000e+00 : f32
    %21 = vector.broadcast %cst_18 : f32 to vector<256x64xf32>
    %22 = arith.cmpf oge, %20, %21 : vector<256x64xf32>
    %cst_19 = arith.constant 2.000000e-01 : f32
    %23 = vector.broadcast %cst_19 : f32 to vector<256x64xf32>
    %24 = arith.mulf %23, %20 : vector<256x64xf32>
    %25 = arith.select %22, %20, %24 : vector<256x64xi1>, vector<256x64xf32>
    %c0_20 = arith.constant 0 : index
    %c0_21 = arith.constant 0 : index
    %26 = vector.load %arg9[%c0_20, %c0_21] : memref<256x64xf32, #tpu.memory_space<vmem>>, vector<256x64xf32>
    tpu.vector_store %arg9[%c0_20, %c0_21], %25 {strides = array<i32>} : memref<256x64xf32, #tpu.memory_space<vmem>>, vector<256x64xf32>,
    return
  }
  func.func @transform_0(%arg0: i32) -> (i32, i32) {
    %c0_i32 = arith.constant 0 : i32
    %c0_i32_0 = arith.constant 0 : i32
    return %arg0, %c0_i32 : i32, i32
  }
  func.func @transform_1(%arg0: i32) -> (i32, i32) {
    %c0_i32 = arith.constant 0 : i32
    %c0_i32_0 = arith.constant 0 : i32
    return %arg0, %c0_i32 : i32, i32
  }
  func.func @transform_2(%arg0: i32) -> (i32, i32) {
    %c0_i32 = arith.constant 0 : i32
    %c0_i32_0 = arith.constant 0 : i32
    %c0_i32_1 = arith.constant 0 : i32
    return %c0_i32, %c0_i32_0 : i32, i32
  }
  func.func @transform_3(%arg0: i32) -> (i32, i32) {
    %c0_i32 = arith.constant 0 : i32
    %c0_i32_0 = arith.constant 0 : i32
    %c0_i32_1 = arith.constant 0 : i32
    return %c0_i32, %c0_i32_0 : i32, i32
  }
  func.func @transform_4(%arg0: i32) -> (i32, i32) {
    %c0_i32 = arith.constant 0 : i32
    %c0_i32_0 = arith.constant 0 : i32
    %c0_i32_1 = arith.constant 0 : i32
    return %c0_i32, %c0_i32_0 : i32, i32
  }
  func.func @transform_5(%arg0: i32) -> (i32, i32) {
    %c0_i32 = arith.constant 0 : i32
    %c0_i32_0 = arith.constant 0 : i32
    %c0_i32_1 = arith.constant 0 : i32
    return %c0_i32, %c0_i32_0 : i32, i32
  }
  func.func @transform_6(%arg0: i32) -> (i32, i32) {
    %c0_i32 = arith.constant 0 : i32
    %c0_i32_0 = arith.constant 0 : i32
    %c0_i32_1 = arith.constant 0 : i32
    return %c0_i32, %c0_i32_0 : i32, i32
  }
  func.func @transform_7(%arg0: i32) -> (i32, i32) {
    %c0_i32 = arith.constant 0 : i32
    %c0_i32_0 = arith.constant 0 : i32
    %c0_i32_1 = arith.constant 0 : i32
    return %c0_i32, %c0_i32_0 : i32, i32
  }
  func.func @transform_8(%arg0: i32) -> (i32, i32) {
    %c0_i32 = arith.constant 0 : i32
    %c0_i32_0 = arith.constant 0 : i32
    return %arg0, %c0_i32 : i32, i32
  }
}

module attributes {stable_mosaic.version = 11 : i64} {
  func.func @_block_kernel(%arg0: i32, %arg1: memref<128x576xbf16, #tpu.memory_space<vmem>>, %arg2: memref<576x128xbf16, #tpu.memory_space<vmem>>, %arg3: memref<1x128xf32, #tpu.memory_space<vmem>>, %arg4: memref<1x128xf32, #tpu.memory_space<vmem>>, %arg5: memref<128x128xbf16, #tpu.memory_space<vmem>>, %arg6: memref<1x128xf32, #tpu.memory_space<vmem>>, %arg7: memref<1x128xf32, #tpu.memory_space<vmem>>, %arg8: memref<128x128xf32, #tpu.memory_space<vmem>>) attributes {dimension_semantics = [#tpu.dimension_semantics<parallel>], iteration_bounds = array<i64: 4>, scalar_prefetch = 0 : i64, scratch_operands = 0 : i64, tpu.core_type = #tpu.core_type<tc>, window_params = [{transform_indices = @transform_0, window_bounds = array<i64: 128, 576>}, {pipeline_mode = #tpu.pipeline_mode<synchronous>, transform_indices = @transform_1, window_bounds = array<i64: 576, 128>}, {pipeline_mode = #tpu.pipeline_mode<synchronous>, transform_indices = @transform_2, window_bounds = array<i64: 1, 128>}, {pipeline_mode = #tpu.pipeline_mode<synchronous>, transform_indices = @transform_3, window_bounds = array<i64: 1, 128>}, {pipeline_mode = #tpu.pipeline_mode<synchronous>, transform_indices = @transform_4, window_bounds = array<i64: 128, 128>}, {pipeline_mode = #tpu.pipeline_mode<synchronous>, transform_indices = @transform_5, window_bounds = array<i64: 1, 128>}, {pipeline_mode = #tpu.pipeline_mode<synchronous>, transform_indices = @transform_6, window_bounds = array<i64: 1, 128>}, {transform_indices = @transform_7, window_bounds = array<i64: 128, 128>}]} {
    %c0 = arith.constant 0 : index
    %c0_0 = arith.constant 0 : index
    %0 = vector.load %arg1[%c0, %c0_0] : memref<128x576xbf16, #tpu.memory_space<vmem>>, vector<128x576xbf16>
    %c0_1 = arith.constant 0 : index
    %c0_2 = arith.constant 0 : index
    %1 = vector.load %arg2[%c0_1, %c0_2] : memref<576x128xbf16, #tpu.memory_space<vmem>>, vector<576x128xbf16>
    %cst = arith.constant dense<0.000000e+00> : vector<128x128xf32>
    %2 = tpu.matmul %0, %1, %cst {dimension_numbers = #tpu.dot_dimension_numbers<[1], [0], [0], [1], [0, 0, 1, 1], [], []>} : vector<128x576xbf16>, vector<576x128xbf16>, vector<128x128xf32> -> vector<128x128xf32>
    %c0_3 = arith.constant 0 : index
    %c0_4 = arith.constant 0 : index
    %3 = vector.load %arg3[%c0_3, %c0_4] : memref<1x128xf32, #tpu.memory_space<vmem>>, vector<1x128xf32>
    %4 = vector.broadcast %3 : vector<1x128xf32> to vector<128x128xf32>
    %5 = arith.mulf %2, %4 : vector<128x128xf32>
    %c0_5 = arith.constant 0 : index
    %c0_6 = arith.constant 0 : index
    %6 = vector.load %arg4[%c0_5, %c0_6] : memref<1x128xf32, #tpu.memory_space<vmem>>, vector<1x128xf32>
    %7 = vector.broadcast %6 : vector<1x128xf32> to vector<128x128xf32>
    %8 = arith.addf %5, %7 : vector<128x128xf32>
    %cst_7 = arith.constant 0.000000e+00 : f32
    %9 = vector.broadcast %cst_7 : f32 to vector<128x128xf32>
    %10 = arith.maximumf %8, %9 : vector<128x128xf32>
    %11 = arith.truncf %10 : vector<128x128xf32> to vector<128x128xbf16>
    %c0_8 = arith.constant 0 : index
    %c0_9 = arith.constant 0 : index
    %12 = vector.load %arg5[%c0_8, %c0_9] : memref<128x128xbf16, #tpu.memory_space<vmem>>, vector<128x128xbf16>
    %cst_10 = arith.constant dense<0.000000e+00> : vector<128x128xf32>
    %13 = tpu.matmul %11, %12, %cst_10 {dimension_numbers = #tpu.dot_dimension_numbers<[1], [0], [0], [1], [0, 0, 1, 1], [], []>} : vector<128x128xbf16>, vector<128x128xbf16>, vector<128x128xf32> -> vector<128x128xf32>
    %c0_11 = arith.constant 0 : index
    %c0_12 = arith.constant 0 : index
    %14 = vector.load %arg6[%c0_11, %c0_12] : memref<1x128xf32, #tpu.memory_space<vmem>>, vector<1x128xf32>
    %15 = vector.broadcast %14 : vector<1x128xf32> to vector<128x128xf32>
    %16 = arith.mulf %13, %15 : vector<128x128xf32>
    %c0_13 = arith.constant 0 : index
    %c0_14 = arith.constant 0 : index
    %17 = vector.load %arg7[%c0_13, %c0_14] : memref<1x128xf32, #tpu.memory_space<vmem>>, vector<1x128xf32>
    %18 = vector.broadcast %17 : vector<1x128xf32> to vector<128x128xf32>
    %19 = arith.addf %16, %18 : vector<128x128xf32>
    %cst_15 = arith.constant 0.000000e+00 : f32
    %20 = vector.broadcast %cst_15 : f32 to vector<128x128xf32>
    %21 = arith.cmpf oge, %19, %20 : vector<128x128xf32>
    %cst_16 = arith.constant 2.000000e-01 : f32
    %22 = vector.broadcast %cst_16 : f32 to vector<128x128xf32>
    %23 = arith.mulf %22, %19 : vector<128x128xf32>
    %24 = arith.select %21, %19, %23 : vector<128x128xi1>, vector<128x128xf32>
    %c0_17 = arith.constant 0 : index
    %c0_18 = arith.constant 0 : index
    %25 = vector.load %arg8[%c0_17, %c0_18] : memref<128x128xf32, #tpu.memory_space<vmem>>, vector<128x128xf32>
    tpu.vector_store %arg8[%c0_17, %c0_18], %24 {strides = array<i32>} : memref<128x128xf32, #tpu.memory_space<vmem>>, vector<128x128xf32>,
    return
  }
  func.func @transform_0(%arg0: i32) -> (i32, i32) {
    %c0_i32 = arith.constant 0 : i32
    %c0_i32_0 = arith.constant 0 : i32
    return %arg0, %c0_i32 : i32, i32
  }
  func.func @transform_1(%arg0: i32) -> (i32, i32) {
    %c0_i32 = arith.constant 0 : i32
    %c0_i32_0 = arith.constant 0 : i32
    %c0_i32_1 = arith.constant 0 : i32
    return %c0_i32, %c0_i32_0 : i32, i32
  }
  func.func @transform_2(%arg0: i32) -> (i32, i32) {
    %c0_i32 = arith.constant 0 : i32
    %c0_i32_0 = arith.constant 0 : i32
    %c0_i32_1 = arith.constant 0 : i32
    return %c0_i32, %c0_i32_0 : i32, i32
  }
  func.func @transform_3(%arg0: i32) -> (i32, i32) {
    %c0_i32 = arith.constant 0 : i32
    %c0_i32_0 = arith.constant 0 : i32
    %c0_i32_1 = arith.constant 0 : i32
    return %c0_i32, %c0_i32_0 : i32, i32
  }
  func.func @transform_4(%arg0: i32) -> (i32, i32) {
    %c0_i32 = arith.constant 0 : i32
    %c0_i32_0 = arith.constant 0 : i32
    %c0_i32_1 = arith.constant 0 : i32
    return %c0_i32, %c0_i32_0 : i32, i32
  }
  func.func @transform_5(%arg0: i32) -> (i32, i32) {
    %c0_i32 = arith.constant 0 : i32
    %c0_i32_0 = arith.constant 0 : i32
    %c0_i32_1 = arith.constant 0 : i32
    return %c0_i32, %c0_i32_0 : i32, i32
  }
  func.func @transform_6(%arg0: i32) -> (i32, i32) {
    %c0_i32 = arith.constant 0 : i32
    %c0_i32_0 = arith.constant 0 : i32
    %c0_i32_1 = arith.constant 0 : i32
    return %c0_i32, %c0_i32_0 : i32, i32
  }
  func.func @transform_7(%arg0: i32) -> (i32, i32) {
    %c0_i32 = arith.constant 0 : i32
    %c0_i32_0 = arith.constant 0 : i32
    return %arg0, %c0_i32 : i32, i32
  }
}

module attributes {stable_mosaic.version = 11 : i64} {
  func.func @_block_kernel(%arg0: i32, %arg1: memref<32x1152xbf16, #tpu.memory_space<vmem>>, %arg2: memref<1152x256xbf16, #tpu.memory_space<vmem>>, %arg3: memref<1x256xf32, #tpu.memory_space<vmem>>, %arg4: memref<1x256xf32, #tpu.memory_space<vmem>>, %arg5: memref<256x256xbf16, #tpu.memory_space<vmem>>, %arg6: memref<1x256xf32, #tpu.memory_space<vmem>>, %arg7: memref<1x256xf32, #tpu.memory_space<vmem>>, %arg8: memref<32x256xf32, #tpu.memory_space<vmem>>) attributes {dimension_semantics = [#tpu.dimension_semantics<parallel>], iteration_bounds = array<i64: 4>, scalar_prefetch = 0 : i64, scratch_operands = 0 : i64, tpu.core_type = #tpu.core_type<tc>, window_params = [{transform_indices = @transform_0, window_bounds = array<i64: 32, 1152>}, {pipeline_mode = #tpu.pipeline_mode<synchronous>, transform_indices = @transform_1, window_bounds = array<i64: 1152, 256>}, {pipeline_mode = #tpu.pipeline_mode<synchronous>, transform_indices = @transform_2, window_bounds = array<i64: 1, 256>}, {pipeline_mode = #tpu.pipeline_mode<synchronous>, transform_indices = @transform_3, window_bounds = array<i64: 1, 256>}, {pipeline_mode = #tpu.pipeline_mode<synchronous>, transform_indices = @transform_4, window_bounds = array<i64: 256, 256>}, {pipeline_mode = #tpu.pipeline_mode<synchronous>, transform_indices = @transform_5, window_bounds = array<i64: 1, 256>}, {pipeline_mode = #tpu.pipeline_mode<synchronous>, transform_indices = @transform_6, window_bounds = array<i64: 1, 256>}, {transform_indices = @transform_7, window_bounds = array<i64: 32, 256>}]} {
    %c0 = arith.constant 0 : index
    %c0_0 = arith.constant 0 : index
    %0 = vector.load %arg1[%c0, %c0_0] : memref<32x1152xbf16, #tpu.memory_space<vmem>>, vector<32x1152xbf16>
    %c0_1 = arith.constant 0 : index
    %c0_2 = arith.constant 0 : index
    %1 = vector.load %arg2[%c0_1, %c0_2] : memref<1152x256xbf16, #tpu.memory_space<vmem>>, vector<1152x256xbf16>
    %cst = arith.constant dense<0.000000e+00> : vector<32x256xf32>
    %2 = tpu.matmul %0, %1, %cst {dimension_numbers = #tpu.dot_dimension_numbers<[1], [0], [0], [1], [0, 0, 1, 1], [], []>} : vector<32x1152xbf16>, vector<1152x256xbf16>, vector<32x256xf32> -> vector<32x256xf32>
    %c0_3 = arith.constant 0 : index
    %c0_4 = arith.constant 0 : index
    %3 = vector.load %arg3[%c0_3, %c0_4] : memref<1x256xf32, #tpu.memory_space<vmem>>, vector<1x256xf32>
    %4 = vector.broadcast %3 : vector<1x256xf32> to vector<32x256xf32>
    %5 = arith.mulf %2, %4 : vector<32x256xf32>
    %c0_5 = arith.constant 0 : index
    %c0_6 = arith.constant 0 : index
    %6 = vector.load %arg4[%c0_5, %c0_6] : memref<1x256xf32, #tpu.memory_space<vmem>>, vector<1x256xf32>
    %7 = vector.broadcast %6 : vector<1x256xf32> to vector<32x256xf32>
    %8 = arith.addf %5, %7 : vector<32x256xf32>
    %cst_7 = arith.constant 0.000000e+00 : f32
    %9 = vector.broadcast %cst_7 : f32 to vector<32x256xf32>
    %10 = arith.maximumf %8, %9 : vector<32x256xf32>
    %11 = arith.truncf %10 : vector<32x256xf32> to vector<32x256xbf16>
    %c0_8 = arith.constant 0 : index
    %c0_9 = arith.constant 0 : index
    %12 = vector.load %arg5[%c0_8, %c0_9] : memref<256x256xbf16, #tpu.memory_space<vmem>>, vector<256x256xbf16>
    %cst_10 = arith.constant dense<0.000000e+00> : vector<32x256xf32>
    %13 = tpu.matmul %11, %12, %cst_10 {dimension_numbers = #tpu.dot_dimension_numbers<[1], [0], [0], [1], [0, 0, 1, 1], [], []>} : vector<32x256xbf16>, vector<256x256xbf16>, vector<32x256xf32> -> vector<32x256xf32>
    %c0_11 = arith.constant 0 : index
    %c0_12 = arith.constant 0 : index
    %14 = vector.load %arg6[%c0_11, %c0_12] : memref<1x256xf32, #tpu.memory_space<vmem>>, vector<1x256xf32>
    %15 = vector.broadcast %14 : vector<1x256xf32> to vector<32x256xf32>
    %16 = arith.mulf %13, %15 : vector<32x256xf32>
    %c0_13 = arith.constant 0 : index
    %c0_14 = arith.constant 0 : index
    %17 = vector.load %arg7[%c0_13, %c0_14] : memref<1x256xf32, #tpu.memory_space<vmem>>, vector<1x256xf32>
    %18 = vector.broadcast %17 : vector<1x256xf32> to vector<32x256xf32>
    %19 = arith.addf %16, %18 : vector<32x256xf32>
    %cst_15 = arith.constant 0.000000e+00 : f32
    %20 = vector.broadcast %cst_15 : f32 to vector<32x256xf32>
    %21 = arith.cmpf oge, %19, %20 : vector<32x256xf32>
    %cst_16 = arith.constant 2.000000e-01 : f32
    %22 = vector.broadcast %cst_16 : f32 to vector<32x256xf32>
    %23 = arith.mulf %22, %19 : vector<32x256xf32>
    %24 = arith.select %21, %19, %23 : vector<32x256xi1>, vector<32x256xf32>
    %c0_17 = arith.constant 0 : index
    %c0_18 = arith.constant 0 : index
    %25 = vector.load %arg8[%c0_17, %c0_18] : memref<32x256xf32, #tpu.memory_space<vmem>>, vector<32x256xf32>
    tpu.vector_store %arg8[%c0_17, %c0_18], %24 {strides = array<i32>} : memref<32x256xf32, #tpu.memory_space<vmem>>, vector<32x256xf32>,
    return
  }
  func.func @transform_0(%arg0: i32) -> (i32, i32) {
    %c0_i32 = arith.constant 0 : i32
    %c0_i32_0 = arith.constant 0 : i32
    return %arg0, %c0_i32 : i32, i32
  }
  func.func @transform_1(%arg0: i32) -> (i32, i32) {
    %c0_i32 = arith.constant 0 : i32
    %c0_i32_0 = arith.constant 0 : i32
    %c0_i32_1 = arith.constant 0 : i32
    return %c0_i32, %c0_i32_0 : i32, i32
  }
  func.func @transform_2(%arg0: i32) -> (i32, i32) {
    %c0_i32 = arith.constant 0 : i32
    %c0_i32_0 = arith.constant 0 : i32
    %c0_i32_1 = arith.constant 0 : i32
    return %c0_i32, %c0_i32_0 : i32, i32
  }
  func.func @transform_3(%arg0: i32) -> (i32, i32) {
    %c0_i32 = arith.constant 0 : i32
    %c0_i32_0 = arith.constant 0 : i32
    %c0_i32_1 = arith.constant 0 : i32
    return %c0_i32, %c0_i32_0 : i32, i32
  }
  func.func @transform_4(%arg0: i32) -> (i32, i32) {
    %c0_i32 = arith.constant 0 : i32
    %c0_i32_0 = arith.constant 0 : i32
    %c0_i32_1 = arith.constant 0 : i32
    return %c0_i32, %c0_i32_0 : i32, i32
  }
  func.func @transform_5(%arg0: i32) -> (i32, i32) {
    %c0_i32 = arith.constant 0 : i32
    %c0_i32_0 = arith.constant 0 : i32
    %c0_i32_1 = arith.constant 0 : i32
    return %c0_i32, %c0_i32_0 : i32, i32
  }
  func.func @transform_6(%arg0: i32) -> (i32, i32) {
    %c0_i32 = arith.constant 0 : i32
    %c0_i32_0 = arith.constant 0 : i32
    %c0_i32_1 = arith.constant 0 : i32
    return %c0_i32, %c0_i32_0 : i32, i32
  }
  func.func @transform_7(%arg0: i32) -> (i32, i32) {
    %c0_i32 = arith.constant 0 : i32
    %c0_i32_0 = arith.constant 0 : i32
    return %arg0, %c0_i32 : i32, i32
  }
}

module attributes {stable_mosaic.version = 11 : i64} {
  func.func @_block_kernel(%arg0: i32, %arg1: memref<32x2304xbf16, #tpu.memory_space<vmem>>, %arg2: memref<2304x512xbf16, #tpu.memory_space<vmem>>, %arg3: memref<1x512xf32, #tpu.memory_space<vmem>>, %arg4: memref<1x512xf32, #tpu.memory_space<vmem>>, %arg5: memref<512x512xbf16, #tpu.memory_space<vmem>>, %arg6: memref<1x512xf32, #tpu.memory_space<vmem>>, %arg7: memref<1x512xf32, #tpu.memory_space<vmem>>, %arg8: memref<32x512xf32, #tpu.memory_space<vmem>>) attributes {dimension_semantics = [#tpu.dimension_semantics<parallel>], iteration_bounds = array<i64: 1>, scalar_prefetch = 0 : i64, scratch_operands = 0 : i64, tpu.core_type = #tpu.core_type<tc>, window_params = [{transform_indices = @transform_0, window_bounds = array<i64: 32, 2304>}, {pipeline_mode = #tpu.pipeline_mode<synchronous>, transform_indices = @transform_1, window_bounds = array<i64: 2304, 512>}, {pipeline_mode = #tpu.pipeline_mode<synchronous>, transform_indices = @transform_2, window_bounds = array<i64: 1, 512>}, {pipeline_mode = #tpu.pipeline_mode<synchronous>, transform_indices = @transform_3, window_bounds = array<i64: 1, 512>}, {pipeline_mode = #tpu.pipeline_mode<synchronous>, transform_indices = @transform_4, window_bounds = array<i64: 512, 512>}, {pipeline_mode = #tpu.pipeline_mode<synchronous>, transform_indices = @transform_5, window_bounds = array<i64: 1, 512>}, {pipeline_mode = #tpu.pipeline_mode<synchronous>, transform_indices = @transform_6, window_bounds = array<i64: 1, 512>}, {transform_indices = @transform_7, window_bounds = array<i64: 32, 512>}]} {
    %c0 = arith.constant 0 : index
    %c0_0 = arith.constant 0 : index
    %0 = vector.load %arg1[%c0, %c0_0] : memref<32x2304xbf16, #tpu.memory_space<vmem>>, vector<32x2304xbf16>
    %c0_1 = arith.constant 0 : index
    %c0_2 = arith.constant 0 : index
    %1 = vector.load %arg2[%c0_1, %c0_2] : memref<2304x512xbf16, #tpu.memory_space<vmem>>, vector<2304x512xbf16>
    %cst = arith.constant dense<0.000000e+00> : vector<32x512xf32>
    %2 = tpu.matmul %0, %1, %cst {dimension_numbers = #tpu.dot_dimension_numbers<[1], [0], [0], [1], [0, 0, 1, 1], [], []>} : vector<32x2304xbf16>, vector<2304x512xbf16>, vector<32x512xf32> -> vector<32x512xf32>
    %c0_3 = arith.constant 0 : index
    %c0_4 = arith.constant 0 : index
    %3 = vector.load %arg3[%c0_3, %c0_4] : memref<1x512xf32, #tpu.memory_space<vmem>>, vector<1x512xf32>
    %4 = vector.broadcast %3 : vector<1x512xf32> to vector<32x512xf32>
    %5 = arith.mulf %2, %4 : vector<32x512xf32>
    %c0_5 = arith.constant 0 : index
    %c0_6 = arith.constant 0 : index
    %6 = vector.load %arg4[%c0_5, %c0_6] : memref<1x512xf32, #tpu.memory_space<vmem>>, vector<1x512xf32>
    %7 = vector.broadcast %6 : vector<1x512xf32> to vector<32x512xf32>
    %8 = arith.addf %5, %7 : vector<32x512xf32>
    %cst_7 = arith.constant 0.000000e+00 : f32
    %9 = vector.broadcast %cst_7 : f32 to vector<32x512xf32>
    %10 = arith.maximumf %8, %9 : vector<32x512xf32>
    %11 = arith.truncf %10 : vector<32x512xf32> to vector<32x512xbf16>
    %c0_8 = arith.constant 0 : index
    %c0_9 = arith.constant 0 : index
    %12 = vector.load %arg5[%c0_8, %c0_9] : memref<512x512xbf16, #tpu.memory_space<vmem>>, vector<512x512xbf16>
    %cst_10 = arith.constant dense<0.000000e+00> : vector<32x512xf32>
    %13 = tpu.matmul %11, %12, %cst_10 {dimension_numbers = #tpu.dot_dimension_numbers<[1], [0], [0], [1], [0, 0, 1, 1], [], []>} : vector<32x512xbf16>, vector<512x512xbf16>, vector<32x512xf32> -> vector<32x512xf32>
    %c0_11 = arith.constant 0 : index
    %c0_12 = arith.constant 0 : index
    %14 = vector.load %arg6[%c0_11, %c0_12] : memref<1x512xf32, #tpu.memory_space<vmem>>, vector<1x512xf32>
    %15 = vector.broadcast %14 : vector<1x512xf32> to vector<32x512xf32>
    %16 = arith.mulf %13, %15 : vector<32x512xf32>
    %c0_13 = arith.constant 0 : index
    %c0_14 = arith.constant 0 : index
    %17 = vector.load %arg7[%c0_13, %c0_14] : memref<1x512xf32, #tpu.memory_space<vmem>>, vector<1x512xf32>
    %18 = vector.broadcast %17 : vector<1x512xf32> to vector<32x512xf32>
    %19 = arith.addf %16, %18 : vector<32x512xf32>
    %cst_15 = arith.constant 0.000000e+00 : f32
    %20 = vector.broadcast %cst_15 : f32 to vector<32x512xf32>
    %21 = arith.cmpf oge, %19, %20 : vector<32x512xf32>
    %cst_16 = arith.constant 2.000000e-01 : f32
    %22 = vector.broadcast %cst_16 : f32 to vector<32x512xf32>
    %23 = arith.mulf %22, %19 : vector<32x512xf32>
    %24 = arith.select %21, %19, %23 : vector<32x512xi1>, vector<32x512xf32>
    %c0_17 = arith.constant 0 : index
    %c0_18 = arith.constant 0 : index
    %25 = vector.load %arg8[%c0_17, %c0_18] : memref<32x512xf32, #tpu.memory_space<vmem>>, vector<32x512xf32>
    tpu.vector_store %arg8[%c0_17, %c0_18], %24 {strides = array<i32>} : memref<32x512xf32, #tpu.memory_space<vmem>>, vector<32x512xf32>,
    return
  }
  func.func @transform_0(%arg0: i32) -> (i32, i32) {
    %c0_i32 = arith.constant 0 : i32
    %c0_i32_0 = arith.constant 0 : i32
    return %arg0, %c0_i32 : i32, i32
  }
  func.func @transform_1(%arg0: i32) -> (i32, i32) {
    %c0_i32 = arith.constant 0 : i32
    %c0_i32_0 = arith.constant 0 : i32
    %c0_i32_1 = arith.constant 0 : i32
    return %c0_i32, %c0_i32_0 : i32, i32
  }
  func.func @transform_2(%arg0: i32) -> (i32, i32) {
    %c0_i32 = arith.constant 0 : i32
    %c0_i32_0 = arith.constant 0 : i32
    %c0_i32_1 = arith.constant 0 : i32
    return %c0_i32, %c0_i32_0 : i32, i32
  }
  func.func @transform_3(%arg0: i32) -> (i32, i32) {
    %c0_i32 = arith.constant 0 : i32
    %c0_i32_0 = arith.constant 0 : i32
    %c0_i32_1 = arith.constant 0 : i32
    return %c0_i32, %c0_i32_0 : i32, i32
  }
  func.func @transform_4(%arg0: i32) -> (i32, i32) {
    %c0_i32 = arith.constant 0 : i32
    %c0_i32_0 = arith.constant 0 : i32
    %c0_i32_1 = arith.constant 0 : i32
    return %c0_i32, %c0_i32_0 : i32, i32
  }
  func.func @transform_5(%arg0: i32) -> (i32, i32) {
    %c0_i32 = arith.constant 0 : i32
    %c0_i32_0 = arith.constant 0 : i32
    %c0_i32_1 = arith.constant 0 : i32
    return %c0_i32, %c0_i32_0 : i32, i32
  }
  func.func @transform_6(%arg0: i32) -> (i32, i32) {
    %c0_i32 = arith.constant 0 : i32
    %c0_i32_0 = arith.constant 0 : i32
    %c0_i32_1 = arith.constant 0 : i32
    return %c0_i32, %c0_i32_0 : i32, i32
  }
  func.func @transform_7(%arg0: i32) -> (i32, i32) {
    %c0_i32 = arith.constant 0 : i32
    %c0_i32_0 = arith.constant 0 : i32
    return %arg0, %c0_i32 : i32, i32
  }
}

module attributes {stable_mosaic.version = 11 : i64} {
  func.func @_head_kernel(%arg0: memref<32x4608xbf16, #tpu.memory_space<vmem>>, %arg1: memref<4608x128xbf16, #tpu.memory_space<vmem>>, %arg2: memref<1x1xf32, #tpu.memory_space<vmem>>, %arg3: memref<1x1xf32, #tpu.memory_space<vmem>>, %arg4: memref<32x1xf32, #tpu.memory_space<vmem>>, %arg5: memref<1x1xf32, #tpu.memory_space<vmem>>, %arg6: memref<1x1xf32, #tpu.memory_space<vmem>>) attributes {dimension_semantics = [], scalar_prefetch = 0 : i64, scratch_operands = 0 : i64, tpu.core_type = #tpu.core_type<tc>} {
    %c0 = arith.constant 0 : index
    %c0_0 = arith.constant 0 : index
    %0 = vector.load %arg0[%c0, %c0_0] : memref<32x4608xbf16, #tpu.memory_space<vmem>>, vector<32x4608xbf16>
    %c0_1 = arith.constant 0 : index
    %c0_2 = arith.constant 0 : index
    %1 = vector.load %arg1[%c0_1, %c0_2] : memref<4608x128xbf16, #tpu.memory_space<vmem>>, vector<4608x128xbf16>
    %cst = arith.constant dense<0.000000e+00> : vector<32x128xf32>
    %2 = tpu.matmul %0, %1, %cst {dimension_numbers = #tpu.dot_dimension_numbers<[1], [0], [0], [1], [0, 0, 1, 1], [], []>} : vector<32x4608xbf16>, vector<4608x128xbf16>, vector<32x128xf32> -> vector<32x128xf32>
    %3 = vector.extract_strided_slice %2 {offsets = [0, 0], sizes = [32, 1], strides = [1, 1]} : vector<32x128xf32> to vector<32x1xf32>
    %c0_3 = arith.constant 0 : index
    %c0_4 = arith.constant 0 : index
    %4 = vector.load %arg2[%c0_3, %c0_4] : memref<1x1xf32, #tpu.memory_space<vmem>>, vector<1x1xf32>
    %5 = vector.broadcast %4 : vector<1x1xf32> to vector<32x1xf32>
    %6 = arith.mulf %3, %5 : vector<32x1xf32>
    %c0_5 = arith.constant 0 : index
    %c0_6 = arith.constant 0 : index
    %7 = vector.load %arg3[%c0_5, %c0_6] : memref<1x1xf32, #tpu.memory_space<vmem>>, vector<1x1xf32>
    %8 = vector.broadcast %7 : vector<1x1xf32> to vector<32x1xf32>
    %9 = arith.addf %6, %8 : vector<32x1xf32>
    %cst_7 = arith.constant 0.000000e+00 : f32
    %10 = vector.broadcast %cst_7 : f32 to vector<32x1xf32>
    %11 = arith.maximumf %9, %10 : vector<32x1xf32>
    %c0_8 = arith.constant 0 : index
    %c0_9 = arith.constant 0 : index
    %12 = vector.load %arg4[%c0_8, %c0_9] : memref<32x1xf32, #tpu.memory_space<vmem>>, vector<32x1xf32>
    %13 = arith.mulf %11, %12 : vector<32x1xf32>
    %cst_10 = arith.constant dense<0.000000e+00> : vector<1xf32>
    %14 = vector.multi_reduction <add>, %13, %cst_10 [0] : vector<32x1xf32> to vector<1xf32>
    %15 = vector.shape_cast %14 : vector<1xf32> to vector<1x1xf32>
    %c0_11 = arith.constant 0 : index
    %c0_12 = arith.constant 0 : index
    %16 = vector.load %arg5[%c0_11, %c0_12] : memref<1x1xf32, #tpu.memory_space<vmem>>, vector<1x1xf32>
    %17 = arith.addf %15, %16 : vector<1x1xf32>
    %c0_13 = arith.constant 0 : index
    %c0_14 = arith.constant 0 : index
    %18 = vector.load %arg6[%c0_13, %c0_14] : memref<1x1xf32, #tpu.memory_space<vmem>>, vector<1x1xf32>
    tpu.vector_store %arg6[%c0_13, %c0_14], %17 {strides = array<i32>} : memref<1x1xf32, #tpu.memory_space<vmem>>, vector<1x1xf32>,
    return
  }
}

</mosaic_0001>

<bundles_post_ra>
// kernel: critic_cg1_forward.5
= control target key start
LH: loop header
LB: loop body
LE: loop exit
PB: predicated region body
PF: predicated region fallthrough
CT: control target
= control target key end

     0   :  { %s2011_s27 = smov 0   ;;  %s2326_s0 = inlined_call_operand.vmem [shape: bf16[2048,27], index: 0, kind: input, shape index: {}]   ;;  %s2327_s1 = inlined_call_operand.vmem [shape: bf16[2048,3], index: 1, kind: input, shape index: {}]   ;;  %s2328_s2 = inlined_call_operand.vmem [shape: bf16[27,64], index: 2, kind: input, shape index: {}]   ;;  %s2329_s3 = inlined_call_operand.vmem [shape: f32[1,64], index: 3, kind: input, shape index: {}]   ;;  %s2330_s4 = inlined_call_operand.vmem [shape: f32[1,64], index: 4, kind: input, shape index: {}]   ;;  %s2331_s5 = inlined_call_operand.vmem [shape: bf16[64,64], index: 5, kind: input, shape index: {}]   ;;  %s2332_s6 = inlined_call_operand.vmem [shape: bf16[3,64], index: 6, kind: input, shape index: {}]   ;;  %s2333_s7 = inlined_call_operand.vmem [shape: f32[1,64], index: 7, kind: input, shape index: {}]   ;;  %s2334_s8 = inlined_call_operand.vmem [shape: f32[2048,64], index: 8, kind: output, shape index: {}]  }
   0x1 LB: > { %s1609_s28 = sadd.s32 4294967295, %s1963_s27   ;;  %p1613_p0 = scmp.ge.s32.totalorder %s1963_s27, 1  ;;  %s1963_s27 = sphi %s2011_s27, %s18_s27  }
   0x2   : > { %p274_p1 = scmp.lt.s32.totalorder %s1963_s27, 9 }
   0x4   : > { %p275_p2 = pnand %p1613_p0, %p274_p1 }
   0x5   : > { %v1919_v0 = vld [vmem:[%s2328_s2] sm:$0xff] (!%p275_p2)   ;;  %vm508_vm0 = vcmask (!%p275_p2), 1044480   ;;  %v1920_v1 = vld [vmem:[%s2328_s2 + $0x8] sm:$0x3f] (!%p275_p2)   ;;  %vm509_vm1 = vcmask (!%p275_p2), 1045504   ;;  %vm972_vm2 = vcmask (!%p275_p2), 1040384  }
   0x6   : > { %278 = sbr.rel (%p275_p2) target bundleno = 519 (0x207), region = 52  ;;  %1766 = vmatprep.subr.bf16.mxu0 (!%p275_p2), %v1919_v0  ;;  %s1614_s11 = sshll.u32 (!%p275_p2), %s1609_s28, 5  ;;  %v1965_v2 = vmov (!%p275_p2), 65535   ;;  %v842_v5 = vld [vmem:[%s2332_s6] sm:$0x3] (!%p275_p2)  ;;  %vm973_vm3 = vcmask (!%p275_p2), 1041408  }
   0x7   : > { %1767 = vmatpush3.bf16.msra.mxu0 (!%p275_p2), %v1919_v0  ;;  %v510_v3 = vsel (!%p275_p2), %vm508_vm0, 4294967295, %v1965_v2  ;;  %v974_v4 = vsel (!%p275_p2), %vm972_vm2, 4294967295, %v1965_v2  ;;  %p314_p3 = scmp.lt.s32.totalorder (!%p275_p2), %s1614_s11, 255  ;;  %v1938_v10 = vld [vmem:[%s2331_s5] sm:$0xff] (!%p275_p2)   ;;  %vm459_vm4 = vcmask (!%p275_p2), 220160   ;;  %vm923_vm5 = vcmask (!%p275_p2), 23552  }
   0x8   : > { %v511_v6 = vsel (!%p275_p2), %vm509_vm1, %v510_v3, 0  ;;  %v975_v7 = vsel (!%p275_p2), %vm973_vm3, %v974_v4, 0  ;;  %v1942_v18 = vld [vmem:[%s2331_s5 + $0x8] sm:$0xff] (!%p275_p2)   ;;  %v1945_v22 = vld [vmem:[%s2331_s5 + $0x10] sm:$0xff] (!%p275_p2)   ;;  %v1948_v39 = vld [vmem:[%s2331_s5 + $0x18] sm:$0xff] (!%p275_p2)   ;;  %vm1164_vm6 = vcmask (!%p275_p2), 523264  }
   0x9   : > { %v513_v8 = vand.u32 (!%p275_p2), %v1920_v1, %v511_v6  ;;  %v977_v9 = vand.u32 (!%p275_p2), %v975_v7, %v842_v5  ;;  %v2120_v46 = vld [vmem:[%s2329_s3] ss:$0 sm:$0xff] (!%p275_p2) }
   0xa   : > { %v2125_v48 = vld [vmem:[%s2330_s4] ss:$0 sm:$0xff] (!%p275_p2) }
   0xb   : > { %1768 = vmatprep.subr.bf16.mxu0 (!%p275_p2), %v513_v8  ;;  %1876 = vmatprep.subr.bf16.mxu1 (!%p275_p2), %v977_v9 }
   0xc   : > { %1769 = vmatpush3.bf16.msra.mxu0 (!%p275_p2), %v513_v8  ;;  %1877 = vmatpush3.bf16.msra.mxu1 (!%p275_p2), %v977_v9 }
   0xd   : > { %s2336_s11 = smov (!%p314_p3, %s1614_s11), 255  ;;  %1836 = vmatprep.subr.bf16.mxu1 %v1938_v10  ;;  %1802 = vmatprep.subr.bf16.mxu0 %v977_v9 }
   0xe   : > { %s1615_s16 = sshll.u32 %s2336_s11, 2  ;;  %s1619_s15 = sshll.u32 %s2336_s11, 3 }
   0xf   : > { %s2037_s19 = scalar_lea.vmem %s2326_s0, %s1615_s16  ;;  %s2052_s22 = scalar_lea.vmem %s2327_s1, %s1615_s16 }
  0x10   : > { %v1921_v11 = vld [vmem:[%s2037_s19] sm:$0xff]   ;;  %v1922_v12 = vld [vmem:[%s2037_s19 + $0x8] sm:$0xff]   ;;  %v1923_v13 = vld [vmem:[%s2037_s19 + $0x10] sm:$0xff]   ;;  %s2224_s18 = scalar_lea.vmem %s2334_s8, %s1619_s15 }
  0x11   : > { %1770 = vmatprep.mubr.msk.bf16.mxu0 %vm459_vm4, %v1921_v11  ;;  %v1924_v14 = vld [vmem:[%s2037_s19 + $0x18] sm:$0xff]   ;;  %v1925_v15 = vld [vmem:[%s2037_s19 + $0x20] sm:$0xff]   ;;  %v1926_v16 = vld [vmem:[%s2037_s19 + $0x28] sm:$0xff]  }
  0x12   : > { %1771 = vmatmul.mubr.msk.bf16.vlgmr.msra.gmra.mrb[0].mxu0 %vm459_vm4, %v1922_v12  ;;  %v1927_v17 = vld [vmem:[%s2037_s19 + $0x30] sm:$0xff]   ;;  %v1939_v20 = vld [vmem:[%s2052_s22 + $0x38] sm:$0xff]   ;;  %v1940_v21 = vld [vmem:[%s2052_s22 + $0x40] sm:$0xff]  }
  0x13   : > { %1774 = vmatprep.mubr.msk.bf16.mxu0 %vm459_vm4, %v1923_v13  ;;  %1803 = vmatpush3.bf16.msra.mxu0 %v977_v9  ;;  %v1937_v19 = vld [vmem:[%s2052_s22 + $0x30] sm:$0xff]   ;;  %v1928_v23 = vld [vmem:[%s2037_s19 + $0x38] sm:$0xff]   ;;  %v1929_v24 = vld [vmem:[%s2037_s19 + $0x40] sm:$0xff]  }
  0x14   : > { %1816 = vmatprep.mubr.msk.bf16.mxu1 %vm923_vm5, %v1937_v19  ;;  %v1941_v25 = vld [vmem:[%s2052_s22 + $0x48] sm:$0xff]   ;;  %v1943_v26 = vld [vmem:[%s2052_s22 + $0x50] sm:$0xff]   ;;  %v1944_v28 = vld [vmem:[%s2052_s22 + $0x58] sm:$0xff]  }
  0x15   : > { %1817 = vmatmul.mubr.msk.bf16.vlgmr.msra.gmra.mrb[0].mxu1 %vm923_vm5, %v1939_v20  ;;  %v1930_v27 = vld [vmem:[%s2037_s19 + $0x48] sm:$0xff]   ;;  %v1931_v29 = vld [vmem:[%s2037_s19 + $0x50] sm:$0xff]   ;;  %v1946_v30 = vld [vmem:[%s2052_s22 + $0x60] sm:$0xff]  }
  0x16   : > { %1837 = vmatpush3.bf16.msra.mxu1 %v1938_v10  ;;  %1820 = vmatprep.mubr.msk.bf16.mxu1 %vm923_vm5, %v1940_v21  ;;  %v1932_v31 = vld [vmem:[%s2037_s19 + $0x58] sm:$0xff]   ;;  %v1947_v32 = vld [vmem:[%s2052_s22 + $0x68] sm:$0xff]   ;;  %v1933_v33 = vld [vmem:[%s2037_s19 + $0x60] sm:$0xff]  }
  0x17   : > { %1838 = vmatprep.subr.bf16.mxu1 %v1942_v18  ;;  %v1934_v34 = vld [vmem:[%s2037_s19 + $0x68] sm:$0xff]   ;;  %v1935_v35 = vld [vmem:[%s2037_s19 + $0x70] sm:$0xff]   ;;  %v1936_v36 = vld [vmem:[%s2037_s19 + $0x78] sm:$0xff]  }
  0x18   : > { %v1949_v37 = vld [vmem:[%s2052_s22 + $0x70] sm:$0xff]   ;;  %v1950_v38 = vld [vmem:[%s2052_s22 + $0x78] sm:$0xff]   ;;  %v1951_v40 = vld [vmem:[%s2052_s22] sm:$0xff]  }
  0x19   : > { %v1952_v41 = vld [vmem:[%s2052_s22 + $0x8] sm:$0xff]   ;;  %v1953_v42 = vld [vmem:[%s2052_s22 + $0x10] sm:$0xff]   ;;  %v1954_v43 = vld [vmem:[%s2052_s22 + $0x18] sm:$0xff]  }
  0x1a   : > { %1775 = vmatmul.mubr.msk.bf16.gmra.mrb[4].mxu0 %vm459_vm4, %v1924_v14  ;;  %1839 = vmatpush3.bf16.msra.mxu1 %v1942_v18  ;;  %v1955_v44 = vld [vmem:[%s2052_s22 + $0x20] sm:$0xff]   ;;  %v1956_v45 = vld [vmem:[%s2052_s22 + $0x28] sm:$0xff]  }
  0x1b   : > { %1778 = vmatprep.mubr.msk.bf16.mxu0 %vm459_vm4, %v1925_v15  ;;  %1840 = vmatprep.subr.bf16.mxu1 %v1945_v22 }
  0x1d   : > { %1821 = vmatmul.mubr.msk.bf16.gmra.mrb[4].mxu1 %vm923_vm5, %v1941_v25 }
  0x1e   : > { %1824 = vmatprep.mubr.msk.bf16.mxu1 %vm923_vm5, %v1943_v26  ;;  %1841 = vmatpush3.bf16.msra.mxu1 %v1945_v22 }
  0x1f   : > { %1842 = vmatprep.subr.bf16.mxu1 %v1948_v39 }
  0x22   : > { %1779 = vmatmul.mubr.msk.bf16.gmra.mrb[8].mxu0 %vm459_vm4, %v1926_v16  ;;  %1843 = vmatpush3.bf16.msra.mxu1 %v1948_v39 }
  0x23   : > { %1782 = vmatprep.mubr.msk.bf16.mxu0 %vm459_vm4, %v1927_v17 }
  0x25   : > { %1825 = vmatmul.mubr.msk.bf16.gmra.mrb[8].mxu1 %vm923_vm5, %v1944_v28 }
  0x26   : > { %1828 = vmatprep.mubr.msk.bf16.mxu1 %vm923_vm5, %v1946_v30 }
  0x2a   : > { %1783 = vmatmul.mubr.msk.bf16.gmra.mrb[12].mxu0 %vm459_vm4, %v1928_v23 }
  0x2b   : > { %1786 = vmatprep.mubr.msk.bf16.mxu0 %vm459_vm4, %v1929_v24 }
  0x2d   : > { %1829 = vmatmul.mubr.msk.bf16.gmra.mrb[12].mxu1 %vm923_vm5, %v1947_v32 }
  0x2e   : > { %1832 = vmatprep.mubr.msk.bf16.mxu1 %vm923_vm5, %v1949_v37 }
  0x32   : > { %1787 = vmatmul.mubr.msk.bf16.gmra.mrb[16].mxu0 %vm459_vm4, %v1930_v27 }
  0x33   : > { %1790 = vmatprep.mubr.msk.bf16.mxu0 %vm459_vm4, %v1931_v29 }
  0x35   : > { %1833 = vmatmul.mubr.msk.bf16.gmra.mrb[16].mxu1 %vm923_vm5, %v1950_v38 }
  0x3a   : > { %1791 = vmatmul.mubr.msk.bf16.gmra.mrb[20].mxu0 %vm459_vm4, %v1932_v31 }
  0x3b   : > { %1794 = vmatprep.mubr.msk.bf16.mxu0 %vm459_vm4, %v1933_v33 }
  0x42   : > { %1795 = vmatmul.mubr.msk.bf16.gmra.mrb[24].mxu0 %vm459_vm4, %v1934_v34 }
  0x43   : > { %1798 = vmatprep.mubr.msk.bf16.mxu0 %vm459_vm4, %v1935_v35 }
  0x4a   : > { %1799 = vmatmul.mubr.msk.bf16.gmra.mrb[28].mxu0 %vm459_vm4, %v1936_v36 }
  0x4b   : > { %1804 = vmatprep.mubr.msk.bf16.mxu0 %vm923_vm5, %v1951_v40 }
  0x52   : > { %1805 = vmatmul.mubr.msk.bf16.vlgmr.msra.gmra.mrb[32].mxu0 %vm923_vm5, %v1952_v41 }
  0x53   : > { %1808 = vmatprep.mubr.msk.bf16.mxu0 %vm923_vm5, %v1953_v42 }
  0x5a   : > { %1809 = vmatmul.mubr.msk.bf16.gmra.mrb[36].mxu0 %vm923_vm5, %v1954_v43 }
  0x5b   : > { %1812 = vmatprep.mubr.msk.bf16.mxu0 %vm923_vm5, %v1955_v44 }
  0x62   : > { %1813 = vmatmul.mubr.msk.bf16.gmra.mrb[40].mxu0 %vm923_vm5, %v1956_v45 }
  0xe5   : > { %v1772_v47 = vpop.f32.mrb[0].mxu0 }
  0xe6   : > { %v685_v49 = vmul.f32 %v1772_v47, %v2120_v46  ;;  %v549_v50 = vpop.f32.mrb[1].mxu0 }
  0xe7   : > { %v683_v51 = vmul.f32 %v2120_v46, %v549_v50  ;;  %v1773_v52 = vpop.f32.mrb[2].mxu0 }
  0xe8   : > { %v724_v53 = vadd.f32 %v2125_v48, %v685_v49  ;;  %v686_v54 = vmul.f32 %v1773_v52, %v2120_v46  ;;  %v552_v55 = vpop.f32.mrb[3].mxu0 }
  0xe9   : > { %v722_v56 = vadd.f32 %v2125_v48, %v683_v51  ;;  %v684_v57 = vmul.f32 %v2120_v46, %v552_v55 }
  0xea   : > { %v725_v58 = vadd.f32 %v2125_v48, %v686_v54  ;;  %v756_v60 = vmax.f32 %v724_v53, 0.0 }
  0xeb   : > { %v723_v59 = vadd.f32 %v2125_v48, %v684_v57  ;;  %v754_v62 = vmax.f32 %v722_v56, 0.0 }
  0xec   : > { %v757_v61 = vmax.f32 %v725_v58, 0.0 }
  0xed   : > { %v755_v63 = vmax.f32 %v723_v59, 0.0  ;;  %v1776_v0 = vpop.f32.mrb[4].mxu0 }
  0xee   : > { %v787_v1 = vpack.c.bf16 %v757_v61, %v756_v60  ;;  %v689_v2 = vmul.f32 %v1776_v0, %v2120_v46  ;;  %v565_v3 = vpop.f32.mrb[5].mxu0 }
  0xef   : > { %v786_v4 = vpack.c.bf16 %v755_v63, %v754_v62  ;;  %v687_v5 = vmul.f32 %v2120_v46, %v565_v3  ;;  %v1777_v6 = vpop.f32.mrb[6].mxu0 }
  0xf0   : > { %v728_v7 = vadd.f32 %v2125_v48, %v689_v2  ;;  %v690_v8 = vmul.f32 %v1777_v6, %v2120_v46  ;;  %v568_v9 = vpop.f32.mrb[7].mxu0 }
  0xf1   : > { %v726_v10 = vadd.f32 %v2125_v48, %v687_v5  ;;  %v688_v11 = vmul.f32 %v2120_v46, %v568_v9  ;;  %1844 = vmatprep.mubr.msk.bf16.mxu1 %vm1164_vm6, %v786_v4 }
  0xf2   : > { %v729_v12 = vadd.f32 %v2125_v48, %v690_v8  ;;  %1845 = vmatmul.mubr.msk.bf16.vlgmr.msra.gmra.mrb[20].mxu1 %vm1164_vm6, %v787_v1  ;;  %v760_v14 = vmax.f32 %v728_v7, 0.0 }
  0xf3   : > { %v727_v13 = vadd.f32 %v2125_v48, %v688_v11  ;;  %v758_v16 = vmax.f32 %v726_v10, 0.0 }
  0xf4   : > { %v761_v15 = vmax.f32 %v729_v12, 0.0 }
  0xf5   : > { %v759_v17 = vmax.f32 %v727_v13, 0.0  ;;  %v1780_v18 = vpop.f32.mrb[8].mxu0 }
  0xf6   : > { %v789_v19 = vpack.c.bf16 %v761_v15, %v760_v14  ;;  %v693_v20 = vmul.f32 %v1780_v18, %v2120_v46  ;;  %v581_v21 = vpop.f32.mrb[9].mxu0 }
  0xf7   : > { %v788_v22 = vpack.c.bf16 %v759_v17, %v758_v16  ;;  %v691_v23 = vmul.f32 %v2120_v46, %v581_v21  ;;  %v1781_v24 = vpop.f32.mrb[10].mxu0 }
  0xf8   : > { %v732_v25 = vadd.f32 %v2125_v48, %v693_v20  ;;  %v694_v26 = vmul.f32 %v1781_v24, %v2120_v46  ;;  %v584_v27 = vpop.f32.mrb[11].mxu0 }
  0xf9   : > { %v730_v28 = vadd.f32 %v2125_v48, %v691_v23  ;;  %v692_v29 = vmul.f32 %v2120_v46, %v584_v27  ;;  %1848 = vmatprep.mubr.msk.bf16.mxu1 %vm1164_vm6, %v788_v22 }
  0xfa   : > { %v733_v30 = vadd.f32 %v2125_v48, %v694_v26  ;;  %1849 = vmatmul.mubr.msk.bf16.gmra.mrb[24].mxu1 %vm1164_vm6, %v789_v19  ;;  %v764_v32 = vmax.f32 %v732_v25, 0.0 }
  0xfb   : > { %v731_v31 = vadd.f32 %v2125_v48, %v692_v29  ;;  %v762_v34 = vmax.f32 %v730_v28, 0.0 }
  0xfc   : > { %v765_v33 = vmax.f32 %v733_v30, 0.0 }
  0xfd   : > { %v763_v35 = vmax.f32 %v731_v31, 0.0  ;;  %v1784_v36 = vpop.f32.mrb[12].mxu0 }
  0xfe   : > { %v791_v37 = vpack.c.bf16 %v765_v33, %v764_v32  ;;  %v697_v38 = vmul.f32 %v1784_v36, %v2120_v46  ;;  %v597_v39 = vpop.f32.mrb[13].mxu0 }
  0xff   : > { %v790_v40 = vpack.c.bf16 %v763_v35, %v762_v34  ;;  %v695_v41 = vmul.f32 %v2120_v46, %v597_v39  ;;  %v1785_v42 = vpop.f32.mrb[14].mxu0 }
 0x100   : > { %v736_v43 = vadd.f32 %v2125_v48, %v697_v38  ;;  %v698_v44 = vmul.f32 %v1785_v42, %v2120_v46  ;;  %v600_v45 = vpop.f32.mrb[15].mxu0 }
 0x101   : > { %v734_v47 = vadd.f32 %v2125_v48, %v695_v41  ;;  %v696_v49 = vmul.f32 %v2120_v46, %v600_v45  ;;  %1852 = vmatprep.mubr.msk.bf16.mxu1 %vm1164_vm6, %v790_v40 }
 0x102   : > { %v737_v50 = vadd.f32 %v2125_v48, %v698_v44  ;;  %1853 = vmatmul.mubr.msk.bf16.gmra.mrb[28].mxu1 %vm1164_vm6, %v791_v37  ;;  %v768_v52 = vmax.f32 %v736_v43, 0.0 }
 0x103   : > { %v735_v51 = vadd.f32 %v2125_v48, %v696_v49  ;;  %v766_v54 = vmax.f32 %v734_v47, 0.0 }
 0x104   : > { %v769_v53 = vmax.f32 %v737_v50, 0.0 }
 0x105   : > { %v767_v55 = vmax.f32 %v735_v51, 0.0  ;;  %v1788_v56 = vpop.f32.mrb[16].mxu0 }
 0x106   : > { %v793_v57 = vpack.c.bf16 %v769_v53, %v768_v52  ;;  %v701_v58 = vmul.f32 %v1788_v56, %v2120_v46  ;;  %v613_v59 = vpop.f32.mrb[17].mxu0 }
 0x107   : > { %v792_v60 = vpack.c.bf16 %v767_v55, %v766_v54  ;;  %v699_v61 = vmul.f32 %v2120_v46, %v613_v59  ;;  %v1789_v62 = vpop.f32.mrb[18].mxu0 }
 0x108   : > { %v740_v63 = vadd.f32 %v2125_v48, %v701_v58  ;;  %v702_v0 = vmul.f32 %v1789_v62, %v2120_v46  ;;  %v616_v1 = vpop.f32.mrb[19].mxu0 }
 0x109   : > { %v738_v2 = vadd.f32 %v2125_v48, %v699_v61  ;;  %v700_v3 = vmul.f32 %v2120_v46, %v616_v1  ;;  %1856 = vmatprep.mubr.msk.bf16.mxu1 %vm1164_vm6, %v792_v60 }
 0x10a   : > { %v741_v4 = vadd.f32 %v2125_v48, %v702_v0  ;;  %1857 = vmatmul.mubr.msk.bf16.gmra.mrb[0].mxu1 %vm1164_vm6, %v793_v57  ;;  %v772_v6 = vmax.f32 %v740_v63, 0.0 }
 0x10b   : > { %v739_v5 = vadd.f32 %v2125_v48, %v700_v3  ;;  %v770_v8 = vmax.f32 %v738_v2, 0.0 }
 0x10c   : > { %v773_v7 = vmax.f32 %v741_v4, 0.0 }
 0x10d   : > { %v771_v9 = vmax.f32 %v739_v5, 0.0  ;;  %v1792_v10 = vpop.f32.mrb[20].mxu0 }
 0x10e   : > { %v795_v11 = vpack.c.bf16 %v773_v7, %v772_v6  ;;  %v705_v12 = vmul.f32 %v1792_v10, %v2120_v46  ;;  %v629_v13 = vpop.f32.mrb[21].mxu0 }
 0x10f   : > { %v794_v14 = vpack.c.bf16 %v771_v9, %v770_v8  ;;  %v703_v15 = vmul.f32 %v2120_v46, %v629_v13  ;;  %v1793_v16 = vpop.f32.mrb[22].mxu0 }
 0x110   : > { %v744_v17 = vadd.f32 %v2125_v48, %v705_v12  ;;  %v706_v18 = vmul.f32 %v1793_v16, %v2120_v46  ;;  %v632_v19 = vpop.f32.mrb[23].mxu0 }
 0x111   : > { %v742_v20 = vadd.f32 %v2125_v48, %v703_v15  ;;  %v704_v21 = vmul.f32 %v2120_v46, %v632_v19  ;;  %1860 = vmatprep.mubr.msk.bf16.mxu1 %vm1164_vm6, %v794_v14  ;;  %v2216_v15 = vld [vmem:[%s2333_s7] ss:$0 sm:$0xff] }
 0x112   : > { %v745_v22 = vadd.f32 %v2125_v48, %v706_v18  ;;  %1861 = vmatmul.mubr.msk.bf16.gmra.mrb[4].mxu1 %vm1164_vm6, %v795_v11  ;;  %v776_v24 = vmax.f32 %v744_v17, 0.0 }
 0x113   : > { %v743_v23 = vadd.f32 %v2125_v48, %v704_v21  ;;  %v774_v26 = vmax.f32 %v742_v20, 0.0 }
 0x114   : > { %v777_v25 = vmax.f32 %v745_v22, 0.0 }
 0x115   : > { %v775_v27 = vmax.f32 %v743_v23, 0.0  ;;  %v1796_v28 = vpop.f32.mrb[24].mxu0 }
 0x116   : > { %v797_v29 = vpack.c.bf16 %v777_v25, %v776_v24  ;;  %v709_v30 = vmul.f32 %v1796_v28, %v2120_v46  ;;  %v645_v31 = vpop.f32.mrb[25].mxu0 }
 0x117   : > { %v796_v32 = vpack.c.bf16 %v775_v27, %v774_v26  ;;  %v707_v33 = vmul.f32 %v2120_v46, %v645_v31  ;;  %v1797_v34 = vpop.f32.mrb[26].mxu0 }
 0x118   : > { %v748_v35 = vadd.f32 %v2125_v48, %v709_v30  ;;  %v710_v36 = vmul.f32 %v1797_v34, %v2120_v46  ;;  %v648_v37 = vpop.f32.mrb[27].mxu0 }
 0x119   : > { %v746_v38 = vadd.f32 %v2125_v48, %v707_v33  ;;  %v708_v39 = vmul.f32 %v2120_v46, %v648_v37  ;;  %1864 = vmatprep.mubr.msk.bf16.mxu1 %vm1164_vm6, %v796_v32 }
 0x11a   : > { %v749_v40 = vadd.f32 %v2125_v48, %v710_v36  ;;  %1865 = vmatmul.mubr.msk.bf16.gmra.mrb[8].mxu1 %vm1164_vm6, %v797_v29  ;;  %v780_v42 = vmax.f32 %v748_v35, 0.0 }
 0x11b   : > { %v747_v41 = vadd.f32 %v2125_v48, %v708_v39  ;;  %v778_v44 = vmax.f32 %v746_v38, 0.0 }
 0x11c   : > { %v781_v43 = vmax.f32 %v749_v40, 0.0 }
 0x11d   : > { %v779_v45 = vmax.f32 %v747_v41, 0.0  ;;  %v1800_v47 = vpop.f32.mrb[28].mxu0 }
 0x11e   : > { %v799_v49 = vpack.c.bf16 %v781_v43, %v780_v42  ;;  %v713_v50 = vmul.f32 %v1800_v47, %v2120_v46  ;;  %v661_v51 = vpop.f32.mrb[29].mxu0 }
 0x11f   : > { %v798_v52 = vpack.c.bf16 %v779_v45, %v778_v44  ;;  %v711_v53 = vmul.f32 %v2120_v46, %v661_v51  ;;  %v1801_v54 = vpop.f32.mrb[30].mxu0 }
 0x120   : > { %v752_v55 = vadd.f32 %v2125_v48, %v713_v50  ;;  %v714_v56 = vmul.f32 %v1801_v54, %v2120_v46  ;;  %v664_v57 = vpop.f32.mrb[31].mxu0 }
 0x121   : > { %v750_v58 = vadd.f32 %v2125_v48, %v711_v53  ;;  %v712_v59 = vmul.f32 %v2120_v46, %v664_v57  ;;  %1868 = vmatprep.mubr.msk.bf16.mxu1 %vm1164_vm6, %v798_v52 }
 0x122   : > { %v753_v60 = vadd.f32 %v2125_v48, %v714_v56  ;;  %1869 = vmatmul.mubr.msk.bf16.gmra.mrb[12].mxu1 %vm1164_vm6, %v799_v49  ;;  %v784_v62 = vmax.f32 %v752_v55, 0.0 }
 0x123   : > { %v751_v61 = vadd.f32 %v2125_v48, %v712_v59  ;;  %v782_v0 = vmax.f32 %v750_v58, 0.0 }
 0x124   : > { %v785_v63 = vmax.f32 %v753_v60, 0.0 }
 0x125   : > { %v783_v1 = vmax.f32 %v751_v61, 0.0  ;;  %v1806_v4 = vpop.f32.mrb[32].mxu0 }
 0x126   : > { %v801_v2 = vpack.c.bf16 %v785_v63, %v784_v62  ;;  %v1013_v46 = vpop.f32.mrb[33].mxu0 }
 0x127   : > { %v800_v3 = vpack.c.bf16 %v783_v1, %v782_v0  ;;  %v1807_v5 = vpop.f32.mrb[34].mxu0 }
 0x128   : > { %v1016_v6 = vpop.f32.mrb[35].mxu0 }
 0x129   : > { %1872 = vmatprep.mubr.msk.bf16.mxu1 %vm1164_vm6, %v800_v3 }
 0x12a   : > { %1873 = vmatmul.mubr.msk.bf16.gmra.mrb[16].mxu1 %vm1164_vm6, %v801_v2 }
 0x12d   : > { %v1810_v7 = vpop.f32.mrb[36].mxu0 }
 0x12e   : > { %v1029_v8 = vpop.f32.mrb[37].mxu0 }
 0x12f   : > { %v1811_v9 = vpop.f32.mrb[38].mxu0 }
 0x130   : > { %v1032_v10 = vpop.f32.mrb[39].mxu0 }
 0x135   : > { %v1814_v48 = vpop.f32.mrb[40].mxu0 }
 0x136   : > { %v2207_v11 = vpop.f32.mrb[41].mxu0 }
 0x137   : > { %v2209_v12 = vpop.f32.mrb[42].mxu0 }
 0x138   : > { %v2211_v13 = vpop.f32.mrb[43].mxu0 }
 0x1c5   : > { %v1846_v14 = vpop.f32.mrb[20].mxu1 }
 0x1c6   : > { %v1256_v16 = vadd.f32 %v1846_v14, %v1806_v4  ;;  %v1247_v17 = vpop.f32.mrb[21].mxu1 }
 0x1c7   : > { %v1248_v18 = vadd.f32 %v1247_v17, %v1013_v46  ;;  %v1847_v19 = vpop.f32.mrb[22].mxu1 }
 0x1c8   : > { %v1383_v20 = vadd.f32 %v2216_v15, %v1256_v16  ;;  %v1259_v21 = vadd.f32 %v1847_v19, %v1807_v5  ;;  %v1250_v22 = vpop.f32.mrb[23].mxu1 }
 0x1c9   : > { %v1381_v23 = vadd.f32 %v2216_v15, %v1248_v18  ;;  %v1251_v24 = vadd.f32 %v1250_v22, %v1016_v6 }
 0x1ca   : > { %vm1415_vm7 = vcmp.ge.f32.partialorder %v1383_v20, 0.0  ;;  %v1447_v25 = vmul.f32 0.2, %v1383_v20  ;;  %v1384_v26 = vadd.f32 %v2216_v15, %v1259_v21 }
 0x1cb   : > { %vm1413_vm8 = vcmp.ge.f32.partialorder %v1381_v23, 0.0  ;;  %v1445_v27 = vmul.f32 0.2, %v1381_v23  ;;  %v1382_v28 = vadd.f32 %v2216_v15, %v1251_v24 }
 0x1cc   : > { %v1479_v29 = vsel %vm1415_vm7, %v1383_v20, %v1447_v25  ;;  %vm1416_vm9 = vcmp.ge.f32.partialorder %v1384_v26, 0.0  ;;  %v1448_v30 = vmul.f32 0.2, %v1384_v26 }
 0x1cd   : > { %1511 = vst.msk [vmem:[%s2224_s18 + $0x10] sm:$0xff] %vm1164_vm6, %v1479_v29  ;;  %v1477_v31 = vsel %vm1413_vm8, %v1381_v23, %v1445_v27  ;;  %vm1414_vm10 = vcmp.ge.f32.partialorder %v1382_v28, 0.0  ;;  %v1446_v32 = vmul.f32 0.2, %v1382_v28  ;;  %v1850_v33 = vpop.f32.mrb[24].mxu1 }
 0x1ce   : > { %1509 = vst.msk [vmem:[%s2224_s18] sm:$0xff] %vm1164_vm6, %v1477_v31  ;;  %v1480_v34 = vsel %vm1416_vm9, %v1384_v26, %v1448_v30  ;;  %v1272_v35 = vadd.f32 %v1850_v33, %v1810_v7  ;;  %v1263_v36 = vpop.f32.mrb[25].mxu1 }
 0x1cf   : > { %1512 = vst.msk [vmem:[%s2224_s18 + $0x18] sm:$0xff] %vm1164_vm6, %v1480_v34  ;;  %v1478_v37 = vsel %vm1414_vm10, %v1382_v28, %v1446_v32  ;;  %v1264_v38 = vadd.f32 %v1263_v36, %v1029_v8  ;;  %v1851_v39 = vpop.f32.mrb[26].mxu1 }
 0x1d0   : > { %1510 = vst.msk [vmem:[%s2224_s18 + $0x8] sm:$0xff] %vm1164_vm6, %v1478_v37  ;;  %v1387_v40 = vadd.f32 %v2216_v15, %v1272_v35  ;;  %v1275_v41 = vadd.f32 %v1851_v39, %v1811_v9  ;;  %v1266_v42 = vpop.f32.mrb[27].mxu1 }
 0x1d1   : > { %v1385_v43 = vadd.f32 %v2216_v15, %v1264_v38  ;;  %v1267_v44 = vadd.f32 %v1266_v42, %v1032_v10 }
 0x1d2   : > { %vm1419_vm11 = vcmp.ge.f32.partialorder %v1387_v40, 0.0  ;;  %v1451_v45 = vmul.f32 0.2, %v1387_v40  ;;  %v1388_v47 = vadd.f32 %v2216_v15, %v1275_v41 }
 0x1d3   : > { %vm1417_vm12 = vcmp.ge.f32.partialorder %v1385_v43, 0.0  ;;  %v1449_v49 = vmul.f32 0.2, %v1385_v43  ;;  %v1386_v50 = vadd.f32 %v2216_v15, %v1267_v44 }
 0x1d4   : > { %v1483_v51 = vsel %vm1419_vm11, %v1387_v40, %v1451_v45  ;;  %vm1420_vm13 = vcmp.ge.f32.partialorder %v1388_v47, 0.0  ;;  %v1452_v52 = vmul.f32 0.2, %v1388_v47 }
 0x1d5   : > { %1515 = vst.msk [vmem:[%s2224_s18 + $0x30] sm:$0xff] %vm1164_vm6, %v1483_v51  ;;  %v1481_v53 = vsel %vm1417_vm12, %v1385_v43, %v1449_v49  ;;  %vm1418_vm14 = vcmp.ge.f32.partialorder %v1386_v50, 0.0  ;;  %v1450_v54 = vmul.f32 0.2, %v1386_v50  ;;  %v1854_v55 = vpop.f32.mrb[28].mxu1 }
 0x1d6   : > { %1513 = vst.msk [vmem:[%s2224_s18 + $0x20] sm:$0xff] %vm1164_vm6, %v1481_v53  ;;  %v1484_v56 = vsel %vm1420_vm13, %v1388_v47, %v1452_v52  ;;  %v1288_v57 = vadd.f32 %v1854_v55, %v1814_v48  ;;  %v1279_v58 = vpop.f32.mrb[29].mxu1 }
 0x1d7   : > { %1516 = vst.msk [vmem:[%s2224_s18 + $0x38] sm:$0xff] %vm1164_vm6, %v1484_v56  ;;  %v1482_v59 = vsel %vm1418_vm14, %v1386_v50, %v1450_v54  ;;  %v1280_v60 = vadd.f32 %v1279_v58, %v2207_v11  ;;  %v1855_v61 = vpop.f32.mrb[30].mxu1 }
 0x1d8   : > { %1514 = vst.msk [vmem:[%s2224_s18 + $0x28] sm:$0xff] %vm1164_vm6, %v1482_v59  ;;  %v1391_v62 = vadd.f32 %v2216_v15, %v1288_v57  ;;  %v1291_v63 = vadd.f32 %v1855_v61, %v2209_v12  ;;  %v1282_v0 = vpop.f32.mrb[31].mxu1 }
 0x1d9   : > { %v1389_v1 = vadd.f32 %v2216_v15, %v1280_v60  ;;  %v1283_v2 = vadd.f32 %v1282_v0, %v2211_v13 }
 0x1da   : > { %vm1423_vm15 = vcmp.ge.f32.partialorder %v1391_v62, 0.0  ;;  %v1455_v3 = vmul.f32 0.2, %v1391_v62  ;;  %v1392_v4 = vadd.f32 %v2216_v15, %v1291_v63 }
 0x1db   : > { %vm1421_vm0 = vcmp.ge.f32.partialorder %v1389_v1, 0.0  ;;  %v1453_v46 = vmul.f32 0.2, %v1389_v1  ;;  %v1390_v5 = vadd.f32 %v2216_v15, %v1283_v2 }
 0x1dc   : > { %v1487_v6 = vsel %vm1423_vm15, %v1391_v62, %v1455_v3  ;;  %vm1424_vm1 = vcmp.ge.f32.partialorder %v1392_v4, 0.0  ;;  %v1456_v7 = vmul.f32 0.2, %v1392_v4 }
 0x1dd   : > { %1519 = vst.msk [vmem:[%s2224_s18 + $0x50] sm:$0xff] %vm1164_vm6, %v1487_v6  ;;  %v1485_v8 = vsel %vm1421_vm0, %v1389_v1, %v1453_v46  ;;  %vm1422_vm2 = vcmp.ge.f32.partialorder %v1390_v5, 0.0  ;;  %v1454_v9 = vmul.f32 0.2, %v1390_v5  ;;  %v1858_v10 = vpop.f32.mrb[0].mxu1 }
 0x1de   : > { %1517 = vst.msk [vmem:[%s2224_s18 + $0x40] sm:$0xff] %vm1164_vm6, %v1485_v8  ;;  %v1488_v48 = vsel %vm1424_vm1, %v1392_v4, %v1456_v7  ;;  %v1395_v11 = vadd.f32 %v1858_v10, %v2216_v15  ;;  %v1295_v12 = vpop.f32.mrb[1].mxu1 }
 0x1df   : > { %1520 = vst.msk [vmem:[%s2224_s18 + $0x58] sm:$0xff] %vm1164_vm6, %v1488_v48  ;;  %v1486_v13 = vsel %vm1422_vm2, %v1390_v5, %v1454_v9  ;;  %v1393_v14 = vadd.f32 %v2216_v15, %v1295_v12  ;;  %v1859_v16 = vpop.f32.mrb[2].mxu1 }
 0x1e0   : > { %1518 = vst.msk [vmem:[%s2224_s18 + $0x48] sm:$0xff] %vm1164_vm6, %v1486_v13  ;;  %vm1427_vm3 = vcmp.ge.f32.partialorder %v1395_v11, 0.0  ;;  %v1459_v17 = vmul.f32 0.2, %v1395_v11  ;;  %v1396_v18 = vadd.f32 %v1859_v16, %v2216_v15  ;;  %v1298_v19 = vpop.f32.mrb[3].mxu1 }
 0x1e1   : > { %vm1425_vm4 = vcmp.ge.f32.partialorder %v1393_v14, 0.0  ;;  %v1457_v20 = vmul.f32 0.2, %v1393_v14  ;;  %v1394_v21 = vadd.f32 %v2216_v15, %v1298_v19 }
 0x1e2   : > { %v1491_v22 = vsel %vm1427_vm3, %v1395_v11, %v1459_v17  ;;  %vm1428_vm5 = vcmp.ge.f32.partialorder %v1396_v18, 0.0  ;;  %v1460_v23 = vmul.f32 0.2, %v1396_v18 }
 0x1e3   : > { %1523 = vst.msk [vmem:[%s2224_s18 + $0x70] sm:$0xff] %vm1164_vm6, %v1491_v22  ;;  %v1489_v24 = vsel %vm1425_vm4, %v1393_v14, %v1457_v20  ;;  %vm1426_vm7 = vcmp.ge.f32.partialorder %v1394_v21, 0.0  ;;  %v1458_v25 = vmul.f32 0.2, %v1394_v21 }
 0x1e4   : > { %1521 = vst.msk [vmem:[%s2224_s18 + $0x60] sm:$0xff] %vm1164_vm6, %v1489_v24  ;;  %v1492_v26 = vsel %vm1428_vm5, %v1396_v18, %v1460_v23 }
 0x1e5   : > { %1524 = vst.msk [vmem:[%s2224_s18 + $0x78] sm:$0xff] %vm1164_vm6, %v1492_v26  ;;  %v1490_v27 = vsel %vm1426_vm7, %v1394_v21, %v1458_v25  ;;  %v1862_v28 = vpop.f32.mrb[4].mxu1 }
 0x1e6   : > { %1522 = vst.msk [vmem:[%s2224_s18 + $0x68] sm:$0xff] %vm1164_vm6, %v1490_v27  ;;  %v1399_v29 = vadd.f32 %v1862_v28, %v2216_v15  ;;  %v1311_v30 = vpop.f32.mrb[5].mxu1 }
 0x1e7   : > { %v1397_v31 = vadd.f32 %v2216_v15, %v1311_v30  ;;  %v1863_v32 = vpop.f32.mrb[6].mxu1 }
 0x1e8   : > { %vm1431_vm8 = vcmp.ge.f32.partialorder %v1399_v29, 0.0  ;;  %v1463_v33 = vmul.f32 0.2, %v1399_v29  ;;  %v1400_v34 = vadd.f32 %v1863_v32, %v2216_v15  ;;  %v1314_v35 = vpop.f32.mrb[7].mxu1 }
 0x1e9   : > { %vm1429_vm9 = vcmp.ge.f32.partialorder %v1397_v31, 0.0  ;;  %v1461_v36 = vmul.f32 0.2, %v1397_v31  ;;  %v1398_v37 = vadd.f32 %v2216_v15, %v1314_v35 }
 0x1ea   : > { %v1495_v38 = vsel %vm1431_vm8, %v1399_v29, %v1463_v33  ;;  %vm1432_vm10 = vcmp.ge.f32.partialorder %v1400_v34, 0.0  ;;  %v1464_v39 = vmul.f32 0.2, %v1400_v34 }
 0x1eb   : > { %1527 = vst.msk [vmem:[%s2224_s18 + $0x90] sm:$0xff] %vm1164_vm6, %v1495_v38  ;;  %v1493_v40 = vsel %vm1429_vm9, %v1397_v31, %v1461_v36  ;;  %vm1430_vm11 = vcmp.ge.f32.partialorder %v1398_v37, 0.0  ;;  %v1462_v41 = vmul.f32 0.2, %v1398_v37 }
 0x1ec   : > { %1525 = vst.msk [vmem:[%s2224_s18 + $0x80] sm:$0xff] %vm1164_vm6, %v1493_v40  ;;  %v1496_v42 = vsel %vm1432_vm10, %v1400_v34, %v1464_v39 }
 0x1ed   : > { %1528 = vst.msk [vmem:[%s2224_s18 + $0x98] sm:$0xff] %vm1164_vm6, %v1496_v42  ;;  %v1494_v43 = vsel %vm1430_vm11, %v1398_v37, %v1462_v41  ;;  %v1866_v44 = vpop.f32.mrb[8].mxu1 }
 0x1ee   : > { %1526 = vst.msk [vmem:[%s2224_s18 + $0x88] sm:$0xff] %vm1164_vm6, %v1494_v43  ;;  %v1403_v45 = vadd.f32 %v1866_v44, %v2216_v15  ;;  %v1327_v47 = vpop.f32.mrb[9].mxu1 }
 0x1ef   : > { %v1401_v49 = vadd.f32 %v2216_v15, %v1327_v47  ;;  %v1867_v50 = vpop.f32.mrb[10].mxu1 }
 0x1f0   : > { %vm1435_vm12 = vcmp.ge.f32.partialorder %v1403_v45, 0.0  ;;  %v1467_v51 = vmul.f32 0.2, %v1403_v45  ;;  %v1404_v52 = vadd.f32 %v1867_v50, %v2216_v15  ;;  %v1330_v53 = vpop.f32.mrb[11].mxu1 }
 0x1f1   : > { %vm1433_vm13 = vcmp.ge.f32.partialorder %v1401_v49, 0.0  ;;  %v1465_v54 = vmul.f32 0.2, %v1401_v49  ;;  %v1402_v55 = vadd.f32 %v2216_v15, %v1330_v53 }
 0x1f2   : > { %v1499_v56 = vsel %vm1435_vm12, %v1403_v45, %v1467_v51  ;;  %vm1436_vm14 = vcmp.ge.f32.partialorder %v1404_v52, 0.0  ;;  %v1468_v57 = vmul.f32 0.2, %v1404_v52 }
 0x1f3   : > { %1531 = vst.msk [vmem:[%s2224_s18 + $0xb0] sm:$0xff] %vm1164_vm6, %v1499_v56  ;;  %v1497_v58 = vsel %vm1433_vm13, %v1401_v49, %v1465_v54  ;;  %vm1434_vm15 = vcmp.ge.f32.partialorder %v1402_v55, 0.0  ;;  %v1466_v59 = vmul.f32 0.2, %v1402_v55 }
 0x1f4   : > { %1529 = vst.msk [vmem:[%s2224_s18 + $0xa0] sm:$0xff] %vm1164_vm6, %v1497_v58  ;;  %v1500_v60 = vsel %vm1436_vm14, %v1404_v52, %v1468_v57 }
 0x1f5   : > { %1532 = vst.msk [vmem:[%s2224_s18 + $0xb8] sm:$0xff] %vm1164_vm6, %v1500_v60  ;;  %v1498_v61 = vsel %vm1434_vm15, %v1402_v55, %v1466_v59  ;;  %v1870_v62 = vpop.f32.mrb[12].mxu1 }
 0x1f6   : > { %1530 = vst.msk [vmem:[%s2224_s18 + $0xa8] sm:$0xff] %vm1164_vm6, %v1498_v61  ;;  %v1407_v63 = vadd.f32 %v1870_v62, %v2216_v15  ;;  %v1343_v0 = vpop.f32.mrb[13].mxu1 }
 0x1f7   : > { %v1405_v1 = vadd.f32 %v2216_v15, %v1343_v0  ;;  %v1871_v2 = vpop.f32.mrb[14].mxu1 }
 0x1f8   : > { %vm1439_vm0 = vcmp.ge.f32.partialorder %v1407_v63, 0.0  ;;  %v1471_v3 = vmul.f32 0.2, %v1407_v63  ;;  %v1408_v4 = vadd.f32 %v1871_v2, %v2216_v15  ;;  %v1346_v46 = vpop.f32.mrb[15].mxu1 }
 0x1f9   : > { %vm1437_vm1 = vcmp.ge.f32.partialorder %v1405_v1, 0.0  ;;  %v1469_v5 = vmul.f32 0.2, %v1405_v1  ;;  %v1406_v6 = vadd.f32 %v2216_v15, %v1346_v46 }
 0x1fa   : > { %v1503_v7 = vsel %vm1439_vm0, %v1407_v63, %v1471_v3  ;;  %vm1440_vm2 = vcmp.ge.f32.partialorder %v1408_v4, 0.0  ;;  %v1472_v8 = vmul.f32 0.2, %v1408_v4 }
 0x1fb   : > { %1535 = vst.msk [vmem:[%s2224_s18 + $0xd0] sm:$0xff] %vm1164_vm6, %v1503_v7  ;;  %v1501_v9 = vsel %vm1437_vm1, %v1405_v1, %v1469_v5  ;;  %vm1438_vm3 = vcmp.ge.f32.partialorder %v1406_v6, 0.0  ;;  %v1470_v10 = vmul.f32 0.2, %v1406_v6 }
 0x1fc   : > { %1533 = vst.msk [vmem:[%s2224_s18 + $0xc0] sm:$0xff] %vm1164_vm6, %v1501_v9  ;;  %v1504_v48 = vsel %vm1440_vm2, %v1408_v4, %v1472_v8 }
 0x1fd   : > { %1536 = vst.msk [vmem:[%s2224_s18 + $0xd8] sm:$0xff] %vm1164_vm6, %v1504_v48  ;;  %v1502_v11 = vsel %vm1438_vm3, %v1406_v6, %v1470_v10  ;;  %v1874_v12 = vpop.f32.mrb[16].mxu1 }
 0x1fe   : > { %1534 = vst.msk [vmem:[%s2224_s18 + $0xc8] sm:$0xff] %vm1164_vm6, %v1502_v11  ;;  %v1411_v13 = vadd.f32 %v1874_v12, %v2216_v15  ;;  %v1359_v14 = vpop.f32.mrb[17].mxu1 }
 0x1ff   : > { %v1409_v16 = vadd.f32 %v2216_v15, %v1359_v14  ;;  %v1875_v17 = vpop.f32.mrb[18].mxu1 }
 0x200   : > { %vm1443_vm4 = vcmp.ge.f32.partialorder %v1411_v13, 0.0  ;;  %v1475_v18 = vmul.f32 0.2, %v1411_v13  ;;  %v1412_v19 = vadd.f32 %v1875_v17, %v2216_v15  ;;  %v1362_v20 = vpop.f32.mrb[19].mxu1 }
 0x201   : > { %vm1441_vm5 = vcmp.ge.f32.partialorder %v1409_v16, 0.0  ;;  %v1473_v21 = vmul.f32 0.2, %v1409_v16  ;;  %v1410_v22 = vadd.f32 %v2216_v15, %v1362_v20 }
 0x202   : > { %v1507_v23 = vsel %vm1443_vm4, %v1411_v13, %v1475_v18  ;;  %vm1444_vm7 = vcmp.ge.f32.partialorder %v1412_v19, 0.0  ;;  %v1476_v24 = vmul.f32 0.2, %v1412_v19 }
 0x203   : > { %1539 = vst.msk [vmem:[%s2224_s18 + $0xf0] sm:$0xff] %vm1164_vm6, %v1507_v23  ;;  %v1505_v25 = vsel %vm1441_vm5, %v1409_v16, %v1473_v21  ;;  %vm1442_vm8 = vcmp.ge.f32.partialorder %v1410_v22, 0.0  ;;  %v1474_v26 = vmul.f32 0.2, %v1410_v22 }
 0x204   : > { %1537 = vst.msk [vmem:[%s2224_s18 + $0xe0] sm:$0xff] %vm1164_vm6, %v1505_v25  ;;  %v1508_v27 = vsel %vm1444_vm7, %v1412_v19, %v1476_v24 }
 0x205   : > { %1540 = vst.msk [vmem:[%s2224_s18 + $0xf8] sm:$0xff] %vm1164_vm6, %v1508_v27  ;;  %v1506_v28 = vsel %vm1442_vm8, %v1410_v22, %v1474_v26 }
 0x206   : > { %1538 = vst.msk [vmem:[%s2224_s18 + $0xe8] sm:$0xff] %vm1164_vm6, %v1506_v28 }
 0x207 PF: > { %s18_s27 = sadd.s32 1, %s1963_s27  }
 0x208   : > { %p15_p4 = scmp.ge.s32.totalorder %s18_s27, 10  }
 0x20a   :  { %17 = sbr.rel (!%p15_p4) target bundleno = 1 (0x1), region = 85 }

// kernel: critic_cg1_forward.6
= control target key start
LH: loop header
LB: loop body
LE: loop exit
PB: predicated region body
PF: predicated region fallthrough
CT: control target
= control target key end

     0   :  { %s2011_s24 = smov 0   ;;  %s2366_s0 = inlined_call_operand.vmem [shape: bf16[512,576], index: 0, kind: input, shape index: {}]   ;;  %s2367_s1 = inlined_call_operand.vmem [shape: bf16[576,128], index: 1, kind: input, shape index: {}]   ;;  %s2368_s2 = inlined_call_operand.vmem [shape: f32[1,128], index: 2, kind: input, shape index: {}]   ;;  %s2369_s3 = inlined_call_operand.vmem [shape: f32[1,128], index: 3, kind: input, shape index: {}]   ;;  %s2370_s4 = inlined_call_operand.vmem [shape: bf16[128,128], index: 4, kind: input, shape index: {}]   ;;  %s2371_s5 = inlined_call_operand.vmem [shape: f32[1,128], index: 5, kind: input, shape index: {}]   ;;  %s2372_s6 = inlined_call_operand.vmem [shape: f32[1,128], index: 6, kind: input, shape index: {}]   ;;  %s2373_s7 = inlined_call_operand.vmem [shape: f32[512,128], index: 7, kind: output, shape index: {}]  }
   0x1 LB: > { %s1535_s25 = sadd.s32 4294967295, %s1969_s24   ;;  %p1539_p0 = scmp.ge.s32.totalorder %s1969_s24, 1  ;;  %s1969_s24 = sphi %s2011_s24, %s17_s24  }
   0x2   : > { %p239_p1 = scmp.lt.s32.totalorder %s1969_s24, 5 }
   0x4   : > { %p240_p2 = pnand %p1539_p0, %p239_p1 }
   0x5   : > { %v1863_v0 = vld [vmem:[%s2367_s1 + $0x40] sm:$0xff] (!%p240_p2)   ;;  %v1867_v4 = vld [vmem:[%s2367_s1 + $0x48] sm:$0xff] (!%p240_p2)   ;;  %v1871_v8 = vld [vmem:[%s2367_s1 + $0x50] sm:$0xff] (!%p240_p2)   ;;  %s1540_s12 = sshll.u32 (!%p240_p2), %s1535_s25, 4  ;;  %vm822_vm0 = vcmask (!%p240_p2), 523264  }
   0x6   : > { %243 = sbr.rel (%p240_p2) target bundleno = 576 (0x240), region = 48  ;;  %v1864_v1 = vld [vmem:[%s2367_s1 + $0xc0] sm:$0xff] (!%p240_p2)   ;;  %1642 = vmatprep.subr.bf16.mxu0 (!%p240_p2), %v1863_v0  ;;  %v1868_v5 = vld [vmem:[%s2367_s1 + $0xc8] sm:$0xff] (!%p240_p2)   ;;  %v1872_v9 = vld [vmem:[%s2367_s1 + $0xd0] sm:$0xff] (!%p240_p2)   ;;  %p273_p3 = scmp.lt.s32.totalorder (!%p240_p2), %s1540_s12, 63 }
   0x7   : > { %v1865_v2 = vld [vmem:[%s2367_s1] sm:$0xff] (!%p240_p2)   ;;  %1706 = vmatprep.subr.bf16.mxu1 (!%p240_p2), %v1864_v1  ;;  %v1869_v6 = vld [vmem:[%s2367_s1 + $0x8] sm:$0xff] (!%p240_p2)   ;;  %v1873_v10 = vld [vmem:[%s2367_s1 + $0x10] sm:$0xff] (!%p240_p2)  }
   0x8   : > { %v1866_v3 = vld [vmem:[%s2367_s1 + $0x80] sm:$0xff] (!%p240_p2)   ;;  %1643 = vmatpush3.bf16.msra.mxu0 (!%p240_p2), %v1865_v2  ;;  %v1870_v7 = vld [vmem:[%s2367_s1 + $0x88] sm:$0xff] (!%p240_p2)   ;;  %v1874_v11 = vld [vmem:[%s2367_s1 + $0x90] sm:$0xff] (!%p240_p2)  }
   0x9   : > { %1707 = vmatpush3.bf16.msra.mxu1 (!%p240_p2), %v1866_v3  ;;  %1644 = vmatprep.subr.bf16.mxu0 (!%p240_p2), %v1867_v4  ;;  %v1875_v12 = vld [vmem:[%s2367_s1 + $0x58] sm:$0xff] (!%p240_p2)   ;;  %v1879_v16 = vld [vmem:[%s2367_s1 + $0x60] sm:$0xff] (!%p240_p2)   ;;  %v1883_v20 = vld [vmem:[%s2367_s1 + $0x68] sm:$0xff] (!%p240_p2)  }
   0xa   : > { %1708 = vmatprep.subr.bf16.mxu1 (!%p240_p2), %v1868_v5  ;;  %v1876_v13 = vld [vmem:[%s2367_s1 + $0xd8] sm:$0xff] (!%p240_p2)   ;;  %v1880_v17 = vld [vmem:[%s2367_s1 + $0xe0] sm:$0xff] (!%p240_p2)   ;;  %v1884_v21 = vld [vmem:[%s2367_s1 + $0xe8] sm:$0xff] (!%p240_p2)  }
   0xb   : > { %v1877_v14 = vld [vmem:[%s2367_s1 + $0x18] sm:$0xff] (!%p240_p2)   ;;  %v1881_v18 = vld [vmem:[%s2367_s1 + $0x20] sm:$0xff] (!%p240_p2)   ;;  %v1885_v22 = vld [vmem:[%s2367_s1 + $0x28] sm:$0xff] (!%p240_p2)  }
   0xc   : > { %1645 = vmatpush3.bf16.msra.mxu0 (!%p240_p2), %v1869_v6  ;;  %v1878_v15 = vld [vmem:[%s2367_s1 + $0x98] sm:$0xff] (!%p240_p2)   ;;  %v1882_v19 = vld [vmem:[%s2367_s1 + $0xa0] sm:$0xff] (!%p240_p2)   ;;  %v1886_v23 = vld [vmem:[%s2367_s1 + $0xa8] sm:$0xff] (!%p240_p2)  }
   0xd   : > { %1709 = vmatpush3.bf16.msra.mxu1 %v1870_v7  ;;  %1646 = vmatprep.subr.bf16.mxu0 %v1871_v8  ;;  %s2375_s12 = smov (!%p273_p3, %s1540_s12), 63  ;;  %v1887_v24 = vld [vmem:[%s2367_s1 + $0x70] sm:$0xff]   ;;  %v1891_v28 = vld [vmem:[%s2367_s1 + $0x78] sm:$0xff]   ;;  %v1901_v36 = vld [vmem:[%s2367_s1 + $0x100] sm:$0xff]  }
   0xe   : > { %1710 = vmatprep.subr.bf16.mxu1 %v1872_v9  ;;  %v1888_v25 = vld [vmem:[%s2367_s1 + $0xf0] sm:$0xff]   ;;  %s1854_s14 = smul.u32 20, %s2375_s12  ;;  %v1892_v29 = vld [vmem:[%s2367_s1 + $0xf8] sm:$0xff]   ;;  %v1914_v42 = vld [vmem:[%s2367_s1 + $0x108] sm:$0xff]   ;;  %s1543_s20 = sshll.u32 %s2375_s12, 3 }
   0xf   : > { %v1889_v26 = vld [vmem:[%s2367_s1 + $0x30] sm:$0xff]   ;;  %v1893_v30 = vld [vmem:[%s2367_s1 + $0x38] sm:$0xff]   ;;  %s2319_s22 = scalar_lea.vmem %s2373_s7, %s1543_s20 }
  0x10   : > { %1647 = vmatpush3.bf16.msra.mxu0 %v1873_v10  ;;  %v1890_v27 = vld [vmem:[%s2367_s1 + $0xb0] sm:$0xff]   ;;  %s2117_s26 = scalar_lea.vmem %s2366_s0, %s1854_s14  ;;  %v1894_v31 = vld [vmem:[%s2367_s1 + $0xb8] sm:$0xff]  }
  0x11   : > { %1711 = vmatpush3.bf16.msra.mxu1 %v1874_v11  ;;  %1648 = vmatprep.subr.bf16.mxu0 %v1875_v12  ;;  %v1895_v32 = vld [vmem:[%s2117_s26] ss:$20 sps:$4 sm:$0xff]   ;;  %v1897_v33 = vld [vmem:[%s2117_s26 + $0x4] ss:$20 sps:$4 sm:$0xff]   ;;  %v1898_v34 = vld [vmem:[%s2117_s26 + $0x8] ss:$20 sps:$4 sm:$0xff]  }
  0x12   : > { %1712 = vmatprep.subr.bf16.mxu1 %v1876_v13  ;;  %v1900_v35 = vld [vmem:[%s2117_s26 + $0xc] ss:$20 sps:$4 sm:$0xff]   ;;  %879 = vmatprep.mubr.bf16.mxu0 %v1897_v33  ;;  %v1904_v38 = vld [vmem:[%s2117_s26 + $0x34] ss:$20 sps:$4 sm:$0xff]   ;;  %v1907_v40 = vld [vmem:[%s2117_s26 + $0x30] ss:$20 sps:$4 sm:$0xff]  }
  0x13   : > { %976 = vmatprep.mubr.bf16.mxu1 %v1900_v35  ;;  %v1902_v37 = vld [vmem:[%s2117_s26 + $0x2c] ss:$20 sps:$4 sm:$0xff]   ;;  %v1906_v39 = vld [vmem:[%s2117_s26 + $0x28] ss:$20 sps:$4 sm:$0xff]   ;;  %v1912_v44 = vld [vmem:[%s2117_s26 + $0x50] ss:$20 sps:$4 sm:$0xff]  }
  0x14   : > { %1649 = vmatpush3.bf16.msra.mxu0 %v1877_v14  ;;  %v1908_v41 = vld [vmem:[%s2117_s26 + $0x54] ss:$20 sps:$4 sm:$0xff]   ;;  %v1910_v43 = vld [vmem:[%s2117_s26 + $0x5c] ss:$20 sps:$4 sm:$0xff]   ;;  %v1913_v45 = vld [vmem:[%s2117_s26 + $0x58] ss:$20 sps:$4 sm:$0xff]  }
  0x15   : > { %1713 = vmatpush3.bf16.msra.mxu1 %v1878_v15  ;;  %1650 = vmatprep.subr.bf16.mxu0 %v1879_v16  ;;  %v1927_v46 = vld [vmem:[%s2367_s1 + $0x110] sm:$0xff]   ;;  %v1917_v48 = vld [vmem:[%s2117_s26 + $0x84] ss:$20 sps:$4 sm:$0xff]   ;;  %v1923_v53 = vld [vmem:[%s2117_s26 + $0xac] ss:$20 sps:$4 sm:$0xff]  }
  0x16   : > { %1714 = vmatprep.subr.bf16.mxu1 %v1880_v17  ;;  %v1915_v47 = vld [vmem:[%s2117_s26 + $0x7c] ss:$20 sps:$4 sm:$0xff]   ;;  %v1919_v50 = vld [vmem:[%s2117_s26 + $0x78] ss:$20 sps:$4 sm:$0xff]   ;;  %v1920_v51 = vld [vmem:[%s2117_s26 + $0x80] ss:$20 sps:$4 sm:$0xff]  }
  0x17   : > { %v1940_v49 = vld [vmem:[%s2367_s1 + $0x118] sm:$0xff]   ;;  %v1925_v54 = vld [vmem:[%s2117_s26 + $0xa0] ss:$20 sps:$4 sm:$0xff]   ;;  %v1933_v59 = vld [vmem:[%s2117_s26 + $0xd0] ss:$20 sps:$4 sm:$0xff]  }
  0x18   : > { %1651 = vmatpush3.bf16.msra.mxu0 %v1881_v18  ;;  %v1921_v52 = vld [vmem:[%s2117_s26 + $0xa4] ss:$20 sps:$4 sm:$0xff]   ;;  %v1926_v55 = vld [vmem:[%s2117_s26 + $0xa8] ss:$20 sps:$4 sm:$0xff]   ;;  %v1928_v56 = vld [vmem:[%s2117_s26 + $0xcc] ss:$20 sps:$4 sm:$0xff]  }
  0x19   : > { %1715 = vmatpush3.bf16.msra.mxu1 %v1882_v19  ;;  %1652 = vmatprep.subr.bf16.mxu0 %v1883_v20  ;;  %v1930_v57 = vld [vmem:[%s2117_s26 + $0xd4] ss:$20 sps:$4 sm:$0xff]   ;;  %v1936_v61 = vld [vmem:[%s2117_s26 + $0xfc] ss:$20 sps:$4 sm:$0xff]   ;;  %v1939_v63 = vld [vmem:[%s2117_s26 + $0xf8] ss:$20 sps:$4 sm:$0xff]  }
  0x1a   : > { %1716 = vmatprep.subr.bf16.mxu1 %v1884_v21  ;;  %v1932_v58 = vld [vmem:[%s2117_s26 + $0xc8] ss:$20 sps:$4 sm:$0xff]   ;;  %v1938_v62 = vld [vmem:[%s2117_s26 + $0xf0] ss:$20 sps:$4 sm:$0xff]   ;;  %v1945_v2 = vld [vmem:[%s2117_s26 + $0x118] ss:$20 sps:$4 sm:$0xff]  }
  0x1b   : > { %v1934_v60 = vld [vmem:[%s2117_s26 + $0xf4] ss:$20 sps:$4 sm:$0xff]   ;;  %v1941_v0 = vld [vmem:[%s2117_s26 + $0x11c] ss:$20 sps:$4 sm:$0xff]   ;;  %v1943_v1 = vld [vmem:[%s2117_s26 + $0x124] ss:$20 sps:$4 sm:$0xff]  }
  0x1c   : > { %1653 = vmatpush3.bf16.msra.mxu0 %v1885_v22  ;;  %v1946_v3 = vld [vmem:[%s2117_s26 + $0x120] ss:$20 sps:$4 sm:$0xff]   ;;  %v1947_v4 = vld [vmem:[%s2117_s26 + $0x10] ss:$20 sps:$4 sm:$0xff]   ;;  %v1948_v5 = vld [vmem:[%s2117_s26 + $0x38] ss:$20 sps:$4 sm:$0xff]  }
  0x1d   : > { %1717 = vmatpush3.bf16.msra.mxu1 %v1886_v23  ;;  %1654 = vmatprep.subr.bf16.mxu0 %v1887_v24  ;;  %v1949_v6 = vld [vmem:[%s2117_s26 + $0x60] ss:$20 sps:$4 sm:$0xff]   ;;  %v1950_v7 = vld [vmem:[%s2117_s26 + $0x88] ss:$20 sps:$4 sm:$0xff]   ;;  %v1951_v8 = vld [vmem:[%s2117_s26 + $0xb0] ss:$20 sps:$4 sm:$0xff]  }
  0x1e   : > { %1718 = vmatprep.subr.bf16.mxu1 %v1888_v25  ;;  %v1952_v9 = vld [vmem:[%s2117_s26 + $0xd8] ss:$20 sps:$4 sm:$0xff]   ;;  %v1953_v10 = vld [vmem:[%s2117_s26 + $0x100] ss:$20 sps:$4 sm:$0xff]   ;;  %v1954_v11 = vld [vmem:[%s2117_s26 + $0x128] ss:$20 sps:$4 sm:$0xff]  }
  0x1f   : > { %v1955_v12 = vld [vmem:[%s2370_s4] sm:$0xff]   ;;  %v1956_v13 = vld [vmem:[%s2370_s4 + $0x8] sm:$0xff]   ;;  %v1957_v14 = vld [vmem:[%s2370_s4 + $0x10] sm:$0xff]  }
  0x20   : > { %1655 = vmatpush3.bf16.msra.mxu0 %v1889_v26  ;;  %v1958_v15 = vld [vmem:[%s2370_s4 + $0x18] sm:$0xff]   ;;  %v1959_v16 = vld [vmem:[%s2370_s4 + $0x20] sm:$0xff]   ;;  %v1960_v17 = vld [vmem:[%s2370_s4 + $0x28] sm:$0xff]  }
  0x21   : > { %1719 = vmatpush3.bf16.msra.mxu1 %v1890_v27  ;;  %1656 = vmatprep.subr.bf16.mxu0 %v1891_v28  ;;  %v1961_v18 = vld [vmem:[%s2370_s4 + $0x30] sm:$0xff]   ;;  %v1962_v19 = vld [vmem:[%s2370_s4 + $0x38] sm:$0xff]  }
  0x22   : > { %1720 = vmatprep.subr.bf16.mxu1 %v1892_v29 }
  0x24   : > { %1657 = vmatpush3.bf16.msra.mxu0 %v1893_v30 }
  0x25   : > { %1721 = vmatpush3.bf16.msra.mxu1 %v1894_v31  ;;  %1798 = vmatprep.subr.bf16.mxu0 %v1901_v36 }
  0x26   : > { %1822 = vmatprep.subr.bf16.mxu1 %v1955_v12 }
  0x27   : > { %880 = vmatmul.mubr.bf16.vlgmr.msra.gmra.mrb[0].mxu0 %v1895_v32 }
  0x28   : > { %977 = vmatmul.mubr.bf16.vlgmr.msra.gmra.mrb[0].mxu1 %v1898_v34  ;;  %1799 = vmatpush3.bf16.msra.mxu0 %v1901_v36 }
  0x29   : > { %887 = vmatprep.mubr.bf16.mxu0 %v1902_v37  ;;  %984 = vmatprep.mubr.bf16.mxu1 %v1904_v38 }
  0x2a   : > { %1800 = vmatprep.subr.bf16.mxu0 %v1914_v42  ;;  %1823 = vmatpush3.bf16.msra.mxu1 %v1955_v12 }
  0x2b   : > { %1824 = vmatprep.subr.bf16.mxu1 %v1956_v13 }
  0x2c   : > { %1801 = vmatpush3.bf16.msra.mxu0 %v1914_v42 }
  0x2d   : > { %1802 = vmatprep.subr.bf16.mxu0 %v1927_v46 }
  0x2e   : > { %1825 = vmatpush3.bf16.msra.mxu1 %v1956_v13 }
  0x2f   : > { %888 = vmatmul.mubr.bf16.gmra.mrb[4].mxu0 %v1906_v39  ;;  %1826 = vmatprep.subr.bf16.mxu1 %v1957_v14 }
  0x30   : > { %985 = vmatmul.mubr.bf16.gmra.mrb[4].mxu1 %v1907_v40  ;;  %895 = vmatprep.mubr.bf16.mxu0 %v1908_v41 }
  0x31   : > { %992 = vmatprep.mubr.bf16.mxu1 %v1910_v43  ;;  %1803 = vmatpush3.bf16.msra.mxu0 %v1927_v46 }
  0x32   : > { %1804 = vmatprep.subr.bf16.mxu0 %v1940_v49  ;;  %1827 = vmatpush3.bf16.msra.mxu1 %v1957_v14 }
  0x33   : > { %1828 = vmatprep.subr.bf16.mxu1 %v1958_v15 }
  0x35   : > { %1805 = vmatpush3.bf16.msra.mxu0 %v1940_v49 }
  0x36   : > { %1829 = vmatpush3.bf16.msra.mxu1 %v1958_v15 }
  0x37   : > { %896 = vmatmul.mubr.bf16.gmra.mrb[8].mxu0 %v1912_v44  ;;  %1830 = vmatprep.subr.bf16.mxu1 %v1959_v16 }
  0x38   : > { %993 = vmatmul.mubr.bf16.gmra.mrb[8].mxu1 %v1913_v45  ;;  %903 = vmatprep.mubr.bf16.mxu0 %v1915_v47 }
  0x39   : > { %1000 = vmatprep.mubr.bf16.mxu1 %v1917_v48 }
  0x3a   : > { %1831 = vmatpush3.bf16.msra.mxu1 %v1959_v16 }
  0x3b   : > { %1832 = vmatprep.subr.bf16.mxu1 %v1960_v17 }
  0x3e   : > { %1833 = vmatpush3.bf16.msra.mxu1 %v1960_v17 }
  0x3f   : > { %904 = vmatmul.mubr.bf16.gmra.mrb[12].mxu0 %v1919_v50  ;;  %1834 = vmatprep.subr.bf16.mxu1 %v1961_v18 }
  0x40   : > { %1001 = vmatmul.mubr.bf16.gmra.mrb[12].mxu1 %v1920_v51  ;;  %911 = vmatprep.mubr.bf16.mxu0 %v1921_v52 }
  0x41   : > { %1008 = vmatprep.mubr.bf16.mxu1 %v1923_v53 }
  0x42   : > { %1835 = vmatpush3.bf16.msra.mxu1 %v1961_v18 }
  0x43   : > { %1836 = vmatprep.subr.bf16.mxu1 %v1962_v19 }
  0x46   : > { %1837 = vmatpush3.bf16.msra.mxu1 %v1962_v19 }
  0x47   : > { %912 = vmatmul.mubr.bf16.gmra.mrb[16].mxu0 %v1925_v54 }
  0x48   : > { %1009 = vmatmul.mubr.bf16.gmra.mrb[16].mxu1 %v1926_v55  ;;  %919 = vmatprep.mubr.bf16.mxu0 %v1928_v56 }
  0x49   : > { %1016 = vmatprep.mubr.bf16.mxu1 %v1930_v57 }
  0x4f   : > { %920 = vmatmul.mubr.bf16.gmra.mrb[20].mxu0 %v1932_v58 }
  0x50   : > { %1017 = vmatmul.mubr.bf16.gmra.mrb[20].mxu1 %v1933_v59  ;;  %927 = vmatprep.mubr.bf16.mxu0 %v1934_v60 }
  0x51   : > { %1024 = vmatprep.mubr.bf16.mxu1 %v1936_v61 }
  0x57   : > { %928 = vmatmul.mubr.bf16.gmra.mrb[24].mxu0 %v1938_v62 }
  0x58   : > { %1025 = vmatmul.mubr.bf16.gmra.mrb[24].mxu1 %v1939_v63  ;;  %935 = vmatprep.mubr.bf16.mxu0 %v1941_v0 }
  0x59   : > { %1032 = vmatprep.mubr.bf16.mxu1 %v1943_v1 }
  0x5f   : > { %936 = vmatmul.mubr.bf16.gmra.mrb[28].mxu0 %v1945_v2 }
  0x60   : > { %1033 = vmatmul.mubr.bf16.gmra.mrb[28].mxu1 %v1946_v3  ;;  %1806 = vmatprep.mubr.msk.bf16.mxu0 %vm822_vm0, %v1947_v4 }
  0x67   : > { %1807 = vmatmul.mubr.msk.bf16.vlgmr.msra.gmra.mrb[32].mxu0 %vm822_vm0, %v1948_v5 }
  0x68   : > { %1810 = vmatprep.mubr.msk.bf16.mxu0 %vm822_vm0, %v1949_v6 }
  0x6f   : > { %1811 = vmatmul.mubr.msk.bf16.gmra.mrb[36].mxu0 %vm822_vm0, %v1950_v7 }
  0x70   : > { %1814 = vmatprep.mubr.msk.bf16.mxu0 %vm822_vm0, %v1951_v8 }
  0x77   : > { %1815 = vmatmul.mubr.msk.bf16.gmra.mrb[40].mxu0 %vm822_vm0, %v1952_v9 }
  0x78   : > { %1818 = vmatprep.mubr.msk.bf16.mxu0 %vm822_vm0, %v1953_v10 }
  0x7f   : > { %1819 = vmatmul.mubr.msk.bf16.gmra.mrb[44].mxu0 %vm822_vm0, %v1954_v11 }
  0xfa   : > { %v1658_v20 = vpop.f32.mrb[0].mxu0 }
  0xfb   : > { %v1722_v21 = vpop.f32.mrb[0].mxu1  ;;  %v1659_v22 = vpop.f32.mrb[1].mxu0 }
  0xfc   : > { %v1660_v23 = vadd.f32 %v1659_v22, %v1658_v20  ;;  %v1723_v24 = vpop.f32.mrb[1].mxu1  ;;  %v1661_v25 = vpop.f32.mrb[2].mxu0 }
  0xfd   : > { %v1724_v26 = vadd.f32 %v1723_v24, %v1722_v21  ;;  %v1725_v27 = vpop.f32.mrb[2].mxu1  ;;  %v1662_v28 = vpop.f32.mrb[3].mxu0 }
  0xfe   : > { %v1663_v29 = vadd.f32 %v1662_v28, %v1661_v25  ;;  %v1726_v30 = vpop.f32.mrb[3].mxu1 }
  0xff   : > { %v1727_v31 = vadd.f32 %v1726_v30, %v1725_v27  ;;  %v2209_v32 = vadd.f32 %v1724_v26, %v1660_v23 }
 0x101   : > { %v2211_v33 = vadd.f32 %v1727_v31, %v1663_v29 }
 0x102   : > { %v1664_v34 = vpop.f32.mrb[4].mxu0 }
 0x103   : > { %v1728_v35 = vpop.f32.mrb[4].mxu1  ;;  %v1665_v36 = vpop.f32.mrb[5].mxu0 }
 0x104   : > { %v1666_v37 = vadd.f32 %v1665_v36, %v1664_v34  ;;  %v1729_v38 = vpop.f32.mrb[5].mxu1  ;;  %v1667_v39 = vpop.f32.mrb[6].mxu0 }
 0x105   : > { %v1730_v40 = vadd.f32 %v1729_v38, %v1728_v35  ;;  %v1731_v41 = vpop.f32.mrb[6].mxu1  ;;  %v1668_v42 = vpop.f32.mrb[7].mxu0 }
 0x106   : > { %v1669_v43 = vadd.f32 %v1668_v42, %v1667_v39  ;;  %v1732_v44 = vpop.f32.mrb[7].mxu1 }
 0x107   : > { %v1733_v45 = vadd.f32 %v1732_v44, %v1731_v41  ;;  %v2213_v46 = vadd.f32 %v1730_v40, %v1666_v37 }
 0x109   : > { %v2215_v47 = vadd.f32 %v1733_v45, %v1669_v43 }
 0x10a   : > { %v1670_v48 = vpop.f32.mrb[8].mxu0 }
 0x10b   : > { %v1734_v49 = vpop.f32.mrb[8].mxu1  ;;  %v1671_v50 = vpop.f32.mrb[9].mxu0 }
 0x10c   : > { %v1672_v51 = vadd.f32 %v1671_v50, %v1670_v48  ;;  %v1735_v52 = vpop.f32.mrb[9].mxu1  ;;  %v1673_v53 = vpop.f32.mrb[10].mxu0 }
 0x10d   : > { %v1736_v54 = vadd.f32 %v1735_v52, %v1734_v49  ;;  %v1737_v55 = vpop.f32.mrb[10].mxu1  ;;  %v1674_v56 = vpop.f32.mrb[11].mxu0 }
 0x10e   : > { %v1675_v57 = vadd.f32 %v1674_v56, %v1673_v53  ;;  %v1738_v58 = vpop.f32.mrb[11].mxu1 }
 0x10f   : > { %v1739_v59 = vadd.f32 %v1738_v58, %v1737_v55  ;;  %v2217_v60 = vadd.f32 %v1736_v54, %v1672_v51 }
 0x111   : > { %v2219_v61 = vadd.f32 %v1739_v59, %v1675_v57 }
 0x112   : > { %v1676_v62 = vpop.f32.mrb[12].mxu0 }
 0x113   : > { %v1740_v63 = vpop.f32.mrb[12].mxu1  ;;  %v1677_v0 = vpop.f32.mrb[13].mxu0 }
 0x114   : > { %v1678_v1 = vadd.f32 %v1677_v0, %v1676_v62  ;;  %v1741_v2 = vpop.f32.mrb[13].mxu1  ;;  %v1679_v3 = vpop.f32.mrb[14].mxu0 }
 0x115   : > { %v1742_v4 = vadd.f32 %v1741_v2, %v1740_v63  ;;  %v1743_v5 = vpop.f32.mrb[14].mxu1  ;;  %v1680_v6 = vpop.f32.mrb[15].mxu0 }
 0x116   : > { %v1681_v7 = vadd.f32 %v1680_v6, %v1679_v3  ;;  %v1744_v8 = vpop.f32.mrb[15].mxu1 }
 0x117   : > { %v1745_v9 = vadd.f32 %v1744_v8, %v1743_v5  ;;  %v2221_v10 = vadd.f32 %v1742_v4, %v1678_v1 }
 0x119   : > { %v2223_v11 = vadd.f32 %v1745_v9, %v1681_v7 }
 0x11a   : > { %v1682_v12 = vpop.f32.mrb[16].mxu0 }
 0x11b   : > { %v1746_v13 = vpop.f32.mrb[16].mxu1  ;;  %v1683_v14 = vpop.f32.mrb[17].mxu0 }
 0x11c   : > { %v1684_v15 = vadd.f32 %v1683_v14, %v1682_v12  ;;  %v1747_v16 = vpop.f32.mrb[17].mxu1  ;;  %v1685_v17 = vpop.f32.mrb[18].mxu0 }
 0x11d   : > { %v1748_v18 = vadd.f32 %v1747_v16, %v1746_v13  ;;  %v1749_v19 = vpop.f32.mrb[18].mxu1  ;;  %v1686_v20 = vpop.f32.mrb[19].mxu0  ;;  %v2244_v13 = vld [vmem:[%s2368_s2] ss:$0 sm:$0xff] }
 0x11e   : > { %v1687_v21 = vadd.f32 %v1686_v20, %v1685_v17  ;;  %v1750_v22 = vpop.f32.mrb[19].mxu1  ;;  %v2250_v16 = vld [vmem:[%s2369_s3] ss:$0 sm:$0xff] }
 0x11f   : > { %v1751_v23 = vadd.f32 %v1750_v22, %v1749_v19  ;;  %v2225_v24 = vadd.f32 %v1748_v18, %v1684_v15 }
 0x121   : > { %v2227_v25 = vadd.f32 %v1751_v23, %v1687_v21 }
 0x122   : > { %v1688_v26 = vpop.f32.mrb[20].mxu0 }
 0x123   : > { %v1752_v27 = vpop.f32.mrb[20].mxu1  ;;  %v1689_v28 = vpop.f32.mrb[21].mxu0 }
 0x124   : > { %v1690_v29 = vadd.f32 %v1689_v28, %v1688_v26  ;;  %v1753_v30 = vpop.f32.mrb[21].mxu1  ;;  %v1691_v31 = vpop.f32.mrb[22].mxu0 }
 0x125   : > { %v1754_v34 = vadd.f32 %v1753_v30, %v1752_v27  ;;  %v1755_v35 = vpop.f32.mrb[22].mxu1  ;;  %v1692_v36 = vpop.f32.mrb[23].mxu0 }
 0x126   : > { %v1693_v37 = vadd.f32 %v1692_v36, %v1691_v31  ;;  %v1756_v38 = vpop.f32.mrb[23].mxu1 }
 0x127   : > { %v1757_v39 = vadd.f32 %v1756_v38, %v1755_v35  ;;  %v2229_v40 = vadd.f32 %v1754_v34, %v1690_v29 }
 0x129   : > { %v2231_v41 = vadd.f32 %v1757_v39, %v1693_v37 }
 0x12a   : > { %v1694_v42 = vpop.f32.mrb[24].mxu0 }
 0x12b   : > { %v1758_v43 = vpop.f32.mrb[24].mxu1  ;;  %v1695_v44 = vpop.f32.mrb[25].mxu0 }
 0x12c   : > { %v1696_v45 = vadd.f32 %v1695_v44, %v1694_v42  ;;  %v1759_v48 = vpop.f32.mrb[25].mxu1  ;;  %v1697_v49 = vpop.f32.mrb[26].mxu0 }
 0x12d   : > { %v1760_v50 = vadd.f32 %v1759_v48, %v1758_v43  ;;  %v1761_v51 = vpop.f32.mrb[26].mxu1  ;;  %v1698_v52 = vpop.f32.mrb[27].mxu0 }
 0x12e   : > { %v1699_v53 = vadd.f32 %v1698_v52, %v1697_v49  ;;  %v1762_v54 = vpop.f32.mrb[27].mxu1 }
 0x12f   : > { %v1763_v55 = vadd.f32 %v1762_v54, %v1761_v51  ;;  %v2233_v56 = vadd.f32 %v1760_v50, %v1696_v45 }
 0x131   : > { %v2235_v57 = vadd.f32 %v1763_v55, %v1699_v53 }
 0x132   : > { %v1700_v58 = vpop.f32.mrb[28].mxu0 }
 0x133   : > { %v1764_v59 = vpop.f32.mrb[28].mxu1  ;;  %v1701_v62 = vpop.f32.mrb[29].mxu0 }
 0x134   : > { %v1702_v63 = vadd.f32 %v1701_v62, %v1700_v58  ;;  %v1765_v0 = vpop.f32.mrb[29].mxu1  ;;  %v1703_v1 = vpop.f32.mrb[30].mxu0 }
 0x135   : > { %v1766_v2 = vadd.f32 %v1765_v0, %v1764_v59  ;;  %v1767_v3 = vpop.f32.mrb[30].mxu1  ;;  %v1704_v4 = vpop.f32.mrb[31].mxu0 }
 0x136   : > { %v1705_v5 = vadd.f32 %v1704_v4, %v1703_v1  ;;  %v1768_v6 = vpop.f32.mrb[31].mxu1 }
 0x137   : > { %v1769_v7 = vadd.f32 %v1768_v6, %v1767_v3  ;;  %v2237_v8 = vadd.f32 %v1766_v2, %v1702_v63 }
 0x139   : > { %v2239_v9 = vadd.f32 %v1769_v7, %v1705_v5 }
 0x13a   : > { %v1808_v12 = vpop.f32.mrb[32].mxu0 }
 0x13b   : > { %v1084_v14 = vadd.f32 %v1808_v12, %v2213_v46  ;;  %v1075_v15 = vpop.f32.mrb[33].mxu0 }
 0x13c   : > { %v1076_v17 = vadd.f32 %v1075_v15, %v2209_v32  ;;  %v1809_v18 = vpop.f32.mrb[34].mxu0 }
 0x13d   : > { %v1147_v19 = vmul.f32 %v2244_v13, %v1084_v14  ;;  %v1087_v20 = vadd.f32 %v1809_v18, %v2215_v47  ;;  %v1078_v21 = vpop.f32.mrb[35].mxu0 }
 0x13e   : > { %v1145_v22 = vmul.f32 %v2244_v13, %v1076_v17  ;;  %v1079_v23 = vadd.f32 %v1078_v21, %v2211_v33 }
 0x13f   : > { %v1170_v46 = vadd.f32 %v2250_v16, %v1147_v19  ;;  %v1148_v26 = vmul.f32 %v2244_v13, %v1087_v20 }
 0x140   : > { %v1168_v27 = vadd.f32 %v2250_v16, %v1145_v22  ;;  %v1146_v28 = vmul.f32 %v2244_v13, %v1079_v23 }
 0x141   : > { %v1171_v32 = vadd.f32 %v2250_v16, %v1148_v26  ;;  %v1186_v31 = vmax.f32 %v1170_v46, 0.0 }
 0x142   : > { %v1169_v29 = vadd.f32 %v2250_v16, %v1146_v28  ;;  %v1812_v30 = vpop.f32.mrb[36].mxu0  ;;  %v1184_v36 = vmax.f32 %v1168_v27, 0.0 }
 0x143   : > { %v1187_v47 = vmax.f32 %v1171_v32, 0.0  ;;  %v1100_v34 = vadd.f32 %v1812_v30, %v2221_v10  ;;  %v1091_v35 = vpop.f32.mrb[37].mxu0 }
 0x144   : > { %v1185_v33 = vmax.f32 %v1169_v29, 0.0  ;;  %v1092_v37 = vadd.f32 %v1091_v35, %v2217_v60  ;;  %v1813_v38 = vpop.f32.mrb[38].mxu0 }
 0x145   : > { %v1201_v39 = vpack.c.bf16 %v1187_v47, %v1186_v31  ;;  %v1151_v42 = vmul.f32 %v2244_v13, %v1100_v34  ;;  %v1103_v43 = vadd.f32 %v1813_v38, %v2223_v11  ;;  %v1094_v44 = vpop.f32.mrb[39].mxu0 }
 0x146   : > { %v1149_v45 = vmul.f32 %v2244_v13, %v1092_v37  ;;  %v1095_v48 = vadd.f32 %v1094_v44, %v2219_v61  ;;  %v1200_v49 = vpack.c.bf16 %v1185_v33, %v1184_v36 }
 0x147   : > { %v1174_v50 = vadd.f32 %v2250_v16, %v1151_v42  ;;  %v1152_v10 = vmul.f32 %v2244_v13, %v1103_v43  ;;  %v2302_v42 = vld [vmem:[%s2371_s5] ss:$0 sm:$0xff] }
 0x148   : > { %v1172_v51 = vadd.f32 %v2250_v16, %v1149_v45  ;;  %v1150_v60 = vmul.f32 %v2244_v13, %v1095_v48  ;;  %1838 = vmatprep.mubr.bf16.mxu1 %v1200_v49  ;;  %v2307_v43 = vld [vmem:[%s2372_s6] ss:$0 sm:$0xff] }
 0x149   : > { %v1175_v52 = vadd.f32 %v2250_v16, %v1152_v10  ;;  %1839 = vmatmul.mubr.bf16.vlgmr.msra.gmra.mrb[32].mxu1 %v1201_v39  ;;  %v1190_v54 = vmax.f32 %v1174_v50, 0.0 }
 0x14a   : > { %v1173_v11 = vadd.f32 %v2250_v16, %v1150_v60  ;;  %v1816_v53 = vpop.f32.mrb[40].mxu0  ;;  %v1188_v59 = vmax.f32 %v1172_v51, 0.0 }
 0x14b   : > { %v1191_v55 = vmax.f32 %v1175_v52, 0.0  ;;  %v1116_v61 = vadd.f32 %v1816_v53, %v2229_v40  ;;  %v1107_v58 = vpop.f32.mrb[41].mxu0 }
 0x14c   : > { %v1189_v62 = vmax.f32 %v1173_v11, 0.0  ;;  %v1108_v63 = vadd.f32 %v1107_v58, %v2225_v24  ;;  %v1817_v0 = vpop.f32.mrb[42].mxu0 }
 0x14d   : > { %v1155_v1 = vmul.f32 %v2244_v13, %v1116_v61  ;;  %v1119_v2 = vadd.f32 %v1817_v0, %v2231_v41  ;;  %v1110_v3 = vpop.f32.mrb[43].mxu0  ;;  %v1203_v4 = vpack.c.bf16 %v1191_v55, %v1190_v54 }
 0x14e   : > { %v1153_v5 = vmul.f32 %v2244_v13, %v1108_v63  ;;  %v1111_v6 = vadd.f32 %v1110_v3, %v2227_v25  ;;  %v1202_v7 = vpack.c.bf16 %v1189_v62, %v1188_v59 }
 0x14f   : > { %v1178_v12 = vadd.f32 %v2250_v16, %v1155_v1  ;;  %v1156_v40 = vmul.f32 %v2244_v13, %v1119_v2 }
 0x150   : > { %v1176_v14 = vadd.f32 %v2250_v16, %v1153_v5  ;;  %v1154_v24 = vmul.f32 %v2244_v13, %v1111_v6  ;;  %1842 = vmatprep.mubr.bf16.mxu1 %v1202_v7 }
 0x151   : > { %v1179_v15 = vadd.f32 %v2250_v16, %v1156_v40  ;;  %1843 = vmatmul.mubr.bf16.gmra.mrb[36].mxu1 %v1203_v4  ;;  %v1194_v18 = vmax.f32 %v1178_v12, 0.0 }
 0x152   : > { %v1177_v41 = vadd.f32 %v2250_v16, %v1154_v24  ;;  %v1820_v17 = vpop.f32.mrb[44].mxu0  ;;  %v1192_v21 = vmax.f32 %v1176_v14, 0.0 }
 0x153   : > { %v1195_v19 = vmax.f32 %v1179_v15, 0.0  ;;  %v1132_v25 = vadd.f32 %v1820_v17, %v2237_v8  ;;  %v1123_v20 = vpop.f32.mrb[45].mxu0 }
 0x154   : > { %v1193_v22 = vmax.f32 %v1177_v41, 0.0  ;;  %v1124_v23 = vadd.f32 %v1123_v20, %v2233_v56  ;;  %v1821_v46 = vpop.f32.mrb[46].mxu0 }
 0x155   : > { %v1159_v26 = vmul.f32 %v2244_v13, %v1132_v25  ;;  %v1135_v27 = vadd.f32 %v1821_v46, %v2239_v9  ;;  %v1126_v28 = vpop.f32.mrb[47].mxu0  ;;  %v1205_v32 = vpack.c.bf16 %v1195_v19, %v1194_v18 }
 0x156   : > { %v1157_v29 = vmul.f32 %v2244_v13, %v1124_v23  ;;  %v1127_v30 = vadd.f32 %v1126_v28, %v2235_v57  ;;  %v1204_v31 = vpack.c.bf16 %v1193_v22, %v1192_v21 }
 0x157   : > { %v1182_v47 = vadd.f32 %v2250_v16, %v1159_v26  ;;  %v1160_v8 = vmul.f32 %v2244_v13, %v1135_v27 }
 0x158   : > { %v1180_v34 = vadd.f32 %v2250_v16, %v1157_v29  ;;  %v1158_v56 = vmul.f32 %v2244_v13, %v1127_v30  ;;  %1846 = vmatprep.mubr.bf16.mxu1 %v1204_v31 }
 0x159   : > { %v1183_v35 = vadd.f32 %v2250_v16, %v1160_v8  ;;  %1847 = vmatmul.mubr.bf16.gmra.mrb[40].mxu1 %v1205_v32  ;;  %v1198_v36 = vmax.f32 %v1182_v47, 0.0 }
 0x15a   : > { %v1181_v9 = vadd.f32 %v2250_v16, %v1158_v56  ;;  %v1196_v37 = vmax.f32 %v1180_v34, 0.0 }
 0x15b   : > { %v1199_v33 = vmax.f32 %v1183_v35, 0.0 }
 0x15c   : > { %v1197_v57 = vmax.f32 %v1181_v9, 0.0 }
 0x15d   : > { %v1207_v38 = vpack.c.bf16 %v1199_v33, %v1198_v36 }
 0x15e   : > { %v1206_v39 = vpack.c.bf16 %v1197_v57, %v1196_v37 }
 0x160   : > { %1850 = vmatprep.mubr.bf16.mxu1 %v1206_v39 }
 0x161   : > { %1851 = vmatmul.mubr.bf16.gmra.mrb[44].mxu1 %v1207_v38 }
 0x21c   : > { %v1840_v13 = vpop.f32.mrb[32].mxu1 }
 0x21d   : > { %v1378_v16 = vmul.f32 %v1840_v13, %v2302_v42  ;;  %v1306_v44 = vpop.f32.mrb[33].mxu1 }
 0x21e   : > { %v1376_v45 = vmul.f32 %v2302_v42, %v1306_v44  ;;  %v1841_v48 = vpop.f32.mrb[34].mxu1 }
 0x21f   : > { %v1401_v49 = vadd.f32 %v2307_v43, %v1378_v16  ;;  %v1379_v50 = vmul.f32 %v1841_v48, %v2302_v42  ;;  %v1309_v10 = vpop.f32.mrb[35].mxu1 }
 0x220   : > { %v1399_v51 = vadd.f32 %v2307_v43, %v1376_v45  ;;  %v1377_v60 = vmul.f32 %v2302_v42, %v1309_v10 }
 0x221   : > { %vm1417_vm1 = vcmp.ge.f32.partialorder %v1401_v49, 0.0  ;;  %v1433_v52 = vmul.f32 0.2, %v1401_v49  ;;  %v1402_v11 = vadd.f32 %v2307_v43, %v1379_v50 }
 0x222   : > { %vm1415_vm2 = vcmp.ge.f32.partialorder %v1399_v51, 0.0  ;;  %v1431_v53 = vmul.f32 0.2, %v1399_v51  ;;  %v1400_v54 = vadd.f32 %v2307_v43, %v1377_v60 }
 0x223   : > { %v1449_v55 = vsel %vm1417_vm1, %v1401_v49, %v1433_v52  ;;  %vm1418_vm3 = vcmp.ge.f32.partialorder %v1402_v11, 0.0  ;;  %v1434_v61 = vmul.f32 0.2, %v1402_v11 }
 0x224   : > { %1465 = vst [vmem:[%s2319_s22 + $0x10] sm:$0xff] %v1449_v55  ;;  %v1447_v58 = vsel %vm1415_vm2, %v1399_v51, %v1431_v53  ;;  %vm1416_vm4 = vcmp.ge.f32.partialorder %v1400_v54, 0.0  ;;  %v1432_v59 = vmul.f32 0.2, %v1400_v54  ;;  %v1844_v62 = vpop.f32.mrb[36].mxu1 }
 0x225   : > { %1463 = vst [vmem:[%s2319_s22] sm:$0xff] %v1447_v58  ;;  %v1450_v63 = vsel %vm1418_vm3, %v1402_v11, %v1434_v61  ;;  %v1382_v0 = vmul.f32 %v1844_v62, %v2302_v42  ;;  %v1322_v1 = vpop.f32.mrb[37].mxu1 }
 0x226   : > { %1466 = vst [vmem:[%s2319_s22 + $0x18] sm:$0xff] %v1450_v63  ;;  %v1448_v2 = vsel %vm1416_vm4, %v1400_v54, %v1432_v59  ;;  %v1380_v3 = vmul.f32 %v2302_v42, %v1322_v1  ;;  %v1845_v4 = vpop.f32.mrb[38].mxu1 }
 0x227   : > { %1464 = vst [vmem:[%s2319_s22 + $0x8] sm:$0xff] %v1448_v2  ;;  %v1405_v5 = vadd.f32 %v2307_v43, %v1382_v0  ;;  %v1383_v6 = vmul.f32 %v1845_v4, %v2302_v42  ;;  %v1325_v7 = vpop.f32.mrb[39].mxu1 }
 0x228   : > { %v1403_v12 = vadd.f32 %v2307_v43, %v1380_v3  ;;  %v1381_v40 = vmul.f32 %v2302_v42, %v1325_v7 }
 0x229   : > { %vm1421_vm5 = vcmp.ge.f32.partialorder %v1405_v5, 0.0  ;;  %v1437_v14 = vmul.f32 0.2, %v1405_v5  ;;  %v1406_v24 = vadd.f32 %v2307_v43, %v1383_v6 }
 0x22a   : > { %vm1419_vm6 = vcmp.ge.f32.partialorder %v1403_v12, 0.0  ;;  %v1435_v15 = vmul.f32 0.2, %v1403_v12  ;;  %v1404_v41 = vadd.f32 %v2307_v43, %v1381_v40 }
 0x22b   : > { %v1453_v17 = vsel %vm1421_vm5, %v1405_v5, %v1437_v14  ;;  %vm1422_vm7 = vcmp.ge.f32.partialorder %v1406_v24, 0.0  ;;  %v1438_v18 = vmul.f32 0.2, %v1406_v24 }
 0x22c   : > { %1469 = vst [vmem:[%s2319_s22 + $0x30] sm:$0xff] %v1453_v17  ;;  %v1451_v19 = vsel %vm1419_vm6, %v1403_v12, %v1435_v15  ;;  %vm1420_vm8 = vcmp.ge.f32.partialorder %v1404_v41, 0.0  ;;  %v1436_v25 = vmul.f32 0.2, %v1404_v41  ;;  %v1848_v20 = vpop.f32.mrb[40].mxu1 }
 0x22d   : > { %1467 = vst [vmem:[%s2319_s22 + $0x20] sm:$0xff] %v1451_v19  ;;  %v1454_v21 = vsel %vm1422_vm7, %v1406_v24, %v1438_v18  ;;  %v1386_v22 = vmul.f32 %v1848_v20, %v2302_v42  ;;  %v1338_v23 = vpop.f32.mrb[41].mxu1 }
 0x22e   : > { %1470 = vst [vmem:[%s2319_s22 + $0x38] sm:$0xff] %v1454_v21  ;;  %v1452_v46 = vsel %vm1420_vm8, %v1404_v41, %v1436_v25  ;;  %v1384_v26 = vmul.f32 %v2302_v42, %v1338_v23  ;;  %v1849_v27 = vpop.f32.mrb[42].mxu1 }
 0x22f   : > { %1468 = vst [vmem:[%s2319_s22 + $0x28] sm:$0xff] %v1452_v46  ;;  %v1409_v28 = vadd.f32 %v2307_v43, %v1386_v22  ;;  %v1387_v32 = vmul.f32 %v1849_v27, %v2302_v42  ;;  %v1341_v29 = vpop.f32.mrb[43].mxu1 }
 0x230   : > { %v1407_v30 = vadd.f32 %v2307_v43, %v1384_v26  ;;  %v1385_v31 = vmul.f32 %v2302_v42, %v1341_v29 }
 0x231   : > { %vm1425_vm9 = vcmp.ge.f32.partialorder %v1409_v28, 0.0  ;;  %v1441_v47 = vmul.f32 0.2, %v1409_v28  ;;  %v1410_v8 = vadd.f32 %v2307_v43, %v1387_v32 }
 0x232   : > { %vm1423_vm10 = vcmp.ge.f32.partialorder %v1407_v30, 0.0  ;;  %v1439_v34 = vmul.f32 0.2, %v1407_v30  ;;  %v1408_v56 = vadd.f32 %v2307_v43, %v1385_v31 }
 0x233   : > { %v1457_v35 = vsel %vm1425_vm9, %v1409_v28, %v1441_v47  ;;  %vm1426_vm11 = vcmp.ge.f32.partialorder %v1410_v8, 0.0  ;;  %v1442_v9 = vmul.f32 0.2, %v1410_v8 }
 0x234   : > { %1473 = vst [vmem:[%s2319_s22 + $0x50] sm:$0xff] %v1457_v35  ;;  %v1455_v36 = vsel %vm1423_vm10, %v1407_v30, %v1439_v34  ;;  %vm1424_vm12 = vcmp.ge.f32.partialorder %v1408_v56, 0.0  ;;  %v1440_v33 = vmul.f32 0.2, %v1408_v56  ;;  %v1852_v37 = vpop.f32.mrb[44].mxu1 }
 0x235   : > { %1471 = vst [vmem:[%s2319_s22 + $0x40] sm:$0xff] %v1455_v36  ;;  %v1458_v57 = vsel %vm1426_vm11, %v1410_v8, %v1442_v9  ;;  %v1390_v38 = vmul.f32 %v1852_v37, %v2302_v42  ;;  %v1354_v39 = vpop.f32.mrb[45].mxu1 }
 0x236   : > { %1474 = vst [vmem:[%s2319_s22 + $0x58] sm:$0xff] %v1458_v57  ;;  %v1456_v13 = vsel %vm1424_vm12, %v1408_v56, %v1440_v33  ;;  %v1388_v16 = vmul.f32 %v2302_v42, %v1354_v39  ;;  %v1853_v44 = vpop.f32.mrb[46].mxu1 }
 0x237   : > { %1472 = vst [vmem:[%s2319_s22 + $0x48] sm:$0xff] %v1456_v13  ;;  %v1413_v45 = vadd.f32 %v2307_v43, %v1390_v38  ;;  %v1391_v48 = vmul.f32 %v1853_v44, %v2302_v42  ;;  %v1357_v49 = vpop.f32.mrb[47].mxu1 }
 0x238   : > { %v1411_v50 = vadd.f32 %v2307_v43, %v1388_v16  ;;  %v1389_v10 = vmul.f32 %v2302_v42, %v1357_v49 }
 0x239   : > { %vm1429_vm13 = vcmp.ge.f32.partialorder %v1413_v45, 0.0  ;;  %v1445_v51 = vmul.f32 0.2, %v1413_v45  ;;  %v1414_v60 = vadd.f32 %v2307_v43, %v1391_v48 }
 0x23a   : > { %vm1427_vm14 = vcmp.ge.f32.partialorder %v1411_v50, 0.0  ;;  %v1443_v52 = vmul.f32 0.2, %v1411_v50  ;;  %v1412_v11 = vadd.f32 %v2307_v43, %v1389_v10 }
 0x23b   : > { %v1461_v53 = vsel %vm1429_vm13, %v1413_v45, %v1445_v51  ;;  %vm1430_vm15 = vcmp.ge.f32.partialorder %v1414_v60, 0.0  ;;  %v1446_v54 = vmul.f32 0.2, %v1414_v60 }
 0x23c   : > { %1477 = vst [vmem:[%s2319_s22 + $0x70] sm:$0xff] %v1461_v53  ;;  %v1459_v55 = vsel %vm1427_vm14, %v1411_v50, %v1443_v52  ;;  %vm1428_vm0 = vcmp.ge.f32.partialorder %v1412_v11, 0.0  ;;  %v1444_v61 = vmul.f32 0.2, %v1412_v11 }
 0x23d   : > { %1475 = vst [vmem:[%s2319_s22 + $0x60] sm:$0xff] %v1459_v55  ;;  %v1462_v58 = vsel %vm1430_vm15, %v1414_v60, %v1446_v54 }
 0x23e   : > { %1478 = vst [vmem:[%s2319_s22 + $0x78] sm:$0xff] %v1462_v58  ;;  %v1460_v42 = vsel %vm1428_vm0, %v1412_v11, %v1444_v61 }
 0x23f   : > { %1476 = vst [vmem:[%s2319_s22 + $0x68] sm:$0xff] %v1460_v42 }
 0x240 PF: > { %s17_s24 = sadd.s32 1, %s1969_s24  }
 0x241   : > { %p14_p4 = scmp.ge.s32.totalorder %s17_s24, 6  }
 0x243   :  { %16 = sbr.rel (!%p14_p4) target bundleno = 1 (0x1), region = 78 }

// kernel: critic_cg1_forward.7
= control target key start
LH: loop header
LB: loop body
LE: loop exit
PB: predicated region body
PF: predicated region fallthrough
CT: control target
= control target key end

     0   :  { %s2544_s24 = smov 0   ;;  %s3137_s0 = inlined_call_operand.vmem [shape: bf16[128,1152], index: 0, kind: input, shape index: {}]   ;;  %s3138_s1 = inlined_call_operand.vmem [shape: bf16[1152,256], index: 1, kind: input, shape index: {}]   ;;  %s3139_s2 = inlined_call_operand.vmem [shape: f32[1,256], index: 2, kind: input, shape index: {}]   ;;  %s3140_s3 = inlined_call_operand.vmem [shape: f32[1,256], index: 3, kind: input, shape index: {}]   ;;  %s3141_s4 = inlined_call_operand.vmem [shape: bf16[256,256], index: 4, kind: input, shape index: {}]   ;;  %s3142_s5 = inlined_call_operand.vmem [shape: f32[1,256], index: 5, kind: input, shape index: {}]   ;;  %s3143_s6 = inlined_call_operand.vmem [shape: f32[1,256], index: 6, kind: input, shape index: {}]   ;;  %s3144_s7 = inlined_call_operand.vmem [shape: f32[128,256], index: 7, kind: output, shape index: {}]  }
   0x1 LB: > { %s1956_s25 = sadd.s32 4294967295, %s2501_s24   ;;  %p1960_p0 = scmp.ge.s32.totalorder %s2501_s24, 1  ;;  %s2501_s24 = sphi %s2544_s24, %s17_s24  }
   0x2   : > { %p239_p1 = scmp.lt.s32.totalorder %s2501_s24, 5 }
   0x4   : > { %p240_p2 = pnand %p1960_p0, %p239_p1 }
   0x5   : > { %v2205_v0 = vld [vmem:[%s3138_s1 + $0x4] ss:$8 sps:$4 sm:$0xff] (!%p240_p2)   ;;  %v2209_v2 = vld [vmem:[%s3138_s1] ss:$8 sps:$4 sm:$0xff] (!%p240_p2)   ;;  %v2211_v4 = vld [vmem:[%s3138_s1 + $0x14] ss:$8 sps:$4 sm:$0xff] (!%p240_p2)  }
   0x6   : > { %243 = sbr.rel (%p240_p2) target bundleno = 624 (0x270), region = 48  ;;  %v2207_v1 = vld [vmem:[%s3138_s1 + $0x204] ss:$8 sps:$4 sm:$0xff] (!%p240_p2)   ;;  %1264 = vmatprep.subr.bf16.mxu1 (!%p240_p2), %v2205_v0  ;;  %v2210_v3 = vld [vmem:[%s3138_s1 + $0x200] ss:$8 sps:$4 sm:$0xff] (!%p240_p2)   ;;  %s1961_s21 = sshll.u32 (!%p240_p2), %s1956_s25, 2 }
   0x7   : > { %1370 = vmatprep.subr.bf16.mxu0 (!%p240_p2), %v2207_v1  ;;  %1265 = vmatpush1.bf16.msra.mxu1 (!%p240_p2), %v2209_v2  ;;  %v2213_v5 = vld [vmem:[%s3138_s1 + $0x214] ss:$8 sps:$4 sm:$0xff] (!%p240_p2)   ;;  %v2215_v6 = vld [vmem:[%s3138_s1 + $0x10] ss:$8 sps:$4 sm:$0xff] (!%p240_p2)   ;;  %v2217_v8 = vld [vmem:[%s3138_s1 + $0x24] ss:$8 sps:$4 sm:$0xff] (!%p240_p2)  }
   0x8   : > { %1371 = vmatpush1.bf16.msra.mxu0 (!%p240_p2), %v2210_v3  ;;  %1266 = vmatprep.subr.bf16.mxu1 (!%p240_p2), %v2211_v4  ;;  %v2216_v7 = vld [vmem:[%s3138_s1 + $0x210] ss:$8 sps:$4 sm:$0xff] (!%p240_p2)   ;;  %v2219_v9 = vld [vmem:[%s3138_s1 + $0x224] ss:$8 sps:$4 sm:$0xff] (!%p240_p2)   ;;  %v2221_v10 = vld [vmem:[%s3138_s1 + $0x20] ss:$8 sps:$4 sm:$0xff] (!%p240_p2)  }
   0x9   : > { %1372 = vmatprep.subr.bf16.mxu0 (!%p240_p2), %v2213_v5  ;;  %v2222_v11 = vld [vmem:[%s3138_s1 + $0x220] ss:$8 sps:$4 sm:$0xff] (!%p240_p2)   ;;  %v2223_v12 = vld [vmem:[%s3138_s1 + $0x34] ss:$8 sps:$4 sm:$0xff] (!%p240_p2)   ;;  %v2227_v14 = vld [vmem:[%s3138_s1 + $0x30] ss:$8 sps:$4 sm:$0xff] (!%p240_p2)  }
   0xa   : > { %v2225_v13 = vld [vmem:[%s3138_s1 + $0x234] ss:$8 sps:$4 sm:$0xff] (!%p240_p2)   ;;  %v2228_v15 = vld [vmem:[%s3138_s1 + $0x230] ss:$8 sps:$4 sm:$0xff] (!%p240_p2)   ;;  %v2229_v16 = vld [vmem:[%s3138_s1 + $0x44] ss:$8 sps:$4 sm:$0xff] (!%p240_p2)  }
   0xb   : > { %1267 = vmatpush1.bf16.msra.mxu1 (!%p240_p2), %v2215_v6  ;;  %v2231_v17 = vld [vmem:[%s3138_s1 + $0x244] ss:$8 sps:$4 sm:$0xff] (!%p240_p2)   ;;  %v2233_v18 = vld [vmem:[%s3138_s1 + $0x40] ss:$8 sps:$4 sm:$0xff] (!%p240_p2)   ;;  %v2235_v20 = vld [vmem:[%s3138_s1 + $0x54] ss:$8 sps:$4 sm:$0xff] (!%p240_p2)  }
   0xc   : > { %1373 = vmatpush1.bf16.msra.mxu0 (!%p240_p2), %v2216_v7  ;;  %1268 = vmatprep.subr.bf16.mxu1 (!%p240_p2), %v2217_v8  ;;  %v2234_v19 = vld [vmem:[%s3138_s1 + $0x240] ss:$8 sps:$4 sm:$0xff] (!%p240_p2)   ;;  %v2237_v21 = vld [vmem:[%s3138_s1 + $0x254] ss:$8 sps:$4 sm:$0xff] (!%p240_p2)   ;;  %v2239_v22 = vld [vmem:[%s3138_s1 + $0x50] ss:$8 sps:$4 sm:$0xff] (!%p240_p2)  }
   0xd   : > { %1374 = vmatprep.subr.bf16.mxu0 %v2219_v9  ;;  %v2240_v23 = vld [vmem:[%s3138_s1 + $0x250] ss:$8 sps:$4 sm:$0xff]   ;;  %v2241_v24 = vld [vmem:[%s3138_s1 + $0x64] ss:$8 sps:$4 sm:$0xff]   ;;  %v2245_v26 = vld [vmem:[%s3138_s1 + $0x60] ss:$8 sps:$4 sm:$0xff]  }
   0xe   : > { %v2243_v25 = vld [vmem:[%s3138_s1 + $0x264] ss:$8 sps:$4 sm:$0xff]   ;;  %v2246_v27 = vld [vmem:[%s3138_s1 + $0x260] ss:$8 sps:$4 sm:$0xff]   ;;  %v2247_v28 = vld [vmem:[%s3138_s1 + $0x74] ss:$8 sps:$4 sm:$0xff]  }
   0xf   : > { %1269 = vmatpush1.bf16.msra.mxu1 %v2221_v10  ;;  %v2249_v29 = vld [vmem:[%s3138_s1 + $0x274] ss:$8 sps:$4 sm:$0xff]   ;;  %v2251_v30 = vld [vmem:[%s3138_s1 + $0x70] ss:$8 sps:$4 sm:$0xff]   ;;  %v2253_v32 = vld [vmem:[%s3138_s1 + $0x84] ss:$8 sps:$4 sm:$0xff]  }
  0x10   : > { %1375 = vmatpush1.bf16.msra.mxu0 %v2222_v11  ;;  %1270 = vmatprep.subr.bf16.mxu1 %v2223_v12  ;;  %v2252_v31 = vld [vmem:[%s3138_s1 + $0x270] ss:$8 sps:$4 sm:$0xff]   ;;  %p274_p3 = scmp.lt.s32.totalorder %s1961_s21, 15  ;;  %v2255_v33 = vld [vmem:[%s3138_s1 + $0x284] ss:$8 sps:$4 sm:$0xff]  }
  0x11   : > { %1376 = vmatprep.subr.bf16.mxu0 %v2225_v13  ;;  %v2257_v34 = vld [vmem:[%s3138_s1 + $0x80] ss:$8 sps:$4 sm:$0xff]   ;;  %v2259_v36 = vld [vmem:[%s3138_s1 + $0x94] ss:$8 sps:$4 sm:$0xff]   ;;  %v2263_v38 = vld [vmem:[%s3138_s1 + $0x90] ss:$8 sps:$4 sm:$0xff]  }
  0x12   : > { %v2258_v35 = vld [vmem:[%s3138_s1 + $0x280] ss:$8 sps:$4 sm:$0xff]   ;;  %s3146_s21 = smov (!%p274_p3, %s1961_s21), 15  ;;  %v2261_v37 = vld [vmem:[%s3138_s1 + $0x294] ss:$8 sps:$4 sm:$0xff]  }
  0x13   : > { %1271 = vmatpush1.bf16.msra.mxu1 %v2227_v14  ;;  %v2264_v39 = vld [vmem:[%s3138_s1 + $0x290] ss:$8 sps:$4 sm:$0xff]   ;;  %v2265_v40 = vld [vmem:[%s3138_s1 + $0xa4] ss:$8 sps:$4 sm:$0xff]   ;;  %s2195_s23 = smul.u32 36, %s3146_s21  ;;  %s2162_s20 = sshll.u32 %s3146_s21, 4 }
  0x14   : > { %1377 = vmatpush1.bf16.msra.mxu0 %v2228_v15  ;;  %1272 = vmatprep.subr.bf16.mxu1 %v2229_v16  ;;  %v2267_v41 = vld [vmem:[%s3138_s1 + $0x2a4] ss:$8 sps:$4 sm:$0xff]   ;;  %v2269_v42 = vld [vmem:[%s3138_s1 + $0xa0] ss:$8 sps:$4 sm:$0xff]   ;;  %v2271_v44 = vld [vmem:[%s3138_s1 + $0xb4] ss:$8 sps:$4 sm:$0xff]   ;;  %s3124_s26 = scalar_lea.vmem %s3144_s7, %s2162_s20 }
  0x15   : > { %1378 = vmatprep.subr.bf16.mxu0 %v2231_v17  ;;  %v2270_v43 = vld [vmem:[%s3138_s1 + $0x2a0] ss:$8 sps:$4 sm:$0xff]   ;;  %s2695_s12 = scalar_lea.vmem %s3137_s0, %s2195_s23  ;;  %v2273_v45 = vld [vmem:[%s3138_s1 + $0x2b4] ss:$8 sps:$4 sm:$0xff]   ;;  %v2275_v46 = vld [vmem:[%s3138_s1 + $0xb0] ss:$8 sps:$4 sm:$0xff]  }
  0x16   : > { %v2276_v47 = vld [vmem:[%s3138_s1 + $0x2b0] ss:$8 sps:$4 sm:$0xff]   ;;  %v2303_v48 = vld [vmem:[%s2695_s12 + $0x4] ss:$36 sps:$4 sm:$0xff]   ;;  %v2283_v54 = vld [vmem:[%s3138_s1 + $0xd4] ss:$8 sps:$4 sm:$0xff]  }
  0x17   : > { %1273 = vmatpush1.bf16.msra.mxu1 %v2233_v18  ;;  %v2277_v49 = vld [vmem:[%s3138_s1 + $0xc4] ss:$8 sps:$4 sm:$0xff]   ;;  %1296 = vmatprep.mubr.bf16.mxu1 %v2303_v48  ;;  %v2309_v51 = vld [vmem:[%s2695_s12 + $0x14] ss:$36 sps:$4 sm:$0xff]   ;;  %v2281_v52 = vld [vmem:[%s3138_s1 + $0xc0] ss:$8 sps:$4 sm:$0xff]  }
  0x18   : > { %1379 = vmatpush1.bf16.msra.mxu0 %v2234_v19  ;;  %1274 = vmatprep.subr.bf16.mxu1 %v2235_v20  ;;  %v2279_v50 = vld [vmem:[%s3138_s1 + $0x2c4] ss:$8 sps:$4 sm:$0xff]   ;;  %v2282_v53 = vld [vmem:[%s3138_s1 + $0x2c0] ss:$8 sps:$4 sm:$0xff]   ;;  %v2285_v55 = vld [vmem:[%s3138_s1 + $0x2d4] ss:$8 sps:$4 sm:$0xff]  }
  0x19   : > { %1380 = vmatprep.subr.bf16.mxu0 %v2237_v21  ;;  %1402 = vmatprep.mubr.bf16.mxu0 %v2309_v51  ;;  %v2287_v56 = vld [vmem:[%s3138_s1 + $0xd0] ss:$8 sps:$4 sm:$0xff]   ;;  %v2289_v58 = vld [vmem:[%s3138_s1 + $0xe4] ss:$8 sps:$4 sm:$0xff]   ;;  %v2293_v60 = vld [vmem:[%s3138_s1 + $0xe0] ss:$8 sps:$4 sm:$0xff]  }
  0x1a   : > { %v2288_v57 = vld [vmem:[%s3138_s1 + $0x2d0] ss:$8 sps:$4 sm:$0xff]   ;;  %v2291_v59 = vld [vmem:[%s3138_s1 + $0x2e4] ss:$8 sps:$4 sm:$0xff]   ;;  %v2294_v61 = vld [vmem:[%s3138_s1 + $0x2e0] ss:$8 sps:$4 sm:$0xff]  }
  0x1b   : > { %1275 = vmatpush1.bf16.msra.mxu1 %v2239_v22  ;;  %v2295_v62 = vld [vmem:[%s3138_s1 + $0xf4] ss:$8 sps:$4 sm:$0xff]   ;;  %v2299_v0 = vld [vmem:[%s3138_s1 + $0xf0] ss:$8 sps:$4 sm:$0xff]   ;;  %v2306_v2 = vld [vmem:[%s3138_s1 + $0x104] ss:$8 sps:$4 sm:$0xff]  }
  0x1c   : > { %1381 = vmatpush1.bf16.msra.mxu0 %v2240_v23  ;;  %1276 = vmatprep.subr.bf16.mxu1 %v2241_v24  ;;  %v2297_v63 = vld [vmem:[%s3138_s1 + $0x2f4] ss:$8 sps:$4 sm:$0xff]   ;;  %v2300_v1 = vld [vmem:[%s3138_s1 + $0x2f0] ss:$8 sps:$4 sm:$0xff]   ;;  %v2312_v3 = vld [vmem:[%s3138_s1 + $0x304] ss:$8 sps:$4 sm:$0xff]  }
  0x1d   : > { %1382 = vmatprep.subr.bf16.mxu0 %v2243_v25  ;;  %v2301_v4 = vld [vmem:[%s2695_s12] ss:$36 sps:$4 sm:$0xff]   ;;  %v2307_v6 = vld [vmem:[%s2695_s12 + $0x10] ss:$36 sps:$4 sm:$0xff]  }
  0x1e   : > { %v2304_v5 = vld [vmem:[%s3138_s1 + $0x100] ss:$8 sps:$4 sm:$0xff]   ;;  %v2315_v8 = vld [vmem:[%s3138_s1 + $0x114] ss:$8 sps:$4 sm:$0xff]   ;;  %v2313_v10 = vld [vmem:[%s3138_s1 + $0x110] ss:$8 sps:$4 sm:$0xff]  }
  0x1f   : > { %1277 = vmatpush1.bf16.msra.mxu1 %v2245_v26  ;;  %v2310_v7 = vld [vmem:[%s3138_s1 + $0x300] ss:$8 sps:$4 sm:$0xff]   ;;  %v2318_v9 = vld [vmem:[%s3138_s1 + $0x314] ss:$8 sps:$4 sm:$0xff]   ;;  %v2316_v11 = vld [vmem:[%s3138_s1 + $0x310] ss:$8 sps:$4 sm:$0xff]  }
  0x20   : > { %1383 = vmatpush1.bf16.msra.mxu0 %v2246_v27  ;;  %1278 = vmatprep.subr.bf16.mxu1 %v2247_v28  ;;  %v2321_v12 = vld [vmem:[%s3138_s1 + $0x124] ss:$8 sps:$4 sm:$0xff]   ;;  %v2319_v14 = vld [vmem:[%s3138_s1 + $0x120] ss:$8 sps:$4 sm:$0xff]   ;;  %v2327_v16 = vld [vmem:[%s3138_s1 + $0x134] ss:$8 sps:$4 sm:$0xff]  }
  0x21   : > { %1384 = vmatprep.subr.bf16.mxu0 %v2249_v29  ;;  %v2324_v13 = vld [vmem:[%s3138_s1 + $0x324] ss:$8 sps:$4 sm:$0xff]   ;;  %v2322_v15 = vld [vmem:[%s3138_s1 + $0x320] ss:$8 sps:$4 sm:$0xff]   ;;  %v2330_v17 = vld [vmem:[%s3138_s1 + $0x334] ss:$8 sps:$4 sm:$0xff]  }
  0x22   : > { %v2325_v18 = vld [vmem:[%s3138_s1 + $0x130] ss:$8 sps:$4 sm:$0xff]   ;;  %v2333_v20 = vld [vmem:[%s3138_s1 + $0x144] ss:$8 sps:$4 sm:$0xff]   ;;  %v2331_v22 = vld [vmem:[%s3138_s1 + $0x140] ss:$8 sps:$4 sm:$0xff]  }
  0x23   : > { %1279 = vmatpush1.bf16.msra.mxu1 %v2251_v30  ;;  %v2328_v19 = vld [vmem:[%s3138_s1 + $0x330] ss:$8 sps:$4 sm:$0xff]   ;;  %v2336_v21 = vld [vmem:[%s3138_s1 + $0x344] ss:$8 sps:$4 sm:$0xff]   ;;  %v2334_v23 = vld [vmem:[%s3138_s1 + $0x340] ss:$8 sps:$4 sm:$0xff]  }
  0x24   : > { %1385 = vmatpush1.bf16.msra.mxu0 %v2252_v31  ;;  %1280 = vmatprep.subr.bf16.mxu1 %v2253_v32  ;;  %v2339_v24 = vld [vmem:[%s3138_s1 + $0x154] ss:$8 sps:$4 sm:$0xff]   ;;  %v2337_v26 = vld [vmem:[%s3138_s1 + $0x150] ss:$8 sps:$4 sm:$0xff]   ;;  %v2393_v29 = vld [vmem:[%s2695_s12 + $0x48] ss:$36 sps:$4 sm:$0xff]  }
  0x25   : > { %1386 = vmatprep.subr.bf16.mxu0 %v2255_v33  ;;  %v2342_v25 = vld [vmem:[%s3138_s1 + $0x354] ss:$8 sps:$4 sm:$0xff]   ;;  %v2340_v27 = vld [vmem:[%s3138_s1 + $0x350] ss:$8 sps:$4 sm:$0xff]   ;;  %v2345_v30 = vld [vmem:[%s3138_s1 + $0x164] ss:$8 sps:$4 sm:$0xff]  }
  0x26   : > { %v2391_v28 = vld [vmem:[%s2695_s12 + $0x4c] ss:$36 sps:$4 sm:$0xff]   ;;  %v2397_v32 = vld [vmem:[%s2695_s12 + $0x5c] ss:$36 sps:$4 sm:$0xff]  }
  0x27   : > { %1281 = vmatpush1.bf16.msra.mxu1 %v2257_v34  ;;  %v2348_v31 = vld [vmem:[%s3138_s1 + $0x364] ss:$8 sps:$4 sm:$0xff]   ;;  %v2343_v33 = vld [vmem:[%s3138_s1 + $0x160] ss:$8 sps:$4 sm:$0xff]   ;;  %v2361_v48 = vld [vmem:[%s3138_s1 + $0x190] ss:$8 sps:$4 sm:$0xff]  }
  0x28   : > { %1387 = vmatpush1.bf16.msra.mxu0 %v2258_v35  ;;  %1282 = vmatprep.subr.bf16.mxu1 %v2259_v36  ;;  %v2346_v34 = vld [vmem:[%s3138_s1 + $0x360] ss:$8 sps:$4 sm:$0xff]   ;;  %v2402_v35 = vld [vmem:[%s2695_s12 + $0x58] ss:$36 sps:$4 sm:$0xff]   ;;  %v2372_v51 = vld [vmem:[%s3138_s1 + $0x3a4] ss:$8 sps:$4 sm:$0xff]  }
  0x29   : > { %1388 = vmatprep.subr.bf16.mxu0 %v2261_v37  ;;  %v2351_v36 = vld [vmem:[%s3138_s1 + $0x174] ss:$8 sps:$4 sm:$0xff]  }
  0x2a   : > { %v2354_v37 = vld [vmem:[%s3138_s1 + $0x374] ss:$8 sps:$4 sm:$0xff]  }
  0x2b   : > { %1283 = vmatpush1.bf16.msra.mxu1 %v2263_v38  ;;  %v2349_v38 = vld [vmem:[%s3138_s1 + $0x170] ss:$8 sps:$4 sm:$0xff]  }
  0x2c   : > { %1389 = vmatpush1.bf16.msra.mxu0 %v2264_v39  ;;  %1284 = vmatprep.subr.bf16.mxu1 %v2265_v40  ;;  %v2352_v39 = vld [vmem:[%s3138_s1 + $0x370] ss:$8 sps:$4 sm:$0xff]   ;;  %v2357_v40 = vld [vmem:[%s3138_s1 + $0x184] ss:$8 sps:$4 sm:$0xff]  }
  0x2d   : > { %1390 = vmatprep.subr.bf16.mxu0 %v2267_v41  ;;  %v2411_v41 = vld [vmem:[%s2695_s12 + $0xc] ss:$36 sps:$4 sm:$0xff]  }
  0x2f   : > { %1285 = vmatpush1.bf16.msra.mxu1 %v2269_v42  ;;  %v2360_v42 = vld [vmem:[%s3138_s1 + $0x384] ss:$8 sps:$4 sm:$0xff]  }
  0x30   : > { %1391 = vmatpush1.bf16.msra.mxu0 %v2270_v43  ;;  %1286 = vmatprep.subr.bf16.mxu1 %v2271_v44  ;;  %v2414_v43 = vld [vmem:[%s2695_s12 + $0x1c] ss:$36 sps:$4 sm:$0xff]  }
  0x31   : > { %1392 = vmatprep.subr.bf16.mxu0 %v2273_v45  ;;  %v2355_v44 = vld [vmem:[%s3138_s1 + $0x180] ss:$8 sps:$4 sm:$0xff]  }
  0x32   : > { %v2358_v45 = vld [vmem:[%s3138_s1 + $0x380] ss:$8 sps:$4 sm:$0xff]  }
  0x33   : > { %1287 = vmatpush1.bf16.msra.mxu1 %v2275_v46  ;;  %v2363_v46 = vld [vmem:[%s3138_s1 + $0x194] ss:$8 sps:$4 sm:$0xff]  }
  0x34   : > { %1393 = vmatpush1.bf16.msra.mxu0 %v2276_v47  ;;  %1288 = vmatprep.subr.bf16.mxu1 %v2277_v49  ;;  %v2366_v47 = vld [vmem:[%s3138_s1 + $0x394] ss:$8 sps:$4 sm:$0xff]   ;;  %v2364_v49 = vld [vmem:[%s3138_s1 + $0x390] ss:$8 sps:$4 sm:$0xff]  }
  0x35   : > { %1394 = vmatprep.subr.bf16.mxu0 %v2279_v50  ;;  %v2369_v50 = vld [vmem:[%s3138_s1 + $0x1a4] ss:$8 sps:$4 sm:$0xff]  }
  0x37   : > { %1289 = vmatpush1.bf16.msra.mxu1 %v2281_v52  ;;  %v2367_v52 = vld [vmem:[%s3138_s1 + $0x1a0] ss:$8 sps:$4 sm:$0xff]  }
  0x38   : > { %1395 = vmatpush1.bf16.msra.mxu0 %v2282_v53  ;;  %1290 = vmatprep.subr.bf16.mxu1 %v2283_v54  ;;  %v2370_v53 = vld [vmem:[%s3138_s1 + $0x3a0] ss:$8 sps:$4 sm:$0xff]   ;;  %v2375_v54 = vld [vmem:[%s3138_s1 + $0x1b4] ss:$8 sps:$4 sm:$0xff]  }
  0x39   : > { %1396 = vmatprep.subr.bf16.mxu0 %v2285_v55  ;;  %v2378_v55 = vld [vmem:[%s3138_s1 + $0x3b4] ss:$8 sps:$4 sm:$0xff]  }
  0x3b   : > { %1291 = vmatpush1.bf16.msra.mxu1 %v2287_v56  ;;  %v2373_v56 = vld [vmem:[%s3138_s1 + $0x1b0] ss:$8 sps:$4 sm:$0xff]  }
  0x3c   : > { %1397 = vmatpush1.bf16.msra.mxu0 %v2288_v57  ;;  %1292 = vmatprep.subr.bf16.mxu1 %v2289_v58  ;;  %v2376_v57 = vld [vmem:[%s3138_s1 + $0x3b0] ss:$8 sps:$4 sm:$0xff]   ;;  %v2381_v58 = vld [vmem:[%s3138_s1 + $0x1c4] ss:$8 sps:$4 sm:$0xff]  }
  0x3d   : > { %1398 = vmatprep.subr.bf16.mxu0 %v2291_v59  ;;  %v2384_v59 = vld [vmem:[%s3138_s1 + $0x3c4] ss:$8 sps:$4 sm:$0xff]  }
  0x3f   : > { %1293 = vmatpush1.bf16.msra.mxu1 %v2293_v60  ;;  %v2379_v60 = vld [vmem:[%s3138_s1 + $0x1c0] ss:$8 sps:$4 sm:$0xff]  }
  0x40   : > { %1399 = vmatpush1.bf16.msra.mxu0 %v2294_v61  ;;  %1294 = vmatprep.subr.bf16.mxu1 %v2295_v62  ;;  %v2382_v61 = vld [vmem:[%s3138_s1 + $0x3c0] ss:$8 sps:$4 sm:$0xff]   ;;  %v2387_v62 = vld [vmem:[%s3138_s1 + $0x1d4] ss:$8 sps:$4 sm:$0xff]  }
  0x41   : > { %1400 = vmatprep.subr.bf16.mxu0 %v2297_v63  ;;  %v2390_v63 = vld [vmem:[%s3138_s1 + $0x3d4] ss:$8 sps:$4 sm:$0xff]  }
  0x43   : > { %1295 = vmatpush1.bf16.msra.mxu1 %v2299_v0  ;;  %v2385_v0 = vld [vmem:[%s3138_s1 + $0x1d0] ss:$8 sps:$4 sm:$0xff]  }
  0x44   : > { %1401 = vmatpush1.bf16.msra.mxu0 %v2300_v1  ;;  %1317 = vmatprep.subr.bf16.mxu1 %v2306_v2  ;;  %v2388_v1 = vld [vmem:[%s3138_s1 + $0x3d0] ss:$8 sps:$4 sm:$0xff]   ;;  %v2396_v2 = vld [vmem:[%s3138_s1 + $0x1e4] ss:$8 sps:$4 sm:$0xff]  }
  0x45   : > { %1423 = vmatprep.subr.bf16.mxu0 %v2312_v3  ;;  %v2401_v3 = vld [vmem:[%s3138_s1 + $0x3e4] ss:$8 sps:$4 sm:$0xff]  }
  0x46   : > { %1297 = vmatmul.mubr.bf16.vlgmr.msra.gmra.mrb[0].mxu1 %v2301_v4  ;;  %v2394_v4 = vld [vmem:[%s3138_s1 + $0x1e0] ss:$8 sps:$4 sm:$0xff]  }
  0x47   : > { %1403 = vmatmul.mubr.bf16.vlgmr.msra.gmra.mrb[0].mxu0 %v2307_v6  ;;  %1318 = vmatpush1.bf16.msra.mxu1 %v2304_v5  ;;  %v2399_v5 = vld [vmem:[%s3138_s1 + $0x3e0] ss:$8 sps:$4 sm:$0xff]   ;;  %v2405_v6 = vld [vmem:[%s3138_s1 + $0x1f4] ss:$8 sps:$4 sm:$0xff]  }
  0x48   : > { %1424 = vmatpush1.bf16.msra.mxu0 %v2310_v7  ;;  %1319 = vmatprep.subr.bf16.mxu1 %v2315_v8  ;;  %v2408_v7 = vld [vmem:[%s3138_s1 + $0x3f4] ss:$8 sps:$4 sm:$0xff]   ;;  %v2403_v8 = vld [vmem:[%s3138_s1 + $0x1f0] ss:$8 sps:$4 sm:$0xff]  }
  0x49   : > { %1425 = vmatprep.subr.bf16.mxu0 %v2318_v9  ;;  %1306 = vmatprep.mubr.bf16.mxu1 %v2391_v28  ;;  %v2406_v9 = vld [vmem:[%s3138_s1 + $0x3f0] ss:$8 sps:$4 sm:$0xff]   ;;  %v2453_v28 = vld [vmem:[%s3141_s4 + $0x20] ss:$8 sps:$4 sm:$0xff]  }
  0x4a   : > { %1412 = vmatprep.mubr.bf16.mxu0 %v2397_v32  ;;  %v2429_v32 = vld [vmem:[%s3138_s1 + $0x444] ss:$8 sps:$4 sm:$0xff]  }
  0x4b   : > { %1320 = vmatpush1.bf16.msra.mxu1 %v2313_v10  ;;  %v2417_v10 = vld [vmem:[%s3138_s1 + $0x404] ss:$8 sps:$4 sm:$0xff]  }
  0x4c   : > { %1426 = vmatpush1.bf16.msra.mxu0 %v2316_v11  ;;  %1321 = vmatprep.subr.bf16.mxu1 %v2321_v12  ;;  %v2449_v11 = vld [vmem:[%s3141_s4 + $0x4] ss:$8 sps:$4 sm:$0xff]  }
  0x4d   : > { %1427 = vmatprep.subr.bf16.mxu0 %v2324_v13  ;;  %v2409_v12 = vld [vmem:[%s2695_s12 + $0x8] ss:$36 sps:$4 sm:$0xff]   ;;  %v2412_v13 = vld [vmem:[%s2695_s12 + $0x18] ss:$36 sps:$4 sm:$0xff]  }
  0x4e   : > { %1307 = vmatmul.mubr.bf16.gmra.mrb[4].mxu1 %v2393_v29  ;;  %v2458_v29 = vld [vmem:[%s3141_s4 + $0x34] ss:$8 sps:$4 sm:$0xff]  }
  0x4f   : > { %1322 = vmatpush1.bf16.msra.mxu1 %v2319_v14  ;;  %1413 = vmatmul.mubr.bf16.gmra.mrb[4].mxu0 %v2402_v35  ;;  %v2415_v14 = vld [vmem:[%s3138_s1 + $0x400] ss:$8 sps:$4 sm:$0xff]  }
  0x50   : > { %1428 = vmatpush1.bf16.msra.mxu0 %v2322_v15  ;;  %1323 = vmatprep.subr.bf16.mxu1 %v2327_v16  ;;  %v2430_v15 = vld [vmem:[%s2695_s12 + $0x54] ss:$36 sps:$4 sm:$0xff]   ;;  %v2427_v35 = vld [vmem:[%s3138_s1 + $0x440] ss:$8 sps:$4 sm:$0xff]  }
  0x51   : > { %1429 = vmatprep.subr.bf16.mxu0 %v2330_v17  ;;  %1349 = vmatprep.mubr.bf16.mxu1 %v2411_v41  ;;  %v2420_v16 = vld [vmem:[%s3138_s1 + $0x414] ss:$8 sps:$4 sm:$0xff]   ;;  %v2436_v17 = vld [vmem:[%s2695_s12 + $0x64] ss:$36 sps:$4 sm:$0xff]  }
  0x52   : > { %1455 = vmatprep.mubr.bf16.mxu0 %v2414_v43  ;;  %v2444_v41 = vld [vmem:[%s3138_s1 + $0x474] ss:$8 sps:$4 sm:$0xff]   ;;  %v2445_v43 = vld [vmem:[%s2695_s12 + $0x20] ss:$36 sps:$4 sm:$0xff]  }
  0x53   : > { %1324 = vmatpush1.bf16.msra.mxu1 %v2325_v18  ;;  %v2447_v18 = vld [vmem:[%s3141_s4] ss:$8 sps:$4 sm:$0xff]  }
  0x54   : > { %1430 = vmatpush1.bf16.msra.mxu0 %v2328_v19  ;;  %1325 = vmatprep.subr.bf16.mxu1 %v2333_v20  ;;  %v2452_v19 = vld [vmem:[%s3141_s4 + $0x14] ss:$8 sps:$4 sm:$0xff]   ;;  %v2418_v20 = vld [vmem:[%s3138_s1 + $0x410] ss:$8 sps:$4 sm:$0xff]  }
  0x55   : > { %1431 = vmatprep.subr.bf16.mxu0 %v2336_v21  ;;  %v2423_v21 = vld [vmem:[%s3138_s1 + $0x424] ss:$8 sps:$4 sm:$0xff]  }
  0x57   : > { %1326 = vmatpush1.bf16.msra.mxu1 %v2331_v22  ;;  %v2450_v22 = vld [vmem:[%s3141_s4 + $0x10] ss:$8 sps:$4 sm:$0xff]  }
  0x58   : > { %1432 = vmatpush1.bf16.msra.mxu0 %v2334_v23  ;;  %1327 = vmatprep.subr.bf16.mxu1 %v2339_v24  ;;  %v2435_v23 = vld [vmem:[%s2695_s12 + $0x50] ss:$36 sps:$4 sm:$0xff]   ;;  %v2438_v24 = vld [vmem:[%s2695_s12 + $0x60] ss:$36 sps:$4 sm:$0xff]  }
  0x59   : > { %1433 = vmatprep.subr.bf16.mxu0 %v2342_v25  ;;  %v2421_v25 = vld [vmem:[%s3138_s1 + $0x420] ss:$8 sps:$4 sm:$0xff]  }
  0x5b   : > { %1328 = vmatpush1.bf16.msra.mxu1 %v2337_v26  ;;  %v2426_v26 = vld [vmem:[%s3138_s1 + $0x434] ss:$8 sps:$4 sm:$0xff]  }
  0x5c   : > { %1434 = vmatpush1.bf16.msra.mxu0 %v2340_v27  ;;  %1329 = vmatprep.subr.bf16.mxu1 %v2345_v30  ;;  %v2455_v27 = vld [vmem:[%s3141_s4 + $0x24] ss:$8 sps:$4 sm:$0xff]   ;;  %v2424_v30 = vld [vmem:[%s3138_s1 + $0x430] ss:$8 sps:$4 sm:$0xff]  }
  0x5d   : > { %1435 = vmatprep.subr.bf16.mxu0 %v2348_v31  ;;  %v2503_v31 = vmov 0  }
  0x5f   : > { %1330 = vmatpush1.bf16.msra.mxu1 %v2343_v33  ;;  %v2456_v33 = vld [vmem:[%s3141_s4 + $0x30] ss:$8 sps:$4 sm:$0xff]  }
  0x60   : > { %1436 = vmatpush1.bf16.msra.mxu0 %v2346_v34  ;;  %1331 = vmatprep.subr.bf16.mxu1 %v2351_v36  ;;  %v2461_v34 = vld [vmem:[%s3141_s4 + $0x44] ss:$8 sps:$4 sm:$0xff]   ;;  %v2434_v36 = vld [vmem:[%s3138_s1 + $0x454] ss:$8 sps:$4 sm:$0xff]  }
  0x61   : > { %1437 = vmatprep.subr.bf16.mxu0 %v2354_v37  ;;  %v2459_v37 = vld [vmem:[%s3141_s4 + $0x40] ss:$8 sps:$4 sm:$0xff]  }
  0x63   : > { %1332 = vmatpush1.bf16.msra.mxu1 %v2349_v38  ;;  %v2432_v38 = vld [vmem:[%s3138_s1 + $0x450] ss:$8 sps:$4 sm:$0xff]  }
  0x64   : > { %1438 = vmatpush1.bf16.msra.mxu0 %v2352_v39  ;;  %1333 = vmatprep.subr.bf16.mxu1 %v2357_v40  ;;  %v2441_v39 = vld [vmem:[%s3138_s1 + $0x464] ss:$8 sps:$4 sm:$0xff]   ;;  %v2439_v40 = vld [vmem:[%s3138_s1 + $0x460] ss:$8 sps:$4 sm:$0xff]  }
  0x65   : > { %1439 = vmatprep.subr.bf16.mxu0 %v2360_v42  ;;  %v2442_v42 = vld [vmem:[%s3138_s1 + $0x470] ss:$8 sps:$4 sm:$0xff]  }
  0x67   : > { %1334 = vmatpush1.bf16.msra.mxu1 %v2355_v44  ;;  %v2446_v44 = vld [vmem:[%s2695_s12 + $0x68] ss:$36 sps:$4 sm:$0xff]  }
  0x68   : > { %1440 = vmatpush1.bf16.msra.mxu0 %v2358_v45  ;;  %1335 = vmatprep.subr.bf16.mxu1 %v2363_v46  ;;  %v2464_v45 = vld [vmem:[%s3141_s4 + $0x54] ss:$8 sps:$4 sm:$0xff]   ;;  %v2462_v46 = vld [vmem:[%s3141_s4 + $0x50] ss:$8 sps:$4 sm:$0xff]  }
  0x69   : > { %1441 = vmatprep.subr.bf16.mxu0 %v2366_v47  ;;  %v2467_v47 = vld [vmem:[%s3141_s4 + $0x64] ss:$8 sps:$4 sm:$0xff]  }
  0x6b   : > { %1336 = vmatpush1.bf16.msra.mxu1 %v2361_v48  ;;  %v2465_v48 = vld [vmem:[%s3141_s4 + $0x60] ss:$8 sps:$4 sm:$0xff]  }
  0x6c   : > { %1442 = vmatpush1.bf16.msra.mxu0 %v2364_v49  ;;  %1337 = vmatprep.subr.bf16.mxu1 %v2369_v50  ;;  %v2470_v49 = vld [vmem:[%s3141_s4 + $0x74] ss:$8 sps:$4 sm:$0xff]   ;;  %v2468_v50 = vld [vmem:[%s3141_s4 + $0x70] ss:$8 sps:$4 sm:$0xff]  }
  0x6d   : > { %1443 = vmatprep.subr.bf16.mxu0 %v2372_v51  ;;  %v2473_v51 = vld [vmem:[%s3141_s4 + $0x84] ss:$8 sps:$4 sm:$0xff]  }
  0x6f   : > { %1338 = vmatpush1.bf16.msra.mxu1 %v2367_v52  ;;  %v2471_v52 = vld [vmem:[%s3141_s4 + $0x80] ss:$8 sps:$4 sm:$0xff]  }
  0x70   : > { %1444 = vmatpush1.bf16.msra.mxu0 %v2370_v53  ;;  %1339 = vmatprep.subr.bf16.mxu1 %v2375_v54  ;;  %v2476_v53 = vld [vmem:[%s3141_s4 + $0x94] ss:$8 sps:$4 sm:$0xff]   ;;  %v2474_v54 = vld [vmem:[%s3141_s4 + $0x90] ss:$8 sps:$4 sm:$0xff]  }
  0x71   : > { %1445 = vmatprep.subr.bf16.mxu0 %v2378_v55  ;;  %v2479_v55 = vld [vmem:[%s3141_s4 + $0xa4] ss:$8 sps:$4 sm:$0xff]  }
  0x73   : > { %1340 = vmatpush1.bf16.msra.mxu1 %v2373_v56  ;;  %v2477_v56 = vld [vmem:[%s3141_s4 + $0xa0] ss:$8 sps:$4 sm:$0xff]  }
  0x74   : > { %1446 = vmatpush1.bf16.msra.mxu0 %v2376_v57  ;;  %1341 = vmatprep.subr.bf16.mxu1 %v2381_v58  ;;  %v2482_v57 = vld [vmem:[%s3141_s4 + $0xb4] ss:$8 sps:$4 sm:$0xff]   ;;  %v2480_v58 = vld [vmem:[%s3141_s4 + $0xb0] ss:$8 sps:$4 sm:$0xff]  }
  0x75   : > { %1447 = vmatprep.subr.bf16.mxu0 %v2384_v59  ;;  %v2485_v59 = vld [vmem:[%s3141_s4 + $0xc4] ss:$8 sps:$4 sm:$0xff]  }
  0x77   : > { %1342 = vmatpush1.bf16.msra.mxu1 %v2379_v60  ;;  %v2483_v60 = vld [vmem:[%s3141_s4 + $0xc0] ss:$8 sps:$4 sm:$0xff]  }
  0x78   : > { %1448 = vmatpush1.bf16.msra.mxu0 %v2382_v61  ;;  %1343 = vmatprep.subr.bf16.mxu1 %v2387_v62  ;;  %v2488_v61 = vld [vmem:[%s3141_s4 + $0xd4] ss:$8 sps:$4 sm:$0xff]   ;;  %v2486_v62 = vld [vmem:[%s3141_s4 + $0xd0] ss:$8 sps:$4 sm:$0xff]  }
  0x79   : > { %1449 = vmatprep.subr.bf16.mxu0 %v2390_v63  ;;  %v2491_v63 = vld [vmem:[%s3141_s4 + $0xe4] ss:$8 sps:$4 sm:$0xff]  }
  0x7b   : > { %1344 = vmatpush1.bf16.msra.mxu1 %v2385_v0  ;;  %v2489_v0 = vld [vmem:[%s3141_s4 + $0xe0] ss:$8 sps:$4 sm:$0xff]  }
  0x7c   : > { %1450 = vmatpush1.bf16.msra.mxu0 %v2388_v1  ;;  %1345 = vmatprep.subr.bf16.mxu1 %v2396_v2  ;;  %v2494_v1 = vld [vmem:[%s3141_s4 + $0xf4] ss:$8 sps:$4 sm:$0xff]   ;;  %v2492_v2 = vld [vmem:[%s3141_s4 + $0xf0] ss:$8 sps:$4 sm:$0xff]  }
  0x7d   : > { %1451 = vmatprep.subr.bf16.mxu0 %v2401_v3 }
  0x7f   : > { %1346 = vmatpush1.bf16.msra.mxu1 %v2394_v4 }
  0x80   : > { %1452 = vmatpush1.bf16.msra.mxu0 %v2399_v5  ;;  %1347 = vmatprep.subr.bf16.mxu1 %v2405_v6 }
  0x81   : > { %1453 = vmatprep.subr.bf16.mxu0 %v2408_v7 }
  0x83   : > { %1348 = vmatpush1.bf16.msra.mxu1 %v2403_v8 }
  0x84   : > { %1454 = vmatpush1.bf16.msra.mxu0 %v2406_v9  ;;  %1773 = vmatprep.subr.bf16.mxu1 %v2449_v11  ;;  %v1531_v11 = vlaneseq }
  0x85   : > { %1476 = vmatprep.subr.bf16.mxu0 %v2417_v10 }
  0x86   : > { %1350 = vmatmul.mubr.bf16.vlgmr.msra.gmra.mrb[0].mxu1 %v2409_v12  ;;  %v1532_v12 = vshrl.u32 %v1531_v11, 7 }
  0x87   : > { %1456 = vmatmul.mubr.bf16.vlgmr.msra.gmra.mrb[0].mxu0 %v2412_v13  ;;  %1359 = vmatprep.mubr.bf16.mxu1 %v2430_v15 }
  0x88   : > { %1477 = vmatpush1.bf16.msra.mxu0 %v2415_v14  ;;  %1465 = vmatprep.mubr.bf16.mxu0 %v2436_v17  ;;  %v1533_v13 = vsub.s32 0, %v1532_v12  ;;  %v1529_v14 = vld [vmem:[%s3139_s2] sm:$0x3]  ;;  %v1537_v15 = vsub.s32 1, %v1532_v12 }
  0x89   : > { %1478 = vmatprep.subr.bf16.mxu0 %v2420_v16  ;;  %1774 = vmatpush1.bf16.msra.mxu1 %v2447_v18  ;;  %v1549_v16 = vld [vmem:[%s3140_s3] sm:$0x3] }
  0x8a   : > { %1775 = vmatprep.subr.bf16.mxu1 %v2452_v19  ;;  %v1534_v17 = vrot.slane %v1529_v14, %v1533_v13  ;;  %v1538_v19 = vrot.slane %v1529_v14, %v1537_v15 }
  0x8c   : > { %1479 = vmatpush1.bf16.msra.mxu0 %v2418_v20 }
  0x8d   : > { %1480 = vmatprep.subr.bf16.mxu0 %v2423_v21  ;;  %1776 = vmatpush1.bf16.msra.mxu1 %v2450_v22  ;;  %v1554_v21 = vrot.slane %v1549_v16, %v1533_v13 }
  0x8e   : > { %1360 = vmatmul.mubr.bf16.gmra.mrb[4].mxu1 %v2435_v23  ;;  %1777 = vmatprep.subr.bf16.mxu1 %v2455_v27 }
  0x8f   : > { %1466 = vmatmul.mubr.bf16.gmra.mrb[4].mxu0 %v2438_v24  ;;  %v1558_v24 = vrot.slane %v1549_v16, %v1537_v15 }
  0x90   : > { %1481 = vmatpush1.bf16.msra.mxu0 %v2421_v25  ;;  %1508 = vmatprep.mubr.bf16.mxu0 %v2503_v31 }
  0x91   : > { %1482 = vmatprep.subr.bf16.mxu0 %v2426_v26  ;;  %1778 = vmatpush1.bf16.msra.mxu1 %v2453_v28 }
  0x92   : > { %1779 = vmatprep.subr.bf16.mxu1 %v2458_v29 }
  0x94   : > { %1483 = vmatpush1.bf16.msra.mxu0 %v2424_v30 }
  0x95   : > { %1484 = vmatprep.subr.bf16.mxu0 %v2429_v32  ;;  %1780 = vmatpush1.bf16.msra.mxu1 %v2456_v33 }
  0x96   : > { %1781 = vmatprep.subr.bf16.mxu1 %v2461_v34 }
  0x98   : > { %1485 = vmatpush1.bf16.msra.mxu0 %v2427_v35 }
  0x99   : > { %1486 = vmatprep.subr.bf16.mxu0 %v2434_v36  ;;  %1782 = vmatpush1.bf16.msra.mxu1 %v2459_v37 }
  0x9a   : > { %1783 = vmatprep.subr.bf16.mxu1 %v2464_v45 }
  0x9c   : > { %1487 = vmatpush1.bf16.msra.mxu0 %v2432_v38 }
  0x9d   : > { %1488 = vmatprep.subr.bf16.mxu0 %v2441_v39  ;;  %1784 = vmatpush1.bf16.msra.mxu1 %v2462_v46 }
  0x9e   : > { %1785 = vmatprep.subr.bf16.mxu1 %v2467_v47 }
  0xa0   : > { %1489 = vmatpush1.bf16.msra.mxu0 %v2439_v40 }
  0xa1   : > { %1490 = vmatprep.subr.bf16.mxu0 %v2444_v41  ;;  %1786 = vmatpush1.bf16.msra.mxu1 %v2465_v48 }
  0xa2   : > { %1787 = vmatprep.subr.bf16.mxu1 %v2470_v49 }
  0xa4   : > { %1491 = vmatpush1.bf16.msra.mxu0 %v2442_v42 }
  0xa5   : > { %1788 = vmatpush1.bf16.msra.mxu1 %v2468_v50 }
  0xa6   : > { %1789 = vmatprep.subr.bf16.mxu1 %v2473_v51 }
  0xa7   : > { %1509 = vmatmul.mubr.bf16.vlgmr.msra.gmra.mrb[0].mxu0 %v2445_v43 }
  0xa8   : > { %1518 = vmatprep.mubr.bf16.mxu0 %v2503_v31 }
  0xa9   : > { %1790 = vmatpush1.bf16.msra.mxu1 %v2471_v52 }
  0xaa   : > { %1791 = vmatprep.subr.bf16.mxu1 %v2476_v53 }
  0xad   : > { %1792 = vmatpush1.bf16.msra.mxu1 %v2474_v54 }
  0xae   : > { %1793 = vmatprep.subr.bf16.mxu1 %v2479_v55 }
  0xaf   : > { %1519 = vmatmul.mubr.bf16.gmra.mrb[4].mxu0 %v2446_v44 }
  0xb1   : > { %1794 = vmatpush1.bf16.msra.mxu1 %v2477_v56 }
  0xb2   : > { %1795 = vmatprep.subr.bf16.mxu1 %v2482_v57 }
  0xb5   : > { %1796 = vmatpush1.bf16.msra.mxu1 %v2480_v58 }
  0xb6   : > { %1797 = vmatprep.subr.bf16.mxu1 %v2485_v59 }
  0xb9   : > { %1798 = vmatpush1.bf16.msra.mxu1 %v2483_v60 }
  0xba   : > { %1799 = vmatprep.subr.bf16.mxu1 %v2488_v61 }
  0xbd   : > { %1800 = vmatpush1.bf16.msra.mxu1 %v2486_v62 }
  0xbe   : > { %1801 = vmatprep.subr.bf16.mxu1 %v2491_v63 }
  0xc1   : > { %1802 = vmatpush1.bf16.msra.mxu1 %v2489_v0 }
  0xc2   : > { %1803 = vmatprep.subr.bf16.mxu1 %v2494_v1  ;;  %v1826_v1 = vld [vmem:[%s3142_s5] sm:$0x3] }
  0xc5   : > { %1804 = vmatpush1.bf16.msra.mxu1 %v2492_v2  ;;  %v1846_v2 = vld [vmem:[%s3143_s6] sm:$0x3] }
 0x159   : > { %v1351_v3 = vpop.f32.mrb[0].mxu1 }
 0x15a   : > { %v1353_v4 = vpop.f32.mrb[1].mxu1 }
 0x15b   : > { %v1355_v5 = vpop.f32.mrb[2].mxu1 }
 0x15c   : > { %v1357_v6 = vpop.f32.mrb[3].mxu1 }
 0x161   : > { %v1361_v7 = vpop.f32.mrb[4].mxu1 }
 0x162   : > { %v1363_v8 = vpop.f32.mrb[5].mxu1 }
 0x163   : > { %v1365_v9 = vpop.f32.mrb[6].mxu1 }
 0x164   : > { %v1367_v10 = vpop.f32.mrb[7].mxu1 }
 0x17a   : > { %v1510_v18 = vpop.f32.mrb[0].mxu0 }
 0x17b   : > { %v2163_v20 = vadd.f32 %v1510_v18, %v1351_v3  ;;  %v1512_v22 = vpop.f32.mrb[1].mxu0  ;;  %v1831_v3 = vrot.slane %v1826_v1, %v1533_v13 }
 0x17c   : > { %v2164_v23 = vadd.f32 %v1512_v22, %v1353_v4  ;;  %v1514_v25 = vpop.f32.mrb[2].mxu0  ;;  %v1835_v4 = vrot.slane %v1826_v1, %v1537_v15 }
 0x17d   : > { %v1541_v26 = vmul.f32 %v2163_v20, %v1534_v17  ;;  %v2165_v27 = vadd.f32 %v1514_v25, %v1355_v5  ;;  %v1516_v28 = vpop.f32.mrb[3].mxu0  ;;  %v1851_v5 = vrot.slane %v1846_v2, %v1533_v13 }
 0x17e   : > { %v1542_v29 = vmul.f32 %v2164_v23, %v1538_v19  ;;  %v2166_v30 = vadd.f32 %v1516_v28, %v1357_v6 }
 0x17f   : > { %v1561_v31 = vadd.f32 %v1554_v21, %v1541_v26  ;;  %v1543_v32 = vmul.f32 %v2165_v27, %v1534_v17 }
 0x180   : > { %v1562_v33 = vadd.f32 %v1558_v24, %v1542_v29  ;;  %v1544_v34 = vmul.f32 %v2166_v30, %v1538_v19 }
 0x181   : > { %v1563_v35 = vadd.f32 %v1554_v21, %v1543_v32  ;;  %v1569_v38 = vmax.f32 %v1561_v31, 0.0 }
 0x182   : > { %v1564_v36 = vadd.f32 %v1558_v24, %v1544_v34  ;;  %v1520_v37 = vpop.f32.mrb[4].mxu0  ;;  %v1570_v42 = vmax.f32 %v1562_v33, 0.0 }
 0x183   : > { %v1571_v39 = vmax.f32 %v1563_v35, 0.0  ;;  %v2167_v40 = vadd.f32 %v1520_v37, %v1361_v7  ;;  %v1522_v41 = vpop.f32.mrb[5].mxu0  ;;  %v1855_v7 = vrot.slane %v1846_v2, %v1537_v15 }
 0x184   : > { %v1572_v43 = vmax.f32 %v1564_v36, 0.0  ;;  %v2168_v44 = vadd.f32 %v1522_v41, %v1363_v8  ;;  %v1524_v45 = vpop.f32.mrb[6].mxu0 }
 0x185   : > { %v1577_v46 = vpack.c.bf16 %v1571_v39, %v1569_v38  ;;  %v1545_v47 = vmul.f32 %v2167_v40, %v1534_v17  ;;  %v2169_v48 = vadd.f32 %v1524_v45, %v1365_v9  ;;  %v1526_v49 = vpop.f32.mrb[7].mxu0 }
 0x186   : > { %v1546_v50 = vmul.f32 %v2168_v44, %v1538_v19  ;;  %v2170_v51 = vadd.f32 %v1526_v49, %v1367_v10  ;;  %v1578_v52 = vpack.c.bf16 %v1572_v43, %v1570_v42 }
 0x187   : > { %v1565_v53 = vadd.f32 %v1554_v21, %v1545_v47  ;;  %v1547_v54 = vmul.f32 %v2169_v48, %v1534_v17 }
 0x188   : > { %v1566_v55 = vadd.f32 %v1558_v24, %v1546_v50  ;;  %v1548_v56 = vmul.f32 %v2170_v51, %v1538_v19  ;;  %1805 = vmatprep.mubr.bf16.mxu1 %v1578_v52 }
 0x189   : > { %v1567_v57 = vadd.f32 %v1554_v21, %v1547_v54  ;;  %1806 = vmatmul.mubr.bf16.vlgmr.msra.gmra.mrb[8].mxu1 %v1577_v46  ;;  %v1573_v59 = vmax.f32 %v1565_v53, 0.0 }
 0x18a   : > { %v1568_v58 = vadd.f32 %v1558_v24, %v1548_v56  ;;  %v1574_v61 = vmax.f32 %v1566_v55, 0.0 }
 0x18b   : > { %v1575_v60 = vmax.f32 %v1567_v57, 0.0 }
 0x18c   : > { %v1576_v62 = vmax.f32 %v1568_v58, 0.0 }
 0x18d   : > { %v1579_v63 = vpack.c.bf16 %v1575_v60, %v1573_v59 }
 0x18e   : > { %v1580_v0 = vpack.c.bf16 %v1576_v62, %v1574_v61 }
 0x190   : > { %1815 = vmatprep.mubr.bf16.mxu1 %v1580_v0 }
 0x191   : > { %1816 = vmatmul.mubr.bf16.gmra.mrb[12].mxu1 %v1579_v63 }
 0x25c   : > { %v1807_v6 = vpop.f32.mrb[8].mxu1 }
 0x25d   : > { %v1838_v8 = vmul.f32 %v1831_v3, %v1807_v6  ;;  %v1809_v9 = vpop.f32.mrb[9].mxu1 }
 0x25e   : > { %v1839_v10 = vmul.f32 %v1835_v4, %v1809_v9  ;;  %v1811_v11 = vpop.f32.mrb[10].mxu1 }
 0x25f   : > { %v1858_v12 = vadd.f32 %v1851_v5, %v1838_v8  ;;  %v1840_v14 = vmul.f32 %v1831_v3, %v1811_v11  ;;  %v1813_v16 = vpop.f32.mrb[11].mxu1 }
 0x260   : > { %v1859_v17 = vadd.f32 %v1855_v7, %v1839_v10  ;;  %v1841_v18 = vmul.f32 %v1835_v4, %v1813_v16 }
 0x261   : > { %vm1866_vm0 = vcmp.ge.f32.partialorder %v1858_v12, 0.0  ;;  %v1874_v13 = vmul.f32 0.2, %v1858_v12  ;;  %v1860_v15 = vadd.f32 %v1851_v5, %v1840_v14 }
 0x262   : > { %vm1867_vm1 = vcmp.ge.f32.partialorder %v1859_v17, 0.0  ;;  %v1875_v19 = vmul.f32 0.2, %v1859_v17  ;;  %v1861_v20 = vadd.f32 %v1855_v7, %v1841_v18 }
 0x263   : > { %v1882_v21 = vsel %vm1866_vm0, %v1858_v12, %v1874_v13  ;;  %vm1868_vm2 = vcmp.ge.f32.partialorder %v1860_v15, 0.0  ;;  %v1876_v22 = vmul.f32 0.2, %v1860_v15 }
 0x264   : > { %1890 = vst [vmem:[%s3124_s26] sm:$0xff] %v1882_v21  ;;  %v1883_v23 = vsel %vm1867_vm1, %v1859_v17, %v1875_v19  ;;  %vm1869_vm3 = vcmp.ge.f32.partialorder %v1861_v20, 0.0  ;;  %v1877_v24 = vmul.f32 0.2, %v1861_v20  ;;  %v1817_v25 = vpop.f32.mrb[12].mxu1 }
 0x265   : > { %1891 = vst [vmem:[%s3124_s26 + $0x8] sm:$0xff] %v1883_v23  ;;  %v1884_v26 = vsel %vm1868_vm2, %v1860_v15, %v1876_v22  ;;  %v1842_v27 = vmul.f32 %v1831_v3, %v1817_v25  ;;  %v1819_v28 = vpop.f32.mrb[13].mxu1 }
 0x266   : > { %1892 = vst [vmem:[%s3124_s26 + $0x10] sm:$0xff] %v1884_v26  ;;  %v1885_v29 = vsel %vm1869_vm3, %v1861_v20, %v1877_v24  ;;  %v1843_v30 = vmul.f32 %v1835_v4, %v1819_v28  ;;  %v1821_v31 = vpop.f32.mrb[14].mxu1 }
 0x267   : > { %1893 = vst [vmem:[%s3124_s26 + $0x18] sm:$0xff] %v1885_v29  ;;  %v1862_v32 = vadd.f32 %v1851_v5, %v1842_v27  ;;  %v1844_v33 = vmul.f32 %v1831_v3, %v1821_v31  ;;  %v1823_v34 = vpop.f32.mrb[15].mxu1 }
 0x268   : > { %v1863_v35 = vadd.f32 %v1855_v7, %v1843_v30  ;;  %v1845_v36 = vmul.f32 %v1835_v4, %v1823_v34 }
 0x269   : > { %vm1870_vm4 = vcmp.ge.f32.partialorder %v1862_v32, 0.0  ;;  %v1878_v37 = vmul.f32 0.2, %v1862_v32  ;;  %v1864_v38 = vadd.f32 %v1851_v5, %v1844_v33 }
 0x26a   : > { %vm1871_vm5 = vcmp.ge.f32.partialorder %v1863_v35, 0.0  ;;  %v1879_v39 = vmul.f32 0.2, %v1863_v35  ;;  %v1865_v40 = vadd.f32 %v1855_v7, %v1845_v36 }
 0x26b   : > { %v1886_v41 = vsel %vm1870_vm4, %v1862_v32, %v1878_v37  ;;  %vm1872_vm6 = vcmp.ge.f32.partialorder %v1864_v38, 0.0  ;;  %v1880_v42 = vmul.f32 0.2, %v1864_v38 }
 0x26c   : > { %1894 = vst [vmem:[%s3124_s26 + $0x20] sm:$0xff] %v1886_v41  ;;  %v1887_v43 = vsel %vm1871_vm5, %v1863_v35, %v1879_v39  ;;  %vm1873_vm7 = vcmp.ge.f32.partialorder %v1865_v40, 0.0  ;;  %v1881_v44 = vmul.f32 0.2, %v1865_v40 }
 0x26d   : > { %1895 = vst [vmem:[%s3124_s26 + $0x28] sm:$0xff] %v1887_v43  ;;  %v1888_v45 = vsel %vm1872_vm6, %v1864_v38, %v1880_v42 }
 0x26e   : > { %1896 = vst [vmem:[%s3124_s26 + $0x30] sm:$0xff] %v1888_v45  ;;  %v1889_v46 = vsel %vm1873_vm7, %v1865_v40, %v1881_v44 }
 0x26f   : > { %1897 = vst [vmem:[%s3124_s26 + $0x38] sm:$0xff] %v1889_v46 }
 0x270 PF: > { %s17_s24 = sadd.s32 1, %s2501_s24  }
 0x271   : > { %p14_p4 = scmp.ge.s32.totalorder %s17_s24, 6  }
 0x273   :  { %16 = sbr.rel (!%p14_p4) target bundleno = 1 (0x1), region = 78 }

// kernel: critic_cg1_forward.9
= control target key start
LH: loop header
LB: loop body
LE: loop exit
PB: predicated region body
PF: predicated region fallthrough
CT: control target
= control target key end

     0   :  { %s6176_s0 = inlined_call_operand.vmem [shape: bf16[32,4608], index: 0, kind: input, shape index: {}]   ;;  %s6177_s1 = inlined_call_operand.vmem [shape: bf16[4608,128], index: 1, kind: input, shape index: {}]   ;;  %s6178_s2 = inlined_call_operand.<no memory space> [shape: f32[1,1], index: 2, kind: input, shape index: {}]   ;;  %s6179_s4 = inlined_call_operand.vmem [shape: f32[32,1], index: 4, kind: input, shape index: {}]   ;;  %s6180_s6 = inlined_call_operand.hbm [shape: f32[1,1], index: 6, kind: output, shape index: {}]   ;;  %s6181_s3 = inlined_call_operand.<no memory space> [shape: f32[1,1], index: 3, kind: input, shape index: {}]   ;;  %s6182_s5 = inlined_call_operand.<no memory space> [shape: f32[1,1], index: 5, kind: input, shape index: {}]  }
   0x1   :  { %v11_v0 = vstv %s6178_s2  ;;  %v13_v1 = vstv %s6181_s3  ;;  %v15_v2 = vstv %s6182_s5 }
   0x2   :  { %12 = vst [vmem:[#allocation2] sm:$0x1] %v11_v0  ;;  %14 = vst [vmem:[#allocation3] sm:$0x1] %v13_v1 }
   0x3   :  { %16 = vst [vmem:[#allocation4] sm:$0x1] %v15_v2 }
   0x4   :  { %v4582_v3 = vld [vmem:[%s6177_s1 + $0x40] sm:$0xff]   ;;  %v4586_v7 = vld [vmem:[%s6177_s1 + $0x48] sm:$0xff]   ;;  %v4590_v11 = vld [vmem:[%s6177_s1 + $0x50] sm:$0xff]  }
   0x5   :  { %v4583_v4 = vld [vmem:[%s6177_s1 + $0xc0] sm:$0xff]   ;;  %4077 = vmatprep.subr.bf16.mxu0 %v4582_v3  ;;  %v4587_v8 = vld [vmem:[%s6177_s1 + $0xc8] sm:$0xff]   ;;  %v4591_v12 = vld [vmem:[%s6177_s1 + $0xd0] sm:$0xff]  }
   0x6   :  { %v4584_v5 = vld [vmem:[%s6177_s1] sm:$0xff]   ;;  %4105 = vmatprep.subr.bf16.mxu1 %v4583_v4  ;;  %v4588_v9 = vld [vmem:[%s6177_s1 + $0x8] sm:$0xff]   ;;  %v4592_v13 = vld [vmem:[%s6177_s1 + $0x10] sm:$0xff]  }
   0x7   :  { %v4585_v6 = vld [vmem:[%s6177_s1 + $0x80] sm:$0xff]   ;;  %4078 = vmatpush3.bf16.msra.mxu0 %v4584_v5  ;;  %v4589_v10 = vld [vmem:[%s6177_s1 + $0x88] sm:$0xff]   ;;  %v4593_v14 = vld [vmem:[%s6177_s1 + $0x90] sm:$0xff]  }
   0x8   :  { %4106 = vmatpush3.bf16.msra.mxu1 %v4585_v6  ;;  %4079 = vmatprep.subr.bf16.mxu0 %v4586_v7  ;;  %v4594_v15 = vld [vmem:[%s6177_s1 + $0x58] sm:$0xff]   ;;  %v4598_v19 = vld [vmem:[%s6177_s1 + $0x60] sm:$0xff]   ;;  %v4602_v23 = vld [vmem:[%s6177_s1 + $0x68] sm:$0xff]  }
   0x9   :  { %4107 = vmatprep.subr.bf16.mxu1 %v4587_v8  ;;  %v4595_v16 = vld [vmem:[%s6177_s1 + $0xd8] sm:$0xff]   ;;  %v4599_v20 = vld [vmem:[%s6177_s1 + $0xe0] sm:$0xff]   ;;  %v4603_v24 = vld [vmem:[%s6177_s1 + $0xe8] sm:$0xff]  }
   0xa   :  { %v4596_v17 = vld [vmem:[%s6177_s1 + $0x18] sm:$0xff]   ;;  %v4600_v21 = vld [vmem:[%s6177_s1 + $0x20] sm:$0xff]   ;;  %v4604_v25 = vld [vmem:[%s6177_s1 + $0x28] sm:$0xff]  }
   0xb   :  { %4080 = vmatpush3.bf16.msra.mxu0 %v4588_v9  ;;  %v4597_v18 = vld [vmem:[%s6177_s1 + $0x98] sm:$0xff]   ;;  %v4601_v22 = vld [vmem:[%s6177_s1 + $0xa0] sm:$0xff]   ;;  %v4605_v26 = vld [vmem:[%s6177_s1 + $0xa8] sm:$0xff]  }
   0xc   :  { %4108 = vmatpush3.bf16.msra.mxu1 %v4589_v10  ;;  %4081 = vmatprep.subr.bf16.mxu0 %v4590_v11  ;;  %v4606_v27 = vld [vmem:[%s6177_s1 + $0x70] sm:$0xff]   ;;  %v4610_v31 = vld [vmem:[%s6177_s1 + $0x78] sm:$0xff]   ;;  %v4620_v39 = vld [vmem:[%s6177_s1 + $0x140] sm:$0xff]  }
   0xd   :  { %4109 = vmatprep.subr.bf16.mxu1 %v4591_v12  ;;  %v4607_v28 = vld [vmem:[%s6177_s1 + $0xf0] sm:$0xff]   ;;  %v4611_v32 = vld [vmem:[%s6177_s1 + $0xf8] sm:$0xff]   ;;  %v4621_v40 = vld [vmem:[%s6177_s1 + $0x1c0] sm:$0xff]  }
   0xe   :  { %v4608_v29 = vld [vmem:[%s6177_s1 + $0x30] sm:$0xff]   ;;  %v4612_v33 = vld [vmem:[%s6177_s1 + $0x38] sm:$0xff]   ;;  %v4622_v41 = vld [vmem:[%s6177_s1 + $0x100] sm:$0xff]  }
   0xf   :  { %4082 = vmatpush3.bf16.msra.mxu0 %v4592_v13  ;;  %v4609_v30 = vld [vmem:[%s6177_s1 + $0xb0] sm:$0xff]   ;;  %v4613_v34 = vld [vmem:[%s6177_s1 + $0xb8] sm:$0xff]   ;;  %v4623_v42 = vld [vmem:[%s6177_s1 + $0x180] sm:$0xff]  }
  0x10   :  { %4110 = vmatpush3.bf16.msra.mxu1 %v4593_v14  ;;  %4083 = vmatprep.subr.bf16.mxu0 %v4594_v15  ;;  %v4614_v35 = vld [vmem:[%s6176_s0] ss:$144 sps:$4 sm:$0xff]   ;;  %v4616_v36 = vld [vmem:[%s6176_s0 + $0x4] ss:$144 sps:$4 sm:$0xff]   ;;  %v4617_v37 = vld [vmem:[%s6176_s0 + $0x8] ss:$144 sps:$4 sm:$0xff]  }
  0x11   :  { %4111 = vmatprep.subr.bf16.mxu1 %v4595_v16  ;;  %v4619_v38 = vld [vmem:[%s6176_s0 + $0xc] ss:$144 sps:$4 sm:$0xff]   ;;  %2799 = vmatprep.mubr.bf16.mxu0 %v4616_v36  ;;  %v4628_v47 = vld [vmem:[%s6177_s1 + $0x150] sm:$0xff]   ;;  %v4636_v55 = vld [vmem:[%s6177_s1 + $0x160] sm:$0xff]  }
  0x12   :  { %2848 = vmatprep.mubr.bf16.mxu1 %v4619_v38  ;;  %v4624_v43 = vld [vmem:[%s6177_s1 + $0x148] sm:$0xff]   ;;  %v4629_v48 = vld [vmem:[%s6177_s1 + $0x1d0] sm:$0xff]   ;;  %v4632_v51 = vld [vmem:[%s6177_s1 + $0x158] sm:$0xff]  }
  0x13   :  { %4084 = vmatpush3.bf16.msra.mxu0 %v4596_v17  ;;  %v4625_v44 = vld [vmem:[%s6177_s1 + $0x1c8] sm:$0xff]   ;;  %v4630_v49 = vld [vmem:[%s6177_s1 + $0x110] sm:$0xff]   ;;  %v4633_v52 = vld [vmem:[%s6177_s1 + $0x1d8] sm:$0xff]  }
  0x14   :  { %4112 = vmatpush3.bf16.msra.mxu1 %v4597_v18  ;;  %4085 = vmatprep.subr.bf16.mxu0 %v4598_v19  ;;  %v4626_v45 = vld [vmem:[%s6177_s1 + $0x108] sm:$0xff]   ;;  %v4631_v50 = vld [vmem:[%s6177_s1 + $0x190] sm:$0xff]   ;;  %v4634_v53 = vld [vmem:[%s6177_s1 + $0x118] sm:$0xff]  }
  0x15   :  { %4113 = vmatprep.subr.bf16.mxu1 %v4599_v20  ;;  %v4627_v46 = vld [vmem:[%s6177_s1 + $0x188] sm:$0xff]   ;;  %v4635_v54 = vld [vmem:[%s6177_s1 + $0x198] sm:$0xff]   ;;  %v4637_v56 = vld [vmem:[%s6177_s1 + $0x1e0] sm:$0xff]  }
  0x16   :  { %v4638_v57 = vld [vmem:[%s6177_s1 + $0x120] sm:$0xff]   ;;  %v4640_v59 = vld [vmem:[%s6177_s1 + $0x168] sm:$0xff]   ;;  %v4650_v3 = vld [vmem:[%s6177_s1 + $0x170] sm:$0xff]  }
  0x17   :  { %4086 = vmatpush3.bf16.msra.mxu0 %v4600_v21  ;;  %v4639_v58 = vld [vmem:[%s6177_s1 + $0x1a0] sm:$0xff]   ;;  %v4641_v60 = vld [vmem:[%s6177_s1 + $0x1e8] sm:$0xff]   ;;  %v4651_v4 = vld [vmem:[%s6177_s1 + $0x1f0] sm:$0xff]  }
  0x18   :  { %4114 = vmatpush3.bf16.msra.mxu1 %v4601_v22  ;;  %4087 = vmatprep.subr.bf16.mxu0 %v4602_v23  ;;  %v4642_v61 = vld [vmem:[%s6176_s0 + $0x124] ss:$144 sps:$4 sm:$0xff]   ;;  %v4644_v62 = vld [vmem:[%s6176_s0 + $0x12c] ss:$144 sps:$4 sm:$0xff]   ;;  %v4648_v1 = vld [vmem:[%s6176_s0 + $0x120] ss:$144 sps:$4 sm:$0xff]  }
  0x19   :  { %4115 = vmatprep.subr.bf16.mxu1 %v4603_v24  ;;  %v4646_v63 = vld [vmem:[%s6177_s1 + $0x128] sm:$0xff]   ;;  %v4652_v5 = vld [vmem:[%s6177_s1 + $0x130] sm:$0xff]   ;;  %v4654_v7 = vld [vmem:[%s6177_s1 + $0x178] sm:$0xff]  }
  0x1a   :  { %v4647_v0 = vld [vmem:[%s6177_s1 + $0x1a8] sm:$0xff]   ;;  %v4653_v6 = vld [vmem:[%s6177_s1 + $0x1b0] sm:$0xff]   ;;  %v4655_v8 = vld [vmem:[%s6177_s1 + $0x1f8] sm:$0xff]  }
  0x1b   :  { %4088 = vmatpush3.bf16.msra.mxu0 %v4604_v25  ;;  %v4649_v2 = vld [vmem:[%s6176_s0 + $0x128] ss:$144 sps:$4 sm:$0xff]   ;;  %v4658_v11 = vld [vmem:[%s6176_s0 + $0x10] ss:$144 sps:$4 sm:$0xff]   ;;  %v4660_v12 = vld [vmem:[%s6176_s0 + $0x14] ss:$144 sps:$4 sm:$0xff]  }
  0x1c   :  { %4116 = vmatpush3.bf16.msra.mxu1 %v4605_v26  ;;  %4089 = vmatprep.subr.bf16.mxu0 %v4606_v27  ;;  %v4656_v9 = vld [vmem:[%s6177_s1 + $0x138] sm:$0xff]   ;;  %v4664_v15 = vld [vmem:[%s6177_s1 + $0x240] sm:$0xff]   ;;  %v4668_v19 = vld [vmem:[%s6177_s1 + $0x248] sm:$0xff]  }
  0x1d   :  { %4117 = vmatprep.subr.bf16.mxu1 %v4607_v28  ;;  %v4657_v10 = vld [vmem:[%s6177_s1 + $0x1b8] sm:$0xff]   ;;  %v4665_v16 = vld [vmem:[%s6177_s1 + $0x2c0] sm:$0xff]   ;;  %v4669_v20 = vld [vmem:[%s6177_s1 + $0x2c8] sm:$0xff]  }
  0x1e   :  { %v4661_v13 = vld [vmem:[%s6176_s0 + $0x18] ss:$144 sps:$4 sm:$0xff]   ;;  %v4663_v14 = vld [vmem:[%s6176_s0 + $0x1c] ss:$144 sps:$4 sm:$0xff]   ;;  %v4666_v17 = vld [vmem:[%s6177_s1 + $0x200] sm:$0xff]  }
  0x1f   :  { %4090 = vmatpush3.bf16.msra.mxu0 %v4608_v29  ;;  %v4667_v18 = vld [vmem:[%s6177_s1 + $0x280] sm:$0xff]   ;;  %v4670_v21 = vld [vmem:[%s6177_s1 + $0x208] sm:$0xff]   ;;  %v4675_v25 = vld [vmem:[%s6177_s1 + $0x250] sm:$0xff]  }
  0x20   :  { %4118 = vmatpush3.bf16.msra.mxu1 %v4609_v30  ;;  %4091 = vmatprep.subr.bf16.mxu0 %v4610_v31  ;;  %v4671_v22 = vld [vmem:[%s6177_s1 + $0x288] sm:$0xff]   ;;  %v4672_v23 = vld [vmem:[%s6176_s0 + $0x134] ss:$144 sps:$4 sm:$0xff]   ;;  %v4674_v24 = vld [vmem:[%s6176_s0 + $0x130] ss:$144 sps:$4 sm:$0xff]  }
  0x21   :  { %4119 = vmatprep.subr.bf16.mxu1 %v4611_v32  ;;  %v4676_v26 = vld [vmem:[%s6177_s1 + $0x2d0] sm:$0xff]   ;;  %v4677_v27 = vld [vmem:[%s6176_s0 + $0x13c] ss:$144 sps:$4 sm:$0xff]   ;;  %v4681_v30 = vld [vmem:[%s6176_s0 + $0x138] ss:$144 sps:$4 sm:$0xff]  }
  0x22   :  { %v4679_v28 = vld [vmem:[%s6177_s1 + $0x210] sm:$0xff]   ;;  %v4682_v31 = vld [vmem:[%s6177_s1 + $0x258] sm:$0xff]   ;;  %v4687_v36 = vld [vmem:[%s6177_s1 + $0x2e0] sm:$0xff]  }
  0x23   :  { %4092 = vmatpush3.bf16.msra.mxu0 %v4612_v33  ;;  %v4680_v29 = vld [vmem:[%s6177_s1 + $0x290] sm:$0xff]   ;;  %v4683_v32 = vld [vmem:[%s6177_s1 + $0x2d8] sm:$0xff]   ;;  %v4689_v38 = vld [vmem:[%s6177_s1 + $0x2a0] sm:$0xff]  }
  0x24   :  { %4120 = vmatpush3.bf16.msra.mxu1 %v4613_v34  ;;  %4133 = vmatprep.subr.bf16.mxu0 %v4620_v39  ;;  %v4684_v33 = vld [vmem:[%s6177_s1 + $0x218] sm:$0xff]   ;;  %v4690_v39 = vld [vmem:[%s6177_s1 + $0x268] sm:$0xff]  }
  0x25   :  { %4161 = vmatprep.subr.bf16.mxu1 %v4621_v40  ;;  %v4685_v34 = vld [vmem:[%s6177_s1 + $0x298] sm:$0xff]   ;;  %v4691_v40 = vld [vmem:[%s6177_s1 + $0x2e8] sm:$0xff]  }
  0x26   :  { %2800 = vmatmul.mubr.bf16.vlgmr.msra.gmra.mrb[0].mxu0 %v4614_v35  ;;  %v4686_v35 = vld [vmem:[%s6177_s1 + $0x260] sm:$0xff]  }
  0x27   :  { %2849 = vmatmul.mubr.bf16.vlgmr.msra.gmra.mrb[0].mxu1 %v4617_v37  ;;  %4134 = vmatpush3.bf16.msra.mxu0 %v4622_v41  ;;  %v4688_v37 = vld [vmem:[%s6177_s1 + $0x220] sm:$0xff]   ;;  %v4692_v41 = vld [vmem:[%s6177_s1 + $0x228] sm:$0xff]  }
  0x28   :  { %4162 = vmatpush3.bf16.msra.mxu1 %v4623_v42  ;;  %4135 = vmatprep.subr.bf16.mxu0 %v4624_v43  ;;  %v4693_v42 = vld [vmem:[%s6177_s1 + $0x2a8] sm:$0xff]   ;;  %v4694_v43 = vld [vmem:[%s6177_s1 + $0x270] sm:$0xff]  }
  0x29   :  { %4163 = vmatprep.subr.bf16.mxu1 %v4625_v44  ;;  %2807 = vmatprep.mubr.bf16.mxu0 %v4642_v61  ;;  %v4695_v44 = vld [vmem:[%s6177_s1 + $0x2f0] sm:$0xff]   ;;  %v4714_v61 = vld [vmem:[%s6177_s1 + $0x308] sm:$0xff]  }
  0x2a   :  { %2856 = vmatprep.mubr.bf16.mxu1 %v4644_v62  ;;  %v4715_v62 = vld [vmem:[%s6177_s1 + $0x388] sm:$0xff]  }
  0x2b   :  { %4136 = vmatpush3.bf16.msra.mxu0 %v4626_v45  ;;  %v4696_v45 = vld [vmem:[%s6177_s1 + $0x230] sm:$0xff]  }
  0x2c   :  { %4164 = vmatpush3.bf16.msra.mxu1 %v4627_v46  ;;  %4137 = vmatprep.subr.bf16.mxu0 %v4628_v47  ;;  %v4697_v46 = vld [vmem:[%s6177_s1 + $0x2b0] sm:$0xff]   ;;  %v4698_v47 = vld [vmem:[%s6177_s1 + $0x278] sm:$0xff]  }
  0x2d   :  { %4165 = vmatprep.subr.bf16.mxu1 %v4629_v48  ;;  %v4699_v48 = vld [vmem:[%s6177_s1 + $0x2f8] sm:$0xff]  }
  0x2e   :  { %2808 = vmatmul.mubr.bf16.gmra.mrb[4].mxu0 %v4648_v1  ;;  %v4719_v1 = vld [vmem:[%s6177_s1 + $0x350] sm:$0xff]  }
  0x2f   :  { %4138 = vmatpush3.bf16.msra.mxu0 %v4630_v49  ;;  %2857 = vmatmul.mubr.bf16.gmra.mrb[4].mxu1 %v4649_v2  ;;  %v4700_v49 = vld [vmem:[%s6177_s1 + $0x238] sm:$0xff]   ;;  %v4720_v2 = vld [vmem:[%s6177_s1 + $0x3d0] sm:$0xff]  }
  0x30   :  { %4166 = vmatpush3.bf16.msra.mxu1 %v4631_v50  ;;  %4139 = vmatprep.subr.bf16.mxu0 %v4632_v51  ;;  %v4701_v50 = vld [vmem:[%s6177_s1 + $0x2b8] sm:$0xff]   ;;  %v4702_v51 = vld [vmem:[%s6176_s0 + $0x20] ss:$144 sps:$4 sm:$0xff]  }
  0x31   :  { %4167 = vmatprep.subr.bf16.mxu1 %v4633_v52  ;;  %2897 = vmatprep.mubr.bf16.mxu0 %v4660_v12  ;;  %v4704_v52 = vld [vmem:[%s6176_s0 + $0x24] ss:$144 sps:$4 sm:$0xff]  }
  0x32   :  { %2946 = vmatprep.mubr.bf16.mxu1 %v4663_v14  ;;  %v4731_v12 = vld [vmem:[%s6177_s1 + $0x3e0] sm:$0xff]  }
  0x33   :  { %4140 = vmatpush3.bf16.msra.mxu0 %v4634_v53  ;;  %v4705_v53 = vld [vmem:[%s6176_s0 + $0x28] ss:$144 sps:$4 sm:$0xff]   ;;  %v4733_v14 = vld [vmem:[%s6177_s1 + $0x3a0] sm:$0xff]  }
  0x34   :  { %4168 = vmatpush3.bf16.msra.mxu1 %v4635_v54  ;;  %4141 = vmatprep.subr.bf16.mxu0 %v4636_v55  ;;  %v4707_v54 = vld [vmem:[%s6176_s0 + $0x2c] ss:$144 sps:$4 sm:$0xff]   ;;  %v4708_v55 = vld [vmem:[%s6177_s1 + $0x340] sm:$0xff]  }
  0x35   :  { %4169 = vmatprep.subr.bf16.mxu1 %v4637_v56  ;;  %v4709_v56 = vld [vmem:[%s6177_s1 + $0x3c0] sm:$0xff]  }
  0x37   :  { %4142 = vmatpush3.bf16.msra.mxu0 %v4638_v57  ;;  %v4710_v57 = vld [vmem:[%s6177_s1 + $0x300] sm:$0xff]  }
  0x38   :  { %4170 = vmatpush3.bf16.msra.mxu1 %v4639_v58  ;;  %4143 = vmatprep.subr.bf16.mxu0 %v4640_v59  ;;  %v4711_v58 = vld [vmem:[%s6177_s1 + $0x380] sm:$0xff]   ;;  %v4712_v59 = vld [vmem:[%s6177_s1 + $0x348] sm:$0xff]  }
  0x39   :  { %4171 = vmatprep.subr.bf16.mxu1 %v4641_v60  ;;  %v4713_v60 = vld [vmem:[%s6177_s1 + $0x3c8] sm:$0xff]  }
  0x3b   :  { %4144 = vmatpush3.bf16.msra.mxu0 %v4646_v63  ;;  %v4716_v63 = vld [vmem:[%s6176_s0 + $0x144] ss:$144 sps:$4 sm:$0xff]  }
  0x3c   :  { %4172 = vmatpush3.bf16.msra.mxu1 %v4647_v0  ;;  %4145 = vmatprep.subr.bf16.mxu0 %v4650_v3  ;;  %v4718_v0 = vld [vmem:[%s6176_s0 + $0x140] ss:$144 sps:$4 sm:$0xff]   ;;  %v4721_v3 = vld [vmem:[%s6176_s0 + $0x14c] ss:$144 sps:$4 sm:$0xff]  }
  0x3d   :  { %4173 = vmatprep.subr.bf16.mxu1 %v4651_v4  ;;  %v4723_v4 = vld [vmem:[%s6177_s1 + $0x310] sm:$0xff]  }
  0x3f   :  { %4146 = vmatpush3.bf16.msra.mxu0 %v4652_v5  ;;  %v4724_v5 = vld [vmem:[%s6177_s1 + $0x390] sm:$0xff]  }
  0x40   :  { %4174 = vmatpush3.bf16.msra.mxu1 %v4653_v6  ;;  %4147 = vmatprep.subr.bf16.mxu0 %v4654_v7  ;;  %v4725_v6 = vld [vmem:[%s6176_s0 + $0x148] ss:$144 sps:$4 sm:$0xff]  }
  0x41   :  { %4175 = vmatprep.subr.bf16.mxu1 %v4655_v8  ;;  %v4726_v7 = vld [vmem:[%s6177_s1 + $0x358] sm:$0xff]  }
  0x42   :  { %v4727_v8 = vld [vmem:[%s6177_s1 + $0x3d8] sm:$0xff]  }
  0x43   :  { %4148 = vmatpush3.bf16.msra.mxu0 %v4656_v9  ;;  %v4728_v9 = vld [vmem:[%s6177_s1 + $0x318] sm:$0xff]  }
  0x44   :  { %4176 = vmatpush3.bf16.msra.mxu1 %v4657_v10  ;;  %4189 = vmatprep.subr.bf16.mxu0 %v4664_v15  ;;  %v4729_v10 = vld [vmem:[%s6177_s1 + $0x398] sm:$0xff]   ;;  %v4734_v15 = vld [vmem:[%s6177_s1 + $0x368] sm:$0xff]  }
  0x45   :  { %4217 = vmatprep.subr.bf16.mxu1 %v4665_v16  ;;  %v4735_v16 = vld [vmem:[%s6177_s1 + $0x3e8] sm:$0xff]  }
  0x46   :  { %2898 = vmatmul.mubr.bf16.vlgmr.msra.gmra.mrb[8].mxu0 %v4658_v11  ;;  %v4730_v11 = vld [vmem:[%s6177_s1 + $0x360] sm:$0xff]  }
  0x47   :  { %2947 = vmatmul.mubr.bf16.vlgmr.msra.gmra.mrb[8].mxu1 %v4661_v13  ;;  %4190 = vmatpush3.bf16.msra.mxu0 %v4666_v17  ;;  %v4732_v13 = vld [vmem:[%s6177_s1 + $0x320] sm:$0xff]   ;;  %v4736_v17 = vld [vmem:[%s6177_s1 + $0x328] sm:$0xff]  }
  0x48   :  { %4218 = vmatpush3.bf16.msra.mxu1 %v4667_v18  ;;  %4191 = vmatprep.subr.bf16.mxu0 %v4668_v19  ;;  %v4737_v18 = vld [vmem:[%s6177_s1 + $0x3a8] sm:$0xff]   ;;  %v4738_v19 = vld [vmem:[%s6177_s1 + $0x370] sm:$0xff]  }
  0x49   :  { %4219 = vmatprep.subr.bf16.mxu1 %v4669_v20  ;;  %2905 = vmatprep.mubr.bf16.mxu0 %v4672_v23  ;;  %v4739_v20 = vld [vmem:[%s6177_s1 + $0x3f0] sm:$0xff]   ;;  %v4742_v23 = vld [vmem:[%s6177_s1 + $0x378] sm:$0xff]  }
  0x4a   :  { %2954 = vmatprep.mubr.bf16.mxu1 %v4677_v27  ;;  %v4746_v27 = vld [vmem:[%s6176_s0 + $0x30] ss:$144 sps:$4 sm:$0xff]  }
  0x4b   :  { %4192 = vmatpush3.bf16.msra.mxu0 %v4670_v21  ;;  %v4740_v21 = vld [vmem:[%s6177_s1 + $0x330] sm:$0xff]  }
  0x4c   :  { %4220 = vmatpush3.bf16.msra.mxu1 %v4671_v22  ;;  %4193 = vmatprep.subr.bf16.mxu0 %v4675_v25  ;;  %v4741_v22 = vld [vmem:[%s6177_s1 + $0x3b0] sm:$0xff]   ;;  %v4744_v25 = vld [vmem:[%s6177_s1 + $0x338] sm:$0xff]  }
  0x4d   :  { %4221 = vmatprep.subr.bf16.mxu1 %v4676_v26  ;;  %v4745_v26 = vld [vmem:[%s6177_s1 + $0x3b8] sm:$0xff]  }
  0x4e   :  { %2906 = vmatmul.mubr.bf16.gmra.mrb[12].mxu0 %v4674_v24  ;;  %v4743_v24 = vld [vmem:[%s6177_s1 + $0x3f8] sm:$0xff]  }
  0x4f   :  { %4194 = vmatpush3.bf16.msra.mxu0 %v4679_v28  ;;  %2955 = vmatmul.mubr.bf16.gmra.mrb[12].mxu1 %v4681_v30  ;;  %v4748_v28 = vld [vmem:[%s6176_s0 + $0x34] ss:$144 sps:$4 sm:$0xff]   ;;  %v4751_v30 = vld [vmem:[%s6176_s0 + $0x3c] ss:$144 sps:$4 sm:$0xff]  }
  0x50   :  { %4222 = vmatpush3.bf16.msra.mxu1 %v4680_v29  ;;  %4195 = vmatprep.subr.bf16.mxu0 %v4682_v31  ;;  %v4749_v29 = vld [vmem:[%s6176_s0 + $0x38] ss:$144 sps:$4 sm:$0xff]   ;;  %v4752_v31 = vld [vmem:[%s6177_s1 + $0x440] sm:$0xff]  }
  0x51   :  { %4223 = vmatprep.subr.bf16.mxu1 %v4683_v32  ;;  %2995 = vmatprep.mubr.bf16.mxu0 %v4704_v52  ;;  %v4753_v32 = vld [vmem:[%s6177_s1 + $0x4c0] sm:$0xff]  }
  0x52   :  { %3044 = vmatprep.mubr.bf16.mxu1 %v4707_v54  ;;  %v4775_v52 = vld [vmem:[%s6177_s1 + $0x4e0] sm:$0xff]  }
  0x53   :  { %4196 = vmatpush3.bf16.msra.mxu0 %v4684_v33  ;;  %v4754_v33 = vld [vmem:[%s6177_s1 + $0x400] sm:$0xff]  }
  0x54   :  { %4224 = vmatpush3.bf16.msra.mxu1 %v4685_v34  ;;  %4197 = vmatprep.subr.bf16.mxu0 %v4686_v35  ;;  %v4755_v34 = vld [vmem:[%s6177_s1 + $0x480] sm:$0xff]   ;;  %v4756_v35 = vld [vmem:[%s6177_s1 + $0x448] sm:$0xff]  }
  0x55   :  { %4225 = vmatprep.subr.bf16.mxu1 %v4687_v36  ;;  %v4757_v36 = vld [vmem:[%s6177_s1 + $0x4c8] sm:$0xff]   ;;  %v4777_v54 = vld [vmem:[%s6177_s1 + $0x4a0] sm:$0xff]  }
  0x57   :  { %4198 = vmatpush3.bf16.msra.mxu0 %v4688_v37  ;;  %v4758_v37 = vld [vmem:[%s6177_s1 + $0x408] sm:$0xff]  }
  0x58   :  { %4226 = vmatpush3.bf16.msra.mxu1 %v4689_v38  ;;  %4199 = vmatprep.subr.bf16.mxu0 %v4690_v39  ;;  %v4759_v38 = vld [vmem:[%s6177_s1 + $0x488] sm:$0xff]   ;;  %v4760_v39 = vld [vmem:[%s6176_s0 + $0x154] ss:$144 sps:$4 sm:$0xff]  }
  0x59   :  { %4227 = vmatprep.subr.bf16.mxu1 %v4691_v40  ;;  %v4762_v40 = vld [vmem:[%s6176_s0 + $0x150] ss:$144 sps:$4 sm:$0xff]  }
  0x5b   :  { %4200 = vmatpush3.bf16.msra.mxu0 %v4692_v41  ;;  %v4763_v41 = vld [vmem:[%s6177_s1 + $0x450] sm:$0xff]  }
  0x5c   :  { %4228 = vmatpush3.bf16.msra.mxu1 %v4693_v42  ;;  %4201 = vmatprep.subr.bf16.mxu0 %v4694_v43  ;;  %v4764_v42 = vld [vmem:[%s6177_s1 + $0x4d0] sm:$0xff]   ;;  %v4765_v43 = vld [vmem:[%s6176_s0 + $0x15c] ss:$144 sps:$4 sm:$0xff]  }
  0x5d   :  { %4229 = vmatprep.subr.bf16.mxu1 %v4695_v44  ;;  %v4767_v44 = vld [vmem:[%s6177_s1 + $0x410] sm:$0xff]  }
  0x5f   :  { %4202 = vmatpush3.bf16.msra.mxu0 %v4696_v45  ;;  %v4768_v45 = vld [vmem:[%s6177_s1 + $0x490] sm:$0xff]  }
  0x60   :  { %4230 = vmatpush3.bf16.msra.mxu1 %v4697_v46  ;;  %4203 = vmatprep.subr.bf16.mxu0 %v4698_v47  ;;  %v4769_v46 = vld [vmem:[%s6176_s0 + $0x158] ss:$144 sps:$4 sm:$0xff]  }
  0x61   :  { %4231 = vmatprep.subr.bf16.mxu1 %v4699_v48  ;;  %v4770_v47 = vld [vmem:[%s6177_s1 + $0x458] sm:$0xff]  }
  0x62   :  { %v4771_v48 = vld [vmem:[%s6177_s1 + $0x4d8] sm:$0xff]  }
  0x63   :  { %4204 = vmatpush3.bf16.msra.mxu0 %v4700_v49  ;;  %v4772_v49 = vld [vmem:[%s6177_s1 + $0x418] sm:$0xff]  }
  0x64   :  { %4232 = vmatpush3.bf16.msra.mxu1 %v4701_v50  ;;  %4245 = vmatprep.subr.bf16.mxu0 %v4708_v55  ;;  %v4773_v50 = vld [vmem:[%s6177_s1 + $0x498] sm:$0xff]   ;;  %v4778_v55 = vld [vmem:[%s6177_s1 + $0x468] sm:$0xff]  }
  0x65   :  { %4273 = vmatprep.subr.bf16.mxu1 %v4709_v56  ;;  %v4779_v56 = vld [vmem:[%s6177_s1 + $0x4e8] sm:$0xff]  }
  0x66   :  { %2996 = vmatmul.mubr.bf16.vlgmr.msra.gmra.mrb[16].mxu0 %v4702_v51  ;;  %v4774_v51 = vld [vmem:[%s6177_s1 + $0x460] sm:$0xff]  }
  0x67   :  { %3045 = vmatmul.mubr.bf16.vlgmr.msra.gmra.mrb[16].mxu1 %v4705_v53  ;;  %4246 = vmatpush3.bf16.msra.mxu0 %v4710_v57  ;;  %v4776_v53 = vld [vmem:[%s6177_s1 + $0x420] sm:$0xff]   ;;  %v4780_v57 = vld [vmem:[%s6177_s1 + $0x428] sm:$0xff]  }
  0x68   :  { %4274 = vmatpush3.bf16.msra.mxu1 %v4711_v58  ;;  %4247 = vmatprep.subr.bf16.mxu0 %v4712_v59  ;;  %v4781_v58 = vld [vmem:[%s6177_s1 + $0x4a8] sm:$0xff]   ;;  %v4782_v59 = vld [vmem:[%s6177_s1 + $0x470] sm:$0xff]  }
  0x69   :  { %4275 = vmatprep.subr.bf16.mxu1 %v4713_v60  ;;  %3003 = vmatprep.mubr.bf16.mxu0 %v4716_v63  ;;  %v4783_v60 = vld [vmem:[%s6177_s1 + $0x4f0] sm:$0xff]   ;;  %v4786_v63 = vld [vmem:[%s6177_s1 + $0x478] sm:$0xff]  }
  0x6a   :  { %3052 = vmatprep.mubr.bf16.mxu1 %v4721_v3  ;;  %v4790_v3 = vld [vmem:[%s6176_s0 + $0x40] ss:$144 sps:$4 sm:$0xff]  }
  0x6b   :  { %4248 = vmatpush3.bf16.msra.mxu0 %v4714_v61  ;;  %v4784_v61 = vld [vmem:[%s6177_s1 + $0x430] sm:$0xff]  }
  0x6c   :  { %4276 = vmatpush3.bf16.msra.mxu1 %v4715_v62  ;;  %4249 = vmatprep.subr.bf16.mxu0 %v4719_v1  ;;  %v4785_v62 = vld [vmem:[%s6177_s1 + $0x4b0] sm:$0xff]   ;;  %v4788_v1 = vld [vmem:[%s6177_s1 + $0x438] sm:$0xff]  }
  0x6d   :  { %4277 = vmatprep.subr.bf16.mxu1 %v4720_v2  ;;  %v4789_v2 = vld [vmem:[%s6177_s1 + $0x4b8] sm:$0xff]  }
  0x6e   :  { %3004 = vmatmul.mubr.bf16.gmra.mrb[20].mxu0 %v4718_v0  ;;  %v4787_v0 = vld [vmem:[%s6177_s1 + $0x4f8] sm:$0xff]  }
  0x6f   :  { %4250 = vmatpush3.bf16.msra.mxu0 %v4723_v4  ;;  %3053 = vmatmul.mubr.bf16.gmra.mrb[20].mxu1 %v4725_v6  ;;  %v4792_v4 = vld [vmem:[%s6176_s0 + $0x44] ss:$144 sps:$4 sm:$0xff]   ;;  %v4795_v6 = vld [vmem:[%s6176_s0 + $0x4c] ss:$144 sps:$4 sm:$0xff]  }
  0x70   :  { %4278 = vmatpush3.bf16.msra.mxu1 %v4724_v5  ;;  %4251 = vmatprep.subr.bf16.mxu0 %v4726_v7  ;;  %v4793_v5 = vld [vmem:[%s6176_s0 + $0x48] ss:$144 sps:$4 sm:$0xff]   ;;  %v4796_v7 = vld [vmem:[%s6177_s1 + $0x540] sm:$0xff]  }
  0x71   :  { %4279 = vmatprep.subr.bf16.mxu1 %v4727_v8  ;;  %3093 = vmatprep.mubr.bf16.mxu0 %v4748_v28  ;;  %v4797_v8 = vld [vmem:[%s6177_s1 + $0x5c0] sm:$0xff]  }
  0x72   :  { %3142 = vmatprep.mubr.bf16.mxu1 %v4751_v30  ;;  %v4819_v28 = vld [vmem:[%s6177_s1 + $0x5e0] sm:$0xff]  }
  0x73   :  { %4252 = vmatpush3.bf16.msra.mxu0 %v4728_v9  ;;  %v4798_v9 = vld [vmem:[%s6177_s1 + $0x500] sm:$0xff]  }
  0x74   :  { %4280 = vmatpush3.bf16.msra.mxu1 %v4729_v10  ;;  %4253 = vmatprep.subr.bf16.mxu0 %v4730_v11  ;;  %v4799_v10 = vld [vmem:[%s6177_s1 + $0x580] sm:$0xff]   ;;  %v4800_v11 = vld [vmem:[%s6177_s1 + $0x548] sm:$0xff]  }
  0x75   :  { %4281 = vmatprep.subr.bf16.mxu1 %v4731_v12  ;;  %v4801_v12 = vld [vmem:[%s6177_s1 + $0x5c8] sm:$0xff]   ;;  %v4821_v30 = vld [vmem:[%s6177_s1 + $0x5a0] sm:$0xff]  }
  0x77   :  { %4254 = vmatpush3.bf16.msra.mxu0 %v4732_v13  ;;  %v4802_v13 = vld [vmem:[%s6177_s1 + $0x508] sm:$0xff]  }
  0x78   :  { %4282 = vmatpush3.bf16.msra.mxu1 %v4733_v14  ;;  %4255 = vmatprep.subr.bf16.mxu0 %v4734_v15  ;;  %v4803_v14 = vld [vmem:[%s6177_s1 + $0x588] sm:$0xff]   ;;  %v4804_v15 = vld [vmem:[%s6176_s0 + $0x164] ss:$144 sps:$4 sm:$0xff]  }
  0x79   :  { %4283 = vmatprep.subr.bf16.mxu1 %v4735_v16  ;;  %v4806_v16 = vld [vmem:[%s6176_s0 + $0x160] ss:$144 sps:$4 sm:$0xff]  }
  0x7b   :  { %4256 = vmatpush3.bf16.msra.mxu0 %v4736_v17  ;;  %v4807_v17 = vld [vmem:[%s6177_s1 + $0x550] sm:$0xff]  }
  0x7c   :  { %4284 = vmatpush3.bf16.msra.mxu1 %v4737_v18  ;;  %4257 = vmatprep.subr.bf16.mxu0 %v4738_v19  ;;  %v4808_v18 = vld [vmem:[%s6177_s1 + $0x5d0] sm:$0xff]   ;;  %v4809_v19 = vld [vmem:[%s6176_s0 + $0x16c] ss:$144 sps:$4 sm:$0xff]  }
  0x7d   :  { %4285 = vmatprep.subr.bf16.mxu1 %v4739_v20  ;;  %v4811_v20 = vld [vmem:[%s6177_s1 + $0x510] sm:$0xff]  }
  0x7f   :  { %4258 = vmatpush3.bf16.msra.mxu0 %v4740_v21  ;;  %v4812_v21 = vld [vmem:[%s6177_s1 + $0x590] sm:$0xff]  }
  0x80   :  { %4286 = vmatpush3.bf16.msra.mxu1 %v4741_v22  ;;  %4259 = vmatprep.subr.bf16.mxu0 %v4742_v23  ;;  %v4813_v22 = vld [vmem:[%s6176_s0 + $0x168] ss:$144 sps:$4 sm:$0xff]  }
  0x81   :  { %4287 = vmatprep.subr.bf16.mxu1 %v4743_v24  ;;  %v4814_v23 = vld [vmem:[%s6177_s1 + $0x558] sm:$0xff]  }
  0x82   :  { %v4815_v24 = vld [vmem:[%s6177_s1 + $0x5d8] sm:$0xff]  }
  0x83   :  { %4260 = vmatpush3.bf16.msra.mxu0 %v4744_v25  ;;  %v4816_v25 = vld [vmem:[%s6177_s1 + $0x518] sm:$0xff]  }
  0x84   :  { %4288 = vmatpush3.bf16.msra.mxu1 %v4745_v26  ;;  %4301 = vmatprep.subr.bf16.mxu0 %v4752_v31  ;;  %v4817_v26 = vld [vmem:[%s6177_s1 + $0x598] sm:$0xff]   ;;  %v4822_v31 = vld [vmem:[%s6177_s1 + $0x568] sm:$0xff]  }
  0x85   :  { %4329 = vmatprep.subr.bf16.mxu1 %v4753_v32  ;;  %v4823_v32 = vld [vmem:[%s6177_s1 + $0x5e8] sm:$0xff]  }
  0x86   :  { %3094 = vmatmul.mubr.bf16.vlgmr.msra.gmra.mrb[24].mxu0 %v4746_v27  ;;  %v4818_v27 = vld [vmem:[%s6177_s1 + $0x560] sm:$0xff]  }
  0x87   :  { %3143 = vmatmul.mubr.bf16.vlgmr.msra.gmra.mrb[24].mxu1 %v4749_v29  ;;  %4302 = vmatpush3.bf16.msra.mxu0 %v4754_v33  ;;  %v4820_v29 = vld [vmem:[%s6177_s1 + $0x520] sm:$0xff]   ;;  %v4824_v33 = vld [vmem:[%s6177_s1 + $0x528] sm:$0xff]  }
  0x88   :  { %4330 = vmatpush3.bf16.msra.mxu1 %v4755_v34  ;;  %4303 = vmatprep.subr.bf16.mxu0 %v4756_v35  ;;  %v4825_v34 = vld [vmem:[%s6177_s1 + $0x5a8] sm:$0xff]   ;;  %v4826_v35 = vld [vmem:[%s6177_s1 + $0x570] sm:$0xff]  }
  0x89   :  { %4331 = vmatprep.subr.bf16.mxu1 %v4757_v36  ;;  %3101 = vmatprep.mubr.bf16.mxu0 %v4760_v39  ;;  %v4827_v36 = vld [vmem:[%s6177_s1 + $0x5f0] sm:$0xff]   ;;  %v4830_v39 = vld [vmem:[%s6177_s1 + $0x578] sm:$0xff]  }
  0x8a   :  { %3150 = vmatprep.mubr.bf16.mxu1 %v4765_v43  ;;  %v4834_v43 = vld [vmem:[%s6176_s0 + $0x50] ss:$144 sps:$4 sm:$0xff]  }
  0x8b   :  { %4304 = vmatpush3.bf16.msra.mxu0 %v4758_v37  ;;  %v4828_v37 = vld [vmem:[%s6177_s1 + $0x530] sm:$0xff]  }
  0x8c   :  { %4332 = vmatpush3.bf16.msra.mxu1 %v4759_v38  ;;  %4305 = vmatprep.subr.bf16.mxu0 %v4763_v41  ;;  %v4829_v38 = vld [vmem:[%s6177_s1 + $0x5b0] sm:$0xff]   ;;  %v4832_v41 = vld [vmem:[%s6177_s1 + $0x538] sm:$0xff]  }
  0x8d   :  { %4333 = vmatprep.subr.bf16.mxu1 %v4764_v42  ;;  %v4833_v42 = vld [vmem:[%s6177_s1 + $0x5b8] sm:$0xff]  }
  0x8e   :  { %3102 = vmatmul.mubr.bf16.gmra.mrb[28].mxu0 %v4762_v40  ;;  %v4831_v40 = vld [vmem:[%s6177_s1 + $0x5f8] sm:$0xff]  }
  0x8f   :  { %4306 = vmatpush3.bf16.msra.mxu0 %v4767_v44  ;;  %3151 = vmatmul.mubr.bf16.gmra.mrb[28].mxu1 %v4769_v46  ;;  %v4836_v44 = vld [vmem:[%s6176_s0 + $0x54] ss:$144 sps:$4 sm:$0xff]   ;;  %v4839_v46 = vld [vmem:[%s6176_s0 + $0x5c] ss:$144 sps:$4 sm:$0xff]  }
  0x90   :  { %4334 = vmatpush3.bf16.msra.mxu1 %v4768_v45  ;;  %4307 = vmatprep.subr.bf16.mxu0 %v4770_v47  ;;  %v4837_v45 = vld [vmem:[%s6176_s0 + $0x58] ss:$144 sps:$4 sm:$0xff]   ;;  %v4840_v47 = vld [vmem:[%s6177_s1 + $0x640] sm:$0xff]  }
  0x91   :  { %4335 = vmatprep.subr.bf16.mxu1 %v4771_v48  ;;  %3191 = vmatprep.mubr.bf16.mxu0 %v4792_v4  ;;  %v4841_v48 = vld [vmem:[%s6177_s1 + $0x6c0] sm:$0xff]  }
  0x92   :  { %3240 = vmatprep.mubr.bf16.mxu1 %v4795_v6  ;;  %v4863_v4 = vld [vmem:[%s6177_s1 + $0x6e0] sm:$0xff]  }
  0x93   :  { %4308 = vmatpush3.bf16.msra.mxu0 %v4772_v49  ;;  %v4842_v49 = vld [vmem:[%s6177_s1 + $0x600] sm:$0xff]  }
  0x94   :  { %4336 = vmatpush3.bf16.msra.mxu1 %v4773_v50  ;;  %4309 = vmatprep.subr.bf16.mxu0 %v4774_v51  ;;  %v4843_v50 = vld [vmem:[%s6177_s1 + $0x680] sm:$0xff]   ;;  %v4844_v51 = vld [vmem:[%s6177_s1 + $0x648] sm:$0xff]  }
  0x95   :  { %4337 = vmatprep.subr.bf16.mxu1 %v4775_v52  ;;  %v4845_v52 = vld [vmem:[%s6177_s1 + $0x6c8] sm:$0xff]   ;;  %v4865_v6 = vld [vmem:[%s6177_s1 + $0x6a0] sm:$0xff]  }
  0x97   :  { %4310 = vmatpush3.bf16.msra.mxu0 %v4776_v53  ;;  %v4846_v53 = vld [vmem:[%s6177_s1 + $0x608] sm:$0xff]  }
  0x98   :  { %4338 = vmatpush3.bf16.msra.mxu1 %v4777_v54  ;;  %4311 = vmatprep.subr.bf16.mxu0 %v4778_v55  ;;  %v4847_v54 = vld [vmem:[%s6177_s1 + $0x688] sm:$0xff]   ;;  %v4848_v55 = vld [vmem:[%s6176_s0 + $0x174] ss:$144 sps:$4 sm:$0xff]  }
  0x99   :  { %4339 = vmatprep.subr.bf16.mxu1 %v4779_v56  ;;  %v4850_v56 = vld [vmem:[%s6176_s0 + $0x170] ss:$144 sps:$4 sm:$0xff]  }
  0x9b   :  { %4312 = vmatpush3.bf16.msra.mxu0 %v4780_v57  ;;  %v4851_v57 = vld [vmem:[%s6177_s1 + $0x650] sm:$0xff]  }
  0x9c   :  { %4340 = vmatpush3.bf16.msra.mxu1 %v4781_v58  ;;  %4313 = vmatprep.subr.bf16.mxu0 %v4782_v59  ;;  %v4852_v58 = vld [vmem:[%s6177_s1 + $0x6d0] sm:$0xff]   ;;  %v4853_v59 = vld [vmem:[%s6176_s0 + $0x17c] ss:$144 sps:$4 sm:$0xff]  }
  0x9d   :  { %4341 = vmatprep.subr.bf16.mxu1 %v4783_v60  ;;  %v4855_v60 = vld [vmem:[%s6177_s1 + $0x610] sm:$0xff]  }
  0x9f   :  { %4314 = vmatpush3.bf16.msra.mxu0 %v4784_v61  ;;  %v4856_v61 = vld [vmem:[%s6177_s1 + $0x690] sm:$0xff]  }
  0xa0   :  { %4342 = vmatpush3.bf16.msra.mxu1 %v4785_v62  ;;  %4315 = vmatprep.subr.bf16.mxu0 %v4786_v63  ;;  %v4857_v62 = vld [vmem:[%s6176_s0 + $0x178] ss:$144 sps:$4 sm:$0xff]  }
  0xa1   :  { %4343 = vmatprep.subr.bf16.mxu1 %v4787_v0  ;;  %v4858_v63 = vld [vmem:[%s6177_s1 + $0x658] sm:$0xff]  }
  0xa2   :  { %v4859_v0 = vld [vmem:[%s6177_s1 + $0x6d8] sm:$0xff]  }
  0xa3   :  { %4316 = vmatpush3.bf16.msra.mxu0 %v4788_v1  ;;  %v4860_v1 = vld [vmem:[%s6177_s1 + $0x618] sm:$0xff]  }
  0xa4   :  { %4344 = vmatpush3.bf16.msra.mxu1 %v4789_v2  ;;  %4357 = vmatprep.subr.bf16.mxu0 %v4796_v7  ;;  %v4861_v2 = vld [vmem:[%s6177_s1 + $0x698] sm:$0xff]   ;;  %v4866_v7 = vld [vmem:[%s6177_s1 + $0x668] sm:$0xff]  }
  0xa5   :  { %4385 = vmatprep.subr.bf16.mxu1 %v4797_v8  ;;  %v4867_v8 = vld [vmem:[%s6177_s1 + $0x6e8] sm:$0xff]  }
  0xa6   :  { %3192 = vmatmul.mubr.bf16.vlgmr.msra.gmra.mrb[32].mxu0 %v4790_v3  ;;  %v4862_v3 = vld [vmem:[%s6177_s1 + $0x660] sm:$0xff]  }
  0xa7   :  { %3241 = vmatmul.mubr.bf16.vlgmr.msra.gmra.mrb[32].mxu1 %v4793_v5  ;;  %4358 = vmatpush3.bf16.msra.mxu0 %v4798_v9  ;;  %v4864_v5 = vld [vmem:[%s6177_s1 + $0x620] sm:$0xff]   ;;  %v4868_v9 = vld [vmem:[%s6177_s1 + $0x628] sm:$0xff]  }
  0xa8   :  { %4386 = vmatpush3.bf16.msra.mxu1 %v4799_v10  ;;  %4359 = vmatprep.subr.bf16.mxu0 %v4800_v11  ;;  %v4869_v10 = vld [vmem:[%s6177_s1 + $0x6a8] sm:$0xff]  }
  0xa9   :  { %4387 = vmatprep.subr.bf16.mxu1 %v4801_v12  ;;  %3199 = vmatprep.mubr.bf16.mxu0 %v4804_v15  ;;  %v4870_v12 = vld [vmem:[%s6177_s1 + $0x670] sm:$0xff]  }
  0xaa   :  { %3248 = vmatprep.mubr.bf16.mxu1 %v4809_v19  ;;  %v4873_v19 = vld [vmem:[%s6177_s1 + $0x6b0] sm:$0xff]  }
  0xab   :  { %4360 = vmatpush3.bf16.msra.mxu0 %v4802_v13 }
  0xac   :  { %4388 = vmatpush3.bf16.msra.mxu1 %v4803_v14  ;;  %4361 = vmatprep.subr.bf16.mxu0 %v4807_v17  ;;  %v4871_v14 = vld [vmem:[%s6177_s1 + $0x6f0] sm:$0xff]  }
  0xad   :  { %4389 = vmatprep.subr.bf16.mxu1 %v4808_v18 }
  0xae   :  { %3200 = vmatmul.mubr.bf16.gmra.mrb[36].mxu0 %v4806_v16  ;;  %v4872_v16 = vld [vmem:[%s6177_s1 + $0x630] sm:$0xff]  }
  0xaf   :  { %4362 = vmatpush3.bf16.msra.mxu0 %v4811_v20  ;;  %3249 = vmatmul.mubr.bf16.gmra.mrb[36].mxu1 %v4813_v22  ;;  %v4874_v22 = vld [vmem:[%s6177_s1 + $0x678] sm:$0xff]  }
  0xb0   :  { %4390 = vmatpush3.bf16.msra.mxu1 %v4812_v21  ;;  %4363 = vmatprep.subr.bf16.mxu0 %v4814_v23 }
  0xb1   :  { %4391 = vmatprep.subr.bf16.mxu1 %v4815_v24  ;;  %3289 = vmatprep.mubr.bf16.mxu0 %v4836_v44  ;;  %v4875_v24 = vld [vmem:[%s6177_s1 + $0x6f8] sm:$0xff]   ;;  %v4891_v44 = vld [vmem:[%s6177_s1 + $0x788] sm:$0xff]  }
  0xb2   :  { %3338 = vmatprep.mubr.bf16.mxu1 %v4839_v46  ;;  %v4894_v46 = vld [vmem:[%s6176_s0 + $0x180] ss:$144 sps:$4 sm:$0xff]  }
  0xb3   :  { %4364 = vmatpush3.bf16.msra.mxu0 %v4816_v25 }
  0xb4   :  { %4392 = vmatpush3.bf16.msra.mxu1 %v4817_v26  ;;  %4365 = vmatprep.subr.bf16.mxu0 %v4818_v27  ;;  %v4876_v27 = vld [vmem:[%s6177_s1 + $0x638] sm:$0xff]  }
  0xb5   :  { %4393 = vmatprep.subr.bf16.mxu1 %v4819_v28 }
  0xb7   :  { %4366 = vmatpush3.bf16.msra.mxu0 %v4820_v29 }
  0xb8   :  { %4394 = vmatpush3.bf16.msra.mxu1 %v4821_v30  ;;  %4367 = vmatprep.subr.bf16.mxu0 %v4822_v31  ;;  %v4877_v30 = vld [vmem:[%s6177_s1 + $0x6b8] sm:$0xff]  }
  0xb9   :  { %4395 = vmatprep.subr.bf16.mxu1 %v4823_v32  ;;  %v4878_v32 = vld [vmem:[%s6176_s0 + $0x60] ss:$144 sps:$4 sm:$0xff]  }
  0xbb   :  { %4368 = vmatpush3.bf16.msra.mxu0 %v4824_v33  ;;  %v4880_v33 = vld [vmem:[%s6176_s0 + $0x64] ss:$144 sps:$4 sm:$0xff]  }
  0xbc   :  { %4396 = vmatpush3.bf16.msra.mxu1 %v4825_v34  ;;  %4369 = vmatprep.subr.bf16.mxu0 %v4826_v35  ;;  %v4881_v35 = vld [vmem:[%s6176_s0 + $0x68] ss:$144 sps:$4 sm:$0xff]  }
  0xbd   :  { %4397 = vmatprep.subr.bf16.mxu1 %v4827_v36  ;;  %v4883_v36 = vld [vmem:[%s6176_s0 + $0x6c] ss:$144 sps:$4 sm:$0xff]  }
  0xbf   :  { %4370 = vmatpush3.bf16.msra.mxu0 %v4828_v37  ;;  %v4884_v37 = vld [vmem:[%s6177_s1 + $0x740] sm:$0xff]  }
  0xc0   :  { %4398 = vmatpush3.bf16.msra.mxu1 %v4829_v38  ;;  %4371 = vmatprep.subr.bf16.mxu0 %v4830_v39  ;;  %v4885_v38 = vld [vmem:[%s6177_s1 + $0x7c0] sm:$0xff]  }
  0xc1   :  { %4399 = vmatprep.subr.bf16.mxu1 %v4831_v40  ;;  %v4886_v39 = vld [vmem:[%s6177_s1 + $0x700] sm:$0xff]  }
  0xc2   :  { %v4887_v40 = vld [vmem:[%s6177_s1 + $0x780] sm:$0xff]  }
  0xc3   :  { %4372 = vmatpush3.bf16.msra.mxu0 %v4832_v41  ;;  %v4888_v41 = vld [vmem:[%s6177_s1 + $0x748] sm:$0xff]  }
  0xc4   :  { %4400 = vmatpush3.bf16.msra.mxu1 %v4833_v42  ;;  %4413 = vmatprep.subr.bf16.mxu0 %v4840_v47  ;;  %v4889_v42 = vld [vmem:[%s6177_s1 + $0x7c8] sm:$0xff]   ;;  %v4895_v47 = vld [vmem:[%s6177_s1 + $0x750] sm:$0xff]  }
  0xc5   :  { %4441 = vmatprep.subr.bf16.mxu1 %v4841_v48  ;;  %v4896_v48 = vld [vmem:[%s6177_s1 + $0x7d0] sm:$0xff]  }
  0xc6   :  { %3290 = vmatmul.mubr.bf16.vlgmr.msra.gmra.mrb[40].mxu0 %v4834_v43  ;;  %v4890_v43 = vld [vmem:[%s6177_s1 + $0x708] sm:$0xff]  }
  0xc7   :  { %3339 = vmatmul.mubr.bf16.vlgmr.msra.gmra.mrb[40].mxu1 %v4837_v45  ;;  %4414 = vmatpush3.bf16.msra.mxu0 %v4842_v49  ;;  %v4892_v45 = vld [vmem:[%s6176_s0 + $0x184] ss:$144 sps:$4 sm:$0xff]   ;;  %v4897_v49 = vld [vmem:[%s6176_s0 + $0x18c] ss:$144 sps:$4 sm:$0xff]  }
  0xc8   :  { %4442 = vmatpush3.bf16.msra.mxu1 %v4843_v50  ;;  %4415 = vmatprep.subr.bf16.mxu0 %v4844_v51  ;;  %v4899_v50 = vld [vmem:[%s6177_s1 + $0x710] sm:$0xff]  }
  0xc9   :  { %4443 = vmatprep.subr.bf16.mxu1 %v4845_v52  ;;  %3297 = vmatprep.mubr.bf16.mxu0 %v4848_v55  ;;  %v4900_v51 = vld [vmem:[%s6177_s1 + $0x790] sm:$0xff]   ;;  %v4901_v52 = vld [vmem:[%s6176_s0 + $0x188] ss:$144 sps:$4 sm:$0xff]  }
  0xca   :  { %3346 = vmatprep.mubr.bf16.mxu1 %v4853_v59  ;;  %v4903_v55 = vld [vmem:[%s6177_s1 + $0x7d8] sm:$0xff]  }
  0xcb   :  { %4416 = vmatpush3.bf16.msra.mxu0 %v4846_v53  ;;  %v4902_v53 = vld [vmem:[%s6177_s1 + $0x758] sm:$0xff]  }
  0xcc   :  { %4444 = vmatpush3.bf16.msra.mxu1 %v4847_v54  ;;  %4417 = vmatprep.subr.bf16.mxu0 %v4851_v57  ;;  %v4904_v57 = vld [vmem:[%s6177_s1 + $0x718] sm:$0xff]  }
  0xcd   :  { %4445 = vmatprep.subr.bf16.mxu1 %v4852_v58  ;;  %v4905_v59 = vld [vmem:[%s6177_s1 + $0x798] sm:$0xff]  }
  0xce   :  { %3298 = vmatmul.mubr.bf16.gmra.mrb[44].mxu0 %v4850_v56 }
  0xcf   :  { %4418 = vmatpush3.bf16.msra.mxu0 %v4855_v60  ;;  %3347 = vmatmul.mubr.bf16.gmra.mrb[44].mxu1 %v4857_v62  ;;  %v4906_v62 = vld [vmem:[%s6177_s1 + $0x760] sm:$0xff]  }
  0xd0   :  { %4446 = vmatpush3.bf16.msra.mxu1 %v4856_v61  ;;  %4419 = vmatprep.subr.bf16.mxu0 %v4858_v63 }
  0xd1   :  { %4447 = vmatprep.subr.bf16.mxu1 %v4859_v0  ;;  %3387 = vmatprep.mubr.bf16.mxu0 %v4880_v33 }
  0xd2   :  { %3436 = vmatprep.mubr.bf16.mxu1 %v4883_v36 }
  0xd3   :  { %4420 = vmatpush3.bf16.msra.mxu0 %v4860_v1  ;;  %v4907_v1 = vld [vmem:[%s6177_s1 + $0x7e0] sm:$0xff]  }
  0xd4   :  { %4448 = vmatpush3.bf16.msra.mxu1 %v4861_v2  ;;  %4421 = vmatprep.subr.bf16.mxu0 %v4862_v3  ;;  %v4908_v3 = vld [vmem:[%s6177_s1 + $0x720] sm:$0xff]  }
  0xd5   :  { %4449 = vmatprep.subr.bf16.mxu1 %v4863_v4 }
  0xd7   :  { %4422 = vmatpush3.bf16.msra.mxu0 %v4864_v5 }
  0xd8   :  { %4450 = vmatpush3.bf16.msra.mxu1 %v4865_v6  ;;  %4423 = vmatprep.subr.bf16.mxu0 %v4866_v7  ;;  %v4909_v6 = vld [vmem:[%s6177_s1 + $0x7a0] sm:$0xff]  }
  0xd9   :  { %4451 = vmatprep.subr.bf16.mxu1 %v4867_v8 }
  0xdb   :  { %4424 = vmatpush3.bf16.msra.mxu0 %v4868_v9  ;;  %v4910_v9 = vld [vmem:[%s6177_s1 + $0x768] sm:$0xff]  }
  0xdc   :  { %4452 = vmatpush3.bf16.msra.mxu1 %v4869_v10  ;;  %4425 = vmatprep.subr.bf16.mxu0 %v4870_v12  ;;  %v4912_v12 = vld [vmem:[%s6177_s1 + $0x728] sm:$0xff]  }
  0xdd   :  { %4453 = vmatprep.subr.bf16.mxu1 %v4871_v14 }
  0xdf   :  { %4426 = vmatpush3.bf16.msra.mxu0 %v4872_v16 }
  0xe0   :  { %4454 = vmatpush3.bf16.msra.mxu1 %v4873_v19  ;;  %4427 = vmatprep.subr.bf16.mxu0 %v4874_v22  ;;  %v4915_v19 = vld [vmem:[%s6177_s1 + $0x7f0] sm:$0xff]  }
  0xe1   :  { %4455 = vmatprep.subr.bf16.mxu1 %v4875_v24  ;;  %v4916_v22 = vld [vmem:[%s6177_s1 + $0x730] sm:$0xff]  }
  0xe3   :  { %4428 = vmatpush3.bf16.msra.mxu0 %v4876_v27 }
  0xe4   :  { %4456 = vmatpush3.bf16.msra.mxu1 %v4877_v30  ;;  %4469 = vmatprep.subr.bf16.mxu0 %v4884_v37  ;;  %v4921_v37 = vld [vmem:[%s6177_s1 + $0x7b8] sm:$0xff]  }
  0xe5   :  { %4497 = vmatprep.subr.bf16.mxu1 %v4885_v38 }
  0xe6   :  { %3388 = vmatmul.mubr.bf16.vlgmr.msra.gmra.mrb[48].mxu0 %v4878_v32 }
  0xe7   :  { %3437 = vmatmul.mubr.bf16.vlgmr.msra.gmra.mrb[48].mxu1 %v4881_v35  ;;  %4470 = vmatpush3.bf16.msra.mxu0 %v4886_v39  ;;  %v4922_v39 = vld [vmem:[%s6176_s0 + $0x70] ss:$144 sps:$4 sm:$0xff]  }
  0xe8   :  { %4498 = vmatpush3.bf16.msra.mxu1 %v4887_v40  ;;  %4471 = vmatprep.subr.bf16.mxu0 %v4888_v41  ;;  %v4924_v40 = vld [vmem:[%s6176_s0 + $0x74] ss:$144 sps:$4 sm:$0xff]  }
  0xe9   :  { %4499 = vmatprep.subr.bf16.mxu1 %v4889_v42  ;;  %3395 = vmatprep.mubr.bf16.mxu0 %v4892_v45  ;;  %v4925_v42 = vld [vmem:[%s6176_s0 + $0x78] ss:$144 sps:$4 sm:$0xff]   ;;  %v4928_v45 = vld [vmem:[%s6177_s1 + $0x840] sm:$0xff]  }
  0xea   :  { %3444 = vmatprep.mubr.bf16.mxu1 %v4897_v49 }
  0xeb   :  { %4472 = vmatpush3.bf16.msra.mxu0 %v4890_v43  ;;  %v4927_v43 = vld [vmem:[%s6176_s0 + $0x7c] ss:$144 sps:$4 sm:$0xff]  }
  0xec   :  { %4500 = vmatpush3.bf16.msra.mxu1 %v4891_v44  ;;  %4473 = vmatprep.subr.bf16.mxu0 %v4895_v47 }
  0xed   :  { %4501 = vmatprep.subr.bf16.mxu1 %v4896_v48  ;;  %v4929_v48 = vld [vmem:[%s6177_s1 + $0x8c0] sm:$0xff]  }
  0xee   :  { %3396 = vmatmul.mubr.bf16.gmra.mrb[52].mxu0 %v4894_v46 }
  0xef   :  { %4474 = vmatpush3.bf16.msra.mxu0 %v4899_v50  ;;  %3445 = vmatmul.mubr.bf16.gmra.mrb[52].mxu1 %v4901_v52  ;;  %v4930_v50 = vld [vmem:[%s6177_s1 + $0x800] sm:$0xff]  }
  0xf0   :  { %4502 = vmatpush3.bf16.msra.mxu1 %v4900_v51  ;;  %4475 = vmatprep.subr.bf16.mxu0 %v4902_v53  ;;  %v4931_v53 = vld [vmem:[%s6177_s1 + $0x880] sm:$0xff]  }
  0xf1   :  { %4503 = vmatprep.subr.bf16.mxu1 %v4903_v55  ;;  %3485 = vmatprep.mubr.bf16.mxu0 %v4924_v40 }
  0xf2   :  { %3534 = vmatprep.mubr.bf16.mxu1 %v4927_v43  ;;  %v4964_v43 = vld [vmem:[%s6177_s1 + $0x838] sm:$0xff]  }
  0xf3   :  { %4476 = vmatpush3.bf16.msra.mxu0 %v4904_v57  ;;  %v4933_v57 = vld [vmem:[%s6177_s1 + $0x8c8] sm:$0xff]  }
  0xf4   :  { %4504 = vmatpush3.bf16.msra.mxu1 %v4905_v59  ;;  %4477 = vmatprep.subr.bf16.mxu0 %v4906_v62  ;;  %v4934_v59 = vld [vmem:[%s6177_s1 + $0x808] sm:$0xff]  }
  0xf5   :  { %4505 = vmatprep.subr.bf16.mxu1 %v4907_v1  ;;  %v4935_v62 = vld [vmem:[%s6177_s1 + $0x888] sm:$0xff]  }
  0xf7   :  { %4478 = vmatpush3.bf16.msra.mxu0 %v4908_v3  ;;  %v4938_v3 = vld [vmem:[%s6176_s0 + $0x190] ss:$144 sps:$4 sm:$0xff]  }
  0xf8   :  { %4506 = vmatpush3.bf16.msra.mxu1 %v4909_v6  ;;  %4479 = vmatprep.subr.bf16.mxu0 %v4910_v9  ;;  %v4940_v6 = vld [vmem:[%s6177_s1 + $0x8d0] sm:$0xff]  }
  0xf9   :  { %v4093_v11 = vpop.f32.mrb[0].mxu0  ;;  %v4944_v9 = vld [vmem:[%s6177_s1 + $0x890] sm:$0xff]  }
  0xfa   :  { %v4121_v13 = vpop.f32.mrb[0].mxu1  ;;  %v4094_v15 = vpop.f32.mrb[1].mxu0 }
  0xfb   :  { %v4095_v17 = vadd.f32 %v4094_v15, %v4093_v11  ;;  %v4122_v18 = vpop.f32.mrb[1].mxu1  ;;  %v4096_v21 = vpop.f32.mrb[2].mxu0  ;;  %v4911_v11 = vld [vmem:[%s6177_s1 + $0x7e8] sm:$0xff]   ;;  %4480 = vmatpush3.bf16.msra.mxu0 %v4912_v12  ;;  %v4947_v12 = vld [vmem:[%s6177_s1 + $0x8d8] sm:$0xff]  }
  0xfc   :  { %v4123_v20 = vadd.f32 %v4122_v18, %v4121_v13  ;;  %v4124_v23 = vpop.f32.mrb[2].mxu1  ;;  %v4097_v26 = vpop.f32.mrb[3].mxu0  ;;  %4507 = vmatprep.subr.bf16.mxu1 %v4911_v11  ;;  %v4913_v15 = vld [vmem:[%s6177_s1 + $0x7a8] sm:$0xff]   ;;  %v4946_v11 = vld [vmem:[%s6177_s1 + $0x858] sm:$0xff]  }
  0xfd   :  { %v4098_v28 = vadd.f32 %v4097_v26, %v4096_v21  ;;  %v4125_v29 = vpop.f32.mrb[3].mxu1  ;;  %4508 = vmatpush3.bf16.msra.mxu1 %v4913_v15  ;;  %v4917_v26 = vld [vmem:[%s6177_s1 + $0x7b0] sm:$0xff]   ;;  %v4950_v15 = vld [vmem:[%s6177_s1 + $0x860] sm:$0xff]  }
  0xfe   :  { %v5857_v25 = vadd.f32 %v4123_v20, %v4095_v17  ;;  %v4126_v31 = vadd.f32 %v4125_v29, %v4124_v23  ;;  %v4914_v17 = vld [vmem:[%s6177_s1 + $0x770] sm:$0xff]   ;;  %4509 = vmatprep.subr.bf16.mxu1 %v4915_v19  ;;  %v4918_v29 = vld [vmem:[%s6177_s1 + $0x778] sm:$0xff]   ;;  %v4954_v19 = vld [vmem:[%s6177_s1 + $0x868] sm:$0xff]  }
  0xff   :  { %4481 = vmatprep.subr.bf16.mxu0 %v4914_v17  ;;  %v4952_v17 = vld [vmem:[%s6177_s1 + $0x820] sm:$0xff]  }
 0x100   :  { %v5871_v34 = vadd.f32 %v4126_v31, %v4098_v28  ;;  %4482 = vmatpush3.bf16.msra.mxu0 %v4916_v22  ;;  %v4919_v31 = vld [vmem:[%s6177_s1 + $0x7f8] sm:$0xff]  }
 0x101   :  { %v4099_v54 = vpop.f32.mrb[4].mxu0  ;;  %4510 = vmatpush3.bf16.msra.mxu1 %v4917_v26  ;;  %4483 = vmatprep.subr.bf16.mxu0 %v4918_v29  ;;  %v4958_v26 = vld [vmem:[%s6177_s1 + $0x870] sm:$0xff]  }
 0x102   :  { %v4127_v56 = vpop.f32.mrb[4].mxu1  ;;  %v4100_v58 = vpop.f32.mrb[5].mxu0  ;;  %4511 = vmatprep.subr.bf16.mxu1 %v4919_v31  ;;  %v4959_v29 = vld [vmem:[%s6177_s1 + $0x8f0] sm:$0xff]  }
 0x103   :  { %v4101_v60 = vadd.f32 %v4100_v58, %v4099_v54  ;;  %v4128_v61 = vpop.f32.mrb[5].mxu1  ;;  %v4102_v0 = vpop.f32.mrb[6].mxu0  ;;  %v4932_v54 = vld [vmem:[%s6177_s1 + $0x848] sm:$0xff]   ;;  %v4960_v31 = vld [vmem:[%s6177_s1 + $0x830] sm:$0xff]  }
 0x104   :  { %v4129_v63 = vadd.f32 %v4128_v61, %v4127_v56  ;;  %v4130_v2 = vpop.f32.mrb[6].mxu1  ;;  %v4103_v5 = vpop.f32.mrb[7].mxu0 }
 0x105   :  { %v4104_v7 = vadd.f32 %v4103_v5, %v4102_v0  ;;  %v4131_v8 = vpop.f32.mrb[7].mxu1  ;;  %4512 = vmatpush3.bf16.msra.mxu1 %v4921_v37  ;;  %v4936_v0 = vld [vmem:[%s6176_s0 + $0x194] ss:$144 sps:$4 sm:$0xff]  }
 0x106   :  { %v5948_v4 = vadd.f32 %v4129_v63, %v4101_v60  ;;  %v4132_v10 = vadd.f32 %v4131_v8, %v4130_v2  ;;  %4553 = vmatprep.subr.bf16.mxu1 %v4929_v48  ;;  %v4943_v8 = vld [vmem:[%s6177_s1 + $0x810] sm:$0xff]  }
 0x107   :  { %v4968_v48 = vld [vmem:[%s6176_s0 + $0x84] ss:$144 sps:$4 sm:$0xff]  }
 0x108   :  { %v2862_v13 = vadd.f32 %v4132_v10, %v4104_v7  ;;  %3535 = vmatmul.mubr.bf16.vlgmr.msra.gmra.mrb[56].mxu1 %v4925_v42  ;;  %v4941_v7 = vld [vmem:[%s6176_s0 + $0x19c] ss:$144 sps:$4 sm:$0xff]   ;;  %v4945_v10 = vld [vmem:[%s6176_s0 + $0x198] ss:$144 sps:$4 sm:$0xff]  }
 0x109   :  { %4554 = vmatpush3.bf16.msra.mxu1 %v4931_v53  ;;  %3542 = vmatprep.mubr.bf16.mxu1 %v4941_v7  ;;  %v4972_v53 = vld [vmem:[%s6176_s0 + $0x1a4] ss:$144 sps:$4 sm:$0xff]  }
 0x10a   :  { %4555 = vmatprep.subr.bf16.mxu1 %v4933_v57 }
 0x10d   :  { %4556 = vmatpush3.bf16.msra.mxu1 %v4935_v62 }
 0x10e   :  { %4557 = vmatprep.subr.bf16.mxu1 %v4940_v6 }
 0x110   :  { %3543 = vmatmul.mubr.bf16.gmra.mrb[60].mxu1 %v4945_v10 }
 0x111   :  { %4558 = vmatpush3.bf16.msra.mxu1 %v4944_v9 }
 0x112   :  { %4559 = vmatprep.subr.bf16.mxu1 %v4947_v12 }
 0x119   :  { %v4149_v14 = vpop.f32.mrb[8].mxu0 }
 0x11a   :  { %v4177_v16 = vpop.f32.mrb[8].mxu1  ;;  %v4150_v18 = vpop.f32.mrb[9].mxu0 }
 0x11b   :  { %v4151_v20 = vadd.f32 %v4150_v18, %v4149_v14  ;;  %v4178_v21 = vpop.f32.mrb[9].mxu1  ;;  %v4152_v24 = vpop.f32.mrb[10].mxu0  ;;  %v4949_v14 = vld [vmem:[%s6177_s1 + $0x898] sm:$0xff]   ;;  %v4953_v18 = vld [vmem:[%s6177_s1 + $0x8a0] sm:$0xff]  }
 0x11c   :  { %v4179_v23 = vadd.f32 %v4178_v21, %v4177_v16  ;;  %v4180_v28 = vpop.f32.mrb[10].mxu1  ;;  %v4153_v30 = vpop.f32.mrb[11].mxu0  ;;  %4560 = vmatpush3.bf16.msra.mxu1 %v4949_v14  ;;  %v4951_v16 = vld [vmem:[%s6177_s1 + $0x8e0] sm:$0xff]   ;;  %v4956_v21 = vld [vmem:[%s6177_s1 + $0x828] sm:$0xff]  }
 0x11d   :  { %v2900_v27 = vadd.f32 %v4151_v20, %v5857_v25  ;;  %v4154_v33 = vadd.f32 %v4153_v30, %v4152_v24  ;;  %v4181_v35 = vpop.f32.mrb[11].mxu1  ;;  %v4920_v25 = vld [vmem:[%s6177_s1 + $0x738] sm:$0xff]   ;;  %4561 = vmatprep.subr.bf16.mxu1 %v4951_v16  ;;  %v4955_v20 = vld [vmem:[%s6177_s1 + $0x8e8] sm:$0xff]  }
 0x11e   :  { %v4182_v36 = vadd.f32 %v4181_v35, %v4180_v28  ;;  %4484 = vmatpush3.bf16.msra.mxu0 %v4920_v25 }
 0x11f   :  { %v5984_v32 = vadd.f32 %v4179_v23, %v2900_v27  ;;  %v2903_v38 = vadd.f32 %v4154_v33, %v5871_v34  ;;  %4525 = vmatprep.subr.bf16.mxu0 %v4928_v45  ;;  %v4957_v23 = vld [vmem:[%s6177_s1 + $0x8a8] sm:$0xff]   ;;  %v4965_v45 = vld [vmem:[%s6177_s1 + $0x8b8] sm:$0xff]  }
 0x120   :  { %4562 = vmatpush3.bf16.msra.mxu1 %v4953_v18 }
 0x121   :  { %v4155_v41 = vpop.f32.mrb[12].mxu0  ;;  %v6005_v34 = vadd.f32 %v4182_v36, %v2903_v38  ;;  %3486 = vmatmul.mubr.bf16.vlgmr.msra.gmra.mrb[56].mxu0 %v4922_v39  ;;  %4563 = vmatprep.subr.bf16.mxu1 %v4955_v20  ;;  %v4961_v36 = vld [vmem:[%s6177_s1 + $0x8b0] sm:$0xff]   ;;  %v4962_v38 = vld [vmem:[%s6177_s1 + $0x878] sm:$0xff]  }
 0x122   :  { %v4156_v44 = vpop.f32.mrb[13].mxu0  ;;  %4526 = vmatpush3.bf16.msra.mxu0 %v4930_v50  ;;  %v4183_v55 = vpop.f32.mrb[12].mxu1  ;;  %3493 = vmatprep.mubr.bf16.mxu0 %v4936_v0 }
 0x123   :  { %v4157_v46 = vadd.f32 %v4156_v44, %v4155_v41  ;;  %v4158_v47 = vpop.f32.mrb[14].mxu0  ;;  %v4184_v58 = vpop.f32.mrb[13].mxu1  ;;  %4527 = vmatprep.subr.bf16.mxu0 %v4932_v54 }
 0x124   :  { %v4159_v49 = vpop.f32.mrb[15].mxu0  ;;  %v4185_v60 = vadd.f32 %v4184_v58, %v4183_v55  ;;  %v4186_v61 = vpop.f32.mrb[14].mxu1  ;;  %4564 = vmatpush3.bf16.msra.mxu1 %v4957_v23 }
 0x125   :  { %v2908_v51 = vadd.f32 %v4157_v46, %v5948_v4  ;;  %v4160_v52 = vadd.f32 %v4159_v49, %v4158_v47  ;;  %v4187_v63 = vpop.f32.mrb[15].mxu1  ;;  %v4939_v4 = vld [vmem:[%s6177_s1 + $0x850] sm:$0xff]   ;;  %4565 = vmatprep.subr.bf16.mxu1 %v4959_v29  ;;  %v4969_v49 = vld [vmem:[%s6176_s0 + $0x88] ss:$144 sps:$4 sm:$0xff]  }
 0x126   :  { %4528 = vmatpush3.bf16.msra.mxu0 %v4934_v59  ;;  %v4188_v2 = vadd.f32 %v4187_v63, %v4186_v61  ;;  %v4966_v47 = vld [vmem:[%s6176_s0 + $0x80] ss:$144 sps:$4 sm:$0xff]  }
 0x127   :  { %v2911_v56 = vadd.f32 %v4160_v52, %v2862_v13  ;;  %v6035_v1 = vadd.f32 %v4185_v60, %v2908_v51  ;;  %4529 = vmatprep.subr.bf16.mxu0 %v4939_v4  ;;  %v4948_v13 = vld [vmem:[%s6177_s1 + $0x818] sm:$0xff]  }
 0x128   :  { %4566 = vmatpush3.bf16.msra.mxu1 %v4961_v36 }
 0x129   :  { %v6043_v5 = vadd.f32 %v4188_v2, %v2911_v56  ;;  %3494 = vmatmul.mubr.bf16.gmra.mrb[60].mxu0 %v4938_v3  ;;  %v4974_v56 = vld [vmem:[%s6176_s0 + $0x1ac] ss:$144 sps:$4 sm:$0xff]  }
 0x12a   :  { %4530 = vmatpush3.bf16.msra.mxu0 %v4943_v8  ;;  %3583 = vmatprep.mubr.bf16.mxu0 %v4968_v48 }
 0x12b   :  { %4531 = vmatprep.subr.bf16.mxu0 %v4946_v11 }
 0x12e   :  { %4532 = vmatpush3.bf16.msra.mxu0 %v4948_v13 }
 0x12f   :  { %4533 = vmatprep.subr.bf16.mxu0 %v4950_v15 }
 0x132   :  { %4534 = vmatpush3.bf16.msra.mxu0 %v4952_v17 }
 0x133   :  { %4535 = vmatprep.subr.bf16.mxu0 %v4954_v19 }
 0x136   :  { %4536 = vmatpush3.bf16.msra.mxu0 %v4956_v21 }
 0x137   :  { %4537 = vmatprep.subr.bf16.mxu0 %v4958_v26 }
 0x139   :  { %v4205_v22 = vpop.f32.mrb[16].mxu0 }
 0x13a   :  { %v4206_v24 = vpop.f32.mrb[17].mxu0  ;;  %v4233_v27 = vpop.f32.mrb[16].mxu1  ;;  %4538 = vmatpush3.bf16.msra.mxu0 %v4960_v31 }
 0x13b   :  { %v4207_v28 = vadd.f32 %v4206_v24, %v4205_v22  ;;  %v4234_v30 = vpop.f32.mrb[17].mxu1  ;;  %v4208_v25 = vpop.f32.mrb[18].mxu0  ;;  %4539 = vmatprep.subr.bf16.mxu0 %v4962_v38 }
 0x13c   :  { %v4235_v35 = vadd.f32 %v4234_v30, %v4233_v27  ;;  %v4236_v37 = vpop.f32.mrb[18].mxu1  ;;  %v4209_v40 = vpop.f32.mrb[19].mxu0 }
 0x13d   :  { %v2998_v33 = vadd.f32 %v4207_v28, %v5984_v32  ;;  %v4963_v32 = vld [vmem:[%s6177_s1 + $0x8f8] sm:$0xff]   ;;  %v4210_v41 = vadd.f32 %v4209_v40, %v4208_v25  ;;  %v4237_v42 = vpop.f32.mrb[19].mxu1 }
 0x13e   :  { %v4238_v44 = vadd.f32 %v4237_v42, %v4236_v37  ;;  %4567 = vmatprep.subr.bf16.mxu1 %v4963_v32  ;;  %4540 = vmatpush3.bf16.msra.mxu0 %v4964_v43 }
 0x13f   :  { %v3047_v39 = vadd.f32 %v4235_v35, %v2998_v33  ;;  %v3001_v46 = vadd.f32 %v4210_v41, %v6005_v34  ;;  %4568 = vmatpush3.bf16.msra.mxu1 %v4965_v45  ;;  %v4971_v34 = vld [vmem:[%s6176_s0 + $0x8c] ss:$144 sps:$4 sm:$0xff]  }
 0x140   :  { %3632 = vmatprep.mubr.bf16.mxu1 %v4971_v34 }
 0x141   :  { %v3050_v50 = vadd.f32 %v4238_v44, %v3001_v46  ;;  %v4211_v51 = vpop.f32.mrb[20].mxu0  ;;  %3584 = vmatmul.mubr.bf16.vlgmr.msra.gmra.mrb[64].mxu0 %v4966_v47 }
 0x142   :  { %v4212_v52 = vpop.f32.mrb[21].mxu0  ;;  %3633 = vmatmul.mubr.bf16.vlgmr.msra.gmra.mrb[64].mxu1 %v4969_v49  ;;  %3591 = vmatprep.mubr.bf16.mxu0 %v4972_v53 }
 0x143   :  { %v4213_v54 = vadd.f32 %v4212_v52, %v4211_v51  ;;  %v4214_v55 = vpop.f32.mrb[22].mxu0 }
 0x144   :  { %v4215_v58 = vpop.f32.mrb[23].mxu0 }
 0x145   :  { %v3006_v57 = vadd.f32 %v4213_v54, %v6035_v1 }
 0x146   :  { %17 = vsyncpa [#allocation6], 0  ;;  %3640 = vmatprep.mubr.bf16.mxu1 %v4974_v56  ;;  %v4239_v59 = vpop.f32.mrb[20].mxu1  ;;  %v4216_v60 = vadd.f32 %v4215_v58, %v4214_v55  ;;  %v4976_v61 = vld [vmem:[%s6176_s0 + $0x1a0] ss:$144 sps:$4 sm:$0xff]   ;;  %vm3683_vm0 = vcmask 7168  }
 0x147   :  { %v4240_v62 = vpop.f32.mrb[21].mxu1  ;;  %v4977_v3 = vld [vmem:[%s6176_s0 + $0x1a8] ss:$144 sps:$4 sm:$0xff]   ;;  %s5002_s24 = smov [#allocation5]   ;;  %vm3699_vm1 = vcmask 0  }
 0x148   :  { %v3009_v63 = vadd.f32 %v4216_v60, %v6043_v5  ;;  %v4241_v0 = vadd.f32 %v4240_v62, %v4239_v59  ;;  %v4242_v2 = vpop.f32.mrb[22].mxu1  ;;  %s3707_s25 = sshll.u32 %s5002_s24, 4  ;;  %s3708_s25 = int_to_ptr.vmem [resolvable:$true] %s3707_s25 }
 0x149   :  { %v4243_v4 = vpop.f32.mrb[23].mxu1  ;;  %3592 = vmatmul.mubr.bf16.gmra.mrb[68].mxu0 %v4976_v61  ;;  %s4982_s26 = scalar_lea.vmem %s3708_s25, 32  ;;  %p4983_p1 = scmp.lt.s32.totalorder %s3708_s25, %s3708_s25 }
 0x14a   :  { %v3055_v1 = vadd.f32 %v4241_v0, %v3006_v57  ;;  %v4244_v6 = vadd.f32 %v4243_v4, %v4242_v2  ;;  %3641 = vmatmul.mubr.bf16.gmra.mrb[68].mxu1 %v4977_v3 }
 0x14c   :  { %v3058_v7 = vadd.f32 %v4244_v6, %v3009_v63 }
 0x159   :  { %v4261_v8 = vpop.f32.mrb[24].mxu0 }
 0x15a   :  { %v4289_v9 = vpop.f32.mrb[24].mxu1  ;;  %v4262_v10 = vpop.f32.mrb[25].mxu0 }
 0x15b   :  { %v4263_v11 = vadd.f32 %v4262_v10, %v4261_v8  ;;  %v4290_v12 = vpop.f32.mrb[25].mxu1  ;;  %v4264_v13 = vpop.f32.mrb[26].mxu0 }
 0x15c   :  { %v4291_v14 = vadd.f32 %v4290_v12, %v4289_v9  ;;  %v4292_v5 = vpop.f32.mrb[26].mxu1  ;;  %v4265_v15 = vpop.f32.mrb[27].mxu0 }
 0x15d   :  { %v3096_v16 = vadd.f32 %v4263_v11, %v3047_v39  ;;  %v4266_v17 = vadd.f32 %v4265_v15, %v4264_v13  ;;  %v4293_v18 = vpop.f32.mrb[27].mxu1 }
 0x15e   :  { %v4294_v19 = vadd.f32 %v4293_v18, %v4292_v5 }
 0x15f   :  { %v3145_v20 = vadd.f32 %v4291_v14, %v3096_v16  ;;  %v3099_v21 = vadd.f32 %v4266_v17, %v3050_v50 }
 0x161   :  { %v3148_v22 = vadd.f32 %v4294_v19, %v3099_v21  ;;  %v4267_v23 = vpop.f32.mrb[28].mxu0 }
 0x162   :  { %v4268_v24 = vpop.f32.mrb[29].mxu0  ;;  %v4295_v31 = vpop.f32.mrb[28].mxu1 }
 0x163   :  { %v4269_v26 = vadd.f32 %v4268_v24, %v4267_v23  ;;  %v4270_v27 = vpop.f32.mrb[30].mxu0  ;;  %v4296_v35 = vpop.f32.mrb[29].mxu1 }
 0x164   :  { %v4271_v28 = vpop.f32.mrb[31].mxu0  ;;  %v4297_v25 = vadd.f32 %v4296_v35, %v4295_v31  ;;  %v4298_v36 = vpop.f32.mrb[30].mxu1 }
 0x165   :  { %v3104_v29 = vadd.f32 %v4269_v26, %v3055_v1  ;;  %v4272_v30 = vadd.f32 %v4271_v28, %v4270_v27  ;;  %v4299_v37 = vpop.f32.mrb[31].mxu1 }
 0x166   :  { %v4300_v39 = vadd.f32 %v4299_v37, %v4298_v36 }
 0x167   :  { %v3107_v33 = vadd.f32 %v4272_v30, %v3058_v7  ;;  %v3153_v38 = vadd.f32 %v4297_v25, %v3104_v29 }
 0x169   :  { %v3156_v40 = vadd.f32 %v4300_v39, %v3107_v33 }
 0x179   :  { %v4317_v32 = vpop.f32.mrb[32].mxu0 }
 0x17a   :  { %v4345_v41 = vpop.f32.mrb[32].mxu1  ;;  %v4318_v42 = vpop.f32.mrb[33].mxu0 }
 0x17b   :  { %v4319_v43 = vadd.f32 %v4318_v42, %v4317_v32  ;;  %v4346_v44 = vpop.f32.mrb[33].mxu1  ;;  %v4320_v45 = vpop.f32.mrb[34].mxu0 }
 0x17c   :  { %v4347_v46 = vadd.f32 %v4346_v44, %v4345_v41  ;;  %v4348_v47 = vpop.f32.mrb[34].mxu1  ;;  %v4321_v48 = vpop.f32.mrb[35].mxu0 }
 0x17d   :  { %v3194_v49 = vadd.f32 %v4319_v43, %v3145_v20  ;;  %v4322_v50 = vadd.f32 %v4321_v48, %v4320_v45  ;;  %v4349_v51 = vpop.f32.mrb[35].mxu1 }
 0x17e   :  { %v4350_v34 = vadd.f32 %v4349_v51, %v4348_v47 }
 0x17f   :  { %v3243_v52 = vadd.f32 %v4347_v46, %v3194_v49  ;;  %v3197_v53 = vadd.f32 %v4322_v50, %v3148_v22 }
 0x181   :  { %v3246_v54 = vadd.f32 %v4350_v34, %v3197_v53  ;;  %v4323_v55 = vpop.f32.mrb[36].mxu0 }
 0x182   :  { %v4324_v56 = vpop.f32.mrb[37].mxu0  ;;  %v4351_v62 = vpop.f32.mrb[36].mxu1 }
 0x183   :  { %v4325_v57 = vadd.f32 %v4324_v56, %v4323_v55  ;;  %v4326_v58 = vpop.f32.mrb[38].mxu0  ;;  %v4352_v0 = vpop.f32.mrb[37].mxu1 }
 0x184   :  { %v4327_v59 = vpop.f32.mrb[39].mxu0  ;;  %v4353_v2 = vadd.f32 %v4352_v0, %v4351_v62  ;;  %v4354_v3 = vpop.f32.mrb[38].mxu1 }
 0x185   :  { %v3202_v60 = vadd.f32 %v4325_v57, %v3153_v38  ;;  %v4328_v61 = vadd.f32 %v4327_v59, %v4326_v58  ;;  %v4355_v4 = vpop.f32.mrb[39].mxu1 }
 0x186   :  { %v4356_v6 = vadd.f32 %v4355_v4, %v4354_v3 }
 0x187   :  { %v3205_v63 = vadd.f32 %v4328_v61, %v3156_v40  ;;  %v3251_v1 = vadd.f32 %v4353_v2, %v3202_v60 }
 0x189   :  { %v3254_v7 = vadd.f32 %v4356_v6, %v3205_v63 }
 0x199   :  { %v4373_v8 = vpop.f32.mrb[40].mxu0 }
 0x19a   :  { %v4374_v9 = vpop.f32.mrb[41].mxu0  ;;  %v4401_v10 = vpop.f32.mrb[40].mxu1 }
 0x19b   :  { %v4375_v11 = vadd.f32 %v4374_v9, %v4373_v8  ;;  %v4376_v12 = vpop.f32.mrb[42].mxu0  ;;  %v4402_v13 = vpop.f32.mrb[41].mxu1 }
 0x19c   :  { %v4377_v14 = vpop.f32.mrb[43].mxu0  ;;  %v4403_v15 = vadd.f32 %v4402_v13, %v4401_v10  ;;  %v4404_v16 = vpop.f32.mrb[42].mxu1 }
 0x19d   :  { %v3292_v5 = vadd.f32 %v4375_v11, %v3243_v52  ;;  %v4378_v17 = vadd.f32 %v4377_v14, %v4376_v12  ;;  %v4405_v18 = vpop.f32.mrb[43].mxu1 }
 0x19e   :  { %v4406_v21 = vadd.f32 %v4405_v18, %v4404_v16 }
 0x19f   :  { %v3341_v19 = vadd.f32 %v4403_v15, %v3292_v5  ;;  %v3295_v20 = vadd.f32 %v4378_v17, %v3246_v54 }
 0x1a1   :  { %v3344_v22 = vadd.f32 %v4406_v21, %v3295_v20  ;;  %v4379_v23 = vpop.f32.mrb[44].mxu0 }
 0x1a2   :  { %v4380_v24 = vpop.f32.mrb[45].mxu0  ;;  %v4407_v31 = vpop.f32.mrb[44].mxu1 }
 0x1a3   :  { %v4381_v26 = vadd.f32 %v4380_v24, %v4379_v23  ;;  %v4382_v27 = vpop.f32.mrb[46].mxu0  ;;  %v4408_v35 = vpop.f32.mrb[45].mxu1 }
 0x1a4   :  { %v4383_v28 = vpop.f32.mrb[47].mxu0  ;;  %v4409_v25 = vadd.f32 %v4408_v35, %v4407_v31  ;;  %v4410_v36 = vpop.f32.mrb[46].mxu1 }
 0x1a5   :  { %v3300_v29 = vadd.f32 %v4381_v26, %v3251_v1  ;;  %v4384_v30 = vadd.f32 %v4383_v28, %v4382_v27  ;;  %v4411_v37 = vpop.f32.mrb[47].mxu1 }
 0x1a6   :  { %v4412_v39 = vadd.f32 %v4411_v37, %v4410_v36 }
 0x1a7   :  { %v3303_v33 = vadd.f32 %v4384_v30, %v3254_v7  ;;  %v3349_v38 = vadd.f32 %v4409_v25, %v3300_v29 }
 0x1a9   :  { %v3352_v40 = vadd.f32 %v4412_v39, %v3303_v33 }
 0x1b9   :  { %v4429_v32 = vpop.f32.mrb[48].mxu0 }
 0x1ba   :  { %v4457_v41 = vpop.f32.mrb[48].mxu1  ;;  %v4430_v42 = vpop.f32.mrb[49].mxu0 }
 0x1bb   :  { %v4431_v43 = vadd.f32 %v4430_v42, %v4429_v32  ;;  %v4458_v44 = vpop.f32.mrb[49].mxu1  ;;  %v4432_v45 = vpop.f32.mrb[50].mxu0 }
 0x1bc   :  { %v4459_v46 = vadd.f32 %v4458_v44, %v4457_v41  ;;  %v4460_v47 = vpop.f32.mrb[50].mxu1  ;;  %v4433_v48 = vpop.f32.mrb[51].mxu0 }
 0x1bd   :  { %v3390_v49 = vadd.f32 %v4431_v43, %v3341_v19  ;;  %v4434_v50 = vadd.f32 %v4433_v48, %v4432_v45  ;;  %v4461_v51 = vpop.f32.mrb[51].mxu1 }
 0x1be   :  { %v4462_v34 = vadd.f32 %v4461_v51, %v4460_v47  ;;  %v4075_v51 = vld [vmem:[#allocation2] ss:$0 sm:$0xff] }
 0x1bf   :  { %v3439_v52 = vadd.f32 %v4459_v46, %v3390_v49  ;;  %v3393_v53 = vadd.f32 %v4434_v50, %v3344_v22 }
 0x1c1   :  { %v3442_v54 = vadd.f32 %v4462_v34, %v3393_v53  ;;  %v4435_v55 = vpop.f32.mrb[52].mxu0 }
 0x1c2   :  { %v4436_v56 = vpop.f32.mrb[53].mxu0  ;;  %v4463_v62 = vpop.f32.mrb[52].mxu1 }
 0x1c3   :  { %v4437_v57 = vadd.f32 %v4436_v56, %v4435_v55  ;;  %v4438_v58 = vpop.f32.mrb[54].mxu0  ;;  %v4464_v0 = vpop.f32.mrb[53].mxu1  ;;  %v4076_v55 = vld [vmem:[#allocation3] ss:$0 sm:$0xff] }
 0x1c4   :  { %v4439_v59 = vpop.f32.mrb[55].mxu0  ;;  %v4465_v2 = vadd.f32 %v4464_v0, %v4463_v62  ;;  %v4466_v3 = vpop.f32.mrb[54].mxu1 }
 0x1c5   :  { %v3398_v60 = vadd.f32 %v4437_v57, %v3349_v38  ;;  %v4440_v61 = vadd.f32 %v4439_v59, %v4438_v58  ;;  %v4467_v4 = vpop.f32.mrb[55].mxu1 }
 0x1c6   :  { %v4468_v6 = vadd.f32 %v4467_v4, %v4466_v3 }
 0x1c7   :  { %v3401_v63 = vadd.f32 %v4440_v61, %v3352_v40  ;;  %v3447_v1 = vadd.f32 %v4465_v2, %v3398_v60  ;;  %v3675_v2 = vld [vmem:[%s6179_s4] sm:$0xff] }
 0x1c9   :  { %v3450_v7 = vadd.f32 %v4468_v6, %v3401_v63 }
 0x1db   :  { %v4513_v9 = vpop.f32.mrb[56].mxu1 }
 0x1dc   :  { %v4514_v12 = vpop.f32.mrb[57].mxu1 }
 0x1dd   :  { %v4515_v14 = vadd.f32 %v4514_v12, %v4513_v9  ;;  %v4516_v5 = vpop.f32.mrb[58].mxu1 }
 0x1de   :  { %v4517_v18 = vpop.f32.mrb[59].mxu1 }
 0x1df   :  { %v4518_v19 = vadd.f32 %v4517_v18, %v4516_v5 }
 0x1e3   :  { %v4519_v31 = vpop.f32.mrb[60].mxu1 }
 0x1e4   :  { %v4520_v35 = vpop.f32.mrb[61].mxu1 }
 0x1e5   :  { %v4521_v25 = vadd.f32 %v4520_v35, %v4519_v31  ;;  %v4522_v36 = vpop.f32.mrb[62].mxu1 }
 0x1e6   :  { %v4523_v37 = vpop.f32.mrb[63].mxu1 }
 0x1e7   :  { %v4524_v39 = vadd.f32 %v4523_v37, %v4522_v36 }
 0x1f4   :  { %v4485_v8 = vpop.f32.mrb[56].mxu0 }
 0x1f5   :  { %v4486_v10 = vpop.f32.mrb[57].mxu0 }
 0x1f6   :  { %v4487_v11 = vadd.f32 %v4486_v10, %v4485_v8  ;;  %v4488_v13 = vpop.f32.mrb[58].mxu0  ;;  %v3676_v10 = vld [vmem:[%s6179_s4 + $0x8] sm:$0xff] }
 0x1f7   :  { %v4489_v15 = vpop.f32.mrb[59].mxu0 }
 0x1f8   :  { %v3488_v16 = vadd.f32 %v4487_v11, %v3439_v52  ;;  %v4490_v17 = vadd.f32 %v4489_v15, %v4488_v13 }
 0x1fa   :  { %v3537_v20 = vadd.f32 %v4515_v14, %v3488_v16  ;;  %v3491_v21 = vadd.f32 %v4490_v17, %v3442_v54 }
 0x1fc   :  { %v3540_v22 = vadd.f32 %v4518_v19, %v3491_v21  ;;  %v4491_v23 = vpop.f32.mrb[60].mxu0 }
 0x1fd   :  { %v4492_v24 = vpop.f32.mrb[61].mxu0 }
 0x1fe   :  { %v4493_v26 = vadd.f32 %v4492_v24, %v4491_v23  ;;  %v4494_v27 = vpop.f32.mrb[62].mxu0  ;;  %v3677_v24 = vld [vmem:[%s6179_s4 + $0x10] sm:$0xff] }
 0x1ff   :  { %v4495_v28 = vpop.f32.mrb[63].mxu0 }
 0x200   :  { %v3496_v29 = vadd.f32 %v4493_v26, %v3447_v1  ;;  %v4496_v30 = vadd.f32 %v4495_v28, %v4494_v27 }
 0x202   :  { %v3499_v33 = vadd.f32 %v4496_v30, %v3450_v7  ;;  %v3545_v38 = vadd.f32 %v4521_v25, %v3496_v29  ;;  %v3678_v30 = vld [vmem:[%s6179_s4 + $0x18] sm:$0xff]  ;;  %s4978_s4 = scalar_lea.vmem %s3708_s25, 16 }
 0x203   :  { %p4979_p0 = scmp.ne.s32.totalorder %s3708_s25, %s4978_s4  ;;  %p4984_p2 = scmp.lt.s32.totalorder %s4982_s26, %s4978_s4 }
 0x204   :  { %v3548_v40 = vadd.f32 %v4524_v39, %v3499_v33 }
 0x205   :  { %p4985_p3 = por %p4984_p2, %p4983_p1 }
 0x207   :  { %p4986_p4 = pnand %p4985_p3, %p4979_p0 }
 0x214   :  { %v4541_v32 = vpop.f32.mrb[64].mxu0 }
 0x215   :  { %v4542_v41 = vpop.f32.mrb[65].mxu0  ;;  %v4569_v42 = vpop.f32.mrb[64].mxu1 }
 0x216   :  { %v4543_v43 = vadd.f32 %v4542_v41, %v4541_v32  ;;  %v4544_v44 = vpop.f32.mrb[66].mxu0  ;;  %v4570_v45 = vpop.f32.mrb[65].mxu1 }
 0x217   :  { %v4545_v46 = vpop.f32.mrb[67].mxu0  ;;  %v4571_v48 = vadd.f32 %v4570_v45, %v4569_v42  ;;  %v4572_v49 = vpop.f32.mrb[66].mxu1  ;;  %v3697_v42 = vld [vmem:[#allocation4] sm:$0x1] }
 0x218   :  { %v3586_v47 = vadd.f32 %v4543_v43, %v3537_v20  ;;  %v4546_v50 = vadd.f32 %v4545_v46, %v4544_v44  ;;  %v4573_v34 = vpop.f32.mrb[67].mxu1 }
 0x219   :  { %v4574_v54 = vadd.f32 %v4573_v34, %v4572_v49 }
 0x21a   :  { %v3635_v52 = vadd.f32 %v4571_v48, %v3586_v47  ;;  %v3589_v53 = vadd.f32 %v4546_v50, %v3540_v22 }
 0x21c   :  { %v3656_v56 = vmul.f32 %v4075_v51, %v3635_v52  ;;  %v3638_v57 = vadd.f32 %v4574_v54, %v3589_v53  ;;  %v4547_v58 = vpop.f32.mrb[68].mxu0 }
 0x21d   :  { %v4548_v59 = vpop.f32.mrb[69].mxu0  ;;  %v4575_v62 = vpop.f32.mrb[68].mxu1 }
 0x21e   :  { %v3667_v60 = vadd.f32 %v4076_v55, %v3656_v56  ;;  %v3657_v61 = vmul.f32 %v4075_v51, %v3638_v57  ;;  %v4549_v63 = vadd.f32 %v4548_v59, %v4547_v58  ;;  %v4550_v0 = vpop.f32.mrb[70].mxu0  ;;  %v4576_v3 = vpop.f32.mrb[69].mxu1 }
 0x21f   :  { %v4551_v4 = vpop.f32.mrb[71].mxu0  ;;  %v4577_v8 = vadd.f32 %v4576_v3, %v4575_v62  ;;  %v4578_v9 = vpop.f32.mrb[70].mxu1 }
 0x220   :  { %v3671_v1 = vmax.f32 %v3667_v60, 0.0  ;;  %v3668_v6 = vadd.f32 %v4076_v55, %v3657_v61  ;;  %v3594_v7 = vadd.f32 %v4549_v63, %v3545_v38  ;;  %v4552_v11 = vadd.f32 %v4551_v4, %v4550_v0  ;;  %v4579_v12 = vpop.f32.mrb[71].mxu1 }
 0x221   :  { %v4580_v15 = vadd.f32 %v4579_v12, %v4578_v9 }
 0x222   :  { %v3679_v13 = vmul.f32 %v3675_v2, %v3671_v1  ;;  %v3672_v14 = vmax.f32 %v3668_v6, 0.0  ;;  %v3643_v5 = vadd.f32 %v4577_v8, %v3594_v7  ;;  %v3597_v16 = vadd.f32 %v4552_v11, %v3548_v40 }
 0x224   :  { %v3680_v17 = vmul.f32 %v3676_v10, %v3672_v14  ;;  %v3658_v18 = vmul.f32 %v4075_v51, %v3643_v5  ;;  %v3646_v19 = vadd.f32 %v4580_v15, %v3597_v16  ;;  %v3684_v20 = vsel %vm3683_vm0, %v3679_v13, 0.0 }
 0x226   :  { %v3685_v21 = vsel %vm3683_vm0, %v3680_v17, 0.0  ;;  %v3669_v22 = vadd.f32 %v4076_v55, %v3658_v18  ;;  %v3659_v26 = vmul.f32 %v4075_v51, %v3646_v19 }
 0x227   :  { %v3686_v23 = vadd.f32 %v3685_v21, %v3684_v20 }
 0x228   :  { %v3673_v27 = vmax.f32 %v3669_v22, 0.0  ;;  %v3670_v28 = vadd.f32 %v4076_v55, %v3659_v26 }
 0x22a   :  { %v3681_v29 = vmul.f32 %v3677_v24, %v3673_v27  ;;  %v3674_v31 = vmax.f32 %v3670_v28, 0.0 }
 0x22c   :  { %v3687_v33 = vsel %vm3683_vm0, %v3681_v29, 0.0  ;;  %v3682_v25 = vmul.f32 %v3678_v30, %v3674_v31 }
 0x22d   :  { %v3688_v35 = vadd.f32 %v3687_v33, %v3686_v23 }
 0x22e   :  { %v3689_v36 = vsel %vm3683_vm0, %v3682_v25, 0.0 }
 0x22f   :  { %v3690_v37 = vadd.f32 %v3689_v36, %v3688_v35 }
 0x231   :  { %v3691_v38 = vrot.slane %v3690_v37, 4 }
 0x233   :  { %v3692_v39 = vadd.f32 %v3691_v38, %v3690_v37 }
 0x235   :  { %v3693_v40 = vrot.slane %v3692_v39, 2 }
 0x237   :  { %v3694_v32 = vadd.f32 %v3693_v40, %v3692_v39 }
 0x239   :  { %v3695_v41 = vrot.slane %v3694_v32, 1 }
 0x23b   :  { %v3696_v43 = vadd.f32 %v3695_v41, %v3694_v32 }
 0x23d   :  { %v3698_v44 = vadd.f32 %v3697_v42, %v3696_v43 }
 0x23f   :  { %3700 = vst.msk [vmem:[#allocation5] sm:$0x1] %vm3699_vm1, %v3698_v44 }
 0x240   :  { %4989 = shalt.err (!%p4986_p4)
}
 0x241   :  { %s4990_s29 = scalar_lea.hbm %s6180_s6, 16 }
 0x242   :  { %p4991_p5 = scmp.ne.s32.totalorder %s6180_s6, %s4990_s29  ;;  %p4994_p6 = scmp.lt.u32.totalorder %s4990_s29, %s6180_s6 }
 0x244   :  { %p4996_p7 = pnand %p4994_p6, %p4991_p5 }
 0x246   :  { %4999 = shalt.err (!%p4996_p7)
}
 0x247   :  { %3710 = dma.vmem_to_hbm [thread:$0]  %s3708_s25, 16, %s6180_s6, [#allocation6]  }
 0x248   :  { %5000 = dma.done.wait [#allocation6], 16  }
 0x249   :  { %5001 = vsyncadd [#allocation6], 4294967280 }
 0x24a   :  { %3714 = vsyncpa [#allocation6], 1 }

// kernel: critic_cg1_forward.8
= control target key start
LH: loop header
LB: loop body
LE: loop exit
PB: predicated region body
PF: predicated region fallthrough
CT: control target
= control target key end

     0   :  { %s10311_s1 = inlined_call_operand.vmem [shape: bf16[2304,512], index: 1, kind: input, shape index: {}]   ;;  %s10312_s0 = inlined_call_operand.vmem [shape: bf16[32,2304], index: 0, kind: input, shape index: {}]   ;;  %s10313_s4 = inlined_call_operand.vmem [shape: bf16[512,512], index: 4, kind: input, shape index: {}]   ;;  %s10314_s2 = inlined_call_operand.vmem [shape: f32[1,512], index: 2, kind: input, shape index: {}]   ;;  %s10315_s3 = inlined_call_operand.vmem [shape: f32[1,512], index: 3, kind: input, shape index: {}]   ;;  %s10316_s5 = inlined_call_operand.vmem [shape: f32[1,512], index: 5, kind: input, shape index: {}]   ;;  %s10317_s6 = inlined_call_operand.vmem [shape: f32[1,512], index: 6, kind: input, shape index: {}]   ;;  %s10318_s7 = inlined_call_operand.vmem [shape: f32[32,512], index: 7, kind: output, shape index: {}]  }
   0x1   :  { %v6760_v0 = vld [vmem:[%s10311_s1 + $0x4] ss:$16 sps:$4 sm:$0xff]   ;;  %v6762_v1 = vld [vmem:[%s10311_s1 + $0xc] ss:$16 sps:$4 sm:$0xff]   ;;  %v6764_v2 = vld [vmem:[%s10311_s1] ss:$16 sps:$4 sm:$0xff]  }
   0x2   :  { %3698 = vmatprep.subr.bf16.mxu0 %v6760_v0  ;;  %v6765_v3 = vld [vmem:[%s10311_s1 + $0x8] ss:$16 sps:$4 sm:$0xff]   ;;  %4175 = vmatprep.subr.bf16.mxu1 %v6762_v1  ;;  %v6766_v4 = vld [vmem:[%s10311_s1 + $0x24] ss:$16 sps:$4 sm:$0xff]   ;;  %v6768_v5 = vld [vmem:[%s10311_s1 + $0x2c] ss:$16 sps:$4 sm:$0xff]  }
   0x3   :  { %3699 = vmatpush1.bf16.msra.mxu0 %v6764_v2  ;;  %4176 = vmatpush1.bf16.msra.mxu1 %v6765_v3  ;;  %v6770_v6 = vld [vmem:[%s10311_s1 + $0x20] ss:$16 sps:$4 sm:$0xff]   ;;  %v6771_v7 = vld [vmem:[%s10311_s1 + $0x28] ss:$16 sps:$4 sm:$0xff]   ;;  %v6772_v8 = vld [vmem:[%s10311_s1 + $0x44] ss:$16 sps:$4 sm:$0xff]  }
   0x4   :  { %3700 = vmatprep.subr.bf16.mxu0 %v6766_v4  ;;  %4177 = vmatprep.subr.bf16.mxu1 %v6768_v5  ;;  %v6774_v9 = vld [vmem:[%s10311_s1 + $0x4c] ss:$16 sps:$4 sm:$0xff]   ;;  %v6776_v10 = vld [vmem:[%s10311_s1 + $0x40] ss:$16 sps:$4 sm:$0xff]   ;;  %v6777_v11 = vld [vmem:[%s10311_s1 + $0x48] ss:$16 sps:$4 sm:$0xff]  }
   0x5   :  { %v6778_v12 = vld [vmem:[%s10311_s1 + $0x64] ss:$16 sps:$4 sm:$0xff]   ;;  %v6780_v13 = vld [vmem:[%s10311_s1 + $0x6c] ss:$16 sps:$4 sm:$0xff]   ;;  %v6782_v14 = vld [vmem:[%s10311_s1 + $0x60] ss:$16 sps:$4 sm:$0xff]  }
   0x6   :  { %v6783_v15 = vld [vmem:[%s10311_s1 + $0x68] ss:$16 sps:$4 sm:$0xff]   ;;  %v6784_v16 = vld [vmem:[%s10311_s1 + $0x84] ss:$16 sps:$4 sm:$0xff]   ;;  %v6786_v17 = vld [vmem:[%s10311_s1 + $0x8c] ss:$16 sps:$4 sm:$0xff]  }
   0x7   :  { %3701 = vmatpush1.bf16.msra.mxu0 %v6770_v6  ;;  %4178 = vmatpush1.bf16.msra.mxu1 %v6771_v7  ;;  %v6788_v18 = vld [vmem:[%s10311_s1 + $0x80] ss:$16 sps:$4 sm:$0xff]   ;;  %v6789_v19 = vld [vmem:[%s10311_s1 + $0x88] ss:$16 sps:$4 sm:$0xff]   ;;  %v6790_v20 = vld [vmem:[%s10311_s1 + $0xa4] ss:$16 sps:$4 sm:$0xff]  }
   0x8   :  { %3702 = vmatprep.subr.bf16.mxu0 %v6772_v8  ;;  %4179 = vmatprep.subr.bf16.mxu1 %v6774_v9  ;;  %v6792_v21 = vld [vmem:[%s10311_s1 + $0xac] ss:$16 sps:$4 sm:$0xff]   ;;  %v6794_v22 = vld [vmem:[%s10311_s1 + $0xa0] ss:$16 sps:$4 sm:$0xff]   ;;  %v6795_v23 = vld [vmem:[%s10311_s1 + $0xa8] ss:$16 sps:$4 sm:$0xff]  }
   0x9   :  { %v6796_v24 = vld [vmem:[%s10311_s1 + $0xc4] ss:$16 sps:$4 sm:$0xff]   ;;  %v6798_v25 = vld [vmem:[%s10311_s1 + $0xcc] ss:$16 sps:$4 sm:$0xff]   ;;  %v6800_v26 = vld [vmem:[%s10311_s1 + $0xc0] ss:$16 sps:$4 sm:$0xff]  }
   0xa   :  { %v6801_v27 = vld [vmem:[%s10311_s1 + $0xc8] ss:$16 sps:$4 sm:$0xff]   ;;  %v6802_v28 = vld [vmem:[%s10311_s1 + $0xe4] ss:$16 sps:$4 sm:$0xff]   ;;  %v6804_v29 = vld [vmem:[%s10311_s1 + $0xec] ss:$16 sps:$4 sm:$0xff]  }
   0xb   :  { %3703 = vmatpush1.bf16.msra.mxu0 %v6776_v10  ;;  %4180 = vmatpush1.bf16.msra.mxu1 %v6777_v11  ;;  %v6806_v30 = vld [vmem:[%s10311_s1 + $0xe0] ss:$16 sps:$4 sm:$0xff]   ;;  %v6807_v31 = vld [vmem:[%s10311_s1 + $0xe8] ss:$16 sps:$4 sm:$0xff]   ;;  %v6808_v32 = vld [vmem:[%s10311_s1 + $0x104] ss:$16 sps:$4 sm:$0xff]  }
   0xc   :  { %3704 = vmatprep.subr.bf16.mxu0 %v6778_v12  ;;  %4181 = vmatprep.subr.bf16.mxu1 %v6780_v13  ;;  %v6810_v33 = vld [vmem:[%s10311_s1 + $0x10c] ss:$16 sps:$4 sm:$0xff]   ;;  %v6812_v34 = vld [vmem:[%s10311_s1 + $0x100] ss:$16 sps:$4 sm:$0xff]   ;;  %v6813_v35 = vld [vmem:[%s10311_s1 + $0x108] ss:$16 sps:$4 sm:$0xff]  }
   0xd   :  { %v6814_v36 = vld [vmem:[%s10311_s1 + $0x124] ss:$16 sps:$4 sm:$0xff]   ;;  %v6816_v37 = vld [vmem:[%s10311_s1 + $0x12c] ss:$16 sps:$4 sm:$0xff]   ;;  %v6818_v38 = vld [vmem:[%s10311_s1 + $0x120] ss:$16 sps:$4 sm:$0xff]  }
   0xe   :  { %v6819_v39 = vld [vmem:[%s10311_s1 + $0x128] ss:$16 sps:$4 sm:$0xff]   ;;  %v6820_v40 = vld [vmem:[%s10311_s1 + $0x144] ss:$16 sps:$4 sm:$0xff]   ;;  %v6822_v41 = vld [vmem:[%s10311_s1 + $0x14c] ss:$16 sps:$4 sm:$0xff]  }
   0xf   :  { %3705 = vmatpush1.bf16.msra.mxu0 %v6782_v14  ;;  %4182 = vmatpush1.bf16.msra.mxu1 %v6783_v15  ;;  %v6824_v42 = vld [vmem:[%s10311_s1 + $0x140] ss:$16 sps:$4 sm:$0xff]   ;;  %v6825_v43 = vld [vmem:[%s10311_s1 + $0x148] ss:$16 sps:$4 sm:$0xff]   ;;  %v6826_v44 = vld [vmem:[%s10311_s1 + $0x164] ss:$16 sps:$4 sm:$0xff]  }
  0x10   :  { %3706 = vmatprep.subr.bf16.mxu0 %v6784_v16  ;;  %4183 = vmatprep.subr.bf16.mxu1 %v6786_v17  ;;  %v6828_v45 = vld [vmem:[%s10311_s1 + $0x16c] ss:$16 sps:$4 sm:$0xff]   ;;  %v6830_v46 = vld [vmem:[%s10311_s1 + $0x160] ss:$16 sps:$4 sm:$0xff]   ;;  %v6831_v47 = vld [vmem:[%s10311_s1 + $0x168] ss:$16 sps:$4 sm:$0xff]  }
  0x11   :  { %v6858_v48 = vld [vmem:[%s10312_s0 + $0x4] ss:$72 sps:$4 sm:$0xff]   ;;  %v6836_v51 = vld [vmem:[%s10311_s1 + $0x180] ss:$16 sps:$4 sm:$0xff]   ;;  %v6837_v52 = vld [vmem:[%s10311_s1 + $0x188] ss:$16 sps:$4 sm:$0xff]  }
  0x12   :  { %v6832_v49 = vld [vmem:[%s10311_s1 + $0x184] ss:$16 sps:$4 sm:$0xff]   ;;  %v6834_v50 = vld [vmem:[%s10311_s1 + $0x18c] ss:$16 sps:$4 sm:$0xff]   ;;  %3730 = vmatprep.mubr.bf16.mxu0 %v6858_v48  ;;  %4207 = vmatprep.mubr.bf16.mxu1 %v6858_v48  ;;  %v6842_v55 = vld [vmem:[%s10311_s1 + $0x1a0] ss:$16 sps:$4 sm:$0xff]  }
  0x13   :  { %3707 = vmatpush1.bf16.msra.mxu0 %v6788_v18  ;;  %4184 = vmatpush1.bf16.msra.mxu1 %v6789_v19  ;;  %v6838_v53 = vld [vmem:[%s10311_s1 + $0x1a4] ss:$16 sps:$4 sm:$0xff]   ;;  %v6840_v54 = vld [vmem:[%s10311_s1 + $0x1ac] ss:$16 sps:$4 sm:$0xff]   ;;  %v6843_v56 = vld [vmem:[%s10311_s1 + $0x1a8] ss:$16 sps:$4 sm:$0xff]  }
  0x14   :  { %3708 = vmatprep.subr.bf16.mxu0 %v6790_v20  ;;  %4185 = vmatprep.subr.bf16.mxu1 %v6792_v21  ;;  %v6844_v57 = vld [vmem:[%s10311_s1 + $0x1c4] ss:$16 sps:$4 sm:$0xff]   ;;  %v6846_v58 = vld [vmem:[%s10311_s1 + $0x1cc] ss:$16 sps:$4 sm:$0xff]   ;;  %v6848_v59 = vld [vmem:[%s10311_s1 + $0x1c0] ss:$16 sps:$4 sm:$0xff]  }
  0x15   :  { %v6849_v60 = vld [vmem:[%s10311_s1 + $0x1c8] ss:$16 sps:$4 sm:$0xff]   ;;  %v6850_v61 = vld [vmem:[%s10311_s1 + $0x1e4] ss:$16 sps:$4 sm:$0xff]   ;;  %v6852_v62 = vld [vmem:[%s10311_s1 + $0x1ec] ss:$16 sps:$4 sm:$0xff]  }
  0x16   :  { %v6854_v63 = vld [vmem:[%s10311_s1 + $0x1e0] ss:$16 sps:$4 sm:$0xff]   ;;  %v6855_v0 = vld [vmem:[%s10311_s1 + $0x1e8] ss:$16 sps:$4 sm:$0xff]   ;;  %v6861_v1 = vld [vmem:[%s10311_s1 + $0x204] ss:$16 sps:$4 sm:$0xff]  }
  0x17   :  { %3709 = vmatpush1.bf16.msra.mxu0 %v6794_v22  ;;  %4186 = vmatpush1.bf16.msra.mxu1 %v6795_v23  ;;  %v6864_v2 = vld [vmem:[%s10311_s1 + $0x20c] ss:$16 sps:$4 sm:$0xff]   ;;  %v6856_v3 = vld [vmem:[%s10312_s0] ss:$72 sps:$4 sm:$0xff]   ;;  %v6867_v6 = vld [vmem:[%s10311_s1 + $0x224] ss:$16 sps:$4 sm:$0xff]  }
  0x18   :  { %3710 = vmatprep.subr.bf16.mxu0 %v6796_v24  ;;  %4187 = vmatprep.subr.bf16.mxu1 %v6798_v25  ;;  %v6859_v4 = vld [vmem:[%s10311_s1 + $0x200] ss:$16 sps:$4 sm:$0xff]   ;;  %v6862_v5 = vld [vmem:[%s10311_s1 + $0x208] ss:$16 sps:$4 sm:$0xff]   ;;  %v6870_v7 = vld [vmem:[%s10311_s1 + $0x22c] ss:$16 sps:$4 sm:$0xff]  }
  0x19   :  { %v6865_v8 = vld [vmem:[%s10311_s1 + $0x220] ss:$16 sps:$4 sm:$0xff]   ;;  %v6868_v9 = vld [vmem:[%s10311_s1 + $0x228] ss:$16 sps:$4 sm:$0xff]   ;;  %v6873_v10 = vld [vmem:[%s10311_s1 + $0x244] ss:$16 sps:$4 sm:$0xff]  }
  0x1a   :  { %v6876_v11 = vld [vmem:[%s10311_s1 + $0x24c] ss:$16 sps:$4 sm:$0xff]   ;;  %v6871_v12 = vld [vmem:[%s10311_s1 + $0x240] ss:$16 sps:$4 sm:$0xff]   ;;  %v6874_v13 = vld [vmem:[%s10311_s1 + $0x248] ss:$16 sps:$4 sm:$0xff]  }
  0x1b   :  { %3711 = vmatpush1.bf16.msra.mxu0 %v6800_v26  ;;  %4188 = vmatpush1.bf16.msra.mxu1 %v6801_v27  ;;  %v6879_v14 = vld [vmem:[%s10311_s1 + $0x264] ss:$16 sps:$4 sm:$0xff]   ;;  %v6882_v15 = vld [vmem:[%s10311_s1 + $0x26c] ss:$16 sps:$4 sm:$0xff]   ;;  %v6877_v16 = vld [vmem:[%s10311_s1 + $0x260] ss:$16 sps:$4 sm:$0xff]  }
  0x1c   :  { %3712 = vmatprep.subr.bf16.mxu0 %v6802_v28  ;;  %4189 = vmatprep.subr.bf16.mxu1 %v6804_v29  ;;  %v6880_v17 = vld [vmem:[%s10311_s1 + $0x268] ss:$16 sps:$4 sm:$0xff]   ;;  %v6885_v18 = vld [vmem:[%s10311_s1 + $0x284] ss:$16 sps:$4 sm:$0xff]   ;;  %v6888_v19 = vld [vmem:[%s10311_s1 + $0x28c] ss:$16 sps:$4 sm:$0xff]  }
  0x1d   :  { %v6883_v20 = vld [vmem:[%s10311_s1 + $0x280] ss:$16 sps:$4 sm:$0xff]   ;;  %v6886_v21 = vld [vmem:[%s10311_s1 + $0x288] ss:$16 sps:$4 sm:$0xff]   ;;  %v6891_v22 = vld [vmem:[%s10311_s1 + $0x2a4] ss:$16 sps:$4 sm:$0xff]  }
  0x1e   :  { %v6894_v23 = vld [vmem:[%s10311_s1 + $0x2ac] ss:$16 sps:$4 sm:$0xff]   ;;  %v6889_v25 = vld [vmem:[%s10311_s1 + $0x2a0] ss:$16 sps:$4 sm:$0xff]   ;;  %v6892_v26 = vld [vmem:[%s10311_s1 + $0x2a8] ss:$16 sps:$4 sm:$0xff]  }
  0x1f   :  { %3713 = vmatpush1.bf16.msra.mxu0 %v6806_v30  ;;  %4190 = vmatpush1.bf16.msra.mxu1 %v6807_v31  ;;  %v6943_v24 = vld [vmem:[%s10312_s0 + $0x94] ss:$72 sps:$4 sm:$0xff]   ;;  %v6951_v29 = vld [vmem:[%s10312_s0 + $0x90] ss:$72 sps:$4 sm:$0xff]  }
  0x20   :  { %3714 = vmatprep.subr.bf16.mxu0 %v6808_v32  ;;  %4191 = vmatprep.subr.bf16.mxu1 %v6810_v33  ;;  %v6897_v27 = vld [vmem:[%s10311_s1 + $0x2c4] ss:$16 sps:$4 sm:$0xff]   ;;  %v6900_v28 = vld [vmem:[%s10311_s1 + $0x2cc] ss:$16 sps:$4 sm:$0xff]   ;;  %v6895_v30 = vld [vmem:[%s10311_s1 + $0x2c0] ss:$16 sps:$4 sm:$0xff]  }
  0x21   :  { %v6898_v31 = vld [vmem:[%s10311_s1 + $0x2c8] ss:$16 sps:$4 sm:$0xff]   ;;  %v6903_v32 = vld [vmem:[%s10311_s1 + $0x2e4] ss:$16 sps:$4 sm:$0xff]   ;;  %v6906_v33 = vld [vmem:[%s10311_s1 + $0x2ec] ss:$16 sps:$4 sm:$0xff]  }
  0x22   :  { %v6922_v48 = vld [vmem:[%s10311_s1 + $0x348] ss:$16 sps:$4 sm:$0xff]  }
  0x23   :  { %3715 = vmatpush1.bf16.msra.mxu0 %v6812_v34  ;;  %4192 = vmatpush1.bf16.msra.mxu1 %v6813_v35  ;;  %v6960_v34 = vld [vmem:[%s10312_s0 + $0xc] ss:$72 sps:$4 sm:$0xff]   ;;  %v6901_v35 = vld [vmem:[%s10311_s1 + $0x2e0] ss:$16 sps:$4 sm:$0xff]  }
  0x24   :  { %3716 = vmatprep.subr.bf16.mxu0 %v6814_v36  ;;  %4193 = vmatprep.subr.bf16.mxu1 %v6816_v37  ;;  %v6904_v36 = vld [vmem:[%s10311_s1 + $0x2e8] ss:$16 sps:$4 sm:$0xff]   ;;  %v6909_v37 = vld [vmem:[%s10311_s1 + $0x304] ss:$16 sps:$4 sm:$0xff]  }
  0x27   :  { %3717 = vmatpush1.bf16.msra.mxu0 %v6818_v38  ;;  %4194 = vmatpush1.bf16.msra.mxu1 %v6819_v39  ;;  %v6912_v38 = vld [vmem:[%s10311_s1 + $0x30c] ss:$16 sps:$4 sm:$0xff]   ;;  %v6907_v39 = vld [vmem:[%s10311_s1 + $0x300] ss:$16 sps:$4 sm:$0xff]  }
  0x28   :  { %3718 = vmatprep.subr.bf16.mxu0 %v6820_v40  ;;  %4195 = vmatprep.subr.bf16.mxu1 %v6822_v41  ;;  %v6910_v40 = vld [vmem:[%s10311_s1 + $0x308] ss:$16 sps:$4 sm:$0xff]   ;;  %v6915_v41 = vld [vmem:[%s10311_s1 + $0x324] ss:$16 sps:$4 sm:$0xff]  }
  0x2b   :  { %3719 = vmatpush1.bf16.msra.mxu0 %v6824_v42  ;;  %4196 = vmatpush1.bf16.msra.mxu1 %v6825_v43  ;;  %v6918_v42 = vld [vmem:[%s10311_s1 + $0x32c] ss:$16 sps:$4 sm:$0xff]   ;;  %v6913_v43 = vld [vmem:[%s10311_s1 + $0x320] ss:$16 sps:$4 sm:$0xff]  }
  0x2c   :  { %3720 = vmatprep.subr.bf16.mxu0 %v6826_v44  ;;  %4197 = vmatprep.subr.bf16.mxu1 %v6828_v45  ;;  %v6916_v44 = vld [vmem:[%s10311_s1 + $0x328] ss:$16 sps:$4 sm:$0xff]   ;;  %v6921_v45 = vld [vmem:[%s10311_s1 + $0x344] ss:$16 sps:$4 sm:$0xff]  }
  0x2f   :  { %3721 = vmatpush1.bf16.msra.mxu0 %v6830_v46  ;;  %4198 = vmatpush1.bf16.msra.mxu1 %v6831_v47  ;;  %v6924_v46 = vld [vmem:[%s10311_s1 + $0x34c] ss:$16 sps:$4 sm:$0xff]   ;;  %v6919_v47 = vld [vmem:[%s10311_s1 + $0x340] ss:$16 sps:$4 sm:$0xff]  }
  0x30   :  { %3722 = vmatprep.subr.bf16.mxu0 %v6832_v49  ;;  %4199 = vmatprep.subr.bf16.mxu1 %v6834_v50  ;;  %v6927_v49 = vld [vmem:[%s10311_s1 + $0x364] ss:$16 sps:$4 sm:$0xff]   ;;  %v6930_v50 = vld [vmem:[%s10311_s1 + $0x36c] ss:$16 sps:$4 sm:$0xff]  }
  0x33   :  { %3723 = vmatpush1.bf16.msra.mxu0 %v6836_v51  ;;  %4200 = vmatpush1.bf16.msra.mxu1 %v6837_v52  ;;  %v6925_v51 = vld [vmem:[%s10311_s1 + $0x360] ss:$16 sps:$4 sm:$0xff]   ;;  %v6928_v52 = vld [vmem:[%s10311_s1 + $0x368] ss:$16 sps:$4 sm:$0xff]  }
  0x34   :  { %3724 = vmatprep.subr.bf16.mxu0 %v6838_v53  ;;  %4201 = vmatprep.subr.bf16.mxu1 %v6840_v54  ;;  %v6933_v53 = vld [vmem:[%s10311_s1 + $0x384] ss:$16 sps:$4 sm:$0xff]   ;;  %v6936_v54 = vld [vmem:[%s10311_s1 + $0x38c] ss:$16 sps:$4 sm:$0xff]  }
  0x37   :  { %3725 = vmatpush1.bf16.msra.mxu0 %v6842_v55  ;;  %4202 = vmatpush1.bf16.msra.mxu1 %v6843_v56  ;;  %v6931_v55 = vld [vmem:[%s10311_s1 + $0x380] ss:$16 sps:$4 sm:$0xff]   ;;  %v6934_v56 = vld [vmem:[%s10311_s1 + $0x388] ss:$16 sps:$4 sm:$0xff]  }
  0x38   :  { %3726 = vmatprep.subr.bf16.mxu0 %v6844_v57  ;;  %4203 = vmatprep.subr.bf16.mxu1 %v6846_v58  ;;  %v6939_v57 = vld [vmem:[%s10311_s1 + $0x3a4] ss:$16 sps:$4 sm:$0xff]   ;;  %v6942_v58 = vld [vmem:[%s10311_s1 + $0x3ac] ss:$16 sps:$4 sm:$0xff]  }
  0x3b   :  { %3727 = vmatpush1.bf16.msra.mxu0 %v6848_v59  ;;  %4204 = vmatpush1.bf16.msra.mxu1 %v6849_v60  ;;  %v6937_v59 = vld [vmem:[%s10311_s1 + $0x3a0] ss:$16 sps:$4 sm:$0xff]   ;;  %v6940_v60 = vld [vmem:[%s10311_s1 + $0x3a8] ss:$16 sps:$4 sm:$0xff]  }
  0x3c   :  { %3728 = vmatprep.subr.bf16.mxu0 %v6850_v61  ;;  %4205 = vmatprep.subr.bf16.mxu1 %v6852_v62  ;;  %v6947_v61 = vld [vmem:[%s10311_s1 + $0x3c4] ss:$16 sps:$4 sm:$0xff]   ;;  %v6950_v62 = vld [vmem:[%s10311_s1 + $0x3cc] ss:$16 sps:$4 sm:$0xff]  }
  0x3f   :  { %3729 = vmatpush1.bf16.msra.mxu0 %v6854_v63  ;;  %4206 = vmatpush1.bf16.msra.mxu1 %v6855_v0  ;;  %v6945_v63 = vld [vmem:[%s10311_s1 + $0x3c0] ss:$16 sps:$4 sm:$0xff]   ;;  %v6948_v0 = vld [vmem:[%s10311_s1 + $0x3c8] ss:$16 sps:$4 sm:$0xff]  }
  0x40   :  { %3751 = vmatprep.subr.bf16.mxu0 %v6861_v1  ;;  %4228 = vmatprep.subr.bf16.mxu1 %v6864_v2  ;;  %v6954_v1 = vld [vmem:[%s10311_s1 + $0x3e4] ss:$16 sps:$4 sm:$0xff]   ;;  %v6957_v2 = vld [vmem:[%s10311_s1 + $0x3ec] ss:$16 sps:$4 sm:$0xff]  }
  0x42   :  { %3731 = vmatmul.mubr.bf16.vlgmr.msra.gmra.mrb[0].mxu0 %v6856_v3  ;;  %4208 = vmatmul.mubr.bf16.vlgmr.msra.gmra.mrb[0].mxu1 %v6856_v3  ;;  %v6952_v3 = vld [vmem:[%s10311_s1 + $0x3e0] ss:$16 sps:$4 sm:$0xff]  }
  0x43   :  { %3752 = vmatpush1.bf16.msra.mxu0 %v6859_v4  ;;  %4229 = vmatpush1.bf16.msra.mxu1 %v6862_v5  ;;  %v6955_v4 = vld [vmem:[%s10311_s1 + $0x3e8] ss:$16 sps:$4 sm:$0xff]   ;;  %v6963_v5 = vld [vmem:[%s10311_s1 + $0x404] ss:$16 sps:$4 sm:$0xff]  }
  0x44   :  { %3753 = vmatprep.subr.bf16.mxu0 %v6867_v6  ;;  %4230 = vmatprep.subr.bf16.mxu1 %v6870_v7  ;;  %v6966_v6 = vld [vmem:[%s10311_s1 + $0x40c] ss:$16 sps:$4 sm:$0xff]   ;;  %v6958_v7 = vld [vmem:[%s10312_s0 + $0x8] ss:$72 sps:$4 sm:$0xff]  }
  0x45   :  { %3740 = vmatprep.mubr.bf16.mxu0 %v6943_v24  ;;  %4217 = vmatprep.mubr.bf16.mxu1 %v6943_v24  ;;  %v6982_v24 = vld [vmem:[%s10311_s1 + $0x468] ss:$16 sps:$4 sm:$0xff]  }
  0x47   :  { %3754 = vmatpush1.bf16.msra.mxu0 %v6865_v8  ;;  %4231 = vmatpush1.bf16.msra.mxu1 %v6868_v9  ;;  %v6961_v8 = vld [vmem:[%s10311_s1 + $0x400] ss:$16 sps:$4 sm:$0xff]   ;;  %v6964_v9 = vld [vmem:[%s10311_s1 + $0x408] ss:$16 sps:$4 sm:$0xff]  }
  0x48   :  { %3755 = vmatprep.subr.bf16.mxu0 %v6873_v10  ;;  %4232 = vmatprep.subr.bf16.mxu1 %v6876_v11  ;;  %v6969_v10 = vld [vmem:[%s10311_s1 + $0x424] ss:$16 sps:$4 sm:$0xff]   ;;  %v6972_v11 = vld [vmem:[%s10311_s1 + $0x42c] ss:$16 sps:$4 sm:$0xff]  }
  0x4a   :  { %3741 = vmatmul.mubr.bf16.gmra.mrb[4].mxu0 %v6951_v29  ;;  %4218 = vmatmul.mubr.bf16.gmra.mrb[4].mxu1 %v6951_v29  ;;  %v6993_v29 = vld [vmem:[%s10311_s1 + $0x4a4] ss:$16 sps:$4 sm:$0xff]  }
  0x4b   :  { %3756 = vmatpush1.bf16.msra.mxu0 %v6871_v12  ;;  %4233 = vmatpush1.bf16.msra.mxu1 %v6874_v13  ;;  %v7045_v12 = vld [vmem:[%s10312_s0 + $0x9c] ss:$72 sps:$4 sm:$0xff]   ;;  %v6967_v13 = vld [vmem:[%s10311_s1 + $0x420] ss:$16 sps:$4 sm:$0xff]  }
  0x4c   :  { %3757 = vmatprep.subr.bf16.mxu0 %v6879_v14  ;;  %4234 = vmatprep.subr.bf16.mxu1 %v6882_v15  ;;  %v6970_v14 = vld [vmem:[%s10311_s1 + $0x428] ss:$16 sps:$4 sm:$0xff]   ;;  %v6975_v15 = vld [vmem:[%s10311_s1 + $0x444] ss:$16 sps:$4 sm:$0xff]  }
  0x4d   :  { %3783 = vmatprep.mubr.bf16.mxu0 %v6960_v34  ;;  %4260 = vmatprep.mubr.bf16.mxu1 %v6960_v34  ;;  %v7002_v34 = vld [vmem:[%s10311_s1 + $0x4cc] ss:$16 sps:$4 sm:$0xff]  }
  0x4f   :  { %3758 = vmatpush1.bf16.msra.mxu0 %v6877_v16  ;;  %4235 = vmatpush1.bf16.msra.mxu1 %v6880_v17  ;;  %v6978_v16 = vld [vmem:[%s10311_s1 + $0x44c] ss:$16 sps:$4 sm:$0xff]   ;;  %v6973_v17 = vld [vmem:[%s10311_s1 + $0x440] ss:$16 sps:$4 sm:$0xff]  }
  0x50   :  { %3759 = vmatprep.subr.bf16.mxu0 %v6885_v18  ;;  %4236 = vmatprep.subr.bf16.mxu1 %v6888_v19  ;;  %v6976_v18 = vld [vmem:[%s10311_s1 + $0x448] ss:$16 sps:$4 sm:$0xff]  }
  0x51   :  { %v7053_v19 = vld [vmem:[%s10312_s0 + $0x98] ss:$72 sps:$4 sm:$0xff]  }
  0x53   :  { %3760 = vmatpush1.bf16.msra.mxu0 %v6883_v20  ;;  %4237 = vmatpush1.bf16.msra.mxu1 %v6886_v21  ;;  %v6981_v20 = vld [vmem:[%s10311_s1 + $0x464] ss:$16 sps:$4 sm:$0xff]   ;;  %v6984_v21 = vld [vmem:[%s10311_s1 + $0x46c] ss:$16 sps:$4 sm:$0xff]  }
  0x54   :  { %3761 = vmatprep.subr.bf16.mxu0 %v6891_v22  ;;  %4238 = vmatprep.subr.bf16.mxu1 %v6894_v23  ;;  %v7062_v22 = vld [vmem:[%s10312_s0 + $0x14] ss:$72 sps:$4 sm:$0xff]   ;;  %v6979_v23 = vld [vmem:[%s10311_s1 + $0x460] ss:$16 sps:$4 sm:$0xff]  }
  0x57   :  { %3762 = vmatpush1.bf16.msra.mxu0 %v6889_v25  ;;  %4239 = vmatpush1.bf16.msra.mxu1 %v6892_v26  ;;  %v6987_v25 = vld [vmem:[%s10311_s1 + $0x484] ss:$16 sps:$4 sm:$0xff]   ;;  %v6990_v26 = vld [vmem:[%s10311_s1 + $0x48c] ss:$16 sps:$4 sm:$0xff]  }
  0x58   :  { %3763 = vmatprep.subr.bf16.mxu0 %v6897_v27  ;;  %4240 = vmatprep.subr.bf16.mxu1 %v6900_v28  ;;  %v6985_v27 = vld [vmem:[%s10311_s1 + $0x480] ss:$16 sps:$4 sm:$0xff]   ;;  %v6988_v28 = vld [vmem:[%s10311_s1 + $0x488] ss:$16 sps:$4 sm:$0xff]  }
  0x5b   :  { %3764 = vmatpush1.bf16.msra.mxu0 %v6895_v30  ;;  %4241 = vmatpush1.bf16.msra.mxu1 %v6898_v31  ;;  %v6996_v30 = vld [vmem:[%s10311_s1 + $0x4ac] ss:$16 sps:$4 sm:$0xff]   ;;  %v6991_v31 = vld [vmem:[%s10311_s1 + $0x4a0] ss:$16 sps:$4 sm:$0xff]  }
  0x5c   :  { %3765 = vmatprep.subr.bf16.mxu0 %v6903_v32  ;;  %4242 = vmatprep.subr.bf16.mxu1 %v6906_v33  ;;  %v6994_v32 = vld [vmem:[%s10311_s1 + $0x4a8] ss:$16 sps:$4 sm:$0xff]   ;;  %v6999_v33 = vld [vmem:[%s10311_s1 + $0x4c4] ss:$16 sps:$4 sm:$0xff]  }
  0x5f   :  { %3766 = vmatpush1.bf16.msra.mxu0 %v6901_v35  ;;  %4243 = vmatpush1.bf16.msra.mxu1 %v6904_v36  ;;  %v6997_v35 = vld [vmem:[%s10311_s1 + $0x4c0] ss:$16 sps:$4 sm:$0xff]   ;;  %v7000_v36 = vld [vmem:[%s10311_s1 + $0x4c8] ss:$16 sps:$4 sm:$0xff]  }
  0x60   :  { %3767 = vmatprep.subr.bf16.mxu0 %v6909_v37  ;;  %4244 = vmatprep.subr.bf16.mxu1 %v6912_v38  ;;  %v7005_v37 = vld [vmem:[%s10311_s1 + $0x4e4] ss:$16 sps:$4 sm:$0xff]   ;;  %v7008_v38 = vld [vmem:[%s10311_s1 + $0x4ec] ss:$16 sps:$4 sm:$0xff]  }
  0x63   :  { %3768 = vmatpush1.bf16.msra.mxu0 %v6907_v39  ;;  %4245 = vmatpush1.bf16.msra.mxu1 %v6910_v40  ;;  %v7003_v39 = vld [vmem:[%s10311_s1 + $0x4e0] ss:$16 sps:$4 sm:$0xff]   ;;  %v7006_v40 = vld [vmem:[%s10311_s1 + $0x4e8] ss:$16 sps:$4 sm:$0xff]  }
  0x64   :  { %3769 = vmatprep.subr.bf16.mxu0 %v6915_v41  ;;  %4246 = vmatprep.subr.bf16.mxu1 %v6918_v42  ;;  %v7011_v41 = vld [vmem:[%s10311_s1 + $0x504] ss:$16 sps:$4 sm:$0xff]   ;;  %v7014_v42 = vld [vmem:[%s10311_s1 + $0x50c] ss:$16 sps:$4 sm:$0xff]  }
  0x67   :  { %3770 = vmatpush1.bf16.msra.mxu0 %v6913_v43  ;;  %4247 = vmatpush1.bf16.msra.mxu1 %v6916_v44  ;;  %v7009_v43 = vld [vmem:[%s10311_s1 + $0x500] ss:$16 sps:$4 sm:$0xff]   ;;  %v7012_v44 = vld [vmem:[%s10311_s1 + $0x508] ss:$16 sps:$4 sm:$0xff]  }
  0x68   :  { %3771 = vmatprep.subr.bf16.mxu0 %v6921_v45  ;;  %4248 = vmatprep.subr.bf16.mxu1 %v6924_v46  ;;  %v7017_v45 = vld [vmem:[%s10311_s1 + $0x524] ss:$16 sps:$4 sm:$0xff]   ;;  %v7020_v46 = vld [vmem:[%s10311_s1 + $0x52c] ss:$16 sps:$4 sm:$0xff]  }
  0x6b   :  { %3772 = vmatpush1.bf16.msra.mxu0 %v6919_v47  ;;  %4249 = vmatpush1.bf16.msra.mxu1 %v6922_v48  ;;  %v7015_v47 = vld [vmem:[%s10311_s1 + $0x520] ss:$16 sps:$4 sm:$0xff]   ;;  %v7018_v48 = vld [vmem:[%s10311_s1 + $0x528] ss:$16 sps:$4 sm:$0xff]  }
  0x6c   :  { %3773 = vmatprep.subr.bf16.mxu0 %v6927_v49  ;;  %4250 = vmatprep.subr.bf16.mxu1 %v6930_v50  ;;  %v7023_v49 = vld [vmem:[%s10311_s1 + $0x544] ss:$16 sps:$4 sm:$0xff]   ;;  %v7026_v50 = vld [vmem:[%s10311_s1 + $0x54c] ss:$16 sps:$4 sm:$0xff]  }
  0x6f   :  { %3774 = vmatpush1.bf16.msra.mxu0 %v6925_v51  ;;  %4251 = vmatpush1.bf16.msra.mxu1 %v6928_v52  ;;  %v7021_v51 = vld [vmem:[%s10311_s1 + $0x540] ss:$16 sps:$4 sm:$0xff]   ;;  %v7024_v52 = vld [vmem:[%s10311_s1 + $0x548] ss:$16 sps:$4 sm:$0xff]  }
  0x70   :  { %3775 = vmatprep.subr.bf16.mxu0 %v6933_v53  ;;  %4252 = vmatprep.subr.bf16.mxu1 %v6936_v54  ;;  %v7029_v53 = vld [vmem:[%s10311_s1 + $0x564] ss:$16 sps:$4 sm:$0xff]   ;;  %v7032_v54 = vld [vmem:[%s10311_s1 + $0x56c] ss:$16 sps:$4 sm:$0xff]  }
  0x73   :  { %3776 = vmatpush1.bf16.msra.mxu0 %v6931_v55  ;;  %4253 = vmatpush1.bf16.msra.mxu1 %v6934_v56  ;;  %v7027_v55 = vld [vmem:[%s10311_s1 + $0x560] ss:$16 sps:$4 sm:$0xff]   ;;  %v7030_v56 = vld [vmem:[%s10311_s1 + $0x568] ss:$16 sps:$4 sm:$0xff]  }
  0x74   :  { %3777 = vmatprep.subr.bf16.mxu0 %v6939_v57  ;;  %4254 = vmatprep.subr.bf16.mxu1 %v6942_v58  ;;  %v7035_v57 = vld [vmem:[%s10311_s1 + $0x584] ss:$16 sps:$4 sm:$0xff]   ;;  %v7038_v58 = vld [vmem:[%s10311_s1 + $0x58c] ss:$16 sps:$4 sm:$0xff]  }
  0x77   :  { %3778 = vmatpush1.bf16.msra.mxu0 %v6937_v59  ;;  %4255 = vmatpush1.bf16.msra.mxu1 %v6940_v60  ;;  %v7033_v59 = vld [vmem:[%s10311_s1 + $0x580] ss:$16 sps:$4 sm:$0xff]   ;;  %v7036_v60 = vld [vmem:[%s10311_s1 + $0x588] ss:$16 sps:$4 sm:$0xff]  }
  0x78   :  { %3779 = vmatprep.subr.bf16.mxu0 %v6947_v61  ;;  %4256 = vmatprep.subr.bf16.mxu1 %v6950_v62  ;;  %v7041_v61 = vld [vmem:[%s10311_s1 + $0x5a4] ss:$16 sps:$4 sm:$0xff]   ;;  %v7044_v62 = vld [vmem:[%s10311_s1 + $0x5ac] ss:$16 sps:$4 sm:$0xff]  }
  0x7b   :  { %3780 = vmatpush1.bf16.msra.mxu0 %v6945_v63  ;;  %4257 = vmatpush1.bf16.msra.mxu1 %v6948_v0  ;;  %v7039_v63 = vld [vmem:[%s10311_s1 + $0x5a0] ss:$16 sps:$4 sm:$0xff]   ;;  %v7042_v0 = vld [vmem:[%s10311_s1 + $0x5a8] ss:$16 sps:$4 sm:$0xff]  }
  0x7c   :  { %3781 = vmatprep.subr.bf16.mxu0 %v6954_v1  ;;  %4258 = vmatprep.subr.bf16.mxu1 %v6957_v2  ;;  %v7049_v1 = vld [vmem:[%s10311_s1 + $0x5c4] ss:$16 sps:$4 sm:$0xff]   ;;  %v7052_v2 = vld [vmem:[%s10311_s1 + $0x5cc] ss:$16 sps:$4 sm:$0xff]  }
  0x7f   :  { %3782 = vmatpush1.bf16.msra.mxu0 %v6952_v3  ;;  %4259 = vmatpush1.bf16.msra.mxu1 %v6955_v4  ;;  %v7047_v3 = vld [vmem:[%s10311_s1 + $0x5c0] ss:$16 sps:$4 sm:$0xff]   ;;  %v7050_v4 = vld [vmem:[%s10311_s1 + $0x5c8] ss:$16 sps:$4 sm:$0xff]  }
  0x80   :  { %3804 = vmatprep.subr.bf16.mxu0 %v6963_v5  ;;  %4281 = vmatprep.subr.bf16.mxu1 %v6966_v6  ;;  %v7056_v5 = vld [vmem:[%s10311_s1 + $0x5e4] ss:$16 sps:$4 sm:$0xff]   ;;  %v7059_v6 = vld [vmem:[%s10311_s1 + $0x5ec] ss:$16 sps:$4 sm:$0xff]  }
  0x82   :  { %3784 = vmatmul.mubr.bf16.vlgmr.msra.gmra.mrb[0].mxu0 %v6958_v7  ;;  %4261 = vmatmul.mubr.bf16.vlgmr.msra.gmra.mrb[0].mxu1 %v6958_v7  ;;  %v7054_v7 = vld [vmem:[%s10311_s1 + $0x5e0] ss:$16 sps:$4 sm:$0xff]  }
  0x83   :  { %3805 = vmatpush1.bf16.msra.mxu0 %v6961_v8  ;;  %4282 = vmatpush1.bf16.msra.mxu1 %v6964_v9  ;;  %v7057_v8 = vld [vmem:[%s10311_s1 + $0x5e8] ss:$16 sps:$4 sm:$0xff]   ;;  %v7065_v9 = vld [vmem:[%s10311_s1 + $0x604] ss:$16 sps:$4 sm:$0xff]  }
  0x84   :  { %3806 = vmatprep.subr.bf16.mxu0 %v6969_v10  ;;  %4283 = vmatprep.subr.bf16.mxu1 %v6972_v11  ;;  %v7068_v10 = vld [vmem:[%s10311_s1 + $0x60c] ss:$16 sps:$4 sm:$0xff]   ;;  %v7060_v11 = vld [vmem:[%s10312_s0 + $0x10] ss:$72 sps:$4 sm:$0xff]  }
  0x85   :  { %3793 = vmatprep.mubr.bf16.mxu0 %v7045_v12  ;;  %4270 = vmatprep.mubr.bf16.mxu1 %v7045_v12  ;;  %v7063_v12 = vld [vmem:[%s10311_s1 + $0x600] ss:$16 sps:$4 sm:$0xff]  }
  0x87   :  { %3807 = vmatpush1.bf16.msra.mxu0 %v6967_v13  ;;  %4284 = vmatpush1.bf16.msra.mxu1 %v6970_v14  ;;  %v7066_v13 = vld [vmem:[%s10311_s1 + $0x608] ss:$16 sps:$4 sm:$0xff]   ;;  %v7071_v14 = vld [vmem:[%s10311_s1 + $0x624] ss:$16 sps:$4 sm:$0xff]  }
  0x88   :  { %3808 = vmatprep.subr.bf16.mxu0 %v6975_v15  ;;  %4285 = vmatprep.subr.bf16.mxu1 %v6978_v16  ;;  %v7074_v15 = vld [vmem:[%s10311_s1 + $0x62c] ss:$16 sps:$4 sm:$0xff]  }
  0x89   :  { %v7147_v16 = vld [vmem:[%s10312_s0 + $0xa4] ss:$72 sps:$4 sm:$0xff]  }
  0x8a   :  { %3794 = vmatmul.mubr.bf16.gmra.mrb[4].mxu0 %v7053_v19  ;;  %4271 = vmatmul.mubr.bf16.gmra.mrb[4].mxu1 %v7053_v19  ;;  %v7077_v19 = vld [vmem:[%s10311_s1 + $0x644] ss:$16 sps:$4 sm:$0xff]  }
  0x8b   :  { %3809 = vmatpush1.bf16.msra.mxu0 %v6973_v17  ;;  %4286 = vmatpush1.bf16.msra.mxu1 %v6976_v18  ;;  %v7069_v17 = vld [vmem:[%s10311_s1 + $0x620] ss:$16 sps:$4 sm:$0xff]   ;;  %v7072_v18 = vld [vmem:[%s10311_s1 + $0x628] ss:$16 sps:$4 sm:$0xff]  }
  0x8c   :  { %3810 = vmatprep.subr.bf16.mxu0 %v6981_v20  ;;  %4287 = vmatprep.subr.bf16.mxu1 %v6984_v21  ;;  %v7080_v20 = vld [vmem:[%s10311_s1 + $0x64c] ss:$16 sps:$4 sm:$0xff]   ;;  %v7075_v21 = vld [vmem:[%s10311_s1 + $0x640] ss:$16 sps:$4 sm:$0xff]  }
  0x8d   :  { %3836 = vmatprep.mubr.bf16.mxu0 %v7062_v22  ;;  %4313 = vmatprep.mubr.bf16.mxu1 %v7062_v22  ;;  %v7078_v22 = vld [vmem:[%s10311_s1 + $0x648] ss:$16 sps:$4 sm:$0xff]  }
  0x8f   :  { %3811 = vmatpush1.bf16.msra.mxu0 %v6979_v23  ;;  %4288 = vmatpush1.bf16.msra.mxu1 %v6982_v24  ;;  %v7155_v23 = vld [vmem:[%s10312_s0 + $0xa0] ss:$72 sps:$4 sm:$0xff]   ;;  %v7083_v24 = vld [vmem:[%s10311_s1 + $0x664] ss:$16 sps:$4 sm:$0xff]  }
  0x90   :  { %3812 = vmatprep.subr.bf16.mxu0 %v6987_v25  ;;  %4289 = vmatprep.subr.bf16.mxu1 %v6990_v26  ;;  %v7086_v25 = vld [vmem:[%s10311_s1 + $0x66c] ss:$16 sps:$4 sm:$0xff]  }
  0x91   :  { %v7164_v26 = vld [vmem:[%s10312_s0 + $0x1c] ss:$72 sps:$4 sm:$0xff]  }
  0x93   :  { %3813 = vmatpush1.bf16.msra.mxu0 %v6985_v27  ;;  %4290 = vmatpush1.bf16.msra.mxu1 %v6988_v28  ;;  %v7081_v27 = vld [vmem:[%s10311_s1 + $0x660] ss:$16 sps:$4 sm:$0xff]   ;;  %v7084_v28 = vld [vmem:[%s10311_s1 + $0x668] ss:$16 sps:$4 sm:$0xff]  }
  0x94   :  { %3814 = vmatprep.subr.bf16.mxu0 %v6993_v29  ;;  %4291 = vmatprep.subr.bf16.mxu1 %v6996_v30  ;;  %v7089_v29 = vld [vmem:[%s10311_s1 + $0x684] ss:$16 sps:$4 sm:$0xff]   ;;  %v7092_v30 = vld [vmem:[%s10311_s1 + $0x68c] ss:$16 sps:$4 sm:$0xff]  }
  0x97   :  { %3815 = vmatpush1.bf16.msra.mxu0 %v6991_v31  ;;  %4292 = vmatpush1.bf16.msra.mxu1 %v6994_v32  ;;  %v7087_v31 = vld [vmem:[%s10311_s1 + $0x680] ss:$16 sps:$4 sm:$0xff]   ;;  %v7090_v32 = vld [vmem:[%s10311_s1 + $0x688] ss:$16 sps:$4 sm:$0xff]  }
  0x98   :  { %3816 = vmatprep.subr.bf16.mxu0 %v6999_v33  ;;  %4293 = vmatprep.subr.bf16.mxu1 %v7002_v34  ;;  %v7095_v33 = vld [vmem:[%s10311_s1 + $0x6a4] ss:$16 sps:$4 sm:$0xff]   ;;  %v7098_v34 = vld [vmem:[%s10311_s1 + $0x6ac] ss:$16 sps:$4 sm:$0xff]  }
  0x9b   :  { %3817 = vmatpush1.bf16.msra.mxu0 %v6997_v35  ;;  %4294 = vmatpush1.bf16.msra.mxu1 %v7000_v36  ;;  %v7093_v35 = vld [vmem:[%s10311_s1 + $0x6a0] ss:$16 sps:$4 sm:$0xff]   ;;  %v7096_v36 = vld [vmem:[%s10311_s1 + $0x6a8] ss:$16 sps:$4 sm:$0xff]  }
  0x9c   :  { %3818 = vmatprep.subr.bf16.mxu0 %v7005_v37  ;;  %4295 = vmatprep.subr.bf16.mxu1 %v7008_v38  ;;  %v7101_v37 = vld [vmem:[%s10311_s1 + $0x6c4] ss:$16 sps:$4 sm:$0xff]   ;;  %v7104_v38 = vld [vmem:[%s10311_s1 + $0x6cc] ss:$16 sps:$4 sm:$0xff]  }
  0x9f   :  { %3819 = vmatpush1.bf16.msra.mxu0 %v7003_v39  ;;  %4296 = vmatpush1.bf16.msra.mxu1 %v7006_v40  ;;  %v7099_v39 = vld [vmem:[%s10311_s1 + $0x6c0] ss:$16 sps:$4 sm:$0xff]   ;;  %v7102_v40 = vld [vmem:[%s10311_s1 + $0x6c8] ss:$16 sps:$4 sm:$0xff]  }
  0xa0   :  { %3820 = vmatprep.subr.bf16.mxu0 %v7011_v41  ;;  %4297 = vmatprep.subr.bf16.mxu1 %v7014_v42  ;;  %v7107_v41 = vld [vmem:[%s10311_s1 + $0x6e4] ss:$16 sps:$4 sm:$0xff]   ;;  %v7110_v42 = vld [vmem:[%s10311_s1 + $0x6ec] ss:$16 sps:$4 sm:$0xff]  }
  0xa3   :  { %3821 = vmatpush1.bf16.msra.mxu0 %v7009_v43  ;;  %4298 = vmatpush1.bf16.msra.mxu1 %v7012_v44  ;;  %v7105_v43 = vld [vmem:[%s10311_s1 + $0x6e0] ss:$16 sps:$4 sm:$0xff]   ;;  %v7108_v44 = vld [vmem:[%s10311_s1 + $0x6e8] ss:$16 sps:$4 sm:$0xff]  }
  0xa4   :  { %3822 = vmatprep.subr.bf16.mxu0 %v7017_v45  ;;  %4299 = vmatprep.subr.bf16.mxu1 %v7020_v46  ;;  %v7113_v45 = vld [vmem:[%s10311_s1 + $0x704] ss:$16 sps:$4 sm:$0xff]   ;;  %v7116_v46 = vld [vmem:[%s10311_s1 + $0x70c] ss:$16 sps:$4 sm:$0xff]  }
  0xa7   :  { %3823 = vmatpush1.bf16.msra.mxu0 %v7015_v47  ;;  %4300 = vmatpush1.bf16.msra.mxu1 %v7018_v48  ;;  %v7111_v47 = vld [vmem:[%s10311_s1 + $0x700] ss:$16 sps:$4 sm:$0xff]   ;;  %v7114_v48 = vld [vmem:[%s10311_s1 + $0x708] ss:$16 sps:$4 sm:$0xff]  }
  0xa8   :  { %3824 = vmatprep.subr.bf16.mxu0 %v7023_v49  ;;  %4301 = vmatprep.subr.bf16.mxu1 %v7026_v50  ;;  %v7119_v49 = vld [vmem:[%s10311_s1 + $0x724] ss:$16 sps:$4 sm:$0xff]   ;;  %v7122_v50 = vld [vmem:[%s10311_s1 + $0x72c] ss:$16 sps:$4 sm:$0xff]  }
  0xab   :  { %3825 = vmatpush1.bf16.msra.mxu0 %v7021_v51  ;;  %4302 = vmatpush1.bf16.msra.mxu1 %v7024_v52  ;;  %v7117_v51 = vld [vmem:[%s10311_s1 + $0x720] ss:$16 sps:$4 sm:$0xff]   ;;  %v7120_v52 = vld [vmem:[%s10311_s1 + $0x728] ss:$16 sps:$4 sm:$0xff]  }
  0xac   :  { %3826 = vmatprep.subr.bf16.mxu0 %v7029_v53  ;;  %4303 = vmatprep.subr.bf16.mxu1 %v7032_v54  ;;  %v7125_v53 = vld [vmem:[%s10311_s1 + $0x744] ss:$16 sps:$4 sm:$0xff]   ;;  %v7128_v54 = vld [vmem:[%s10311_s1 + $0x74c] ss:$16 sps:$4 sm:$0xff]  }
  0xaf   :  { %3827 = vmatpush1.bf16.msra.mxu0 %v7027_v55  ;;  %4304 = vmatpush1.bf16.msra.mxu1 %v7030_v56  ;;  %v7123_v55 = vld [vmem:[%s10311_s1 + $0x740] ss:$16 sps:$4 sm:$0xff]   ;;  %v7126_v56 = vld [vmem:[%s10311_s1 + $0x748] ss:$16 sps:$4 sm:$0xff]  }
  0xb0   :  { %3828 = vmatprep.subr.bf16.mxu0 %v7035_v57  ;;  %4305 = vmatprep.subr.bf16.mxu1 %v7038_v58  ;;  %v7131_v57 = vld [vmem:[%s10311_s1 + $0x764] ss:$16 sps:$4 sm:$0xff]   ;;  %v7134_v58 = vld [vmem:[%s10311_s1 + $0x76c] ss:$16 sps:$4 sm:$0xff]  }
  0xb3   :  { %3829 = vmatpush1.bf16.msra.mxu0 %v7033_v59  ;;  %4306 = vmatpush1.bf16.msra.mxu1 %v7036_v60  ;;  %v7129_v59 = vld [vmem:[%s10311_s1 + $0x760] ss:$16 sps:$4 sm:$0xff]   ;;  %v7132_v60 = vld [vmem:[%s10311_s1 + $0x768] ss:$16 sps:$4 sm:$0xff]  }
  0xb4   :  { %3830 = vmatprep.subr.bf16.mxu0 %v7041_v61  ;;  %4307 = vmatprep.subr.bf16.mxu1 %v7044_v62  ;;  %v7137_v61 = vld [vmem:[%s10311_s1 + $0x784] ss:$16 sps:$4 sm:$0xff]   ;;  %v7140_v62 = vld [vmem:[%s10311_s1 + $0x78c] ss:$16 sps:$4 sm:$0xff]  }
  0xb7   :  { %3831 = vmatpush1.bf16.msra.mxu0 %v7039_v63  ;;  %4308 = vmatpush1.bf16.msra.mxu1 %v7042_v0  ;;  %v7135_v63 = vld [vmem:[%s10311_s1 + $0x780] ss:$16 sps:$4 sm:$0xff]   ;;  %v7138_v0 = vld [vmem:[%s10311_s1 + $0x788] ss:$16 sps:$4 sm:$0xff]  }
  0xb8   :  { %3832 = vmatprep.subr.bf16.mxu0 %v7049_v1  ;;  %4309 = vmatprep.subr.bf16.mxu1 %v7052_v2  ;;  %v7143_v1 = vld [vmem:[%s10311_s1 + $0x7a4] ss:$16 sps:$4 sm:$0xff]   ;;  %v7146_v2 = vld [vmem:[%s10311_s1 + $0x7ac] ss:$16 sps:$4 sm:$0xff]  }
  0xbb   :  { %3833 = vmatpush1.bf16.msra.mxu0 %v7047_v3  ;;  %4310 = vmatpush1.bf16.msra.mxu1 %v7050_v4  ;;  %v7141_v3 = vld [vmem:[%s10311_s1 + $0x7a0] ss:$16 sps:$4 sm:$0xff]   ;;  %v7144_v4 = vld [vmem:[%s10311_s1 + $0x7a8] ss:$16 sps:$4 sm:$0xff]  }
  0xbc   :  { %3834 = vmatprep.subr.bf16.mxu0 %v7056_v5  ;;  %4311 = vmatprep.subr.bf16.mxu1 %v7059_v6  ;;  %v7151_v5 = vld [vmem:[%s10311_s1 + $0x7c4] ss:$16 sps:$4 sm:$0xff]   ;;  %v7154_v6 = vld [vmem:[%s10311_s1 + $0x7cc] ss:$16 sps:$4 sm:$0xff]  }
  0xbf   :  { %3835 = vmatpush1.bf16.msra.mxu0 %v7054_v7  ;;  %4312 = vmatpush1.bf16.msra.mxu1 %v7057_v8  ;;  %v7149_v7 = vld [vmem:[%s10311_s1 + $0x7c0] ss:$16 sps:$4 sm:$0xff]   ;;  %v7152_v8 = vld [vmem:[%s10311_s1 + $0x7c8] ss:$16 sps:$4 sm:$0xff]  }
  0xc0   :  { %3857 = vmatprep.subr.bf16.mxu0 %v7065_v9  ;;  %4334 = vmatprep.subr.bf16.mxu1 %v7068_v10  ;;  %v7158_v9 = vld [vmem:[%s10311_s1 + $0x7e4] ss:$16 sps:$4 sm:$0xff]   ;;  %v7161_v10 = vld [vmem:[%s10311_s1 + $0x7ec] ss:$16 sps:$4 sm:$0xff]  }
  0xc2   :  { %3837 = vmatmul.mubr.bf16.vlgmr.msra.gmra.mrb[0].mxu0 %v7060_v11  ;;  %4314 = vmatmul.mubr.bf16.vlgmr.msra.gmra.mrb[0].mxu1 %v7060_v11  ;;  %v7156_v11 = vld [vmem:[%s10311_s1 + $0x7e0] ss:$16 sps:$4 sm:$0xff]  }
  0xc3   :  { %3858 = vmatpush1.bf16.msra.mxu0 %v7063_v12  ;;  %4335 = vmatpush1.bf16.msra.mxu1 %v7066_v13  ;;  %v7159_v12 = vld [vmem:[%s10311_s1 + $0x7e8] ss:$16 sps:$4 sm:$0xff]   ;;  %v7167_v13 = vld [vmem:[%s10311_s1 + $0x804] ss:$16 sps:$4 sm:$0xff]  }
  0xc4   :  { %3859 = vmatprep.subr.bf16.mxu0 %v7071_v14  ;;  %4336 = vmatprep.subr.bf16.mxu1 %v7074_v15  ;;  %v7170_v14 = vld [vmem:[%s10311_s1 + $0x80c] ss:$16 sps:$4 sm:$0xff]   ;;  %v7162_v15 = vld [vmem:[%s10312_s0 + $0x18] ss:$72 sps:$4 sm:$0xff]  }
  0xc5   :  { %3846 = vmatprep.mubr.bf16.mxu0 %v7147_v16  ;;  %4323 = vmatprep.mubr.bf16.mxu1 %v7147_v16  ;;  %v7165_v16 = vld [vmem:[%s10311_s1 + $0x800] ss:$16 sps:$4 sm:$0xff]  }
  0xc7   :  { %3860 = vmatpush1.bf16.msra.mxu0 %v7069_v17  ;;  %4337 = vmatpush1.bf16.msra.mxu1 %v7072_v18  ;;  %v7168_v17 = vld [vmem:[%s10311_s1 + $0x808] ss:$16 sps:$4 sm:$0xff]   ;;  %v7173_v18 = vld [vmem:[%s10311_s1 + $0x824] ss:$16 sps:$4 sm:$0xff]  }
  0xc8   :  { %3861 = vmatprep.subr.bf16.mxu0 %v7077_v19  ;;  %4338 = vmatprep.subr.bf16.mxu1 %v7080_v20  ;;  %v7176_v19 = vld [vmem:[%s10311_s1 + $0x82c] ss:$16 sps:$4 sm:$0xff]  }
  0xc9   :  { %v7249_v20 = vld [vmem:[%s10312_s0 + $0xac] ss:$72 sps:$4 sm:$0xff]  }
  0xca   :  { %3847 = vmatmul.mubr.bf16.gmra.mrb[4].mxu0 %v7155_v23  ;;  %4324 = vmatmul.mubr.bf16.gmra.mrb[4].mxu1 %v7155_v23  ;;  %v7179_v23 = vld [vmem:[%s10311_s1 + $0x844] ss:$16 sps:$4 sm:$0xff]  }
  0xcb   :  { %3862 = vmatpush1.bf16.msra.mxu0 %v7075_v21  ;;  %4339 = vmatpush1.bf16.msra.mxu1 %v7078_v22  ;;  %v7171_v21 = vld [vmem:[%s10311_s1 + $0x820] ss:$16 sps:$4 sm:$0xff]   ;;  %v7174_v22 = vld [vmem:[%s10311_s1 + $0x828] ss:$16 sps:$4 sm:$0xff]  }
  0xcc   :  { %3863 = vmatprep.subr.bf16.mxu0 %v7083_v24  ;;  %4340 = vmatprep.subr.bf16.mxu1 %v7086_v25  ;;  %v7182_v24 = vld [vmem:[%s10311_s1 + $0x84c] ss:$16 sps:$4 sm:$0xff]   ;;  %v7177_v25 = vld [vmem:[%s10311_s1 + $0x840] ss:$16 sps:$4 sm:$0xff]  }
  0xcd   :  { %3889 = vmatprep.mubr.bf16.mxu0 %v7164_v26  ;;  %4366 = vmatprep.mubr.bf16.mxu1 %v7164_v26  ;;  %v7257_v26 = vld [vmem:[%s10312_s0 + $0xa8] ss:$72 sps:$4 sm:$0xff]  }
  0xcf   :  { %3864 = vmatpush1.bf16.msra.mxu0 %v7081_v27  ;;  %4341 = vmatpush1.bf16.msra.mxu1 %v7084_v28  ;;  %v7180_v27 = vld [vmem:[%s10311_s1 + $0x848] ss:$16 sps:$4 sm:$0xff]   ;;  %v7185_v28 = vld [vmem:[%s10311_s1 + $0x864] ss:$16 sps:$4 sm:$0xff]  }
  0xd0   :  { %3865 = vmatprep.subr.bf16.mxu0 %v7089_v29  ;;  %4342 = vmatprep.subr.bf16.mxu1 %v7092_v30  ;;  %v7188_v29 = vld [vmem:[%s10311_s1 + $0x86c] ss:$16 sps:$4 sm:$0xff]  }
  0xd1   :  { %v7266_v30 = vld [vmem:[%s10312_s0 + $0x24] ss:$72 sps:$4 sm:$0xff]  }
  0xd3   :  { %3866 = vmatpush1.bf16.msra.mxu0 %v7087_v31  ;;  %4343 = vmatpush1.bf16.msra.mxu1 %v7090_v32  ;;  %v7183_v31 = vld [vmem:[%s10311_s1 + $0x860] ss:$16 sps:$4 sm:$0xff]   ;;  %v7186_v32 = vld [vmem:[%s10311_s1 + $0x868] ss:$16 sps:$4 sm:$0xff]  }
  0xd4   :  { %3867 = vmatprep.subr.bf16.mxu0 %v7095_v33  ;;  %4344 = vmatprep.subr.bf16.mxu1 %v7098_v34  ;;  %v7191_v33 = vld [vmem:[%s10311_s1 + $0x884] ss:$16 sps:$4 sm:$0xff]   ;;  %v7194_v34 = vld [vmem:[%s10311_s1 + $0x88c] ss:$16 sps:$4 sm:$0xff]  }
  0xd7   :  { %3868 = vmatpush1.bf16.msra.mxu0 %v7093_v35  ;;  %4345 = vmatpush1.bf16.msra.mxu1 %v7096_v36  ;;  %v7189_v35 = vld [vmem:[%s10311_s1 + $0x880] ss:$16 sps:$4 sm:$0xff]   ;;  %v7192_v36 = vld [vmem:[%s10311_s1 + $0x888] ss:$16 sps:$4 sm:$0xff]  }
  0xd8   :  { %3869 = vmatprep.subr.bf16.mxu0 %v7101_v37  ;;  %4346 = vmatprep.subr.bf16.mxu1 %v7104_v38  ;;  %v7197_v37 = vld [vmem:[%s10311_s1 + $0x8a4] ss:$16 sps:$4 sm:$0xff]   ;;  %v7200_v38 = vld [vmem:[%s10311_s1 + $0x8ac] ss:$16 sps:$4 sm:$0xff]  }
  0xdb   :  { %3870 = vmatpush1.bf16.msra.mxu0 %v7099_v39  ;;  %4347 = vmatpush1.bf16.msra.mxu1 %v7102_v40  ;;  %v7195_v39 = vld [vmem:[%s10311_s1 + $0x8a0] ss:$16 sps:$4 sm:$0xff]   ;;  %v7198_v40 = vld [vmem:[%s10311_s1 + $0x8a8] ss:$16 sps:$4 sm:$0xff]  }
  0xdc   :  { %3871 = vmatprep.subr.bf16.mxu0 %v7107_v41  ;;  %4348 = vmatprep.subr.bf16.mxu1 %v7110_v42  ;;  %v7203_v41 = vld [vmem:[%s10311_s1 + $0x8c4] ss:$16 sps:$4 sm:$0xff]   ;;  %v7206_v42 = vld [vmem:[%s10311_s1 + $0x8cc] ss:$16 sps:$4 sm:$0xff]  }
  0xdf   :  { %3872 = vmatpush1.bf16.msra.mxu0 %v7105_v43  ;;  %4349 = vmatpush1.bf16.msra.mxu1 %v7108_v44  ;;  %v7201_v43 = vld [vmem:[%s10311_s1 + $0x8c0] ss:$16 sps:$4 sm:$0xff]   ;;  %v7204_v44 = vld [vmem:[%s10311_s1 + $0x8c8] ss:$16 sps:$4 sm:$0xff]  }
  0xe0   :  { %3873 = vmatprep.subr.bf16.mxu0 %v7113_v45  ;;  %4350 = vmatprep.subr.bf16.mxu1 %v7116_v46  ;;  %v7209_v45 = vld [vmem:[%s10311_s1 + $0x8e4] ss:$16 sps:$4 sm:$0xff]   ;;  %v7212_v46 = vld [vmem:[%s10311_s1 + $0x8ec] ss:$16 sps:$4 sm:$0xff]  }
  0xe3   :  { %3874 = vmatpush1.bf16.msra.mxu0 %v7111_v47  ;;  %4351 = vmatpush1.bf16.msra.mxu1 %v7114_v48  ;;  %v7207_v47 = vld [vmem:[%s10311_s1 + $0x8e0] ss:$16 sps:$4 sm:$0xff]   ;;  %v7210_v48 = vld [vmem:[%s10311_s1 + $0x8e8] ss:$16 sps:$4 sm:$0xff]  }
  0xe4   :  { %3875 = vmatprep.subr.bf16.mxu0 %v7119_v49  ;;  %4352 = vmatprep.subr.bf16.mxu1 %v7122_v50  ;;  %v7215_v49 = vld [vmem:[%s10311_s1 + $0x904] ss:$16 sps:$4 sm:$0xff]   ;;  %v7218_v50 = vld [vmem:[%s10311_s1 + $0x90c] ss:$16 sps:$4 sm:$0xff]  }
  0xe7   :  { %3876 = vmatpush1.bf16.msra.mxu0 %v7117_v51  ;;  %4353 = vmatpush1.bf16.msra.mxu1 %v7120_v52  ;;  %v7213_v51 = vld [vmem:[%s10311_s1 + $0x900] ss:$16 sps:$4 sm:$0xff]   ;;  %v7216_v52 = vld [vmem:[%s10311_s1 + $0x908] ss:$16 sps:$4 sm:$0xff]  }
  0xe8   :  { %3877 = vmatprep.subr.bf16.mxu0 %v7125_v53  ;;  %4354 = vmatprep.subr.bf16.mxu1 %v7128_v54  ;;  %v7221_v53 = vld [vmem:[%s10311_s1 + $0x924] ss:$16 sps:$4 sm:$0xff]   ;;  %v7224_v54 = vld [vmem:[%s10311_s1 + $0x92c] ss:$16 sps:$4 sm:$0xff]  }
  0xeb   :  { %3878 = vmatpush1.bf16.msra.mxu0 %v7123_v55  ;;  %4355 = vmatpush1.bf16.msra.mxu1 %v7126_v56  ;;  %v7219_v55 = vld [vmem:[%s10311_s1 + $0x920] ss:$16 sps:$4 sm:$0xff]   ;;  %v7222_v56 = vld [vmem:[%s10311_s1 + $0x928] ss:$16 sps:$4 sm:$0xff]  }
  0xec   :  { %3879 = vmatprep.subr.bf16.mxu0 %v7131_v57  ;;  %4356 = vmatprep.subr.bf16.mxu1 %v7134_v58  ;;  %v7227_v57 = vld [vmem:[%s10311_s1 + $0x944] ss:$16 sps:$4 sm:$0xff]   ;;  %v7230_v58 = vld [vmem:[%s10311_s1 + $0x94c] ss:$16 sps:$4 sm:$0xff]  }
  0xef   :  { %3880 = vmatpush1.bf16.msra.mxu0 %v7129_v59  ;;  %4357 = vmatpush1.bf16.msra.mxu1 %v7132_v60  ;;  %v7225_v59 = vld [vmem:[%s10311_s1 + $0x940] ss:$16 sps:$4 sm:$0xff]   ;;  %v7228_v60 = vld [vmem:[%s10311_s1 + $0x948] ss:$16 sps:$4 sm:$0xff]  }
  0xf0   :  { %3881 = vmatprep.subr.bf16.mxu0 %v7137_v61  ;;  %4358 = vmatprep.subr.bf16.mxu1 %v7140_v62  ;;  %v7233_v61 = vld [vmem:[%s10311_s1 + $0x964] ss:$16 sps:$4 sm:$0xff]   ;;  %v7236_v62 = vld [vmem:[%s10311_s1 + $0x96c] ss:$16 sps:$4 sm:$0xff]  }
  0xf3   :  { %3882 = vmatpush1.bf16.msra.mxu0 %v7135_v63  ;;  %4359 = vmatpush1.bf16.msra.mxu1 %v7138_v0  ;;  %v7231_v63 = vld [vmem:[%s10311_s1 + $0x960] ss:$16 sps:$4 sm:$0xff]   ;;  %v7234_v0 = vld [vmem:[%s10311_s1 + $0x968] ss:$16 sps:$4 sm:$0xff]  }
  0xf4   :  { %3883 = vmatprep.subr.bf16.mxu0 %v7143_v1  ;;  %4360 = vmatprep.subr.bf16.mxu1 %v7146_v2  ;;  %v7239_v1 = vld [vmem:[%s10311_s1 + $0x984] ss:$16 sps:$4 sm:$0xff]   ;;  %v7242_v2 = vld [vmem:[%s10311_s1 + $0x98c] ss:$16 sps:$4 sm:$0xff]  }
  0xf7   :  { %3884 = vmatpush1.bf16.msra.mxu0 %v7141_v3  ;;  %4361 = vmatpush1.bf16.msra.mxu1 %v7144_v4  ;;  %v7237_v3 = vld [vmem:[%s10311_s1 + $0x980] ss:$16 sps:$4 sm:$0xff]   ;;  %v7240_v4 = vld [vmem:[%s10311_s1 + $0x988] ss:$16 sps:$4 sm:$0xff]  }
  0xf8   :  { %3885 = vmatprep.subr.bf16.mxu0 %v7151_v5  ;;  %4362 = vmatprep.subr.bf16.mxu1 %v7154_v6  ;;  %v7245_v5 = vld [vmem:[%s10311_s1 + $0x9a4] ss:$16 sps:$4 sm:$0xff]   ;;  %v7248_v6 = vld [vmem:[%s10311_s1 + $0x9ac] ss:$16 sps:$4 sm:$0xff]  }
  0xfb   :  { %3886 = vmatpush1.bf16.msra.mxu0 %v7149_v7  ;;  %4363 = vmatpush1.bf16.msra.mxu1 %v7152_v8  ;;  %v7243_v7 = vld [vmem:[%s10311_s1 + $0x9a0] ss:$16 sps:$4 sm:$0xff]   ;;  %v7246_v8 = vld [vmem:[%s10311_s1 + $0x9a8] ss:$16 sps:$4 sm:$0xff]  }
  0xfc   :  { %3887 = vmatprep.subr.bf16.mxu0 %v7158_v9  ;;  %4364 = vmatprep.subr.bf16.mxu1 %v7161_v10  ;;  %v7253_v9 = vld [vmem:[%s10311_s1 + $0x9c4] ss:$16 sps:$4 sm:$0xff]   ;;  %v7256_v10 = vld [vmem:[%s10311_s1 + $0x9cc] ss:$16 sps:$4 sm:$0xff]  }
  0xff   :  { %3888 = vmatpush1.bf16.msra.mxu0 %v7156_v11  ;;  %4365 = vmatpush1.bf16.msra.mxu1 %v7159_v12  ;;  %v7251_v11 = vld [vmem:[%s10311_s1 + $0x9c0] ss:$16 sps:$4 sm:$0xff]   ;;  %v7254_v12 = vld [vmem:[%s10311_s1 + $0x9c8] ss:$16 sps:$4 sm:$0xff]  }
 0x100   :  { %3910 = vmatprep.subr.bf16.mxu0 %v7167_v13  ;;  %4387 = vmatprep.subr.bf16.mxu1 %v7170_v14  ;;  %v7260_v13 = vld [vmem:[%s10311_s1 + $0x9e4] ss:$16 sps:$4 sm:$0xff]   ;;  %v7263_v14 = vld [vmem:[%s10311_s1 + $0x9ec] ss:$16 sps:$4 sm:$0xff]  }
 0x102   :  { %3890 = vmatmul.mubr.bf16.vlgmr.msra.gmra.mrb[0].mxu0 %v7162_v15  ;;  %4367 = vmatmul.mubr.bf16.vlgmr.msra.gmra.mrb[0].mxu1 %v7162_v15  ;;  %v7258_v15 = vld [vmem:[%s10311_s1 + $0x9e0] ss:$16 sps:$4 sm:$0xff]  }
 0x103   :  { %3911 = vmatpush1.bf16.msra.mxu0 %v7165_v16  ;;  %4388 = vmatpush1.bf16.msra.mxu1 %v7168_v17  ;;  %v7261_v16 = vld [vmem:[%s10311_s1 + $0x9e8] ss:$16 sps:$4 sm:$0xff]  }
 0x104   :  { %3912 = vmatprep.subr.bf16.mxu0 %v7173_v18  ;;  %4389 = vmatprep.subr.bf16.mxu1 %v7176_v19  ;;  %v7264_v17 = vld [vmem:[%s10312_s0 + $0x20] ss:$72 sps:$4 sm:$0xff]   ;;  %v7269_v18 = vld [vmem:[%s10311_s1 + $0xa04] ss:$16 sps:$4 sm:$0xff]   ;;  %v7272_v19 = vld [vmem:[%s10311_s1 + $0xa0c] ss:$16 sps:$4 sm:$0xff]  }
 0x105   :  { %3899 = vmatprep.mubr.bf16.mxu0 %v7249_v20  ;;  %4376 = vmatprep.mubr.bf16.mxu1 %v7249_v20  ;;  %v7267_v20 = vld [vmem:[%s10311_s1 + $0xa00] ss:$16 sps:$4 sm:$0xff]  }
 0x107   :  { %3913 = vmatpush1.bf16.msra.mxu0 %v7171_v21  ;;  %4390 = vmatpush1.bf16.msra.mxu1 %v7174_v22  ;;  %v7270_v21 = vld [vmem:[%s10311_s1 + $0xa08] ss:$16 sps:$4 sm:$0xff]   ;;  %v7275_v22 = vld [vmem:[%s10311_s1 + $0xa24] ss:$16 sps:$4 sm:$0xff]  }
 0x108   :  { %3914 = vmatprep.subr.bf16.mxu0 %v7179_v23  ;;  %4391 = vmatprep.subr.bf16.mxu1 %v7182_v24  ;;  %v7278_v23 = vld [vmem:[%s10311_s1 + $0xa2c] ss:$16 sps:$4 sm:$0xff]  }
 0x109   :  { %v7351_v24 = vld [vmem:[%s10312_s0 + $0xb4] ss:$72 sps:$4 sm:$0xff]  }
 0x10a   :  { %3900 = vmatmul.mubr.bf16.gmra.mrb[4].mxu0 %v7257_v26  ;;  %4377 = vmatmul.mubr.bf16.gmra.mrb[4].mxu1 %v7257_v26  ;;  %v7276_v26 = vld [vmem:[%s10311_s1 + $0xa28] ss:$16 sps:$4 sm:$0xff]  }
 0x10b   :  { %3915 = vmatpush1.bf16.msra.mxu0 %v7177_v25  ;;  %4392 = vmatpush1.bf16.msra.mxu1 %v7180_v27  ;;  %v7273_v25 = vld [vmem:[%s10311_s1 + $0xa20] ss:$16 sps:$4 sm:$0xff]   ;;  %v7281_v27 = vld [vmem:[%s10311_s1 + $0xa44] ss:$16 sps:$4 sm:$0xff]  }
 0x10c   :  { %3916 = vmatprep.subr.bf16.mxu0 %v7185_v28  ;;  %4393 = vmatprep.subr.bf16.mxu1 %v7188_v29  ;;  %v7284_v28 = vld [vmem:[%s10311_s1 + $0xa4c] ss:$16 sps:$4 sm:$0xff]   ;;  %v7359_v29 = vld [vmem:[%s10312_s0 + $0xb0] ss:$72 sps:$4 sm:$0xff]  }
 0x10d   :  { %3942 = vmatprep.mubr.bf16.mxu0 %v7266_v30  ;;  %4419 = vmatprep.mubr.bf16.mxu1 %v7266_v30  ;;  %v7279_v30 = vld [vmem:[%s10311_s1 + $0xa40] ss:$16 sps:$4 sm:$0xff]  }
 0x10f   :  { %3917 = vmatpush1.bf16.msra.mxu0 %v7183_v31  ;;  %4394 = vmatpush1.bf16.msra.mxu1 %v7186_v32  ;;  %v7282_v31 = vld [vmem:[%s10311_s1 + $0xa48] ss:$16 sps:$4 sm:$0xff]   ;;  %v7287_v32 = vld [vmem:[%s10311_s1 + $0xa64] ss:$16 sps:$4 sm:$0xff]  }
 0x110   :  { %3918 = vmatprep.subr.bf16.mxu0 %v7191_v33  ;;  %4395 = vmatprep.subr.bf16.mxu1 %v7194_v34  ;;  %v7290_v33 = vld [vmem:[%s10311_s1 + $0xa6c] ss:$16 sps:$4 sm:$0xff]  }
 0x111   :  { %v7368_v34 = vld [vmem:[%s10312_s0 + $0x2c] ss:$72 sps:$4 sm:$0xff]  }
 0x113   :  { %3919 = vmatpush1.bf16.msra.mxu0 %v7189_v35  ;;  %4396 = vmatpush1.bf16.msra.mxu1 %v7192_v36  ;;  %v7285_v35 = vld [vmem:[%s10311_s1 + $0xa60] ss:$16 sps:$4 sm:$0xff]   ;;  %v7288_v36 = vld [vmem:[%s10311_s1 + $0xa68] ss:$16 sps:$4 sm:$0xff]  }
 0x114   :  { %3920 = vmatprep.subr.bf16.mxu0 %v7197_v37  ;;  %4397 = vmatprep.subr.bf16.mxu1 %v7200_v38  ;;  %v7293_v37 = vld [vmem:[%s10311_s1 + $0xa84] ss:$16 sps:$4 sm:$0xff]   ;;  %v7296_v38 = vld [vmem:[%s10311_s1 + $0xa8c] ss:$16 sps:$4 sm:$0xff]  }
 0x117   :  { %3921 = vmatpush1.bf16.msra.mxu0 %v7195_v39  ;;  %4398 = vmatpush1.bf16.msra.mxu1 %v7198_v40  ;;  %v7291_v39 = vld [vmem:[%s10311_s1 + $0xa80] ss:$16 sps:$4 sm:$0xff]   ;;  %v7294_v40 = vld [vmem:[%s10311_s1 + $0xa88] ss:$16 sps:$4 sm:$0xff]  }
 0x118   :  { %3922 = vmatprep.subr.bf16.mxu0 %v7203_v41  ;;  %4399 = vmatprep.subr.bf16.mxu1 %v7206_v42  ;;  %v7299_v41 = vld [vmem:[%s10311_s1 + $0xaa4] ss:$16 sps:$4 sm:$0xff]   ;;  %v7302_v42 = vld [vmem:[%s10311_s1 + $0xaac] ss:$16 sps:$4 sm:$0xff]  }
 0x11b   :  { %3923 = vmatpush1.bf16.msra.mxu0 %v7201_v43  ;;  %4400 = vmatpush1.bf16.msra.mxu1 %v7204_v44  ;;  %v7297_v43 = vld [vmem:[%s10311_s1 + $0xaa0] ss:$16 sps:$4 sm:$0xff]   ;;  %v7300_v44 = vld [vmem:[%s10311_s1 + $0xaa8] ss:$16 sps:$4 sm:$0xff]  }
 0x11c   :  { %3924 = vmatprep.subr.bf16.mxu0 %v7209_v45  ;;  %4401 = vmatprep.subr.bf16.mxu1 %v7212_v46  ;;  %v7305_v45 = vld [vmem:[%s10311_s1 + $0xac4] ss:$16 sps:$4 sm:$0xff]   ;;  %v7308_v46 = vld [vmem:[%s10311_s1 + $0xacc] ss:$16 sps:$4 sm:$0xff]  }
 0x11f   :  { %3925 = vmatpush1.bf16.msra.mxu0 %v7207_v47  ;;  %4402 = vmatpush1.bf16.msra.mxu1 %v7210_v48  ;;  %v7303_v47 = vld [vmem:[%s10311_s1 + $0xac0] ss:$16 sps:$4 sm:$0xff]   ;;  %v7306_v48 = vld [vmem:[%s10311_s1 + $0xac8] ss:$16 sps:$4 sm:$0xff]  }
 0x120   :  { %3926 = vmatprep.subr.bf16.mxu0 %v7215_v49  ;;  %4403 = vmatprep.subr.bf16.mxu1 %v7218_v50  ;;  %v7311_v49 = vld [vmem:[%s10311_s1 + $0xae4] ss:$16 sps:$4 sm:$0xff]   ;;  %v7314_v50 = vld [vmem:[%s10311_s1 + $0xaec] ss:$16 sps:$4 sm:$0xff]  }
 0x123   :  { %3927 = vmatpush1.bf16.msra.mxu0 %v7213_v51  ;;  %4404 = vmatpush1.bf16.msra.mxu1 %v7216_v52  ;;  %v7309_v51 = vld [vmem:[%s10311_s1 + $0xae0] ss:$16 sps:$4 sm:$0xff]   ;;  %v7312_v52 = vld [vmem:[%s10311_s1 + $0xae8] ss:$16 sps:$4 sm:$0xff]  }
 0x124   :  { %3928 = vmatprep.subr.bf16.mxu0 %v7221_v53  ;;  %4405 = vmatprep.subr.bf16.mxu1 %v7224_v54  ;;  %v7317_v53 = vld [vmem:[%s10311_s1 + $0xb04] ss:$16 sps:$4 sm:$0xff]   ;;  %v7320_v54 = vld [vmem:[%s10311_s1 + $0xb0c] ss:$16 sps:$4 sm:$0xff]  }
 0x127   :  { %3929 = vmatpush1.bf16.msra.mxu0 %v7219_v55  ;;  %4406 = vmatpush1.bf16.msra.mxu1 %v7222_v56  ;;  %v7315_v55 = vld [vmem:[%s10311_s1 + $0xb00] ss:$16 sps:$4 sm:$0xff]   ;;  %v7318_v56 = vld [vmem:[%s10311_s1 + $0xb08] ss:$16 sps:$4 sm:$0xff]  }
 0x128   :  { %3930 = vmatprep.subr.bf16.mxu0 %v7227_v57  ;;  %4407 = vmatprep.subr.bf16.mxu1 %v7230_v58  ;;  %v7323_v57 = vld [vmem:[%s10311_s1 + $0xb24] ss:$16 sps:$4 sm:$0xff]   ;;  %v7326_v58 = vld [vmem:[%s10311_s1 + $0xb2c] ss:$16 sps:$4 sm:$0xff]  }
 0x12b   :  { %3931 = vmatpush1.bf16.msra.mxu0 %v7225_v59  ;;  %4408 = vmatpush1.bf16.msra.mxu1 %v7228_v60  ;;  %v7321_v59 = vld [vmem:[%s10311_s1 + $0xb20] ss:$16 sps:$4 sm:$0xff]   ;;  %v7324_v60 = vld [vmem:[%s10311_s1 + $0xb28] ss:$16 sps:$4 sm:$0xff]  }
 0x12c   :  { %3932 = vmatprep.subr.bf16.mxu0 %v7233_v61  ;;  %4409 = vmatprep.subr.bf16.mxu1 %v7236_v62  ;;  %v7329_v61 = vld [vmem:[%s10311_s1 + $0xb44] ss:$16 sps:$4 sm:$0xff]   ;;  %v7332_v62 = vld [vmem:[%s10311_s1 + $0xb4c] ss:$16 sps:$4 sm:$0xff]  }
 0x12f   :  { %3933 = vmatpush1.bf16.msra.mxu0 %v7231_v63  ;;  %4410 = vmatpush1.bf16.msra.mxu1 %v7234_v0  ;;  %v7327_v63 = vld [vmem:[%s10311_s1 + $0xb40] ss:$16 sps:$4 sm:$0xff]   ;;  %v7330_v0 = vld [vmem:[%s10311_s1 + $0xb48] ss:$16 sps:$4 sm:$0xff]  }
 0x130   :  { %3934 = vmatprep.subr.bf16.mxu0 %v7239_v1  ;;  %4411 = vmatprep.subr.bf16.mxu1 %v7242_v2  ;;  %v7335_v1 = vld [vmem:[%s10311_s1 + $0xb64] ss:$16 sps:$4 sm:$0xff]   ;;  %v7338_v2 = vld [vmem:[%s10311_s1 + $0xb6c] ss:$16 sps:$4 sm:$0xff]  }
 0x133   :  { %3935 = vmatpush1.bf16.msra.mxu0 %v7237_v3  ;;  %4412 = vmatpush1.bf16.msra.mxu1 %v7240_v4  ;;  %v7333_v3 = vld [vmem:[%s10311_s1 + $0xb60] ss:$16 sps:$4 sm:$0xff]   ;;  %v7336_v4 = vld [vmem:[%s10311_s1 + $0xb68] ss:$16 sps:$4 sm:$0xff]  }
 0x134   :  { %3936 = vmatprep.subr.bf16.mxu0 %v7245_v5  ;;  %4413 = vmatprep.subr.bf16.mxu1 %v7248_v6  ;;  %v7341_v5 = vld [vmem:[%s10311_s1 + $0xb84] ss:$16 sps:$4 sm:$0xff]   ;;  %v7344_v6 = vld [vmem:[%s10311_s1 + $0xb8c] ss:$16 sps:$4 sm:$0xff]  }
 0x137   :  { %3937 = vmatpush1.bf16.msra.mxu0 %v7243_v7  ;;  %4414 = vmatpush1.bf16.msra.mxu1 %v7246_v8  ;;  %v7339_v7 = vld [vmem:[%s10311_s1 + $0xb80] ss:$16 sps:$4 sm:$0xff]   ;;  %v7342_v8 = vld [vmem:[%s10311_s1 + $0xb88] ss:$16 sps:$4 sm:$0xff]  }
 0x138   :  { %3938 = vmatprep.subr.bf16.mxu0 %v7253_v9  ;;  %4415 = vmatprep.subr.bf16.mxu1 %v7256_v10  ;;  %v7347_v9 = vld [vmem:[%s10311_s1 + $0xba4] ss:$16 sps:$4 sm:$0xff]   ;;  %v7350_v10 = vld [vmem:[%s10311_s1 + $0xbac] ss:$16 sps:$4 sm:$0xff]  }
 0x13b   :  { %3939 = vmatpush1.bf16.msra.mxu0 %v7251_v11  ;;  %4416 = vmatpush1.bf16.msra.mxu1 %v7254_v12  ;;  %v7345_v11 = vld [vmem:[%s10311_s1 + $0xba0] ss:$16 sps:$4 sm:$0xff]   ;;  %v7348_v12 = vld [vmem:[%s10311_s1 + $0xba8] ss:$16 sps:$4 sm:$0xff]  }
 0x13c   :  { %3940 = vmatprep.subr.bf16.mxu0 %v7260_v13  ;;  %4417 = vmatprep.subr.bf16.mxu1 %v7263_v14  ;;  %v7355_v13 = vld [vmem:[%s10311_s1 + $0xbc4] ss:$16 sps:$4 sm:$0xff]   ;;  %v7358_v14 = vld [vmem:[%s10311_s1 + $0xbcc] ss:$16 sps:$4 sm:$0xff]  }
 0x13f   :  { %3941 = vmatpush1.bf16.msra.mxu0 %v7258_v15  ;;  %4418 = vmatpush1.bf16.msra.mxu1 %v7261_v16  ;;  %v7353_v15 = vld [vmem:[%s10311_s1 + $0xbc0] ss:$16 sps:$4 sm:$0xff]   ;;  %v7356_v16 = vld [vmem:[%s10311_s1 + $0xbc8] ss:$16 sps:$4 sm:$0xff]  }
 0x140   :  { %3963 = vmatprep.subr.bf16.mxu0 %v7269_v18  ;;  %4440 = vmatprep.subr.bf16.mxu1 %v7272_v19  ;;  %v7365_v18 = vld [vmem:[%s10311_s1 + $0xbec] ss:$16 sps:$4 sm:$0xff]   ;;  %v7360_v19 = vld [vmem:[%s10311_s1 + $0xbe0] ss:$16 sps:$4 sm:$0xff]  }
 0x142   :  { %3943 = vmatmul.mubr.bf16.vlgmr.msra.gmra.mrb[0].mxu0 %v7264_v17  ;;  %4420 = vmatmul.mubr.bf16.vlgmr.msra.gmra.mrb[0].mxu1 %v7264_v17  ;;  %v7362_v17 = vld [vmem:[%s10311_s1 + $0xbe4] ss:$16 sps:$4 sm:$0xff]  }
 0x143   :  { %3964 = vmatpush1.bf16.msra.mxu0 %v7267_v20  ;;  %4441 = vmatpush1.bf16.msra.mxu1 %v7270_v21  ;;  %v7363_v20 = vld [vmem:[%s10311_s1 + $0xbe8] ss:$16 sps:$4 sm:$0xff]  }
 0x144   :  { %3965 = vmatprep.subr.bf16.mxu0 %v7275_v22  ;;  %4442 = vmatprep.subr.bf16.mxu1 %v7278_v23  ;;  %v7366_v21 = vld [vmem:[%s10312_s0 + $0x28] ss:$72 sps:$4 sm:$0xff]   ;;  %v7371_v22 = vld [vmem:[%s10311_s1 + $0xc04] ss:$16 sps:$4 sm:$0xff]   ;;  %v7374_v23 = vld [vmem:[%s10311_s1 + $0xc0c] ss:$16 sps:$4 sm:$0xff]  }
 0x145   :  { %3952 = vmatprep.mubr.bf16.mxu0 %v7351_v24  ;;  %4429 = vmatprep.mubr.bf16.mxu1 %v7351_v24  ;;  %v7369_v24 = vld [vmem:[%s10311_s1 + $0xc00] ss:$16 sps:$4 sm:$0xff]  }
 0x147   :  { %3966 = vmatpush1.bf16.msra.mxu0 %v7273_v25  ;;  %4443 = vmatpush1.bf16.msra.mxu1 %v7276_v26  ;;  %v7372_v25 = vld [vmem:[%s10311_s1 + $0xc08] ss:$16 sps:$4 sm:$0xff]   ;;  %v7377_v26 = vld [vmem:[%s10311_s1 + $0xc24] ss:$16 sps:$4 sm:$0xff]  }
 0x148   :  { %3967 = vmatprep.subr.bf16.mxu0 %v7281_v27  ;;  %4444 = vmatprep.subr.bf16.mxu1 %v7284_v28  ;;  %v7380_v27 = vld [vmem:[%s10311_s1 + $0xc2c] ss:$16 sps:$4 sm:$0xff]  }
 0x149   :  { %v7453_v28 = vld [vmem:[%s10312_s0 + $0xbc] ss:$72 sps:$4 sm:$0xff]  }
 0x14a   :  { %3953 = vmatmul.mubr.bf16.gmra.mrb[4].mxu0 %v7359_v29  ;;  %4430 = vmatmul.mubr.bf16.gmra.mrb[4].mxu1 %v7359_v29  ;;  %v7375_v29 = vld [vmem:[%s10311_s1 + $0xc20] ss:$16 sps:$4 sm:$0xff]  }
 0x14b   :  { %3968 = vmatpush1.bf16.msra.mxu0 %v7279_v30  ;;  %4445 = vmatpush1.bf16.msra.mxu1 %v7282_v31  ;;  %v7378_v30 = vld [vmem:[%s10311_s1 + $0xc28] ss:$16 sps:$4 sm:$0xff]   ;;  %v7383_v31 = vld [vmem:[%s10311_s1 + $0xc44] ss:$16 sps:$4 sm:$0xff]  }
 0x14c   :  { %3969 = vmatprep.subr.bf16.mxu0 %v7287_v32  ;;  %4446 = vmatprep.subr.bf16.mxu1 %v7290_v33  ;;  %v7386_v32 = vld [vmem:[%s10311_s1 + $0xc4c] ss:$16 sps:$4 sm:$0xff]   ;;  %v7461_v33 = vld [vmem:[%s10312_s0 + $0xb8] ss:$72 sps:$4 sm:$0xff]  }
 0x14d   :  { %3995 = vmatprep.mubr.bf16.mxu0 %v7368_v34  ;;  %4472 = vmatprep.mubr.bf16.mxu1 %v7368_v34  ;;  %v7381_v34 = vld [vmem:[%s10311_s1 + $0xc40] ss:$16 sps:$4 sm:$0xff]  }
 0x14f   :  { %3970 = vmatpush1.bf16.msra.mxu0 %v7285_v35  ;;  %4447 = vmatpush1.bf16.msra.mxu1 %v7288_v36  ;;  %v7384_v35 = vld [vmem:[%s10311_s1 + $0xc48] ss:$16 sps:$4 sm:$0xff]   ;;  %v7389_v36 = vld [vmem:[%s10311_s1 + $0xc64] ss:$16 sps:$4 sm:$0xff]  }
 0x150   :  { %3971 = vmatprep.subr.bf16.mxu0 %v7293_v37  ;;  %4448 = vmatprep.subr.bf16.mxu1 %v7296_v38  ;;  %v7392_v37 = vld [vmem:[%s10311_s1 + $0xc6c] ss:$16 sps:$4 sm:$0xff]  }
 0x151   :  { %v7470_v38 = vld [vmem:[%s10312_s0 + $0x34] ss:$72 sps:$4 sm:$0xff]  }
 0x153   :  { %3972 = vmatpush1.bf16.msra.mxu0 %v7291_v39  ;;  %4449 = vmatpush1.bf16.msra.mxu1 %v7294_v40  ;;  %v7387_v39 = vld [vmem:[%s10311_s1 + $0xc60] ss:$16 sps:$4 sm:$0xff]   ;;  %v7390_v40 = vld [vmem:[%s10311_s1 + $0xc68] ss:$16 sps:$4 sm:$0xff]  }
 0x154   :  { %3973 = vmatprep.subr.bf16.mxu0 %v7299_v41  ;;  %4450 = vmatprep.subr.bf16.mxu1 %v7302_v42  ;;  %v7395_v41 = vld [vmem:[%s10311_s1 + $0xc84] ss:$16 sps:$4 sm:$0xff]   ;;  %v7398_v42 = vld [vmem:[%s10311_s1 + $0xc8c] ss:$16 sps:$4 sm:$0xff]  }
 0x157   :  { %3974 = vmatpush1.bf16.msra.mxu0 %v7297_v43  ;;  %4451 = vmatpush1.bf16.msra.mxu1 %v7300_v44  ;;  %v7393_v43 = vld [vmem:[%s10311_s1 + $0xc80] ss:$16 sps:$4 sm:$0xff]   ;;  %v7396_v44 = vld [vmem:[%s10311_s1 + $0xc88] ss:$16 sps:$4 sm:$0xff]  }
 0x158   :  { %3975 = vmatprep.subr.bf16.mxu0 %v7305_v45  ;;  %4452 = vmatprep.subr.bf16.mxu1 %v7308_v46  ;;  %v7401_v45 = vld [vmem:[%s10311_s1 + $0xca4] ss:$16 sps:$4 sm:$0xff]   ;;  %v7404_v46 = vld [vmem:[%s10311_s1 + $0xcac] ss:$16 sps:$4 sm:$0xff]  }
 0x15b   :  { %3976 = vmatpush1.bf16.msra.mxu0 %v7303_v47  ;;  %4453 = vmatpush1.bf16.msra.mxu1 %v7306_v48  ;;  %v7399_v47 = vld [vmem:[%s10311_s1 + $0xca0] ss:$16 sps:$4 sm:$0xff]   ;;  %v7402_v48 = vld [vmem:[%s10311_s1 + $0xca8] ss:$16 sps:$4 sm:$0xff]  }
 0x15c   :  { %3977 = vmatprep.subr.bf16.mxu0 %v7311_v49  ;;  %4454 = vmatprep.subr.bf16.mxu1 %v7314_v50  ;;  %v7407_v49 = vld [vmem:[%s10311_s1 + $0xcc4] ss:$16 sps:$4 sm:$0xff]   ;;  %v7410_v50 = vld [vmem:[%s10311_s1 + $0xccc] ss:$16 sps:$4 sm:$0xff]  }
 0x15f   :  { %3978 = vmatpush1.bf16.msra.mxu0 %v7309_v51  ;;  %4455 = vmatpush1.bf16.msra.mxu1 %v7312_v52  ;;  %v7405_v51 = vld [vmem:[%s10311_s1 + $0xcc0] ss:$16 sps:$4 sm:$0xff]   ;;  %v7408_v52 = vld [vmem:[%s10311_s1 + $0xcc8] ss:$16 sps:$4 sm:$0xff]  }
 0x160   :  { %3979 = vmatprep.subr.bf16.mxu0 %v7317_v53  ;;  %4456 = vmatprep.subr.bf16.mxu1 %v7320_v54  ;;  %v7413_v53 = vld [vmem:[%s10311_s1 + $0xce4] ss:$16 sps:$4 sm:$0xff]   ;;  %v7416_v54 = vld [vmem:[%s10311_s1 + $0xcec] ss:$16 sps:$4 sm:$0xff]  }
 0x163   :  { %3980 = vmatpush1.bf16.msra.mxu0 %v7315_v55  ;;  %4457 = vmatpush1.bf16.msra.mxu1 %v7318_v56  ;;  %v7411_v55 = vld [vmem:[%s10311_s1 + $0xce0] ss:$16 sps:$4 sm:$0xff]   ;;  %v7414_v56 = vld [vmem:[%s10311_s1 + $0xce8] ss:$16 sps:$4 sm:$0xff]  }
 0x164   :  { %3981 = vmatprep.subr.bf16.mxu0 %v7323_v57  ;;  %4458 = vmatprep.subr.bf16.mxu1 %v7326_v58  ;;  %v7419_v57 = vld [vmem:[%s10311_s1 + $0xd04] ss:$16 sps:$4 sm:$0xff]   ;;  %v7422_v58 = vld [vmem:[%s10311_s1 + $0xd0c] ss:$16 sps:$4 sm:$0xff]  }
 0x167   :  { %3982 = vmatpush1.bf16.msra.mxu0 %v7321_v59  ;;  %4459 = vmatpush1.bf16.msra.mxu1 %v7324_v60  ;;  %v7417_v59 = vld [vmem:[%s10311_s1 + $0xd00] ss:$16 sps:$4 sm:$0xff]   ;;  %v7420_v60 = vld [vmem:[%s10311_s1 + $0xd08] ss:$16 sps:$4 sm:$0xff]  }
 0x168   :  { %3983 = vmatprep.subr.bf16.mxu0 %v7329_v61  ;;  %4460 = vmatprep.subr.bf16.mxu1 %v7332_v62  ;;  %v7425_v61 = vld [vmem:[%s10311_s1 + $0xd24] ss:$16 sps:$4 sm:$0xff]   ;;  %v7428_v62 = vld [vmem:[%s10311_s1 + $0xd2c] ss:$16 sps:$4 sm:$0xff]  }
 0x16b   :  { %3984 = vmatpush1.bf16.msra.mxu0 %v7327_v63  ;;  %4461 = vmatpush1.bf16.msra.mxu1 %v7330_v0  ;;  %v7423_v63 = vld [vmem:[%s10311_s1 + $0xd20] ss:$16 sps:$4 sm:$0xff]   ;;  %v7426_v0 = vld [vmem:[%s10311_s1 + $0xd28] ss:$16 sps:$4 sm:$0xff]  }
 0x16c   :  { %3985 = vmatprep.subr.bf16.mxu0 %v7335_v1  ;;  %4462 = vmatprep.subr.bf16.mxu1 %v7338_v2  ;;  %v7431_v1 = vld [vmem:[%s10311_s1 + $0xd44] ss:$16 sps:$4 sm:$0xff]   ;;  %v7434_v2 = vld [vmem:[%s10311_s1 + $0xd4c] ss:$16 sps:$4 sm:$0xff]  }
 0x16f   :  { %3986 = vmatpush1.bf16.msra.mxu0 %v7333_v3  ;;  %4463 = vmatpush1.bf16.msra.mxu1 %v7336_v4  ;;  %v7429_v3 = vld [vmem:[%s10311_s1 + $0xd40] ss:$16 sps:$4 sm:$0xff]   ;;  %v7432_v4 = vld [vmem:[%s10311_s1 + $0xd48] ss:$16 sps:$4 sm:$0xff]  }
 0x170   :  { %3987 = vmatprep.subr.bf16.mxu0 %v7341_v5  ;;  %4464 = vmatprep.subr.bf16.mxu1 %v7344_v6  ;;  %v7437_v5 = vld [vmem:[%s10311_s1 + $0xd64] ss:$16 sps:$4 sm:$0xff]   ;;  %v7440_v6 = vld [vmem:[%s10311_s1 + $0xd6c] ss:$16 sps:$4 sm:$0xff]  }
 0x173   :  { %3988 = vmatpush1.bf16.msra.mxu0 %v7339_v7  ;;  %4465 = vmatpush1.bf16.msra.mxu1 %v7342_v8  ;;  %v7435_v7 = vld [vmem:[%s10311_s1 + $0xd60] ss:$16 sps:$4 sm:$0xff]   ;;  %v7438_v8 = vld [vmem:[%s10311_s1 + $0xd68] ss:$16 sps:$4 sm:$0xff]  }
 0x174   :  { %3989 = vmatprep.subr.bf16.mxu0 %v7347_v9  ;;  %4466 = vmatprep.subr.bf16.mxu1 %v7350_v10  ;;  %v7443_v9 = vld [vmem:[%s10311_s1 + $0xd84] ss:$16 sps:$4 sm:$0xff]   ;;  %v7446_v10 = vld [vmem:[%s10311_s1 + $0xd8c] ss:$16 sps:$4 sm:$0xff]  }
 0x177   :  { %3990 = vmatpush1.bf16.msra.mxu0 %v7345_v11  ;;  %4467 = vmatpush1.bf16.msra.mxu1 %v7348_v12  ;;  %v7441_v11 = vld [vmem:[%s10311_s1 + $0xd80] ss:$16 sps:$4 sm:$0xff]   ;;  %v7444_v12 = vld [vmem:[%s10311_s1 + $0xd88] ss:$16 sps:$4 sm:$0xff]  }
 0x178   :  { %3991 = vmatprep.subr.bf16.mxu0 %v7355_v13  ;;  %4468 = vmatprep.subr.bf16.mxu1 %v7358_v14  ;;  %v7449_v13 = vld [vmem:[%s10311_s1 + $0xda4] ss:$16 sps:$4 sm:$0xff]   ;;  %v7452_v14 = vld [vmem:[%s10311_s1 + $0xdac] ss:$16 sps:$4 sm:$0xff]  }
 0x17b   :  { %3992 = vmatpush1.bf16.msra.mxu0 %v7353_v15  ;;  %4469 = vmatpush1.bf16.msra.mxu1 %v7356_v16  ;;  %v7447_v15 = vld [vmem:[%s10311_s1 + $0xda0] ss:$16 sps:$4 sm:$0xff]   ;;  %v7450_v16 = vld [vmem:[%s10311_s1 + $0xda8] ss:$16 sps:$4 sm:$0xff]  }
 0x17c   :  { %3993 = vmatprep.subr.bf16.mxu0 %v7362_v17  ;;  %4470 = vmatprep.subr.bf16.mxu1 %v7365_v18  ;;  %v7457_v17 = vld [vmem:[%s10311_s1 + $0xdc4] ss:$16 sps:$4 sm:$0xff]   ;;  %v7460_v18 = vld [vmem:[%s10311_s1 + $0xdcc] ss:$16 sps:$4 sm:$0xff]  }
 0x17f   :  { %3994 = vmatpush1.bf16.msra.mxu0 %v7360_v19  ;;  %4471 = vmatpush1.bf16.msra.mxu1 %v7363_v20  ;;  %v7455_v19 = vld [vmem:[%s10311_s1 + $0xdc0] ss:$16 sps:$4 sm:$0xff]   ;;  %v7458_v20 = vld [vmem:[%s10311_s1 + $0xdc8] ss:$16 sps:$4 sm:$0xff]  }
 0x180   :  { %4016 = vmatprep.subr.bf16.mxu0 %v7371_v22  ;;  %4493 = vmatprep.subr.bf16.mxu1 %v7374_v23  ;;  %v7467_v22 = vld [vmem:[%s10311_s1 + $0xdec] ss:$16 sps:$4 sm:$0xff]   ;;  %v7462_v23 = vld [vmem:[%s10311_s1 + $0xde0] ss:$16 sps:$4 sm:$0xff]  }
 0x182   :  { %3996 = vmatmul.mubr.bf16.vlgmr.msra.gmra.mrb[0].mxu0 %v7366_v21  ;;  %4473 = vmatmul.mubr.bf16.vlgmr.msra.gmra.mrb[0].mxu1 %v7366_v21  ;;  %v7464_v21 = vld [vmem:[%s10311_s1 + $0xde4] ss:$16 sps:$4 sm:$0xff]  }
 0x183   :  { %4017 = vmatpush1.bf16.msra.mxu0 %v7369_v24  ;;  %4494 = vmatpush1.bf16.msra.mxu1 %v7372_v25  ;;  %v7465_v24 = vld [vmem:[%s10311_s1 + $0xde8] ss:$16 sps:$4 sm:$0xff]   ;;  %v7473_v25 = vld [vmem:[%s10311_s1 + $0xe04] ss:$16 sps:$4 sm:$0xff]  }
 0x184   :  { %4018 = vmatprep.subr.bf16.mxu0 %v7377_v26  ;;  %4495 = vmatprep.subr.bf16.mxu1 %v7380_v27  ;;  %v7476_v26 = vld [vmem:[%s10311_s1 + $0xe0c] ss:$16 sps:$4 sm:$0xff]   ;;  %v7468_v27 = vld [vmem:[%s10312_s0 + $0x30] ss:$72 sps:$4 sm:$0xff]  }
 0x185   :  { %4005 = vmatprep.mubr.bf16.mxu0 %v7453_v28  ;;  %4482 = vmatprep.mubr.bf16.mxu1 %v7453_v28  ;;  %v7471_v28 = vld [vmem:[%s10311_s1 + $0xe00] ss:$16 sps:$4 sm:$0xff]  }
 0x187   :  { %4019 = vmatpush1.bf16.msra.mxu0 %v7375_v29  ;;  %4496 = vmatpush1.bf16.msra.mxu1 %v7378_v30  ;;  %v7474_v29 = vld [vmem:[%s10311_s1 + $0xe08] ss:$16 sps:$4 sm:$0xff]   ;;  %v7479_v30 = vld [vmem:[%s10311_s1 + $0xe24] ss:$16 sps:$4 sm:$0xff]  }
 0x188   :  { %4020 = vmatprep.subr.bf16.mxu0 %v7383_v31  ;;  %4497 = vmatprep.subr.bf16.mxu1 %v7386_v32  ;;  %v7482_v31 = vld [vmem:[%s10311_s1 + $0xe2c] ss:$16 sps:$4 sm:$0xff]  }
 0x189   :  { %v7555_v32 = vld [vmem:[%s10312_s0 + $0xc4] ss:$72 sps:$4 sm:$0xff]  }
 0x18a   :  { %4006 = vmatmul.mubr.bf16.gmra.mrb[4].mxu0 %v7461_v33  ;;  %4483 = vmatmul.mubr.bf16.gmra.mrb[4].mxu1 %v7461_v33  ;;  %v7477_v33 = vld [vmem:[%s10311_s1 + $0xe20] ss:$16 sps:$4 sm:$0xff]  }
 0x18b   :  { %4021 = vmatpush1.bf16.msra.mxu0 %v7381_v34  ;;  %4498 = vmatpush1.bf16.msra.mxu1 %v7384_v35  ;;  %v7480_v34 = vld [vmem:[%s10311_s1 + $0xe28] ss:$16 sps:$4 sm:$0xff]   ;;  %v7485_v35 = vld [vmem:[%s10311_s1 + $0xe44] ss:$16 sps:$4 sm:$0xff]  }
 0x18c   :  { %4022 = vmatprep.subr.bf16.mxu0 %v7389_v36  ;;  %4499 = vmatprep.subr.bf16.mxu1 %v7392_v37  ;;  %v7488_v36 = vld [vmem:[%s10311_s1 + $0xe4c] ss:$16 sps:$4 sm:$0xff]   ;;  %v7563_v37 = vld [vmem:[%s10312_s0 + $0xc0] ss:$72 sps:$4 sm:$0xff]  }
 0x18d   :  { %4048 = vmatprep.mubr.bf16.mxu0 %v7470_v38  ;;  %4525 = vmatprep.mubr.bf16.mxu1 %v7470_v38  ;;  %v7483_v38 = vld [vmem:[%s10311_s1 + $0xe40] ss:$16 sps:$4 sm:$0xff]  }
 0x18f   :  { %4023 = vmatpush1.bf16.msra.mxu0 %v7387_v39  ;;  %4500 = vmatpush1.bf16.msra.mxu1 %v7390_v40  ;;  %v7486_v39 = vld [vmem:[%s10311_s1 + $0xe48] ss:$16 sps:$4 sm:$0xff]   ;;  %v7491_v40 = vld [vmem:[%s10311_s1 + $0xe64] ss:$16 sps:$4 sm:$0xff]  }
 0x190   :  { %4024 = vmatprep.subr.bf16.mxu0 %v7395_v41  ;;  %4501 = vmatprep.subr.bf16.mxu1 %v7398_v42  ;;  %v7494_v41 = vld [vmem:[%s10311_s1 + $0xe6c] ss:$16 sps:$4 sm:$0xff]  }
 0x191   :  { %v7572_v42 = vld [vmem:[%s10312_s0 + $0x3c] ss:$72 sps:$4 sm:$0xff]  }
 0x193   :  { %4025 = vmatpush1.bf16.msra.mxu0 %v7393_v43  ;;  %4502 = vmatpush1.bf16.msra.mxu1 %v7396_v44  ;;  %v7489_v43 = vld [vmem:[%s10311_s1 + $0xe60] ss:$16 sps:$4 sm:$0xff]   ;;  %v7492_v44 = vld [vmem:[%s10311_s1 + $0xe68] ss:$16 sps:$4 sm:$0xff]  }
 0x194   :  { %4026 = vmatprep.subr.bf16.mxu0 %v7401_v45  ;;  %4503 = vmatprep.subr.bf16.mxu1 %v7404_v46  ;;  %v7497_v45 = vld [vmem:[%s10311_s1 + $0xe84] ss:$16 sps:$4 sm:$0xff]   ;;  %v7500_v46 = vld [vmem:[%s10311_s1 + $0xe8c] ss:$16 sps:$4 sm:$0xff]  }
 0x197   :  { %4027 = vmatpush1.bf16.msra.mxu0 %v7399_v47  ;;  %4504 = vmatpush1.bf16.msra.mxu1 %v7402_v48  ;;  %v7495_v47 = vld [vmem:[%s10311_s1 + $0xe80] ss:$16 sps:$4 sm:$0xff]   ;;  %v7498_v48 = vld [vmem:[%s10311_s1 + $0xe88] ss:$16 sps:$4 sm:$0xff]  }
 0x198   :  { %4028 = vmatprep.subr.bf16.mxu0 %v7407_v49  ;;  %4505 = vmatprep.subr.bf16.mxu1 %v7410_v50  ;;  %v7503_v49 = vld [vmem:[%s10311_s1 + $0xea4] ss:$16 sps:$4 sm:$0xff]   ;;  %v7506_v50 = vld [vmem:[%s10311_s1 + $0xeac] ss:$16 sps:$4 sm:$0xff]  }
 0x19b   :  { %4029 = vmatpush1.bf16.msra.mxu0 %v7405_v51  ;;  %4506 = vmatpush1.bf16.msra.mxu1 %v7408_v52  ;;  %v7501_v51 = vld [vmem:[%s10311_s1 + $0xea0] ss:$16 sps:$4 sm:$0xff]   ;;  %v7504_v52 = vld [vmem:[%s10311_s1 + $0xea8] ss:$16 sps:$4 sm:$0xff]  }
 0x19c   :  { %4030 = vmatprep.subr.bf16.mxu0 %v7413_v53  ;;  %4507 = vmatprep.subr.bf16.mxu1 %v7416_v54  ;;  %v7509_v53 = vld [vmem:[%s10311_s1 + $0xec4] ss:$16 sps:$4 sm:$0xff]   ;;  %v7512_v54 = vld [vmem:[%s10311_s1 + $0xecc] ss:$16 sps:$4 sm:$0xff]  }
 0x19f   :  { %4031 = vmatpush1.bf16.msra.mxu0 %v7411_v55  ;;  %4508 = vmatpush1.bf16.msra.mxu1 %v7414_v56  ;;  %v7507_v55 = vld [vmem:[%s10311_s1 + $0xec0] ss:$16 sps:$4 sm:$0xff]   ;;  %v7510_v56 = vld [vmem:[%s10311_s1 + $0xec8] ss:$16 sps:$4 sm:$0xff]  }
 0x1a0   :  { %4032 = vmatprep.subr.bf16.mxu0 %v7419_v57  ;;  %4509 = vmatprep.subr.bf16.mxu1 %v7422_v58  ;;  %v7515_v57 = vld [vmem:[%s10311_s1 + $0xee4] ss:$16 sps:$4 sm:$0xff]   ;;  %v7518_v58 = vld [vmem:[%s10311_s1 + $0xeec] ss:$16 sps:$4 sm:$0xff]  }
 0x1a3   :  { %4033 = vmatpush1.bf16.msra.mxu0 %v7417_v59  ;;  %4510 = vmatpush1.bf16.msra.mxu1 %v7420_v60  ;;  %v7513_v59 = vld [vmem:[%s10311_s1 + $0xee0] ss:$16 sps:$4 sm:$0xff]   ;;  %v7516_v60 = vld [vmem:[%s10311_s1 + $0xee8] ss:$16 sps:$4 sm:$0xff]  }
 0x1a4   :  { %4034 = vmatprep.subr.bf16.mxu0 %v7425_v61  ;;  %4511 = vmatprep.subr.bf16.mxu1 %v7428_v62  ;;  %v7521_v61 = vld [vmem:[%s10311_s1 + $0xf04] ss:$16 sps:$4 sm:$0xff]   ;;  %v7524_v62 = vld [vmem:[%s10311_s1 + $0xf0c] ss:$16 sps:$4 sm:$0xff]  }
 0x1a7   :  { %4035 = vmatpush1.bf16.msra.mxu0 %v7423_v63  ;;  %4512 = vmatpush1.bf16.msra.mxu1 %v7426_v0  ;;  %v7519_v63 = vld [vmem:[%s10311_s1 + $0xf00] ss:$16 sps:$4 sm:$0xff]   ;;  %v7522_v0 = vld [vmem:[%s10311_s1 + $0xf08] ss:$16 sps:$4 sm:$0xff]  }
 0x1a8   :  { %4036 = vmatprep.subr.bf16.mxu0 %v7431_v1  ;;  %4513 = vmatprep.subr.bf16.mxu1 %v7434_v2  ;;  %v7527_v1 = vld [vmem:[%s10311_s1 + $0xf24] ss:$16 sps:$4 sm:$0xff]   ;;  %v7530_v2 = vld [vmem:[%s10311_s1 + $0xf2c] ss:$16 sps:$4 sm:$0xff]  }
 0x1ab   :  { %4037 = vmatpush1.bf16.msra.mxu0 %v7429_v3  ;;  %4514 = vmatpush1.bf16.msra.mxu1 %v7432_v4  ;;  %v7525_v3 = vld [vmem:[%s10311_s1 + $0xf20] ss:$16 sps:$4 sm:$0xff]   ;;  %v7528_v4 = vld [vmem:[%s10311_s1 + $0xf28] ss:$16 sps:$4 sm:$0xff]  }
 0x1ac   :  { %4038 = vmatprep.subr.bf16.mxu0 %v7437_v5  ;;  %4515 = vmatprep.subr.bf16.mxu1 %v7440_v6  ;;  %v7533_v5 = vld [vmem:[%s10311_s1 + $0xf44] ss:$16 sps:$4 sm:$0xff]   ;;  %v7536_v6 = vld [vmem:[%s10311_s1 + $0xf4c] ss:$16 sps:$4 sm:$0xff]  }
 0x1af   :  { %4039 = vmatpush1.bf16.msra.mxu0 %v7435_v7  ;;  %4516 = vmatpush1.bf16.msra.mxu1 %v7438_v8  ;;  %v7531_v7 = vld [vmem:[%s10311_s1 + $0xf40] ss:$16 sps:$4 sm:$0xff]   ;;  %v7534_v8 = vld [vmem:[%s10311_s1 + $0xf48] ss:$16 sps:$4 sm:$0xff]  }
 0x1b0   :  { %4040 = vmatprep.subr.bf16.mxu0 %v7443_v9  ;;  %4517 = vmatprep.subr.bf16.mxu1 %v7446_v10  ;;  %v7539_v9 = vld [vmem:[%s10311_s1 + $0xf64] ss:$16 sps:$4 sm:$0xff]   ;;  %v7542_v10 = vld [vmem:[%s10311_s1 + $0xf6c] ss:$16 sps:$4 sm:$0xff]  }
 0x1b3   :  { %4041 = vmatpush1.bf16.msra.mxu0 %v7441_v11  ;;  %4518 = vmatpush1.bf16.msra.mxu1 %v7444_v12  ;;  %v7537_v11 = vld [vmem:[%s10311_s1 + $0xf60] ss:$16 sps:$4 sm:$0xff]   ;;  %v7540_v12 = vld [vmem:[%s10311_s1 + $0xf68] ss:$16 sps:$4 sm:$0xff]  }
 0x1b4   :  { %4042 = vmatprep.subr.bf16.mxu0 %v7449_v13  ;;  %4519 = vmatprep.subr.bf16.mxu1 %v7452_v14  ;;  %v7545_v13 = vld [vmem:[%s10311_s1 + $0xf84] ss:$16 sps:$4 sm:$0xff]   ;;  %v7548_v14 = vld [vmem:[%s10311_s1 + $0xf8c] ss:$16 sps:$4 sm:$0xff]  }
 0x1b7   :  { %4043 = vmatpush1.bf16.msra.mxu0 %v7447_v15  ;;  %4520 = vmatpush1.bf16.msra.mxu1 %v7450_v16  ;;  %v7543_v15 = vld [vmem:[%s10311_s1 + $0xf80] ss:$16 sps:$4 sm:$0xff]   ;;  %v7546_v16 = vld [vmem:[%s10311_s1 + $0xf88] ss:$16 sps:$4 sm:$0xff]  }
 0x1b8   :  { %4044 = vmatprep.subr.bf16.mxu0 %v7457_v17  ;;  %4521 = vmatprep.subr.bf16.mxu1 %v7460_v18  ;;  %v7551_v17 = vld [vmem:[%s10311_s1 + $0xfa4] ss:$16 sps:$4 sm:$0xff]   ;;  %v7554_v18 = vld [vmem:[%s10311_s1 + $0xfac] ss:$16 sps:$4 sm:$0xff]  }
 0x1bb   :  { %4045 = vmatpush1.bf16.msra.mxu0 %v7455_v19  ;;  %4522 = vmatpush1.bf16.msra.mxu1 %v7458_v20  ;;  %v7549_v19 = vld [vmem:[%s10311_s1 + $0xfa0] ss:$16 sps:$4 sm:$0xff]   ;;  %v7552_v20 = vld [vmem:[%s10311_s1 + $0xfa8] ss:$16 sps:$4 sm:$0xff]  }
 0x1bc   :  { %4046 = vmatprep.subr.bf16.mxu0 %v7464_v21  ;;  %4523 = vmatprep.subr.bf16.mxu1 %v7467_v22  ;;  %v7559_v21 = vld [vmem:[%s10311_s1 + $0xfc4] ss:$16 sps:$4 sm:$0xff]   ;;  %v7562_v22 = vld [vmem:[%s10311_s1 + $0xfcc] ss:$16 sps:$4 sm:$0xff]  }
 0x1bf   :  { %4047 = vmatpush1.bf16.msra.mxu0 %v7462_v23  ;;  %4524 = vmatpush1.bf16.msra.mxu1 %v7465_v24  ;;  %v7557_v23 = vld [vmem:[%s10311_s1 + $0xfc0] ss:$16 sps:$4 sm:$0xff]   ;;  %v7560_v24 = vld [vmem:[%s10311_s1 + $0xfc8] ss:$16 sps:$4 sm:$0xff]  }
 0x1c0   :  { %4069 = vmatprep.subr.bf16.mxu0 %v7473_v25  ;;  %4546 = vmatprep.subr.bf16.mxu1 %v7476_v26  ;;  %v7566_v25 = vld [vmem:[%s10311_s1 + $0xfe4] ss:$16 sps:$4 sm:$0xff]   ;;  %v7569_v26 = vld [vmem:[%s10311_s1 + $0xfec] ss:$16 sps:$4 sm:$0xff]  }
 0x1c2   :  { %4049 = vmatmul.mubr.bf16.vlgmr.msra.gmra.mrb[0].mxu0 %v7468_v27  ;;  %4526 = vmatmul.mubr.bf16.vlgmr.msra.gmra.mrb[0].mxu1 %v7468_v27  ;;  %v7564_v27 = vld [vmem:[%s10311_s1 + $0xfe0] ss:$16 sps:$4 sm:$0xff]  }
 0x1c3   :  { %4070 = vmatpush1.bf16.msra.mxu0 %v7471_v28  ;;  %4547 = vmatpush1.bf16.msra.mxu1 %v7474_v29  ;;  %v7567_v28 = vld [vmem:[%s10311_s1 + $0xfe8] ss:$16 sps:$4 sm:$0xff]   ;;  %v7575_v29 = vld [vmem:[%s10311_s1 + $0x1004] ss:$16 sps:$4 sm:$0xff]  }
 0x1c4   :  { %4071 = vmatprep.subr.bf16.mxu0 %v7479_v30  ;;  %4548 = vmatprep.subr.bf16.mxu1 %v7482_v31  ;;  %v7578_v30 = vld [vmem:[%s10311_s1 + $0x100c] ss:$16 sps:$4 sm:$0xff]   ;;  %v7570_v31 = vld [vmem:[%s10312_s0 + $0x38] ss:$72 sps:$4 sm:$0xff]  }
 0x1c5   :  { %4058 = vmatprep.mubr.bf16.mxu0 %v7555_v32  ;;  %4535 = vmatprep.mubr.bf16.mxu1 %v7555_v32  ;;  %v7573_v32 = vld [vmem:[%s10311_s1 + $0x1000] ss:$16 sps:$4 sm:$0xff]  }
 0x1c7   :  { %4072 = vmatpush1.bf16.msra.mxu0 %v7477_v33  ;;  %4549 = vmatpush1.bf16.msra.mxu1 %v7480_v34  ;;  %v7576_v33 = vld [vmem:[%s10311_s1 + $0x1008] ss:$16 sps:$4 sm:$0xff]   ;;  %v7581_v34 = vld [vmem:[%s10311_s1 + $0x1024] ss:$16 sps:$4 sm:$0xff]  }
 0x1c8   :  { %4073 = vmatprep.subr.bf16.mxu0 %v7485_v35  ;;  %4550 = vmatprep.subr.bf16.mxu1 %v7488_v36  ;;  %v7584_v35 = vld [vmem:[%s10311_s1 + $0x102c] ss:$16 sps:$4 sm:$0xff]  }
 0x1c9   :  { %v7657_v36 = vld [vmem:[%s10312_s0 + $0xcc] ss:$72 sps:$4 sm:$0xff]  }
 0x1ca   :  { %4059 = vmatmul.mubr.bf16.gmra.mrb[4].mxu0 %v7563_v37  ;;  %4536 = vmatmul.mubr.bf16.gmra.mrb[4].mxu1 %v7563_v37  ;;  %v7579_v37 = vld [vmem:[%s10311_s1 + $0x1020] ss:$16 sps:$4 sm:$0xff]  }
 0x1cb   :  { %4074 = vmatpush1.bf16.msra.mxu0 %v7483_v38  ;;  %4551 = vmatpush1.bf16.msra.mxu1 %v7486_v39  ;;  %v7582_v38 = vld [vmem:[%s10311_s1 + $0x1028] ss:$16 sps:$4 sm:$0xff]   ;;  %v7587_v39 = vld [vmem:[%s10311_s1 + $0x1044] ss:$16 sps:$4 sm:$0xff]  }
 0x1cc   :  { %4075 = vmatprep.subr.bf16.mxu0 %v7491_v40  ;;  %4552 = vmatprep.subr.bf16.mxu1 %v7494_v41  ;;  %v7590_v40 = vld [vmem:[%s10311_s1 + $0x104c] ss:$16 sps:$4 sm:$0xff]   ;;  %v7659_v41 = vld [vmem:[%s10312_s0 + $0xc8] ss:$72 sps:$4 sm:$0xff]  }
 0x1cd   :  { %4101 = vmatprep.mubr.bf16.mxu0 %v7572_v42  ;;  %4578 = vmatprep.mubr.bf16.mxu1 %v7572_v42  ;;  %v7585_v42 = vld [vmem:[%s10311_s1 + $0x1040] ss:$16 sps:$4 sm:$0xff]  }
 0x1cf   :  { %4076 = vmatpush1.bf16.msra.mxu0 %v7489_v43  ;;  %4553 = vmatpush1.bf16.msra.mxu1 %v7492_v44  ;;  %v7588_v43 = vld [vmem:[%s10311_s1 + $0x1048] ss:$16 sps:$4 sm:$0xff]   ;;  %v7593_v44 = vld [vmem:[%s10311_s1 + $0x1064] ss:$16 sps:$4 sm:$0xff]  }
 0x1d0   :  { %4077 = vmatprep.subr.bf16.mxu0 %v7497_v45  ;;  %4554 = vmatprep.subr.bf16.mxu1 %v7500_v46  ;;  %v7596_v45 = vld [vmem:[%s10311_s1 + $0x106c] ss:$16 sps:$4 sm:$0xff]  }
 0x1d1   :  { %v7674_v46 = vld [vmem:[%s10312_s0 + $0x44] ss:$72 sps:$4 sm:$0xff]  }
 0x1d3   :  { %4078 = vmatpush1.bf16.msra.mxu0 %v7495_v47  ;;  %4555 = vmatpush1.bf16.msra.mxu1 %v7498_v48  ;;  %v7591_v47 = vld [vmem:[%s10311_s1 + $0x1060] ss:$16 sps:$4 sm:$0xff]   ;;  %v7594_v48 = vld [vmem:[%s10311_s1 + $0x1068] ss:$16 sps:$4 sm:$0xff]  }
 0x1d4   :  { %4079 = vmatprep.subr.bf16.mxu0 %v7503_v49  ;;  %4556 = vmatprep.subr.bf16.mxu1 %v7506_v50  ;;  %v7599_v49 = vld [vmem:[%s10311_s1 + $0x1084] ss:$16 sps:$4 sm:$0xff]   ;;  %v7602_v50 = vld [vmem:[%s10311_s1 + $0x108c] ss:$16 sps:$4 sm:$0xff]  }
 0x1d7   :  { %4080 = vmatpush1.bf16.msra.mxu0 %v7501_v51  ;;  %4557 = vmatpush1.bf16.msra.mxu1 %v7504_v52  ;;  %v7597_v51 = vld [vmem:[%s10311_s1 + $0x1080] ss:$16 sps:$4 sm:$0xff]   ;;  %v7600_v52 = vld [vmem:[%s10311_s1 + $0x1088] ss:$16 sps:$4 sm:$0xff]  }
 0x1d8   :  { %4081 = vmatprep.subr.bf16.mxu0 %v7509_v53  ;;  %4558 = vmatprep.subr.bf16.mxu1 %v7512_v54  ;;  %v7605_v53 = vld [vmem:[%s10311_s1 + $0x10a4] ss:$16 sps:$4 sm:$0xff]   ;;  %v7608_v54 = vld [vmem:[%s10311_s1 + $0x10ac] ss:$16 sps:$4 sm:$0xff]  }
 0x1db   :  { %4082 = vmatpush1.bf16.msra.mxu0 %v7507_v55  ;;  %4559 = vmatpush1.bf16.msra.mxu1 %v7510_v56  ;;  %v7603_v55 = vld [vmem:[%s10311_s1 + $0x10a0] ss:$16 sps:$4 sm:$0xff]   ;;  %v7606_v56 = vld [vmem:[%s10311_s1 + $0x10a8] ss:$16 sps:$4 sm:$0xff]  }
 0x1dc   :  { %4083 = vmatprep.subr.bf16.mxu0 %v7515_v57  ;;  %4560 = vmatprep.subr.bf16.mxu1 %v7518_v58  ;;  %v7611_v57 = vld [vmem:[%s10311_s1 + $0x10c4] ss:$16 sps:$4 sm:$0xff]   ;;  %v7614_v58 = vld [vmem:[%s10311_s1 + $0x10cc] ss:$16 sps:$4 sm:$0xff]  }
 0x1df   :  { %4084 = vmatpush1.bf16.msra.mxu0 %v7513_v59  ;;  %4561 = vmatpush1.bf16.msra.mxu1 %v7516_v60  ;;  %v7609_v59 = vld [vmem:[%s10311_s1 + $0x10c0] ss:$16 sps:$4 sm:$0xff]   ;;  %v7612_v60 = vld [vmem:[%s10311_s1 + $0x10c8] ss:$16 sps:$4 sm:$0xff]  }
 0x1e0   :  { %4085 = vmatprep.subr.bf16.mxu0 %v7521_v61  ;;  %4562 = vmatprep.subr.bf16.mxu1 %v7524_v62  ;;  %v7617_v61 = vld [vmem:[%s10311_s1 + $0x10e4] ss:$16 sps:$4 sm:$0xff]   ;;  %v7620_v62 = vld [vmem:[%s10311_s1 + $0x10ec] ss:$16 sps:$4 sm:$0xff]  }
 0x1e3   :  { %4086 = vmatpush1.bf16.msra.mxu0 %v7519_v63  ;;  %4563 = vmatpush1.bf16.msra.mxu1 %v7522_v0  ;;  %v7615_v63 = vld [vmem:[%s10311_s1 + $0x10e0] ss:$16 sps:$4 sm:$0xff]   ;;  %v7618_v0 = vld [vmem:[%s10311_s1 + $0x10e8] ss:$16 sps:$4 sm:$0xff]  }
 0x1e4   :  { %4087 = vmatprep.subr.bf16.mxu0 %v7527_v1  ;;  %4564 = vmatprep.subr.bf16.mxu1 %v7530_v2  ;;  %v7623_v1 = vld [vmem:[%s10311_s1 + $0x1104] ss:$16 sps:$4 sm:$0xff]   ;;  %v7626_v2 = vld [vmem:[%s10311_s1 + $0x110c] ss:$16 sps:$4 sm:$0xff]  }
 0x1e7   :  { %4088 = vmatpush1.bf16.msra.mxu0 %v7525_v3  ;;  %4565 = vmatpush1.bf16.msra.mxu1 %v7528_v4  ;;  %v7621_v3 = vld [vmem:[%s10311_s1 + $0x1100] ss:$16 sps:$4 sm:$0xff]   ;;  %v7624_v4 = vld [vmem:[%s10311_s1 + $0x1108] ss:$16 sps:$4 sm:$0xff]  }
 0x1e8   :  { %4089 = vmatprep.subr.bf16.mxu0 %v7533_v5  ;;  %4566 = vmatprep.subr.bf16.mxu1 %v7536_v6  ;;  %v7629_v5 = vld [vmem:[%s10311_s1 + $0x1124] ss:$16 sps:$4 sm:$0xff]   ;;  %v7632_v6 = vld [vmem:[%s10311_s1 + $0x112c] ss:$16 sps:$4 sm:$0xff]  }
 0x1eb   :  { %4090 = vmatpush1.bf16.msra.mxu0 %v7531_v7  ;;  %4567 = vmatpush1.bf16.msra.mxu1 %v7534_v8  ;;  %v7627_v7 = vld [vmem:[%s10311_s1 + $0x1120] ss:$16 sps:$4 sm:$0xff]   ;;  %v7630_v8 = vld [vmem:[%s10311_s1 + $0x1128] ss:$16 sps:$4 sm:$0xff]  }
 0x1ec   :  { %4091 = vmatprep.subr.bf16.mxu0 %v7539_v9  ;;  %4568 = vmatprep.subr.bf16.mxu1 %v7542_v10  ;;  %v7635_v9 = vld [vmem:[%s10311_s1 + $0x1144] ss:$16 sps:$4 sm:$0xff]   ;;  %v7638_v10 = vld [vmem:[%s10311_s1 + $0x114c] ss:$16 sps:$4 sm:$0xff]  }
 0x1ef   :  { %4092 = vmatpush1.bf16.msra.mxu0 %v7537_v11  ;;  %4569 = vmatpush1.bf16.msra.mxu1 %v7540_v12  ;;  %v7633_v11 = vld [vmem:[%s10311_s1 + $0x1140] ss:$16 sps:$4 sm:$0xff]   ;;  %v7636_v12 = vld [vmem:[%s10311_s1 + $0x1148] ss:$16 sps:$4 sm:$0xff]  }
 0x1f0   :  { %4093 = vmatprep.subr.bf16.mxu0 %v7545_v13  ;;  %4570 = vmatprep.subr.bf16.mxu1 %v7548_v14  ;;  %v7641_v13 = vld [vmem:[%s10311_s1 + $0x1164] ss:$16 sps:$4 sm:$0xff]   ;;  %v7644_v14 = vld [vmem:[%s10311_s1 + $0x116c] ss:$16 sps:$4 sm:$0xff]  }
 0x1f3   :  { %4094 = vmatpush1.bf16.msra.mxu0 %v7543_v15  ;;  %4571 = vmatpush1.bf16.msra.mxu1 %v7546_v16  ;;  %v7639_v15 = vld [vmem:[%s10311_s1 + $0x1160] ss:$16 sps:$4 sm:$0xff]   ;;  %v7642_v16 = vld [vmem:[%s10311_s1 + $0x1168] ss:$16 sps:$4 sm:$0xff]  }
 0x1f4   :  { %4095 = vmatprep.subr.bf16.mxu0 %v7551_v17  ;;  %4572 = vmatprep.subr.bf16.mxu1 %v7554_v18  ;;  %v7647_v17 = vld [vmem:[%s10311_s1 + $0x1184] ss:$16 sps:$4 sm:$0xff]   ;;  %v7650_v18 = vld [vmem:[%s10311_s1 + $0x118c] ss:$16 sps:$4 sm:$0xff]  }
 0x1f7   :  { %4096 = vmatpush1.bf16.msra.mxu0 %v7549_v19  ;;  %4573 = vmatpush1.bf16.msra.mxu1 %v7552_v20  ;;  %v7645_v19 = vld [vmem:[%s10311_s1 + $0x1180] ss:$16 sps:$4 sm:$0xff]   ;;  %v7648_v20 = vld [vmem:[%s10311_s1 + $0x1188] ss:$16 sps:$4 sm:$0xff]  }
 0x1f8   :  { %4097 = vmatprep.subr.bf16.mxu0 %v7559_v21  ;;  %4574 = vmatprep.subr.bf16.mxu1 %v7562_v22  ;;  %v7653_v21 = vld [vmem:[%s10311_s1 + $0x11a4] ss:$16 sps:$4 sm:$0xff]   ;;  %v7656_v22 = vld [vmem:[%s10311_s1 + $0x11ac] ss:$16 sps:$4 sm:$0xff]  }
 0x1fb   :  { %4098 = vmatpush1.bf16.msra.mxu0 %v7557_v23  ;;  %4575 = vmatpush1.bf16.msra.mxu1 %v7560_v24  ;;  %v7651_v23 = vld [vmem:[%s10311_s1 + $0x11a0] ss:$16 sps:$4 sm:$0xff]   ;;  %v7654_v24 = vld [vmem:[%s10311_s1 + $0x11a8] ss:$16 sps:$4 sm:$0xff]  }
 0x1fc   :  { %4099 = vmatprep.subr.bf16.mxu0 %v7566_v25  ;;  %4576 = vmatprep.subr.bf16.mxu1 %v7569_v26  ;;  %v7662_v25 = vld [vmem:[%s10311_s1 + $0x11c4] ss:$16 sps:$4 sm:$0xff]   ;;  %v7665_v26 = vld [vmem:[%s10311_s1 + $0x11cc] ss:$16 sps:$4 sm:$0xff]  }
 0x1ff   :  { %4100 = vmatpush1.bf16.msra.mxu0 %v7564_v27  ;;  %4577 = vmatpush1.bf16.msra.mxu1 %v7567_v28  ;;  %v7660_v27 = vld [vmem:[%s10311_s1 + $0x11c0] ss:$16 sps:$4 sm:$0xff]   ;;  %v7663_v28 = vld [vmem:[%s10311_s1 + $0x11c8] ss:$16 sps:$4 sm:$0xff]  }
 0x200   :  { %4122 = vmatprep.subr.bf16.mxu0 %v7575_v29  ;;  %4599 = vmatprep.subr.bf16.mxu1 %v7578_v30  ;;  %v7668_v29 = vld [vmem:[%s10311_s1 + $0x11e4] ss:$16 sps:$4 sm:$0xff]   ;;  %v7671_v30 = vld [vmem:[%s10311_s1 + $0x11ec] ss:$16 sps:$4 sm:$0xff]  }
 0x202   :  { %4102 = vmatmul.mubr.bf16.vlgmr.msra.gmra.mrb[0].mxu0 %v7570_v31  ;;  %4579 = vmatmul.mubr.bf16.vlgmr.msra.gmra.mrb[0].mxu1 %v7570_v31  ;;  %v7666_v31 = vld [vmem:[%s10311_s1 + $0x11e0] ss:$16 sps:$4 sm:$0xff]  }
 0x203   :  { %4123 = vmatpush1.bf16.msra.mxu0 %v7573_v32  ;;  %4600 = vmatpush1.bf16.msra.mxu1 %v7576_v33  ;;  %v7669_v32 = vld [vmem:[%s10311_s1 + $0x11e8] ss:$16 sps:$4 sm:$0xff]   ;;  %v7680_v33 = vld [vmem:[%s10313_s4 + $0x4] ss:$16 sps:$4 sm:$0xff]  }
 0x204   :  { %4124 = vmatprep.subr.bf16.mxu0 %v7581_v34  ;;  %4601 = vmatprep.subr.bf16.mxu1 %v7584_v35  ;;  %v7683_v34 = vld [vmem:[%s10313_s4 + $0xc] ss:$16 sps:$4 sm:$0xff]   ;;  %v7672_v35 = vld [vmem:[%s10312_s0 + $0x40] ss:$72 sps:$4 sm:$0xff]  }
 0x205   :  { %4111 = vmatprep.mubr.bf16.mxu0 %v7657_v36  ;;  %4588 = vmatprep.mubr.bf16.mxu1 %v7657_v36  ;;  %v7675_v36 = vld [vmem:[%s10312_s0 + $0xd4] ss:$72 sps:$4 sm:$0xff]  }
 0x207   :  { %4125 = vmatpush1.bf16.msra.mxu0 %v7579_v37  ;;  %4602 = vmatpush1.bf16.msra.mxu1 %v7582_v38  ;;  %v7678_v37 = vld [vmem:[%s10313_s4] ss:$16 sps:$4 sm:$0xff]   ;;  %v7681_v38 = vld [vmem:[%s10313_s4 + $0x8] ss:$16 sps:$4 sm:$0xff]  }
 0x208   :  { %4126 = vmatprep.subr.bf16.mxu0 %v7587_v39  ;;  %4603 = vmatprep.subr.bf16.mxu1 %v7590_v40  ;;  %v7686_v39 = vld [vmem:[%s10313_s4 + $0x24] ss:$16 sps:$4 sm:$0xff]   ;;  %v7689_v40 = vld [vmem:[%s10313_s4 + $0x2c] ss:$16 sps:$4 sm:$0xff]  }
 0x20a   :  { %4112 = vmatmul.mubr.bf16.gmra.mrb[4].mxu0 %v7659_v41  ;;  %4589 = vmatmul.mubr.bf16.gmra.mrb[4].mxu1 %v7659_v41  ;;  %v7684_v41 = vld [vmem:[%s10313_s4 + $0x20] ss:$16 sps:$4 sm:$0xff]  }
 0x20b   :  { %4127 = vmatpush1.bf16.msra.mxu0 %v7585_v42  ;;  %4604 = vmatpush1.bf16.msra.mxu1 %v7588_v43  ;;  %v7687_v42 = vld [vmem:[%s10313_s4 + $0x28] ss:$16 sps:$4 sm:$0xff]   ;;  %v7692_v43 = vld [vmem:[%s10313_s4 + $0x44] ss:$16 sps:$4 sm:$0xff]  }
 0x20c   :  { %4128 = vmatprep.subr.bf16.mxu0 %v7593_v44  ;;  %4605 = vmatprep.subr.bf16.mxu1 %v7596_v45  ;;  %v7695_v44 = vld [vmem:[%s10313_s4 + $0x4c] ss:$16 sps:$4 sm:$0xff]   ;;  %v7677_v45 = vld [vmem:[%s10312_s0 + $0xd0] ss:$72 sps:$4 sm:$0xff]  }
 0x20d   :  { %4154 = vmatprep.mubr.bf16.mxu0 %v7674_v46  ;;  %4631 = vmatprep.mubr.bf16.mxu1 %v7674_v46  ;;  %v7690_v46 = vld [vmem:[%s10313_s4 + $0x40] ss:$16 sps:$4 sm:$0xff]  }
 0x20f   :  { %4129 = vmatpush1.bf16.msra.mxu0 %v7591_v47  ;;  %4606 = vmatpush1.bf16.msra.mxu1 %v7594_v48  ;;  %v7693_v47 = vld [vmem:[%s10313_s4 + $0x48] ss:$16 sps:$4 sm:$0xff]   ;;  %v7698_v48 = vld [vmem:[%s10313_s4 + $0x64] ss:$16 sps:$4 sm:$0xff]  }
 0x210   :  { %4130 = vmatprep.subr.bf16.mxu0 %v7599_v49  ;;  %4607 = vmatprep.subr.bf16.mxu1 %v7602_v50  ;;  %v7701_v49 = vld [vmem:[%s10313_s4 + $0x6c] ss:$16 sps:$4 sm:$0xff]   ;;  %v7696_v50 = vld [vmem:[%s10313_s4 + $0x60] ss:$16 sps:$4 sm:$0xff]  }
 0x213   :  { %4131 = vmatpush1.bf16.msra.mxu0 %v7597_v51  ;;  %4608 = vmatpush1.bf16.msra.mxu1 %v7600_v52  ;;  %v7699_v51 = vld [vmem:[%s10313_s4 + $0x68] ss:$16 sps:$4 sm:$0xff]   ;;  %v7704_v52 = vld [vmem:[%s10313_s4 + $0x84] ss:$16 sps:$4 sm:$0xff]  }
 0x214   :  { %4132 = vmatprep.subr.bf16.mxu0 %v7605_v53  ;;  %4609 = vmatprep.subr.bf16.mxu1 %v7608_v54  ;;  %v7707_v53 = vld [vmem:[%s10313_s4 + $0x8c] ss:$16 sps:$4 sm:$0xff]   ;;  %v7702_v54 = vld [vmem:[%s10313_s4 + $0x80] ss:$16 sps:$4 sm:$0xff]  }
 0x217   :  { %4133 = vmatpush1.bf16.msra.mxu0 %v7603_v55  ;;  %4610 = vmatpush1.bf16.msra.mxu1 %v7606_v56  ;;  %v7705_v55 = vld [vmem:[%s10313_s4 + $0x88] ss:$16 sps:$4 sm:$0xff]   ;;  %v7710_v56 = vld [vmem:[%s10313_s4 + $0xa4] ss:$16 sps:$4 sm:$0xff]  }
 0x218   :  { %4134 = vmatprep.subr.bf16.mxu0 %v7611_v57  ;;  %4611 = vmatprep.subr.bf16.mxu1 %v7614_v58  ;;  %v7713_v57 = vld [vmem:[%s10313_s4 + $0xac] ss:$16 sps:$4 sm:$0xff]   ;;  %v7708_v58 = vld [vmem:[%s10313_s4 + $0xa0] ss:$16 sps:$4 sm:$0xff]  }
 0x21b   :  { %4135 = vmatpush1.bf16.msra.mxu0 %v7609_v59  ;;  %4612 = vmatpush1.bf16.msra.mxu1 %v7612_v60  ;;  %v7711_v59 = vld [vmem:[%s10313_s4 + $0xa8] ss:$16 sps:$4 sm:$0xff]   ;;  %v7716_v60 = vld [vmem:[%s10313_s4 + $0xc4] ss:$16 sps:$4 sm:$0xff]  }
 0x21c   :  { %4136 = vmatprep.subr.bf16.mxu0 %v7617_v61  ;;  %4613 = vmatprep.subr.bf16.mxu1 %v7620_v62  ;;  %v7719_v61 = vld [vmem:[%s10313_s4 + $0xcc] ss:$16 sps:$4 sm:$0xff]   ;;  %v7714_v62 = vld [vmem:[%s10313_s4 + $0xc0] ss:$16 sps:$4 sm:$0xff]  }
 0x21f   :  { %4137 = vmatpush1.bf16.msra.mxu0 %v7615_v63  ;;  %4614 = vmatpush1.bf16.msra.mxu1 %v7618_v0  ;;  %v7717_v63 = vld [vmem:[%s10313_s4 + $0xc8] ss:$16 sps:$4 sm:$0xff]   ;;  %v7722_v0 = vld [vmem:[%s10313_s4 + $0xe4] ss:$16 sps:$4 sm:$0xff]  }
 0x220   :  { %4138 = vmatprep.subr.bf16.mxu0 %v7623_v1  ;;  %4615 = vmatprep.subr.bf16.mxu1 %v7626_v2  ;;  %v7725_v1 = vld [vmem:[%s10313_s4 + $0xec] ss:$16 sps:$4 sm:$0xff]   ;;  %v7720_v2 = vld [vmem:[%s10313_s4 + $0xe0] ss:$16 sps:$4 sm:$0xff]  }
 0x223   :  { %4139 = vmatpush1.bf16.msra.mxu0 %v7621_v3  ;;  %4616 = vmatpush1.bf16.msra.mxu1 %v7624_v4  ;;  %v7723_v3 = vld [vmem:[%s10313_s4 + $0xe8] ss:$16 sps:$4 sm:$0xff]   ;;  %v7728_v4 = vld [vmem:[%s10313_s4 + $0x104] ss:$16 sps:$4 sm:$0xff]  }
 0x224   :  { %4140 = vmatprep.subr.bf16.mxu0 %v7629_v5  ;;  %4617 = vmatprep.subr.bf16.mxu1 %v7632_v6  ;;  %v7731_v5 = vld [vmem:[%s10313_s4 + $0x10c] ss:$16 sps:$4 sm:$0xff]   ;;  %v7726_v6 = vld [vmem:[%s10313_s4 + $0x100] ss:$16 sps:$4 sm:$0xff]  }
 0x227   :  { %4141 = vmatpush1.bf16.msra.mxu0 %v7627_v7  ;;  %4618 = vmatpush1.bf16.msra.mxu1 %v7630_v8  ;;  %v7729_v7 = vld [vmem:[%s10313_s4 + $0x108] ss:$16 sps:$4 sm:$0xff]   ;;  %v7734_v8 = vld [vmem:[%s10313_s4 + $0x124] ss:$16 sps:$4 sm:$0xff]  }
 0x228   :  { %4142 = vmatprep.subr.bf16.mxu0 %v7635_v9  ;;  %4619 = vmatprep.subr.bf16.mxu1 %v7638_v10  ;;  %v7737_v9 = vld [vmem:[%s10313_s4 + $0x12c] ss:$16 sps:$4 sm:$0xff]   ;;  %v7732_v10 = vld [vmem:[%s10313_s4 + $0x120] ss:$16 sps:$4 sm:$0xff]  }
 0x22b   :  { %4143 = vmatpush1.bf16.msra.mxu0 %v7633_v11  ;;  %4620 = vmatpush1.bf16.msra.mxu1 %v7636_v12  ;;  %v7735_v11 = vld [vmem:[%s10313_s4 + $0x128] ss:$16 sps:$4 sm:$0xff]   ;;  %v7740_v12 = vld [vmem:[%s10313_s4 + $0x144] ss:$16 sps:$4 sm:$0xff]  }
 0x22c   :  { %4144 = vmatprep.subr.bf16.mxu0 %v7641_v13  ;;  %4621 = vmatprep.subr.bf16.mxu1 %v7644_v14  ;;  %v7743_v13 = vld [vmem:[%s10313_s4 + $0x14c] ss:$16 sps:$4 sm:$0xff]   ;;  %v7738_v14 = vld [vmem:[%s10313_s4 + $0x140] ss:$16 sps:$4 sm:$0xff]  }
 0x22f   :  { %4145 = vmatpush1.bf16.msra.mxu0 %v7639_v15  ;;  %4622 = vmatpush1.bf16.msra.mxu1 %v7642_v16  ;;  %v7741_v15 = vld [vmem:[%s10313_s4 + $0x148] ss:$16 sps:$4 sm:$0xff]   ;;  %v7746_v16 = vld [vmem:[%s10313_s4 + $0x164] ss:$16 sps:$4 sm:$0xff]  }
 0x230   :  { %4146 = vmatprep.subr.bf16.mxu0 %v7647_v17  ;;  %4623 = vmatprep.subr.bf16.mxu1 %v7650_v18  ;;  %v7749_v17 = vld [vmem:[%s10313_s4 + $0x16c] ss:$16 sps:$4 sm:$0xff]   ;;  %v7744_v18 = vld [vmem:[%s10313_s4 + $0x160] ss:$16 sps:$4 sm:$0xff]  }
 0x233   :  { %4147 = vmatpush1.bf16.msra.mxu0 %v7645_v19  ;;  %4624 = vmatpush1.bf16.msra.mxu1 %v7648_v20  ;;  %v7747_v19 = vld [vmem:[%s10313_s4 + $0x168] ss:$16 sps:$4 sm:$0xff]   ;;  %v7752_v20 = vld [vmem:[%s10313_s4 + $0x184] ss:$16 sps:$4 sm:$0xff]  }
 0x234   :  { %4148 = vmatprep.subr.bf16.mxu0 %v7653_v21  ;;  %4625 = vmatprep.subr.bf16.mxu1 %v7656_v22  ;;  %v7755_v21 = vld [vmem:[%s10313_s4 + $0x18c] ss:$16 sps:$4 sm:$0xff]   ;;  %v7750_v22 = vld [vmem:[%s10313_s4 + $0x180] ss:$16 sps:$4 sm:$0xff]  }
 0x237   :  { %4149 = vmatpush1.bf16.msra.mxu0 %v7651_v23  ;;  %4626 = vmatpush1.bf16.msra.mxu1 %v7654_v24  ;;  %v7753_v23 = vld [vmem:[%s10313_s4 + $0x188] ss:$16 sps:$4 sm:$0xff]   ;;  %v7758_v24 = vld [vmem:[%s10313_s4 + $0x1a4] ss:$16 sps:$4 sm:$0xff]  }
 0x238   :  { %4150 = vmatprep.subr.bf16.mxu0 %v7662_v25  ;;  %4627 = vmatprep.subr.bf16.mxu1 %v7665_v26  ;;  %v7761_v25 = vld [vmem:[%s10313_s4 + $0x1ac] ss:$16 sps:$4 sm:$0xff]   ;;  %v7756_v26 = vld [vmem:[%s10313_s4 + $0x1a0] ss:$16 sps:$4 sm:$0xff]  }
 0x23b   :  { %4151 = vmatpush1.bf16.msra.mxu0 %v7660_v27  ;;  %4628 = vmatpush1.bf16.msra.mxu1 %v7663_v28  ;;  %v7759_v27 = vld [vmem:[%s10313_s4 + $0x1a8] ss:$16 sps:$4 sm:$0xff]   ;;  %v7764_v28 = vld [vmem:[%s10313_s4 + $0x1c4] ss:$16 sps:$4 sm:$0xff]  }
 0x23c   :  { %4152 = vmatprep.subr.bf16.mxu0 %v7668_v29  ;;  %4629 = vmatprep.subr.bf16.mxu1 %v7671_v30  ;;  %v7767_v29 = vld [vmem:[%s10313_s4 + $0x1cc] ss:$16 sps:$4 sm:$0xff]   ;;  %v7762_v30 = vld [vmem:[%s10313_s4 + $0x1c0] ss:$16 sps:$4 sm:$0xff]  }
 0x23f   :  { %4153 = vmatpush1.bf16.msra.mxu0 %v7666_v31  ;;  %4630 = vmatpush1.bf16.msra.mxu1 %v7669_v32  ;;  %v7765_v31 = vld [vmem:[%s10313_s4 + $0x1c8] ss:$16 sps:$4 sm:$0xff]   ;;  %v7770_v32 = vld [vmem:[%s10313_s4 + $0x1e4] ss:$16 sps:$4 sm:$0xff]  }
 0x240   :  { %5520 = vmatprep.subr.bf16.mxu0 %v7680_v33  ;;  %5626 = vmatprep.subr.bf16.mxu1 %v7683_v34  ;;  %v7773_v33 = vld [vmem:[%s10313_s4 + $0x1ec] ss:$16 sps:$4 sm:$0xff]   ;;  %v7768_v34 = vld [vmem:[%s10313_s4 + $0x1e0] ss:$16 sps:$4 sm:$0xff]  }
 0x242   :  { %4155 = vmatmul.mubr.bf16.vlgmr.msra.gmra.mrb[0].mxu0 %v7672_v35  ;;  %4632 = vmatmul.mubr.bf16.vlgmr.msra.gmra.mrb[0].mxu1 %v7672_v35  ;;  %v7771_v35 = vld [vmem:[%s10313_s4 + $0x1e8] ss:$16 sps:$4 sm:$0xff]  }
 0x243   :  { %4164 = vmatprep.mubr.bf16.mxu0 %v7675_v36  ;;  %4641 = vmatprep.mubr.bf16.mxu1 %v7675_v36  ;;  %v7776_v36 = vld [vmem:[%s10313_s4 + $0x204] ss:$16 sps:$4 sm:$0xff]  }
 0x244   :  { %5521 = vmatpush1.bf16.msra.mxu0 %v7678_v37  ;;  %5627 = vmatpush1.bf16.msra.mxu1 %v7681_v38  ;;  %v7779_v37 = vld [vmem:[%s10313_s4 + $0x20c] ss:$16 sps:$4 sm:$0xff]   ;;  %v4654_v38 = vlaneseq }
 0x245   :  { %5522 = vmatprep.subr.bf16.mxu0 %v7686_v39  ;;  %5628 = vmatprep.subr.bf16.mxu1 %v7689_v40 }
 0x246   :  { %v4655_v39 = vshrl.u32 %v4654_v38, 7 }
 0x248   :  { %5523 = vmatpush1.bf16.msra.mxu0 %v7684_v41  ;;  %5629 = vmatpush1.bf16.msra.mxu1 %v7687_v42  ;;  %v9944_v40 = vsub.s32 0, %v4655_v39  ;;  %v9946_v41 = vsub.s32 2, %v4655_v39  ;;  %v4652_v42 = vld [vmem:[%s10314_s2] sm:$0xf] }
 0x249   :  { %5524 = vmatprep.subr.bf16.mxu0 %v7692_v43  ;;  %5630 = vmatprep.subr.bf16.mxu1 %v7695_v44  ;;  %v9951_v43 = vsub.s32 1, %v4655_v39  ;;  %v9953_v44 = vsub.s32 3, %v4655_v39 }
 0x24a   :  { %4165 = vmatmul.mubr.bf16.gmra.mrb[4].mxu0 %v7677_v45  ;;  %4642 = vmatmul.mubr.bf16.gmra.mrb[4].mxu1 %v7677_v45  ;;  %v4690_v45 = vld [vmem:[%s10315_s3] sm:$0xf] }
 0x24c   :  { %5525 = vmatpush1.bf16.msra.mxu0 %v7690_v46  ;;  %5631 = vmatpush1.bf16.msra.mxu1 %v7693_v47  ;;  %v4657_v46 = vrot.slane %v4652_v42, %v9944_v40  ;;  %v4665_v47 = vrot.slane %v4652_v42, %v9946_v41 }
 0x24d   :  { %5526 = vmatprep.subr.bf16.mxu0 %v7698_v48  ;;  %5632 = vmatprep.subr.bf16.mxu1 %v7701_v49  ;;  %v9961_v48 = vrot.slane %v4652_v42, %v9951_v43  ;;  %v9964_v49 = vrot.slane %v4652_v42, %v9953_v44 }
 0x250   :  { %5527 = vmatpush1.bf16.msra.mxu0 %v7696_v50  ;;  %5633 = vmatpush1.bf16.msra.mxu1 %v7699_v51  ;;  %v9967_v50 = vrot.slane %v4690_v45, %v9944_v40  ;;  %v9970_v51 = vrot.slane %v4690_v45, %v9946_v41 }
 0x251   :  { %5528 = vmatprep.subr.bf16.mxu0 %v7704_v52  ;;  %5634 = vmatprep.subr.bf16.mxu1 %v7707_v53 }
 0x254   :  { %5529 = vmatpush1.bf16.msra.mxu0 %v7702_v54  ;;  %5635 = vmatpush1.bf16.msra.mxu1 %v7705_v55  ;;  %v9973_v54 = vrot.slane %v4690_v45, %v9951_v43  ;;  %v9976_v55 = vrot.slane %v4690_v45, %v9953_v44 }
 0x255   :  { %5530 = vmatprep.subr.bf16.mxu0 %v7710_v56  ;;  %5636 = vmatprep.subr.bf16.mxu1 %v7713_v57 }
 0x258   :  { %5531 = vmatpush1.bf16.msra.mxu0 %v7708_v58  ;;  %5637 = vmatpush1.bf16.msra.mxu1 %v7711_v59 }
 0x259   :  { %5532 = vmatprep.subr.bf16.mxu0 %v7716_v60  ;;  %5638 = vmatprep.subr.bf16.mxu1 %v7719_v61 }
 0x25c   :  { %5533 = vmatpush1.bf16.msra.mxu0 %v7714_v62  ;;  %5639 = vmatpush1.bf16.msra.mxu1 %v7717_v63 }
 0x25d   :  { %5534 = vmatprep.subr.bf16.mxu0 %v7722_v0  ;;  %5640 = vmatprep.subr.bf16.mxu1 %v7725_v1 }
 0x260   :  { %5535 = vmatpush1.bf16.msra.mxu0 %v7720_v2  ;;  %5641 = vmatpush1.bf16.msra.mxu1 %v7723_v3 }
 0x261   :  { %5536 = vmatprep.subr.bf16.mxu0 %v7728_v4  ;;  %5642 = vmatprep.subr.bf16.mxu1 %v7731_v5 }
 0x264   :  { %5537 = vmatpush1.bf16.msra.mxu0 %v7726_v6  ;;  %5643 = vmatpush1.bf16.msra.mxu1 %v7729_v7 }
 0x265   :  { %5538 = vmatprep.subr.bf16.mxu0 %v7734_v8  ;;  %5644 = vmatprep.subr.bf16.mxu1 %v7737_v9 }
 0x268   :  { %5539 = vmatpush1.bf16.msra.mxu0 %v7732_v10  ;;  %5645 = vmatpush1.bf16.msra.mxu1 %v7735_v11 }
 0x269   :  { %5540 = vmatprep.subr.bf16.mxu0 %v7740_v12  ;;  %5646 = vmatprep.subr.bf16.mxu1 %v7743_v13 }
 0x26c   :  { %5541 = vmatpush1.bf16.msra.mxu0 %v7738_v14  ;;  %5647 = vmatpush1.bf16.msra.mxu1 %v7741_v15 }
 0x26d   :  { %5542 = vmatprep.subr.bf16.mxu0 %v7746_v16  ;;  %5648 = vmatprep.subr.bf16.mxu1 %v7749_v17 }
 0x270   :  { %5543 = vmatpush1.bf16.msra.mxu0 %v7744_v18  ;;  %5649 = vmatpush1.bf16.msra.mxu1 %v7747_v19 }
 0x271   :  { %5544 = vmatprep.subr.bf16.mxu0 %v7752_v20  ;;  %5650 = vmatprep.subr.bf16.mxu1 %v7755_v21 }
 0x274   :  { %5545 = vmatpush1.bf16.msra.mxu0 %v7750_v22  ;;  %5651 = vmatpush1.bf16.msra.mxu1 %v7753_v23 }
 0x275   :  { %5546 = vmatprep.subr.bf16.mxu0 %v7758_v24  ;;  %5652 = vmatprep.subr.bf16.mxu1 %v7761_v25 }
 0x278   :  { %5547 = vmatpush1.bf16.msra.mxu0 %v7756_v26  ;;  %5653 = vmatpush1.bf16.msra.mxu1 %v7759_v27 }
 0x279   :  { %5548 = vmatprep.subr.bf16.mxu0 %v7764_v28  ;;  %5654 = vmatprep.subr.bf16.mxu1 %v7767_v29 }
 0x27c   :  { %5549 = vmatpush1.bf16.msra.mxu0 %v7762_v30  ;;  %5655 = vmatpush1.bf16.msra.mxu1 %v7765_v31 }
 0x27d   :  { %5550 = vmatprep.subr.bf16.mxu0 %v7770_v32  ;;  %5656 = vmatprep.subr.bf16.mxu1 %v7773_v33 }
 0x280   :  { %5551 = vmatpush1.bf16.msra.mxu0 %v7768_v34  ;;  %5657 = vmatpush1.bf16.msra.mxu1 %v7771_v35  ;;  %v7774_v35 = vld [vmem:[%s10313_s4 + $0x200] ss:$16 sps:$4 sm:$0xff]  }
 0x281   :  { %5573 = vmatprep.subr.bf16.mxu0 %v7776_v36  ;;  %5679 = vmatprep.subr.bf16.mxu1 %v7779_v37 }
 0x315   :  { %v4156_v52 = vpop.f32.mrb[0].mxu0  ;;  %v4633_v53 = vpop.f32.mrb[0].mxu1 }
 0x316   :  { %v4674_v56 = vmul.f32 %v4657_v46, %v4156_v52  ;;  %v4676_v57 = vmul.f32 %v4665_v47, %v4633_v53  ;;  %v4158_v58 = vpop.f32.mrb[1].mxu0  ;;  %v4635_v59 = vpop.f32.mrb[1].mxu1  ;;  %v7777_v53 = vld [vmem:[%s10313_s4 + $0x208] ss:$16 sps:$4 sm:$0xff]  }
 0x317   :  { %v4675_v60 = vmul.f32 %v9961_v48, %v4158_v58  ;;  %v4677_v61 = vmul.f32 %v9964_v49, %v4635_v59  ;;  %v4160_v62 = vpop.f32.mrb[2].mxu0  ;;  %v4637_v63 = vpop.f32.mrb[2].mxu1 }
 0x318   :  { %v4712_v0 = vadd.f32 %v9967_v50, %v4674_v56  ;;  %v4714_v1 = vadd.f32 %v9970_v51, %v4676_v57  ;;  %v4678_v2 = vmul.f32 %v4657_v46, %v4160_v62  ;;  %v4680_v3 = vmul.f32 %v4665_v47, %v4637_v63  ;;  %v4162_v4 = vpop.f32.mrb[3].mxu0  ;;  %v4639_v5 = vpop.f32.mrb[3].mxu1  ;;  %v7782_v56 = vld [vmem:[%s10313_s4 + $0x224] ss:$16 sps:$4 sm:$0xff]  }
 0x319   :  { %v4713_v6 = vadd.f32 %v9973_v54, %v4675_v60  ;;  %v4715_v7 = vadd.f32 %v9976_v55, %v4677_v61  ;;  %v4679_v8 = vmul.f32 %v9961_v48, %v4162_v4  ;;  %v4681_v9 = vmul.f32 %v9964_v49, %v4639_v5  ;;  %v7791_v5 = vld [vmem:[%s10313_s4 + $0x24c] ss:$16 sps:$4 sm:$0xff]  }
 0x31a   :  { %v4716_v10 = vadd.f32 %v9967_v50, %v4678_v2  ;;  %v4718_v11 = vadd.f32 %v9970_v51, %v4680_v3  ;;  %v4728_v14 = vmax.f32 %v4712_v0, 0.0  ;;  %v4730_v15 = vmax.f32 %v4714_v1, 0.0 }
 0x31b   :  { %v4717_v12 = vadd.f32 %v9973_v54, %v4679_v8  ;;  %v4719_v13 = vadd.f32 %v9976_v55, %v4681_v9  ;;  %v4729_v18 = vmax.f32 %v4713_v6, 0.0  ;;  %v4731_v19 = vmax.f32 %v4715_v7, 0.0  ;;  %v7786_v9 = vld [vmem:[%s10313_s4 + $0x240] ss:$16 sps:$4 sm:$0xff]  }
 0x31c   :  { %v4732_v16 = vmax.f32 %v4716_v10, 0.0  ;;  %v4734_v17 = vmax.f32 %v4718_v11, 0.0  ;;  %v7789_v11 = vld [vmem:[%s10313_s4 + $0x248] ss:$16 sps:$4 sm:$0xff]  }
 0x31d   :  { %v4733_v20 = vmax.f32 %v4717_v12, 0.0  ;;  %v4735_v21 = vmax.f32 %v4719_v13, 0.0  ;;  %v4166_v22 = vpop.f32.mrb[4].mxu0  ;;  %v4643_v23 = vpop.f32.mrb[4].mxu1  ;;  %v7794_v12 = vld [vmem:[%s10313_s4 + $0x264] ss:$16 sps:$4 sm:$0xff]  }
 0x31e   :  { %v4744_v24 = vpack.c.bf16 %v4732_v16, %v4728_v14  ;;  %v9990_v25 = vpack.c.bf16 %v4734_v17, %v4730_v15  ;;  %v4682_v26 = vmul.f32 %v4657_v46, %v4166_v22  ;;  %v4684_v27 = vmul.f32 %v4665_v47, %v4643_v23  ;;  %v4168_v28 = vpop.f32.mrb[5].mxu0  ;;  %v4645_v29 = vpop.f32.mrb[5].mxu1  ;;  %v7797_v13 = vld [vmem:[%s10313_s4 + $0x26c] ss:$16 sps:$4 sm:$0xff]   ;;  %v7792_v14 = vld [vmem:[%s10313_s4 + $0x260] ss:$16 sps:$4 sm:$0xff]  }
 0x31f   :  { %v4683_v30 = vmul.f32 %v9961_v48, %v4168_v28  ;;  %v4685_v31 = vmul.f32 %v9964_v49, %v4645_v29  ;;  %v4170_v32 = vpop.f32.mrb[6].mxu0  ;;  %v4647_v33 = vpop.f32.mrb[6].mxu1  ;;  %v4745_v34 = vpack.c.bf16 %v4733_v20, %v4729_v18  ;;  %v4747_v36 = vpack.c.bf16 %v4735_v21, %v4731_v19  ;;  %v7795_v15 = vld [vmem:[%s10313_s4 + $0x268] ss:$16 sps:$4 sm:$0xff]   ;;  %v7800_v16 = vld [vmem:[%s10313_s4 + $0x284] ss:$16 sps:$4 sm:$0xff]  }
 0x320   :  { %v4720_v37 = vadd.f32 %v9967_v50, %v4682_v26  ;;  %v4722_v38 = vadd.f32 %v9970_v51, %v4684_v27  ;;  %v4686_v39 = vmul.f32 %v4657_v46, %v4170_v32  ;;  %v4688_v42 = vmul.f32 %v4665_v47, %v4647_v33  ;;  %v4172_v45 = vpop.f32.mrb[7].mxu0  ;;  %v4649_v52 = vpop.f32.mrb[7].mxu1  ;;  %v7785_v46 = vld [vmem:[%s10313_s4 + $0x22c] ss:$16 sps:$4 sm:$0xff]   ;;  %v7798_v18 = vld [vmem:[%s10313_s4 + $0x280] ss:$16 sps:$4 sm:$0xff]  }
 0x321   :  { %v4721_v57 = vadd.f32 %v9973_v54, %v4683_v30  ;;  %v4723_v58 = vadd.f32 %v9976_v55, %v4685_v31  ;;  %v4687_v59 = vmul.f32 %v9961_v48, %v4172_v45  ;;  %v4689_v60 = vmul.f32 %v9964_v49, %v4649_v52  ;;  %5552 = vmatprep.mubr.bf16.mxu0 %v4745_v34  ;;  %v7780_v48 = vld [vmem:[%s10313_s4 + $0x220] ss:$16 sps:$4 sm:$0xff]   ;;  %v7783_v49 = vld [vmem:[%s10313_s4 + $0x228] ss:$16 sps:$4 sm:$0xff]   ;;  %v7803_v17 = vld [vmem:[%s10313_s4 + $0x28c] ss:$16 sps:$4 sm:$0xff]  }
 0x322   :  { %v4724_v47 = vadd.f32 %v9967_v50, %v4686_v39  ;;  %v4726_v61 = vadd.f32 %v9970_v51, %v4688_v42  ;;  %5658 = vmatprep.mubr.bf16.mxu1 %v4745_v34  ;;  %5553 = vmatmul.mubr.bf16.vlgmr.msra.gmra.mrb[8].mxu0 %v4744_v24  ;;  %v4736_v0 = vmax.f32 %v4720_v37, 0.0  ;;  %v4738_v50 = vmax.f32 %v4722_v38, 0.0  ;;  %v7801_v19 = vld [vmem:[%s10313_s4 + $0x288] ss:$16 sps:$4 sm:$0xff]   ;;  %v7806_v20 = vld [vmem:[%s10313_s4 + $0x2a4] ss:$16 sps:$4 sm:$0xff]  }
 0x323   :  { %v4725_v62 = vadd.f32 %v9973_v54, %v4687_v59  ;;  %v4727_v63 = vadd.f32 %v9976_v55, %v4689_v60  ;;  %5574 = vmatpush1.bf16.msra.mxu0 %v7774_v35  ;;  %5659 = vmatmul.mubr.bf16.vlgmr.msra.gmra.mrb[8].mxu1 %v4744_v24  ;;  %v7788_v54 = vld [vmem:[%s10313_s4 + $0x244] ss:$16 sps:$4 sm:$0xff]   ;;  %v4737_v55 = vmax.f32 %v4721_v57, 0.0  ;;  %v4739_v2 = vmax.f32 %v4723_v58, 0.0  ;;  %v7809_v21 = vld [vmem:[%s10313_s4 + $0x2ac] ss:$16 sps:$4 sm:$0xff]  }
 0x324   :  { %v4740_v1 = vmax.f32 %v4724_v47, 0.0  ;;  %v4742_v51 = vmax.f32 %v4726_v61, 0.0  ;;  %5680 = vmatpush1.bf16.msra.mxu1 %v7777_v53  ;;  %5575 = vmatprep.subr.bf16.mxu0 %v7782_v56  ;;  %v7804_v22 = vld [vmem:[%s10313_s4 + $0x2a0] ss:$16 sps:$4 sm:$0xff]   ;;  %v7807_v23 = vld [vmem:[%s10313_s4 + $0x2a8] ss:$16 sps:$4 sm:$0xff]  }
 0x325   :  { %v4741_v3 = vmax.f32 %v4725_v62, 0.0  ;;  %v4743_v4 = vmax.f32 %v4727_v63, 0.0  ;;  %5681 = vmatprep.subr.bf16.mxu1 %v7785_v46  ;;  %v7812_v24 = vld [vmem:[%s10313_s4 + $0x2c4] ss:$16 sps:$4 sm:$0xff]   ;;  %v7815_v26 = vld [vmem:[%s10313_s4 + $0x2cc] ss:$16 sps:$4 sm:$0xff]  }
 0x326   :  { %v4748_v6 = vpack.c.bf16 %v4740_v1, %v4736_v0  ;;  %v10028_v7 = vpack.c.bf16 %v4742_v51, %v4738_v50  ;;  %v7810_v27 = vld [vmem:[%s10313_s4 + $0x2c0] ss:$16 sps:$4 sm:$0xff]   ;;  %v7813_v28 = vld [vmem:[%s10313_s4 + $0x2c8] ss:$16 sps:$4 sm:$0xff]   ;;  %v7818_v29 = vld [vmem:[%s10313_s4 + $0x2e4] ss:$16 sps:$4 sm:$0xff]  }
 0x327   :  { %5576 = vmatpush1.bf16.msra.mxu0 %v7780_v48  ;;  %v4749_v8 = vpack.c.bf16 %v4741_v3, %v4737_v55  ;;  %v10033_v10 = vpack.c.bf16 %v4743_v4, %v4739_v2  ;;  %v7821_v30 = vld [vmem:[%s10313_s4 + $0x2ec] ss:$16 sps:$4 sm:$0xff]   ;;  %v7816_v31 = vld [vmem:[%s10313_s4 + $0x2e0] ss:$16 sps:$4 sm:$0xff]   ;;  %v7819_v32 = vld [vmem:[%s10313_s4 + $0x2e8] ss:$16 sps:$4 sm:$0xff]  }
 0x328   :  { %5682 = vmatpush1.bf16.msra.mxu1 %v7783_v49  ;;  %5577 = vmatprep.subr.bf16.mxu0 %v7788_v54  ;;  %v7824_v33 = vld [vmem:[%s10313_s4 + $0x304] ss:$16 sps:$4 sm:$0xff]   ;;  %v7827_v34 = vld [vmem:[%s10313_s4 + $0x30c] ss:$16 sps:$4 sm:$0xff]   ;;  %v7822_v35 = vld [vmem:[%s10313_s4 + $0x300] ss:$16 sps:$4 sm:$0xff]  }
 0x329   :  { %5562 = vmatprep.mubr.bf16.mxu0 %v4749_v8  ;;  %5668 = vmatprep.mubr.bf16.mxu1 %v4749_v8  ;;  %v7830_v37 = vld [vmem:[%s10313_s4 + $0x324] ss:$16 sps:$4 sm:$0xff]   ;;  %v7833_v38 = vld [vmem:[%s10313_s4 + $0x32c] ss:$16 sps:$4 sm:$0xff]   ;;  %v7828_v39 = vld [vmem:[%s10313_s4 + $0x320] ss:$16 sps:$4 sm:$0xff]  }
 0x32a   :  { %5683 = vmatprep.subr.bf16.mxu1 %v7791_v5  ;;  %5563 = vmatmul.mubr.bf16.gmra.mrb[12].mxu0 %v4748_v6  ;;  %v7831_v42 = vld [vmem:[%s10313_s4 + $0x328] ss:$16 sps:$4 sm:$0xff]   ;;  %v7836_v45 = vld [vmem:[%s10313_s4 + $0x344] ss:$16 sps:$4 sm:$0xff]   ;;  %v7839_v52 = vld [vmem:[%s10313_s4 + $0x34c] ss:$16 sps:$4 sm:$0xff]  }
 0x32b   :  { %5578 = vmatpush1.bf16.msra.mxu0 %v7786_v9  ;;  %5669 = vmatmul.mubr.bf16.gmra.mrb[12].mxu1 %v4748_v6  ;;  %v7834_v53 = vld [vmem:[%s10313_s4 + $0x340] ss:$16 sps:$4 sm:$0xff]   ;;  %v7837_v56 = vld [vmem:[%s10313_s4 + $0x348] ss:$16 sps:$4 sm:$0xff]   ;;  %v7842_v57 = vld [vmem:[%s10313_s4 + $0x364] ss:$16 sps:$4 sm:$0xff]  }
 0x32c   :  { %5684 = vmatpush1.bf16.msra.mxu1 %v7789_v11  ;;  %5605 = vmatprep.mubr.bf16.mxu0 %v4747_v36  ;;  %v7845_v58 = vld [vmem:[%s10313_s4 + $0x36c] ss:$16 sps:$4 sm:$0xff]   ;;  %v7840_v59 = vld [vmem:[%s10313_s4 + $0x360] ss:$16 sps:$4 sm:$0xff]   ;;  %v7843_v60 = vld [vmem:[%s10313_s4 + $0x368] ss:$16 sps:$4 sm:$0xff]  }
 0x32d   :  { %5711 = vmatprep.mubr.bf16.mxu1 %v4747_v36  ;;  %5579 = vmatprep.subr.bf16.mxu0 %v7794_v12  ;;  %v7825_v36 = vld [vmem:[%s10313_s4 + $0x308] ss:$16 sps:$4 sm:$0xff]   ;;  %v7848_v46 = vld [vmem:[%s10313_s4 + $0x384] ss:$16 sps:$4 sm:$0xff]   ;;  %v7851_v47 = vld [vmem:[%s10313_s4 + $0x38c] ss:$16 sps:$4 sm:$0xff]  }
 0x32e   :  { %5685 = vmatprep.subr.bf16.mxu1 %v7797_v13  ;;  %v7846_v61 = vld [vmem:[%s10313_s4 + $0x380] ss:$16 sps:$4 sm:$0xff]   ;;  %v7849_v62 = vld [vmem:[%s10313_s4 + $0x388] ss:$16 sps:$4 sm:$0xff]   ;;  %v7854_v63 = vld [vmem:[%s10313_s4 + $0x3a4] ss:$16 sps:$4 sm:$0xff]  }
 0x32f   :  { %5580 = vmatpush1.bf16.msra.mxu0 %v7792_v14  ;;  %v7857_v48 = vld [vmem:[%s10313_s4 + $0x3ac] ss:$16 sps:$4 sm:$0xff]   ;;  %v7852_v49 = vld [vmem:[%s10313_s4 + $0x3a0] ss:$16 sps:$4 sm:$0xff]   ;;  %v7855_v0 = vld [vmem:[%s10313_s4 + $0x3a8] ss:$16 sps:$4 sm:$0xff]  }
 0x330   :  { %5686 = vmatpush1.bf16.msra.mxu1 %v7795_v15  ;;  %5581 = vmatprep.subr.bf16.mxu0 %v7800_v16  ;;  %v7860_v50 = vld [vmem:[%s10313_s4 + $0x3c4] ss:$16 sps:$4 sm:$0xff]   ;;  %v7863_v1 = vld [vmem:[%s10313_s4 + $0x3cc] ss:$16 sps:$4 sm:$0xff]   ;;  %v7858_v51 = vld [vmem:[%s10313_s4 + $0x3c0] ss:$16 sps:$4 sm:$0xff]  }
 0x331   :  { %5687 = vmatprep.subr.bf16.mxu1 %v7803_v17  ;;  %v7861_v54 = vld [vmem:[%s10313_s4 + $0x3c8] ss:$16 sps:$4 sm:$0xff]   ;;  %v7866_v55 = vld [vmem:[%s10313_s4 + $0x3e4] ss:$16 sps:$4 sm:$0xff]   ;;  %v7869_v2 = vld [vmem:[%s10313_s4 + $0x3ec] ss:$16 sps:$4 sm:$0xff]  }
 0x332   :  { %v7864_v3 = vld [vmem:[%s10313_s4 + $0x3e0] ss:$16 sps:$4 sm:$0xff]   ;;  %v7867_v4 = vld [vmem:[%s10313_s4 + $0x3e8] ss:$16 sps:$4 sm:$0xff]  }
 0x333   :  { %5582 = vmatpush1.bf16.msra.mxu0 %v7798_v18  ;;  %v5732_v5 = vld [vmem:[%s10316_s5] sm:$0xf] }
 0x334   :  { %5688 = vmatpush1.bf16.msra.mxu1 %v7801_v19  ;;  %5583 = vmatprep.subr.bf16.mxu0 %v7806_v20  ;;  %v5770_v6 = vld [vmem:[%s10317_s6] sm:$0xf]  ;;  %v10207_v8 = vrot.slane %v5732_v5, %v9944_v40  ;;  %v10213_v9 = vrot.slane %v5732_v5, %v9951_v43 }
 0x335   :  { %5689 = vmatprep.subr.bf16.mxu1 %v7809_v21  ;;  %v10222_v12 = vrot.slane %v5770_v6, %v9946_v41  ;;  %v10225_v13 = vrot.slane %v5770_v6, %v9951_v43  ;;  %v10229_v17 = vrot.slane %v5770_v6, %v9953_v44 }
 0x337   :  { %5584 = vmatpush1.bf16.msra.mxu0 %v7804_v22 }
 0x338   :  { %5690 = vmatpush1.bf16.msra.mxu1 %v7807_v23  ;;  %5585 = vmatprep.subr.bf16.mxu0 %v7812_v24 }
 0x339   :  { %5691 = vmatprep.subr.bf16.mxu1 %v7815_v26 }
 0x33b   :  { %5586 = vmatpush1.bf16.msra.mxu0 %v7810_v27 }
 0x33c   :  { %5692 = vmatpush1.bf16.msra.mxu1 %v7813_v28  ;;  %5587 = vmatprep.subr.bf16.mxu0 %v7818_v29 }
 0x33d   :  { %5693 = vmatprep.subr.bf16.mxu1 %v7821_v30 }
 0x33f   :  { %5588 = vmatpush1.bf16.msra.mxu0 %v7816_v31 }
 0x340   :  { %5694 = vmatpush1.bf16.msra.mxu1 %v7819_v32  ;;  %5589 = vmatprep.subr.bf16.mxu0 %v7824_v33 }
 0x341   :  { %5695 = vmatprep.subr.bf16.mxu1 %v7827_v34 }
 0x343   :  { %5590 = vmatpush1.bf16.msra.mxu0 %v7822_v35 }
 0x344   :  { %5696 = vmatpush1.bf16.msra.mxu1 %v7825_v36  ;;  %5591 = vmatprep.subr.bf16.mxu0 %v7830_v37 }
 0x345   :  { %5697 = vmatprep.subr.bf16.mxu1 %v7833_v38 }
 0x347   :  { %5592 = vmatpush1.bf16.msra.mxu0 %v7828_v39 }
 0x348   :  { %5698 = vmatpush1.bf16.msra.mxu1 %v7831_v42  ;;  %5593 = vmatprep.subr.bf16.mxu0 %v7836_v45 }
 0x349   :  { %5699 = vmatprep.subr.bf16.mxu1 %v7839_v52 }
 0x34b   :  { %5594 = vmatpush1.bf16.msra.mxu0 %v7834_v53 }
 0x34c   :  { %5700 = vmatpush1.bf16.msra.mxu1 %v7837_v56  ;;  %5595 = vmatprep.subr.bf16.mxu0 %v7842_v57 }
 0x34d   :  { %5701 = vmatprep.subr.bf16.mxu1 %v7845_v58 }
 0x34f   :  { %5596 = vmatpush1.bf16.msra.mxu0 %v7840_v59 }
 0x350   :  { %5702 = vmatpush1.bf16.msra.mxu1 %v7843_v60  ;;  %5597 = vmatprep.subr.bf16.mxu0 %v7848_v46 }
 0x351   :  { %5703 = vmatprep.subr.bf16.mxu1 %v7851_v47 }
 0x353   :  { %5598 = vmatpush1.bf16.msra.mxu0 %v7846_v61 }
 0x354   :  { %5704 = vmatpush1.bf16.msra.mxu1 %v7849_v62  ;;  %5599 = vmatprep.subr.bf16.mxu0 %v7854_v63 }
 0x355   :  { %5705 = vmatprep.subr.bf16.mxu1 %v7857_v48 }
 0x357   :  { %5600 = vmatpush1.bf16.msra.mxu0 %v7852_v49 }
 0x358   :  { %5706 = vmatpush1.bf16.msra.mxu1 %v7855_v0  ;;  %5601 = vmatprep.subr.bf16.mxu0 %v7860_v50 }
 0x359   :  { %5707 = vmatprep.subr.bf16.mxu1 %v7863_v1 }
 0x35b   :  { %5602 = vmatpush1.bf16.msra.mxu0 %v7858_v51 }
 0x35c   :  { %5708 = vmatpush1.bf16.msra.mxu1 %v7861_v54  ;;  %5603 = vmatprep.subr.bf16.mxu0 %v7866_v55 }
 0x35d   :  { %5709 = vmatprep.subr.bf16.mxu1 %v7869_v2 }
 0x35f   :  { %5604 = vmatpush1.bf16.msra.mxu0 %v7864_v3 }
 0x360   :  { %5710 = vmatpush1.bf16.msra.mxu1 %v7867_v4 }
 0x362   :  { %5606 = vmatmul.mubr.bf16.vlgmr.msra.gmra.mrb[8].mxu0 %v9990_v25 }
 0x363   :  { %5712 = vmatmul.mubr.bf16.vlgmr.msra.gmra.mrb[8].mxu1 %v9990_v25  ;;  %5615 = vmatprep.mubr.bf16.mxu0 %v10033_v10  ;;  %v10210_v25 = vrot.slane %v5732_v5, %v9946_v41 }
 0x364   :  { %5721 = vmatprep.mubr.bf16.mxu1 %v10033_v10  ;;  %v10216_v10 = vrot.slane %v5770_v6, %v9944_v40 }
 0x36a   :  { %5616 = vmatmul.mubr.bf16.gmra.mrb[12].mxu0 %v10028_v7 }
 0x36b   :  { %5722 = vmatmul.mubr.bf16.gmra.mrb[12].mxu1 %v10028_v7  ;;  %v10219_v7 = vrot.slane %v5732_v5, %v9953_v44 }
 0x435   :  { %v5607_v11 = vpop.f32.mrb[8].mxu0 }
 0x436   :  { %v5754_v14 = vmul.f32 %v10207_v8, %v5607_v11  ;;  %v5713_v15 = vpop.f32.mrb[8].mxu1  ;;  %v5609_v16 = vpop.f32.mrb[9].mxu0 }
 0x437   :  { %v5756_v40 = vmul.f32 %v10210_v25, %v5713_v15  ;;  %v5755_v18 = vmul.f32 %v10213_v9, %v5609_v16  ;;  %v5715_v19 = vpop.f32.mrb[9].mxu1  ;;  %v5611_v20 = vpop.f32.mrb[10].mxu0 }
 0x438   :  { %v5792_v21 = vadd.f32 %v10216_v10, %v5754_v14  ;;  %v5757_v41 = vmul.f32 %v10219_v7, %v5715_v19  ;;  %v5758_v43 = vmul.f32 %v10207_v8, %v5611_v20  ;;  %v5717_v22 = vpop.f32.mrb[10].mxu1  ;;  %v5613_v23 = vpop.f32.mrb[11].mxu0 }
 0x439   :  { %v5794_v24 = vadd.f32 %v10222_v12, %v5756_v40  ;;  %v5793_v26 = vadd.f32 %v10225_v13, %v5755_v18  ;;  %v5760_v44 = vmul.f32 %v10210_v25, %v5717_v22  ;;  %v5759_v27 = vmul.f32 %v10213_v9, %v5613_v23  ;;  %v5719_v28 = vpop.f32.mrb[11].mxu1 }
 0x43a   :  { %vm5808_vm0 = vcmp.ge.f32.partialorder %v5792_v21, 0.0  ;;  %v5824_v29 = vmul.f32 0.2, %v5792_v21  ;;  %v5795_v30 = vadd.f32 %v10229_v17, %v5757_v41  ;;  %v5796_v31 = vadd.f32 %v10216_v10, %v5758_v43 }
 0x43b   :  { %vm5810_vm1 = vcmp.ge.f32.partialorder %v5794_v24, 0.0  ;;  %v5826_v32 = vmul.f32 0.2, %v5794_v24  ;;  %vm5809_vm2 = vcmp.ge.f32.partialorder %v5793_v26, 0.0  ;;  %v5825_v33 = vmul.f32 0.2, %v5793_v26 }
 0x43c   :  { %v5840_v34 = vsel %vm5808_vm0, %v5792_v21, %v5824_v29  ;;  %vm5811_vm3 = vcmp.ge.f32.partialorder %v5795_v30, 0.0  ;;  %v5827_v35 = vmul.f32 0.2, %v5795_v30  ;;  %vm5812_vm4 = vcmp.ge.f32.partialorder %v5796_v31, 0.0 }
 0x43d   :  { %5856 = vst [vmem:[%s10318_s7] sm:$0xff] %v5840_v34  ;;  %v5842_v36 = vsel %vm5810_vm1, %v5794_v24, %v5826_v32  ;;  %v5841_v37 = vsel %vm5809_vm2, %v5793_v26, %v5825_v33  ;;  %v5828_v38 = vmul.f32 0.2, %v5796_v31  ;;  %v5798_v39 = vadd.f32 %v10222_v12, %v5760_v44  ;;  %v5617_v42 = vpop.f32.mrb[12].mxu0 }
 0x43e   :  { %5858 = vst [vmem:[%s10318_s7 + $0x10] sm:$0xff] %v5842_v36  ;;  %5857 = vst [vmem:[%s10318_s7 + $0x8] sm:$0xff] %v5841_v37  ;;  %v5843_v45 = vsel %vm5811_vm3, %v5795_v30, %v5827_v35  ;;  %v5797_v52 = vadd.f32 %v10225_v13, %v5759_v27  ;;  %v5761_v53 = vmul.f32 %v10219_v7, %v5719_v28  ;;  %v5723_v57 = vpop.f32.mrb[12].mxu1  ;;  %v5619_v58 = vpop.f32.mrb[13].mxu0 }
 0x43f   :  { %v5762_v56 = vmul.f32 %v10207_v8, %v5617_v42  ;;  %5859 = vst [vmem:[%s10318_s7 + $0x18] sm:$0xff] %v5843_v45  ;;  %v5844_v59 = vsel %vm5812_vm4, %v5796_v31, %v5828_v38  ;;  %vm5814_vm5 = vcmp.ge.f32.partialorder %v5798_v39, 0.0  ;;  %v5830_v60 = vmul.f32 0.2, %v5798_v39  ;;  %v5725_v47 = vpop.f32.mrb[13].mxu1  ;;  %v5621_v61 = vpop.f32.mrb[14].mxu0 }
 0x440   :  { %v5764_v46 = vmul.f32 %v10210_v25, %v5723_v57  ;;  %5860 = vst [vmem:[%s10318_s7 + $0x20] sm:$0xff] %v5844_v59  ;;  %vm5813_vm6 = vcmp.ge.f32.partialorder %v5797_v52, 0.0  ;;  %v5829_v62 = vmul.f32 0.2, %v5797_v52  ;;  %v5799_v63 = vadd.f32 %v10229_v17, %v5761_v53  ;;  %v5727_v49 = vpop.f32.mrb[14].mxu1  ;;  %v5623_v0 = vpop.f32.mrb[15].mxu0 }
 0x441   :  { %v5800_v48 = vadd.f32 %v10216_v10, %v5762_v56  ;;  %v5846_v50 = vsel %vm5814_vm5, %v5798_v39, %v5830_v60  ;;  %v5763_v51 = vmul.f32 %v10213_v9, %v5619_v58  ;;  %v5765_v54 = vmul.f32 %v10219_v7, %v5725_v47  ;;  %v5729_v55 = vpop.f32.mrb[15].mxu1 }
 0x442   :  { %v5802_v1 = vadd.f32 %v10222_v12, %v5764_v46  ;;  %5862 = vst [vmem:[%s10318_s7 + $0x30] sm:$0xff] %v5846_v50  ;;  %v5845_v2 = vsel %vm5813_vm6, %v5797_v52, %v5829_v62  ;;  %vm5815_vm7 = vcmp.ge.f32.partialorder %v5799_v63, 0.0  ;;  %v5831_v3 = vmul.f32 0.2, %v5799_v63 }
 0x443   :  { %vm5816_vm8 = vcmp.ge.f32.partialorder %v5800_v48, 0.0  ;;  %5861 = vst [vmem:[%s10318_s7 + $0x28] sm:$0xff] %v5845_v2  ;;  %v5832_v4 = vmul.f32 0.2, %v5800_v48  ;;  %v5801_v6 = vadd.f32 %v10225_v13, %v5763_v51  ;;  %v5803_v14 = vadd.f32 %v10229_v17, %v5765_v54 }
 0x444   :  { %vm5818_vm9 = vcmp.ge.f32.partialorder %v5802_v1, 0.0  ;;  %v5834_v5 = vmul.f32 0.2, %v5802_v1  ;;  %v5847_v11 = vsel %vm5815_vm7, %v5799_v63, %v5831_v3  ;;  %v5766_v15 = vmul.f32 %v10207_v8, %v5621_v61 }
 0x445   :  { %v5768_v16 = vmul.f32 %v10210_v25, %v5727_v49  ;;  %5863 = vst [vmem:[%s10318_s7 + $0x38] sm:$0xff] %v5847_v11  ;;  %v5848_v40 = vsel %vm5816_vm8, %v5800_v48, %v5832_v4  ;;  %vm5817_vm10 = vcmp.ge.f32.partialorder %v5801_v6, 0.0  ;;  %v5833_v19 = vmul.f32 0.2, %v5801_v6 }
 0x446   :  { %v5850_v18 = vsel %vm5818_vm9, %v5802_v1, %v5834_v5  ;;  %5864 = vst [vmem:[%s10318_s7 + $0x40] sm:$0xff] %v5848_v40  ;;  %vm5819_vm11 = vcmp.ge.f32.partialorder %v5803_v14, 0.0  ;;  %v5835_v8 = vmul.f32 0.2, %v5803_v14  ;;  %v5804_v25 = vadd.f32 %v10216_v10, %v5766_v15 }
 0x447   :  { %5866 = vst [vmem:[%s10318_s7 + $0x50] sm:$0xff] %v5850_v18  ;;  %v5806_v20 = vadd.f32 %v10222_v12, %v5768_v16  ;;  %v5849_v21 = vsel %vm5817_vm10, %v5801_v6, %v5833_v19  ;;  %v5767_v41 = vmul.f32 %v10213_v9, %v5623_v0  ;;  %v5769_v43 = vmul.f32 %v10219_v7, %v5729_v55 }
 0x448   :  { %5865 = vst [vmem:[%s10318_s7 + $0x48] sm:$0xff] %v5849_v21  ;;  %v5851_v22 = vsel %vm5819_vm11, %v5803_v14, %v5835_v8  ;;  %vm5820_vm12 = vcmp.ge.f32.partialorder %v5804_v25, 0.0  ;;  %v5836_v23 = vmul.f32 0.2, %v5804_v25 }
 0x449   :  { %vm5822_vm13 = vcmp.ge.f32.partialorder %v5806_v20, 0.0  ;;  %5867 = vst [vmem:[%s10318_s7 + $0x58] sm:$0xff] %v5851_v22  ;;  %v5838_v10 = vmul.f32 0.2, %v5806_v20  ;;  %v5805_v12 = vadd.f32 %v10225_v13, %v5767_v41  ;;  %v5807_v24 = vadd.f32 %v10229_v17, %v5769_v43 }
 0x44a   :  { %v5852_v9 = vsel %vm5820_vm12, %v5804_v25, %v5836_v23 }
 0x44b   :  { %5868 = vst [vmem:[%s10318_s7 + $0x60] sm:$0xff] %v5852_v9  ;;  %v5854_v7 = vsel %vm5822_vm13, %v5806_v20, %v5838_v10  ;;  %vm5821_vm14 = vcmp.ge.f32.partialorder %v5805_v12, 0.0  ;;  %v5837_v26 = vmul.f32 0.2, %v5805_v12  ;;  %vm5823_vm15 = vcmp.ge.f32.partialorder %v5807_v24, 0.0 }
 0x44c   :  { %5870 = vst [vmem:[%s10318_s7 + $0x70] sm:$0xff] %v5854_v7  ;;  %v5839_v44 = vmul.f32 0.2, %v5807_v24 }
 0x44d   :  { %v5853_v27 = vsel %vm5821_vm14, %v5805_v12, %v5837_v26 }
 0x44e   :  { %5869 = vst [vmem:[%s10318_s7 + $0x68] sm:$0xff] %v5853_v27  ;;  %v5855_v13 = vsel %vm5823_vm15, %v5807_v24, %v5839_v44 }
 0x44f   :  { %5871 = vst [vmem:[%s10318_s7 + $0x78] sm:$0xff] %v5855_v13 }

</bundles_post_ra>
